<compile_context>
chip_gen: v7x
topology: tpu7x:2x2x1
jax: 0.10.0
libtpu: 0.0.40
codegen_flags: <defaults>
</compile_context>

<pallas_src>
import functools

import jax
import jax.numpy as jnp
from jax import lax
from jax.experimental import pallas as pl
from jax.experimental.pallas import tpu as pltpu

KSIZE = 4
STRIDE = 2
BN_EPS = 1e-5
N_CONV = 9
C_OUT = 128          # 64 real + 64 imag output channels, concatenated
EMB = 1024


def _round_up(x, m):
    return ((x + m - 1) // m) * m


def conv_out_len(L):
    return (L - KSIZE) // STRIDE + 1


def _plan(in_len):
    """Static per-layer output lengths and 8-aligned padded tile sizes."""
    lens = []
    L = in_len
    for _ in range(N_CONV):
        L = conv_out_len(L)
        lens.append(L)
    assert lens[-1] >= 1, "input length too short for 9 stride-2 convs (need >= 1534)"
    out_pads = [_round_up(l, 8) for l in lens[1:]]            # conv layers 2..9
    l1_need = max(lens[0], 2 * out_pads[0] + KSIZE)           # layer-1 act rows the wrapper windows
    maxr = _round_up(max([out_pads[0]] + [2 * p + 2 for p in out_pads[1:]]), 8)
    return lens, out_pads, l1_need, maxr


def bn_scale_shift(gamma, beta, mean, var):
    scale = gamma / jnp.sqrt(var + BN_EPS)
    shift = beta - mean * scale
    return scale, shift


def _complex_block_weight(W_re, W_im):
    """(OC, IC, K) complex parts -> real block conv weight (2*OC, 2*IC, K)."""
    top = jnp.concatenate([W_re, -W_im], axis=1)
    bot = jnp.concatenate([W_im, W_re], axis=1)
    return jnp.concatenate([top, bot], axis=0)


def _complex_bias(b_re, b_im):
    # TODO(synk): ComplexConv class body is not in the spec; bias combination is
    # kept consistent with ref_forward below.
    return jnp.concatenate([b_re - b_im, b_re + b_im])


# ----------------------------------------------------------------------------
# Parameter preparation (runs once, outside the jitted forward)
# ----------------------------------------------------------------------------
def prepare_params(params, in_len):
    """Fold complex convs into real weights, concatenate the 4 taps along the
    contraction axis, fold eval-mode BN of layer i into layer i+1 (BN9 into the
    linear), permute W_lin to the kernel's time-major flatten, cast to bf16."""
    layers = params["layers"]
    lens, _, _, _ = _plan(in_len)
    L_last = lens[-1]

    # --- layer 1: full conv weight, used by the XLA wrapper ------------------
    lp = layers[0]
    W1 = _complex_block_weight(lp["W_re"], lp["W_im"])              # (128, 2, 4)
    b1 = _complex_bias(lp["b_re"], lp["b_im"])                      # (128,)
    prev_scale, prev_shift = bn_scale_shift(
        lp["gamma"], lp["beta"], lp["mean"], lp["var"])

    # --- layers 2..9: one (512, 128) matrix per layer, previous BN folded ----
    taps, biases = [], []
    for lp in layers[1:]:
        Wf = _complex_block_weight(lp["W_re"], lp["W_im"])          # (128, 128, 4)
        W_tap = jnp.transpose(Wf, (2, 1, 0))                        # (K, Cin, Cout)
        b = _complex_bias(lp["b_re"], lp["b_im"])
        b_eff = b + jnp.einsum("c,kco->o", prev_shift, W_tap)
        W_eff = W_tap * prev_scale[None, :, None]
        taps.append(W_eff.reshape(KSIZE * C_OUT, C_OUT))            # rows ordered (k, c)
        biases.append(b_eff.reshape(1, C_OUT))
        prev_scale, prev_shift = bn_scale_shift(
            lp["gamma"], lp["beta"], lp["mean"], lp["var"])

    W_taps = jnp.stack(taps, axis=0)                                # (8, 512, 128)
    b_taps = jnp.stack(biases, axis=0)                              # (8, 1, 128)

    # --- final linear: fold BN9, permute to time-major flatten, fuse flatten --
    Wl = params["W_lin"].reshape(EMB, C_OUT, L_last)                # (o, c, t)
    Wl = jnp.transpose(Wl, (2, 1, 0))                               # (t, c, o)
    b_lin = params["b_lin"] + jnp.einsum("c,tco->o", prev_shift, Wl)
    W_lin = (Wl * prev_scale[None, :, None]).reshape(L_last * C_OUT, EMB)

    return {
        "W1": W1.astype(jnp.float32),
        "b1": b1.astype(jnp.float32),
        "W_taps": W_taps.astype(jnp.bfloat16),
        "b_taps": b_taps.astype(jnp.float32),
        "W_lin": W_lin.astype(jnp.bfloat16),
        "b_lin": b_lin.reshape(1, EMB).astype(jnp.float32),
    }


# ----------------------------------------------------------------------------
# Fused Pallas kernel: conv layers 2..9 + flatten + linear + relu
# ----------------------------------------------------------------------------
def _make_kernel(lens, out_pads, maxr, Bt):
    n_layers = N_CONV - 1        # conv layers 2..9 run in-kernel
    L_last = lens[-1]
    last_pad = out_pads[-1]
    L2_pad = out_pads[0]

    def kernel(x2_ref, wt_ref, bt_ref, wl_ref, bl_ref, out_ref, buf_a, buf_b):
        bufs = (buf_a, buf_b)

        # ---- conv layer 2: operand pre-windowed by the wrapper (no gather) ---
        op = x2_ref[...].reshape(Bt * L2_pad, KSIZE * C_OUT)         # bf16
        a = jnp.maximum(
            jnp.dot(op, wt_ref[0], preferred_element_type=jnp.float32) + bt_ref[0],
            0.0)
        for b in range(Bt):
            buf_a[b * maxr:b * maxr + L2_pad, :] = a[b * L2_pad:(b + 1) * L2_pad, :]
        src_idx = 0

        # ---- conv layers 3..9: one K=512 bf16 MXU dot per layer --------------
        for i in range(1, n_layers):
            l_pad = out_pads[i]
            src = bufs[src_idx]
            rows = []
            for b in range(Bt):
                base = b * maxr
                taps = [src[pl.ds(base + k, l_pad, STRIDE), :].astype(jnp.bfloat16)
                        for k in range(KSIZE)]
                rows.append(jnp.concatenate(taps, axis=-1))          # (l_pad, 512)
            op = rows[0] if Bt == 1 else jnp.concatenate(rows, axis=0)
            a = jnp.maximum(
                jnp.dot(op, wt_ref[i], preferred_element_type=jnp.float32) + bt_ref[i],
                0.0)
            if i < n_layers - 1:
                dst = bufs[1 - src_idx]
                for b in range(Bt):
                    dst[b * maxr:b * maxr + l_pad, :] = a[b * l_pad:(b + 1) * l_pad, :]
                src_idx = 1 - src_idx

        # ---- flatten (valid rows, time-major) + linear + relu -----------------
        a9 = a.reshape(Bt, last_pad, C_OUT)[:, 0:L_last, :]
        flat = a9.reshape(Bt, L_last * C_OUT).astype(jnp.bfloat16)
        y = jnp.dot(flat, wl_ref[...], preferred_element_type=jnp.float32) + bl_ref[...]
        out_ref[...] = jnp.maximum(y, 0.0).reshape(1, Bt, EMB)

    return kernel


@jax.jit
def encoder_forward(x, kp):
    B, two, L = x.shape
    assert two == 2
    lens, out_pads, l1_need, maxr = _plan(L)
    L_last = lens[-1]
    L2_pad = out_pads[0]

    # batch block size: keep >= 2 grid steps when possible (v7x megacore), cap 8
    if B >= 16:
        Bt = 8
    elif B >= 2:
        Bt = max(1, B // 2)
    else:
        Bt = 1
    nsteps = -(-B // Bt)
    B_pad = nsteps * Bt

    # ---- layer 1 (ComplexConv + ReLU) and its stride-2 im2col, in XLA --------
    a1 = lax.conv_general_dilated(
        x, kp["W1"], window_strides=(STRIDE,), padding="VALID",
        dimension_numbers=("NCH", "OIH", "NCH"))                     # (B, 128, L1)
    a1 = jnp.maximum(a1 + kp["b1"][None, :, None], 0.0)
    a1 = jnp.transpose(a1, (0, 2, 1))                                # (B, L1, 128)
    a1 = jnp.pad(a1, ((0, B_pad - B), (0, l1_need - lens[0]), (0, 0)))
    taps = [lax.slice(a1, (0, k, 0), (B_pad, k + 2 * L2_pad, C_OUT), (1, STRIDE, 1))
            for k in range(KSIZE)]
    x2 = jnp.concatenate(taps, axis=-1).astype(jnp.bfloat16)         # (B_pad, L2_pad, 512)

    kernel = _make_kernel(lens, out_pads, maxr, Bt)
    out = pl.pallas_call(
        kernel,
        out_shape=jax.ShapeDtypeStruct((nsteps, Bt, EMB), jnp.float32),
        grid_spec=pltpu.PrefetchScalarGridSpec(
            num_scalar_prefetch=0,
            grid=(nsteps,),
            in_specs=[
                pl.BlockSpec((Bt, L2_pad, KSIZE * C_OUT), lambda b: (b, 0, 0)),
                # Grid-invariant weights (constant index maps).  Not Buffered(1):
                # total weight VMEM is ~1.5 MiB, so double buffering is harmless.
                pl.BlockSpec((N_CONV - 1, KSIZE * C_OUT, C_OUT), lambda b: (0, 0, 0)),
                pl.BlockSpec((N_CONV - 1, 1, C_OUT), lambda b: (0, 0, 0)),
                pl.BlockSpec((L_last * C_OUT, EMB), lambda b: (0, 0)),
                pl.BlockSpec((1, EMB), lambda b: (0, 0)),
            ],
            out_specs=pl.BlockSpec((1, Bt, EMB), lambda b: (b, 0, 0)),
            scratch_shapes=[
                pltpu.VMEM((Bt * maxr, C_OUT), jnp.float32),   # activation ping
                pltpu.VMEM((Bt * maxr, C_OUT), jnp.float32),   # activation pong
            ],
        ),
        compiler_params=pltpu.CompilerParams(
            dimension_semantics=("parallel",),        # shard grid steps across TCs
            vmem_limit_bytes=48 * 1024 * 1024,
        ),
    )(x2, kp["W_taps"], kp["b_taps"], kp["W_lin"], kp["b_lin"])
    return out.reshape(B_pad, EMB)[:B]


# ----------------------------------------------------------------------------
# Random parameter init (PyTorch-like uniform fan-in init)
# ----------------------------------------------------------------------------
def init_params(key, in_len):
    layer_in_ch = [1] + [64] * (N_CONV - 1)
    params = {"layers": []}
    L = in_len
    for ic in layer_in_ch:
        oc = 64
        key, *ks = jax.random.split(key, 9)
        bound = 1.0 / float(ic * KSIZE) ** 0.5
        lp = {
            "W_re": jax.random.uniform(ks[0], (oc, ic, KSIZE), jnp.float32, -bound, bound),
            "W_im": jax.random.uniform(ks[1], (oc, ic, KSIZE), jnp.float32, -bound, bound),
            "b_re": jax.random.uniform(ks[2], (oc,), jnp.float32, -bound, bound),
            "b_im": jax.random.uniform(ks[3], (oc,), jnp.float32, -bound, bound),
            "gamma": jax.random.uniform(ks[4], (C_OUT,), jnp.float32, 0.8, 1.2),
            "beta": jax.random.uniform(ks[5], (C_OUT,), jnp.float32, -0.1, 0.1),
            "mean": jax.random.uniform(ks[6], (C_OUT,), jnp.float32, -0.1, 0.1),
            "var": jax.random.uniform(ks[7], (C_OUT,), jnp.float32, 0.5, 1.5),
        }
        params["layers"].append(lp)
        L = conv_out_len(L)
    flat_dim = C_OUT * L
    key, k1, k2 = jax.random.split(key, 3)
    lb = 1.0 / float(flat_dim) ** 0.5
    params["W_lin"] = jax.random.uniform(k1, (EMB, flat_dim), jnp.float32, -lb, lb)
    params["b_lin"] = jax.random.uniform(k2, (EMB,), jnp.float32, -lb, lb)
    return params


# ----------------------------------------------------------------------------
# Pure-JAX reference (lax.conv, NCL layout, explicit BN affine) for sanity check
# ----------------------------------------------------------------------------
@jax.jit
def ref_forward(x, params):
    conv = functools.partial(
        lax.conv_general_dilated,
        window_strides=(STRIDE,),
        padding="VALID",
        dimension_numbers=("NCH", "OIH", "NCH"),
    )
    for lp in params["layers"]:
        ic = lp["W_re"].shape[1]
        xr, xi = x[:, :ic], x[:, ic:]
        real = conv(xr, lp["W_re"]) - conv(xi, lp["W_im"]) + (lp["b_re"] - lp["b_im"])[None, :, None]
        imag = conv(xi, lp["W_re"]) + conv(xr, lp["W_im"]) + (lp["b_re"] + lp["b_im"])[None, :, None]
        y = jnp.concatenate([real, imag], axis=1)
        y = jnp.maximum(y, 0.0)
        scale, shift = bn_scale_shift(lp["gamma"], lp["beta"], lp["mean"], lp["var"])
        x = y * scale[None, :, None] + shift[None, :, None]
    x = x.reshape(x.shape[0], -1)                      # channel-major flatten (PyTorch)
    x = jnp.dot(x, params["W_lin"].T) + params["b_lin"]
    return jnp.maximum(x, 0.0)


if __name__ == "__main__":
    B, L = 4, 2048  # L must be >= 1534 to survive nine stride-2, k=4 VALID convs
    key = jax.random.PRNGKey(0)
    key_x, key_p = jax.random.split(key)
    x = jax.random.normal(key_x, (B, 2, L), dtype=jnp.float32)   # (batch, [re, im], time)
    params = init_params(key_p, L)
    kparams = prepare_params(params, L)                          # one-time folding/cast

    out = jax.block_until_ready(encoder_forward(x, kparams))
    assert out.shape == (B, EMB), out.shape

    ref = jax.block_until_ready(ref_forward(x, params))
    max_err = float(jnp.max(jnp.abs(out - ref)))
    assert jnp.allclose(out, ref, rtol=5e-2, atol=5e-2), max_err
    print("KERNEL_OK")
</pallas_src>

<mosaic_0001>
module attributes {stable_mosaic.version = 11 : i64} {
  func.func @kernel(%arg0: i32, %arg1: memref<2x512x512xbf16, #tpu.memory_space<vmem>>, %arg2: memref<8x512x128xbf16, #tpu.memory_space<vmem>>, %arg3: memref<8x1x128xf32, #tpu.memory_space<vmem>>, %arg4: memref<256x1024xbf16, #tpu.memory_space<vmem>>, %arg5: memref<1x1024xf32, #tpu.memory_space<vmem>>, %arg6: memref<1x2x1024xf32, #tpu.memory_space<vmem>>, %arg7: memref<1040x128xf32, #tpu.memory_space<vmem>>, %arg8: memref<1040x128xf32, #tpu.memory_space<vmem>>) attributes {dimension_semantics = [#tpu.dimension_semantics<parallel>], iteration_bounds = array<i64: 2>, scalar_prefetch = 0 : i64, scratch_operands = 2 : i64, tpu.core_type = #tpu.core_type<tc>, window_params = [{transform_indices = @transform_0, window_bounds = array<i64: 2, 512, 512>}, {pipeline_mode = #tpu.pipeline_mode<synchronous>, transform_indices = @transform_1, window_bounds = array<i64: 8, 512, 128>}, {pipeline_mode = #tpu.pipeline_mode<synchronous>, transform_indices = @transform_2, window_bounds = array<i64: 8, 1, 128>}, {pipeline_mode = #tpu.pipeline_mode<synchronous>, transform_indices = @transform_3, window_bounds = array<i64: 256, 1024>}, {pipeline_mode = #tpu.pipeline_mode<synchronous>, transform_indices = @transform_4, window_bounds = array<i64: 1, 1024>}, {transform_indices = @transform_5, window_bounds = array<i64: 1, 2, 1024>}]} {
    %c0 = arith.constant 0 : index
    %c0_0 = arith.constant 0 : index
    %c0_1 = arith.constant 0 : index
    %0 = vector.load %arg1[%c0, %c0_0, %c0_1] : memref<2x512x512xbf16, #tpu.memory_space<vmem>>, vector<2x512x512xbf16>
    %1 = vector.shape_cast %0 : vector<2x512x512xbf16> to vector<1024x512xbf16>
    %c0_2 = arith.constant 0 : index
    %c0_3 = arith.constant 0 : index
    %c0_4 = arith.constant 0 : index
    %2 = vector.load %arg2[%c0_2, %c0_3, %c0_4] : memref<8x512x128xbf16, #tpu.memory_space<vmem>>, vector<1x512x128xbf16>
    %3 = vector.shape_cast %2 : vector<1x512x128xbf16> to vector<512x128xbf16>
    %cst = arith.constant dense<0.000000e+00> : vector<1024x128xf32>
    %4 = tpu.matmul %1, %3, %cst {dimension_numbers = #tpu.dot_dimension_numbers<[1], [0], [0], [1], [0, 0, 1, 1], [], []>} : vector<1024x512xbf16>, vector<512x128xbf16>, vector<1024x128xf32> -> vector<1024x128xf32>
    %c0_5 = arith.constant 0 : index
    %c0_6 = arith.constant 0 : index
    %c0_7 = arith.constant 0 : index
    %5 = vector.load %arg3[%c0_5, %c0_6, %c0_7] : memref<8x1x128xf32, #tpu.memory_space<vmem>>, vector<1x1x128xf32>
    %6 = vector.shape_cast %5 : vector<1x1x128xf32> to vector<1x128xf32>
    %7 = vector.broadcast %6 : vector<1x128xf32> to vector<1024x128xf32>
    %8 = arith.addf %4, %7 : vector<1024x128xf32>
    %cst_8 = arith.constant 0.000000e+00 : f32
    %9 = vector.broadcast %cst_8 : f32 to vector<1024x128xf32>
    %10 = arith.maximumf %8, %9 : vector<1024x128xf32>
    %11 = vector.extract_strided_slice %10 {offsets = [0, 0], sizes = [512, 128], strides = [1, 1]} : vector<1024x128xf32> to vector<512x128xf32>
    %c0_9 = arith.constant 0 : index
    %c0_10 = arith.constant 0 : index
    %12 = vector.load %arg7[%c0_9, %c0_10] : memref<1040x128xf32, #tpu.memory_space<vmem>>, vector<512x128xf32>
    tpu.vector_store %arg7[%c0_9, %c0_10], %11 {strides = array<i32>} : memref<1040x128xf32, #tpu.memory_space<vmem>>, vector<512x128xf32>,
    %13 = vector.extract_strided_slice %10 {offsets = [512, 0], sizes = [512, 128], strides = [1, 1]} : vector<1024x128xf32> to vector<512x128xf32>
    %c520 = arith.constant 520 : index
    %c0_11 = arith.constant 0 : index
    %14 = vector.load %arg7[%c520, %c0_11] : memref<1040x128xf32, #tpu.memory_space<vmem>>, vector<512x128xf32>
    tpu.vector_store %arg7[%c520, %c0_11], %13 {strides = array<i32>} : memref<1040x128xf32, #tpu.memory_space<vmem>>, vector<512x128xf32>,
    %c0_12 = arith.constant 0 : index
    %c0_13 = arith.constant 0 : index
    %15 = tpu.strided_load %arg7[%c0_12, %c0_13] {strides = array<i32: 2, 1>} : memref<1040x128xf32, #tpu.memory_space<vmem>>, vector<256x128xf32>
    %16 = arith.truncf %15 : vector<256x128xf32> to vector<256x128xbf16>
    %c1 = arith.constant 1 : index
    %c0_14 = arith.constant 0 : index
    %17 = tpu.strided_load %arg7[%c1, %c0_14] {strides = array<i32: 2, 1>} : memref<1040x128xf32, #tpu.memory_space<vmem>>, vector<256x128xf32>
    %18 = arith.truncf %17 : vector<256x128xf32> to vector<256x128xbf16>
    %c2 = arith.constant 2 : index
    %c0_15 = arith.constant 0 : index
    %19 = tpu.strided_load %arg7[%c2, %c0_15] {strides = array<i32: 2, 1>} : memref<1040x128xf32, #tpu.memory_space<vmem>>, vector<256x128xf32>
    %20 = arith.truncf %19 : vector<256x128xf32> to vector<256x128xbf16>
    %c3 = arith.constant 3 : index
    %c0_16 = arith.constant 0 : index
    %21 = tpu.strided_load %arg7[%c3, %c0_16] {strides = array<i32: 2, 1>} : memref<1040x128xf32, #tpu.memory_space<vmem>>, vector<256x128xf32>
    %22 = arith.truncf %21 : vector<256x128xf32> to vector<256x128xbf16>
    %23 = tpu.concatenate %16, %18, %20, %22 in 1 : vector<256x128xbf16>, vector<256x128xbf16>, vector<256x128xbf16>, vector<256x128xbf16> -> vector<256x512xbf16>
    %c520_17 = arith.constant 520 : index
    %c0_18 = arith.constant 0 : index
    %24 = tpu.strided_load %arg7[%c520_17, %c0_18] {strides = array<i32: 2, 1>} : memref<1040x128xf32, #tpu.memory_space<vmem>>, vector<256x128xf32>
    %25 = arith.truncf %24 : vector<256x128xf32> to vector<256x128xbf16>
    %c521 = arith.constant 521 : index
    %c0_19 = arith.constant 0 : index
    %26 = tpu.strided_load %arg7[%c521, %c0_19] {strides = array<i32: 2, 1>} : memref<1040x128xf32, #tpu.memory_space<vmem>>, vector<256x128xf32>
    %27 = arith.truncf %26 : vector<256x128xf32> to vector<256x128xbf16>
    %c522 = arith.constant 522 : index
    %c0_20 = arith.constant 0 : index
    %28 = tpu.strided_load %arg7[%c522, %c0_20] {strides = array<i32: 2, 1>} : memref<1040x128xf32, #tpu.memory_space<vmem>>, vector<256x128xf32>
    %29 = arith.truncf %28 : vector<256x128xf32> to vector<256x128xbf16>
    %c523 = arith.constant 523 : index
    %c0_21 = arith.constant 0 : index
    %30 = tpu.strided_load %arg7[%c523, %c0_21] {strides = array<i32: 2, 1>} : memref<1040x128xf32, #tpu.memory_space<vmem>>, vector<256x128xf32>
    %31 = arith.truncf %30 : vector<256x128xf32> to vector<256x128xbf16>
    %32 = tpu.concatenate %25, %27, %29, %31 in 1 : vector<256x128xbf16>, vector<256x128xbf16>, vector<256x128xbf16>, vector<256x128xbf16> -> vector<256x512xbf16>
    %33 = tpu.concatenate %23, %32 in 0 : vector<256x512xbf16>, vector<256x512xbf16> -> vector<512x512xbf16>
    %c1_22 = arith.constant 1 : index
    %c0_23 = arith.constant 0 : index
    %c0_24 = arith.constant 0 : index
    %34 = vector.load %arg2[%c1_22, %c0_23, %c0_24] : memref<8x512x128xbf16, #tpu.memory_space<vmem>>, vector<1x512x128xbf16>
    %35 = vector.shape_cast %34 : vector<1x512x128xbf16> to vector<512x128xbf16>
    %cst_25 = arith.constant dense<0.000000e+00> : vector<512x128xf32>
    %36 = tpu.matmul %33, %35, %cst_25 {dimension_numbers = #tpu.dot_dimension_numbers<[1], [0], [0], [1], [0, 0, 1, 1], [], []>} : vector<512x512xbf16>, vector<512x128xbf16>, vector<512x128xf32> -> vector<512x128xf32>
    %c1_26 = arith.constant 1 : index
    %c0_27 = arith.constant 0 : index
    %c0_28 = arith.constant 0 : index
    %37 = vector.load %arg3[%c1_26, %c0_27, %c0_28] : memref<8x1x128xf32, #tpu.memory_space<vmem>>, vector<1x1x128xf32>
    %38 = vector.shape_cast %37 : vector<1x1x128xf32> to vector<1x128xf32>
    %39 = vector.broadcast %38 : vector<1x128xf32> to vector<512x128xf32>
    %40 = arith.addf %36, %39 : vector<512x128xf32>
    %cst_29 = arith.constant 0.000000e+00 : f32
    %41 = vector.broadcast %cst_29 : f32 to vector<512x128xf32>
    %42 = arith.maximumf %40, %41 : vector<512x128xf32>
    %43 = vector.extract_strided_slice %42 {offsets = [0, 0], sizes = [256, 128], strides = [1, 1]} : vector<512x128xf32> to vector<256x128xf32>
    %c0_30 = arith.constant 0 : index
    %c0_31 = arith.constant 0 : index
    %44 = vector.load %arg8[%c0_30, %c0_31] : memref<1040x128xf32, #tpu.memory_space<vmem>>, vector<256x128xf32>
    tpu.vector_store %arg8[%c0_30, %c0_31], %43 {strides = array<i32>} : memref<1040x128xf32, #tpu.memory_space<vmem>>, vector<256x128xf32>,
    %45 = vector.extract_strided_slice %42 {offsets = [256, 0], sizes = [256, 128], strides = [1, 1]} : vector<512x128xf32> to vector<256x128xf32>
    %c520_32 = arith.constant 520 : index
    %c0_33 = arith.constant 0 : index
    %46 = vector.load %arg8[%c520_32, %c0_33] : memref<1040x128xf32, #tpu.memory_space<vmem>>, vector<256x128xf32>
    tpu.vector_store %arg8[%c520_32, %c0_33], %45 {strides = array<i32>} : memref<1040x128xf32, #tpu.memory_space<vmem>>, vector<256x128xf32>,
    %c0_34 = arith.constant 0 : index
    %c0_35 = arith.constant 0 : index
    %47 = tpu.strided_load %arg8[%c0_34, %c0_35] {strides = array<i32: 2, 1>} : memref<1040x128xf32, #tpu.memory_space<vmem>>, vector<128x128xf32>
    %48 = arith.truncf %47 : vector<128x128xf32> to vector<128x128xbf16>
    %c1_36 = arith.constant 1 : index
    %c0_37 = arith.constant 0 : index
    %49 = tpu.strided_load %arg8[%c1_36, %c0_37] {strides = array<i32: 2, 1>} : memref<1040x128xf32, #tpu.memory_space<vmem>>, vector<128x128xf32>
    %50 = arith.truncf %49 : vector<128x128xf32> to vector<128x128xbf16>
    %c2_38 = arith.constant 2 : index
    %c0_39 = arith.constant 0 : index
    %51 = tpu.strided_load %arg8[%c2_38, %c0_39] {strides = array<i32: 2, 1>} : memref<1040x128xf32, #tpu.memory_space<vmem>>, vector<128x128xf32>
    %52 = arith.truncf %51 : vector<128x128xf32> to vector<128x128xbf16>
    %c3_40 = arith.constant 3 : index
    %c0_41 = arith.constant 0 : index
    %53 = tpu.strided_load %arg8[%c3_40, %c0_41] {strides = array<i32: 2, 1>} : memref<1040x128xf32, #tpu.memory_space<vmem>>, vector<128x128xf32>
    %54 = arith.truncf %53 : vector<128x128xf32> to vector<128x128xbf16>
    %55 = tpu.concatenate %48, %50, %52, %54 in 1 : vector<128x128xbf16>, vector<128x128xbf16>, vector<128x128xbf16>, vector<128x128xbf16> -> vector<128x512xbf16>
    %c520_42 = arith.constant 520 : index
    %c0_43 = arith.constant 0 : index
    %56 = tpu.strided_load %arg8[%c520_42, %c0_43] {strides = array<i32: 2, 1>} : memref<1040x128xf32, #tpu.memory_space<vmem>>, vector<128x128xf32>
    %57 = arith.truncf %56 : vector<128x128xf32> to vector<128x128xbf16>
    %c521_44 = arith.constant 521 : index
    %c0_45 = arith.constant 0 : index
    %58 = tpu.strided_load %arg8[%c521_44, %c0_45] {strides = array<i32: 2, 1>} : memref<1040x128xf32, #tpu.memory_space<vmem>>, vector<128x128xf32>
    %59 = arith.truncf %58 : vector<128x128xf32> to vector<128x128xbf16>
    %c522_46 = arith.constant 522 : index
    %c0_47 = arith.constant 0 : index
    %60 = tpu.strided_load %arg8[%c522_46, %c0_47] {strides = array<i32: 2, 1>} : memref<1040x128xf32, #tpu.memory_space<vmem>>, vector<128x128xf32>
    %61 = arith.truncf %60 : vector<128x128xf32> to vector<128x128xbf16>
    %c523_48 = arith.constant 523 : index
    %c0_49 = arith.constant 0 : index
    %62 = tpu.strided_load %arg8[%c523_48, %c0_49] {strides = array<i32: 2, 1>} : memref<1040x128xf32, #tpu.memory_space<vmem>>, vector<128x128xf32>
    %63 = arith.truncf %62 : vector<128x128xf32> to vector<128x128xbf16>
    %64 = tpu.concatenate %57, %59, %61, %63 in 1 : vector<128x128xbf16>, vector<128x128xbf16>, vector<128x128xbf16>, vector<128x128xbf16> -> vector<128x512xbf16>
    %65 = tpu.concatenate %55, %64 in 0 : vector<128x512xbf16>, vector<128x512xbf16> -> vector<256x512xbf16>
    %c2_50 = arith.constant 2 : index
    %c0_51 = arith.constant 0 : index
    %c0_52 = arith.constant 0 : index
    %66 = vector.load %arg2[%c2_50, %c0_51, %c0_52] : memref<8x512x128xbf16, #tpu.memory_space<vmem>>, vector<1x512x128xbf16>
    %67 = vector.shape_cast %66 : vector<1x512x128xbf16> to vector<512x128xbf16>
    %cst_53 = arith.constant dense<0.000000e+00> : vector<256x128xf32>
    %68 = tpu.matmul %65, %67, %cst_53 {dimension_numbers = #tpu.dot_dimension_numbers<[1], [0], [0], [1], [0, 0, 1, 1], [], []>} : vector<256x512xbf16>, vector<512x128xbf16>, vector<256x128xf32> -> vector<256x128xf32>
    %c2_54 = arith.constant 2 : index
    %c0_55 = arith.constant 0 : index
    %c0_56 = arith.constant 0 : index
    %69 = vector.load %arg3[%c2_54, %c0_55, %c0_56] : memref<8x1x128xf32, #tpu.memory_space<vmem>>, vector<1x1x128xf32>
    %70 = vector.shape_cast %69 : vector<1x1x128xf32> to vector<1x128xf32>
    %71 = vector.broadcast %70 : vector<1x128xf32> to vector<256x128xf32>
    %72 = arith.addf %68, %71 : vector<256x128xf32>
    %cst_57 = arith.constant 0.000000e+00 : f32
    %73 = vector.broadcast %cst_57 : f32 to vector<256x128xf32>
    %74 = arith.maximumf %72, %73 : vector<256x128xf32>
    %75 = vector.extract_strided_slice %74 {offsets = [0, 0], sizes = [128, 128], strides = [1, 1]} : vector<256x128xf32> to vector<128x128xf32>
    %c0_58 = arith.constant 0 : index
    %c0_59 = arith.constant 0 : index
    %76 = vector.load %arg7[%c0_58, %c0_59] : memref<1040x128xf32, #tpu.memory_space<vmem>>, vector<128x128xf32>
    tpu.vector_store %arg7[%c0_58, %c0_59], %75 {strides = array<i32>} : memref<1040x128xf32, #tpu.memory_space<vmem>>, vector<128x128xf32>,
    %77 = vector.extract_strided_slice %74 {offsets = [128, 0], sizes = [128, 128], strides = [1, 1]} : vector<256x128xf32> to vector<128x128xf32>
    %c520_60 = arith.constant 520 : index
    %c0_61 = arith.constant 0 : index
    %78 = vector.load %arg7[%c520_60, %c0_61] : memref<1040x128xf32, #tpu.memory_space<vmem>>, vector<128x128xf32>
    tpu.vector_store %arg7[%c520_60, %c0_61], %77 {strides = array<i32>} : memref<1040x128xf32, #tpu.memory_space<vmem>>, vector<128x128xf32>,
    %c0_62 = arith.constant 0 : index
    %c0_63 = arith.constant 0 : index
    %79 = tpu.strided_load %arg7[%c0_62, %c0_63] {strides = array<i32: 2, 1>} : memref<1040x128xf32, #tpu.memory_space<vmem>>, vector<64x128xf32>
    %80 = arith.truncf %79 : vector<64x128xf32> to vector<64x128xbf16>
    %c1_64 = arith.constant 1 : index
    %c0_65 = arith.constant 0 : index
    %81 = tpu.strided_load %arg7[%c1_64, %c0_65] {strides = array<i32: 2, 1>} : memref<1040x128xf32, #tpu.memory_space<vmem>>, vector<64x128xf32>
    %82 = arith.truncf %81 : vector<64x128xf32> to vector<64x128xbf16>
    %c2_66 = arith.constant 2 : index
    %c0_67 = arith.constant 0 : index
    %83 = tpu.strided_load %arg7[%c2_66, %c0_67] {strides = array<i32: 2, 1>} : memref<1040x128xf32, #tpu.memory_space<vmem>>, vector<64x128xf32>
    %84 = arith.truncf %83 : vector<64x128xf32> to vector<64x128xbf16>
    %c3_68 = arith.constant 3 : index
    %c0_69 = arith.constant 0 : index
    %85 = tpu.strided_load %arg7[%c3_68, %c0_69] {strides = array<i32: 2, 1>} : memref<1040x128xf32, #tpu.memory_space<vmem>>, vector<64x128xf32>
    %86 = arith.truncf %85 : vector<64x128xf32> to vector<64x128xbf16>
    %87 = tpu.concatenate %80, %82, %84, %86 in 1 : vector<64x128xbf16>, vector<64x128xbf16>, vector<64x128xbf16>, vector<64x128xbf16> -> vector<64x512xbf16>
    %c520_70 = arith.constant 520 : index
    %c0_71 = arith.constant 0 : index
    %88 = tpu.strided_load %arg7[%c520_70, %c0_71] {strides = array<i32: 2, 1>} : memref<1040x128xf32, #tpu.memory_space<vmem>>, vector<64x128xf32>
    %89 = arith.truncf %88 : vector<64x128xf32> to vector<64x128xbf16>
    %c521_72 = arith.constant 521 : index
    %c0_73 = arith.constant 0 : index
    %90 = tpu.strided_load %arg7[%c521_72, %c0_73] {strides = array<i32: 2, 1>} : memref<1040x128xf32, #tpu.memory_space<vmem>>, vector<64x128xf32>
    %91 = arith.truncf %90 : vector<64x128xf32> to vector<64x128xbf16>
    %c522_74 = arith.constant 522 : index
    %c0_75 = arith.constant 0 : index
    %92 = tpu.strided_load %arg7[%c522_74, %c0_75] {strides = array<i32: 2, 1>} : memref<1040x128xf32, #tpu.memory_space<vmem>>, vector<64x128xf32>
    %93 = arith.truncf %92 : vector<64x128xf32> to vector<64x128xbf16>
    %c523_76 = arith.constant 523 : index
    %c0_77 = arith.constant 0 : index
    %94 = tpu.strided_load %arg7[%c523_76, %c0_77] {strides = array<i32: 2, 1>} : memref<1040x128xf32, #tpu.memory_space<vmem>>, vector<64x128xf32>
    %95 = arith.truncf %94 : vector<64x128xf32> to vector<64x128xbf16>
    %96 = tpu.concatenate %89, %91, %93, %95 in 1 : vector<64x128xbf16>, vector<64x128xbf16>, vector<64x128xbf16>, vector<64x128xbf16> -> vector<64x512xbf16>
    %97 = tpu.concatenate %87, %96 in 0 : vector<64x512xbf16>, vector<64x512xbf16> -> vector<128x512xbf16>
    %c3_78 = arith.constant 3 : index
    %c0_79 = arith.constant 0 : index
    %c0_80 = arith.constant 0 : index
    %98 = vector.load %arg2[%c3_78, %c0_79, %c0_80] : memref<8x512x128xbf16, #tpu.memory_space<vmem>>, vector<1x512x128xbf16>
    %99 = vector.shape_cast %98 : vector<1x512x128xbf16> to vector<512x128xbf16>
    %cst_81 = arith.constant dense<0.000000e+00> : vector<128x128xf32>
    %100 = tpu.matmul %97, %99, %cst_81 {dimension_numbers = #tpu.dot_dimension_numbers<[1], [0], [0], [1], [0, 0, 1, 1], [], []>} : vector<128x512xbf16>, vector<512x128xbf16>, vector<128x128xf32> -> vector<128x128xf32>
    %c3_82 = arith.constant 3 : index
    %c0_83 = arith.constant 0 : index
    %c0_84 = arith.constant 0 : index
    %101 = vector.load %arg3[%c3_82, %c0_83, %c0_84] : memref<8x1x128xf32, #tpu.memory_space<vmem>>, vector<1x1x128xf32>
    %102 = vector.shape_cast %101 : vector<1x1x128xf32> to vector<1x128xf32>
    %103 = vector.broadcast %102 : vector<1x128xf32> to vector<128x128xf32>
    %104 = arith.addf %100, %103 : vector<128x128xf32>
    %cst_85 = arith.constant 0.000000e+00 : f32
    %105 = vector.broadcast %cst_85 : f32 to vector<128x128xf32>
    %106 = arith.maximumf %104, %105 : vector<128x128xf32>
    %107 = vector.extract_strided_slice %106 {offsets = [0, 0], sizes = [64, 128], strides = [1, 1]} : vector<128x128xf32> to vector<64x128xf32>
    %c0_86 = arith.constant 0 : index
    %c0_87 = arith.constant 0 : index
    %108 = vector.load %arg8[%c0_86, %c0_87] : memref<1040x128xf32, #tpu.memory_space<vmem>>, vector<64x128xf32>
    tpu.vector_store %arg8[%c0_86, %c0_87], %107 {strides = array<i32>} : memref<1040x128xf32, #tpu.memory_space<vmem>>, vector<64x128xf32>,
    %109 = vector.extract_strided_slice %106 {offsets = [64, 0], sizes = [64, 128], strides = [1, 1]} : vector<128x128xf32> to vector<64x128xf32>
    %c520_88 = arith.constant 520 : index
    %c0_89 = arith.constant 0 : index
    %110 = vector.load %arg8[%c520_88, %c0_89] : memref<1040x128xf32, #tpu.memory_space<vmem>>, vector<64x128xf32>
    tpu.vector_store %arg8[%c520_88, %c0_89], %109 {strides = array<i32>} : memref<1040x128xf32, #tpu.memory_space<vmem>>, vector<64x128xf32>,
    %c0_90 = arith.constant 0 : index
    %c0_91 = arith.constant 0 : index
    %111 = tpu.strided_load %arg8[%c0_90, %c0_91] {strides = array<i32: 2, 1>} : memref<1040x128xf32, #tpu.memory_space<vmem>>, vector<32x128xf32>
    %112 = arith.truncf %111 : vector<32x128xf32> to vector<32x128xbf16>
    %c1_92 = arith.constant 1 : index
    %c0_93 = arith.constant 0 : index
    %113 = tpu.strided_load %arg8[%c1_92, %c0_93] {strides = array<i32: 2, 1>} : memref<1040x128xf32, #tpu.memory_space<vmem>>, vector<32x128xf32>
    %114 = arith.truncf %113 : vector<32x128xf32> to vector<32x128xbf16>
    %c2_94 = arith.constant 2 : index
    %c0_95 = arith.constant 0 : index
    %115 = tpu.strided_load %arg8[%c2_94, %c0_95] {strides = array<i32: 2, 1>} : memref<1040x128xf32, #tpu.memory_space<vmem>>, vector<32x128xf32>
    %116 = arith.truncf %115 : vector<32x128xf32> to vector<32x128xbf16>
    %c3_96 = arith.constant 3 : index
    %c0_97 = arith.constant 0 : index
    %117 = tpu.strided_load %arg8[%c3_96, %c0_97] {strides = array<i32: 2, 1>} : memref<1040x128xf32, #tpu.memory_space<vmem>>, vector<32x128xf32>
    %118 = arith.truncf %117 : vector<32x128xf32> to vector<32x128xbf16>
    %119 = tpu.concatenate %112, %114, %116, %118 in 1 : vector<32x128xbf16>, vector<32x128xbf16>, vector<32x128xbf16>, vector<32x128xbf16> -> vector<32x512xbf16>
    %c520_98 = arith.constant 520 : index
    %c0_99 = arith.constant 0 : index
    %120 = tpu.strided_load %arg8[%c520_98, %c0_99] {strides = array<i32: 2, 1>} : memref<1040x128xf32, #tpu.memory_space<vmem>>, vector<32x128xf32>
    %121 = arith.truncf %120 : vector<32x128xf32> to vector<32x128xbf16>
    %c521_100 = arith.constant 521 : index
    %c0_101 = arith.constant 0 : index
    %122 = tpu.strided_load %arg8[%c521_100, %c0_101] {strides = array<i32: 2, 1>} : memref<1040x128xf32, #tpu.memory_space<vmem>>, vector<32x128xf32>
    %123 = arith.truncf %122 : vector<32x128xf32> to vector<32x128xbf16>
    %c522_102 = arith.constant 522 : index
    %c0_103 = arith.constant 0 : index
    %124 = tpu.strided_load %arg8[%c522_102, %c0_103] {strides = array<i32: 2, 1>} : memref<1040x128xf32, #tpu.memory_space<vmem>>, vector<32x128xf32>
    %125 = arith.truncf %124 : vector<32x128xf32> to vector<32x128xbf16>
    %c523_104 = arith.constant 523 : index
    %c0_105 = arith.constant 0 : index
    %126 = tpu.strided_load %arg8[%c523_104, %c0_105] {strides = array<i32: 2, 1>} : memref<1040x128xf32, #tpu.memory_space<vmem>>, vector<32x128xf32>
    %127 = arith.truncf %126 : vector<32x128xf32> to vector<32x128xbf16>
    %128 = tpu.concatenate %121, %123, %125, %127 in 1 : vector<32x128xbf16>, vector<32x128xbf16>, vector<32x128xbf16>, vector<32x128xbf16> -> vector<32x512xbf16>
    %129 = tpu.concatenate %119, %128 in 0 : vector<32x512xbf16>, vector<32x512xbf16> -> vector<64x512xbf16>
    %c4 = arith.constant 4 : index
    %c0_106 = arith.constant 0 : index
    %c0_107 = arith.constant 0 : index
    %130 = vector.load %arg2[%c4, %c0_106, %c0_107] : memref<8x512x128xbf16, #tpu.memory_space<vmem>>, vector<1x512x128xbf16>
    %131 = vector.shape_cast %130 : vector<1x512x128xbf16> to vector<512x128xbf16>
    %cst_108 = arith.constant dense<0.000000e+00> : vector<64x128xf32>
    %132 = tpu.matmul %129, %131, %cst_108 {dimension_numbers = #tpu.dot_dimension_numbers<[1], [0], [0], [1], [0, 0, 1, 1], [], []>} : vector<64x512xbf16>, vector<512x128xbf16>, vector<64x128xf32> -> vector<64x128xf32>
    %c4_109 = arith.constant 4 : index
    %c0_110 = arith.constant 0 : index
    %c0_111 = arith.constant 0 : index
    %133 = vector.load %arg3[%c4_109, %c0_110, %c0_111] : memref<8x1x128xf32, #tpu.memory_space<vmem>>, vector<1x1x128xf32>
    %134 = vector.shape_cast %133 : vector<1x1x128xf32> to vector<1x128xf32>
    %135 = vector.broadcast %134 : vector<1x128xf32> to vector<64x128xf32>
    %136 = arith.addf %132, %135 : vector<64x128xf32>
    %cst_112 = arith.constant 0.000000e+00 : f32
    %137 = vector.broadcast %cst_112 : f32 to vector<64x128xf32>
    %138 = arith.maximumf %136, %137 : vector<64x128xf32>
    %139 = vector.extract_strided_slice %138 {offsets = [0, 0], sizes = [32, 128], strides = [1, 1]} : vector<64x128xf32> to vector<32x128xf32>
    %c0_113 = arith.constant 0 : index
    %c0_114 = arith.constant 0 : index
    %140 = vector.load %arg7[%c0_113, %c0_114] : memref<1040x128xf32, #tpu.memory_space<vmem>>, vector<32x128xf32>
    tpu.vector_store %arg7[%c0_113, %c0_114], %139 {strides = array<i32>} : memref<1040x128xf32, #tpu.memory_space<vmem>>, vector<32x128xf32>,
    %141 = vector.extract_strided_slice %138 {offsets = [32, 0], sizes = [32, 128], strides = [1, 1]} : vector<64x128xf32> to vector<32x128xf32>
    %c520_115 = arith.constant 520 : index
    %c0_116 = arith.constant 0 : index
    %142 = vector.load %arg7[%c520_115, %c0_116] : memref<1040x128xf32, #tpu.memory_space<vmem>>, vector<32x128xf32>
    tpu.vector_store %arg7[%c520_115, %c0_116], %141 {strides = array<i32>} : memref<1040x128xf32, #tpu.memory_space<vmem>>, vector<32x128xf32>,
    %c0_117 = arith.constant 0 : index
    %c0_118 = arith.constant 0 : index
    %143 = tpu.strided_load %arg7[%c0_117, %c0_118] {strides = array<i32: 2, 1>} : memref<1040x128xf32, #tpu.memory_space<vmem>>, vector<16x128xf32>
    %144 = arith.truncf %143 : vector<16x128xf32> to vector<16x128xbf16>
    %c1_119 = arith.constant 1 : index
    %c0_120 = arith.constant 0 : index
    %145 = tpu.strided_load %arg7[%c1_119, %c0_120] {strides = array<i32: 2, 1>} : memref<1040x128xf32, #tpu.memory_space<vmem>>, vector<16x128xf32>
    %146 = arith.truncf %145 : vector<16x128xf32> to vector<16x128xbf16>
    %c2_121 = arith.constant 2 : index
    %c0_122 = arith.constant 0 : index
    %147 = tpu.strided_load %arg7[%c2_121, %c0_122] {strides = array<i32: 2, 1>} : memref<1040x128xf32, #tpu.memory_space<vmem>>, vector<16x128xf32>
    %148 = arith.truncf %147 : vector<16x128xf32> to vector<16x128xbf16>
    %c3_123 = arith.constant 3 : index
    %c0_124 = arith.constant 0 : index
    %149 = tpu.strided_load %arg7[%c3_123, %c0_124] {strides = array<i32: 2, 1>} : memref<1040x128xf32, #tpu.memory_space<vmem>>, vector<16x128xf32>
    %150 = arith.truncf %149 : vector<16x128xf32> to vector<16x128xbf16>
    %151 = tpu.concatenate %144, %146, %148, %150 in 1 : vector<16x128xbf16>, vector<16x128xbf16>, vector<16x128xbf16>, vector<16x128xbf16> -> vector<16x512xbf16>
    %c520_125 = arith.constant 520 : index
    %c0_126 = arith.constant 0 : index
    %152 = tpu.strided_load %arg7[%c520_125, %c0_126] {strides = array<i32: 2, 1>} : memref<1040x128xf32, #tpu.memory_space<vmem>>, vector<16x128xf32>
    %153 = arith.truncf %152 : vector<16x128xf32> to vector<16x128xbf16>
    %c521_127 = arith.constant 521 : index
    %c0_128 = arith.constant 0 : index
    %154 = tpu.strided_load %arg7[%c521_127, %c0_128] {strides = array<i32: 2, 1>} : memref<1040x128xf32, #tpu.memory_space<vmem>>, vector<16x128xf32>
    %155 = arith.truncf %154 : vector<16x128xf32> to vector<16x128xbf16>
    %c522_129 = arith.constant 522 : index
    %c0_130 = arith.constant 0 : index
    %156 = tpu.strided_load %arg7[%c522_129, %c0_130] {strides = array<i32: 2, 1>} : memref<1040x128xf32, #tpu.memory_space<vmem>>, vector<16x128xf32>
    %157 = arith.truncf %156 : vector<16x128xf32> to vector<16x128xbf16>
    %c523_131 = arith.constant 523 : index
    %c0_132 = arith.constant 0 : index
    %158 = tpu.strided_load %arg7[%c523_131, %c0_132] {strides = array<i32: 2, 1>} : memref<1040x128xf32, #tpu.memory_space<vmem>>, vector<16x128xf32>
    %159 = arith.truncf %158 : vector<16x128xf32> to vector<16x128xbf16>
    %160 = tpu.concatenate %153, %155, %157, %159 in 1 : vector<16x128xbf16>, vector<16x128xbf16>, vector<16x128xbf16>, vector<16x128xbf16> -> vector<16x512xbf16>
    %161 = tpu.concatenate %151, %160 in 0 : vector<16x512xbf16>, vector<16x512xbf16> -> vector<32x512xbf16>
    %c5 = arith.constant 5 : index
    %c0_133 = arith.constant 0 : index
    %c0_134 = arith.constant 0 : index
    %162 = vector.load %arg2[%c5, %c0_133, %c0_134] : memref<8x512x128xbf16, #tpu.memory_space<vmem>>, vector<1x512x128xbf16>
    %163 = vector.shape_cast %162 : vector<1x512x128xbf16> to vector<512x128xbf16>
    %cst_135 = arith.constant dense<0.000000e+00> : vector<32x128xf32>
    %164 = tpu.matmul %161, %163, %cst_135 {dimension_numbers = #tpu.dot_dimension_numbers<[1], [0], [0], [1], [0, 0, 1, 1], [], []>} : vector<32x512xbf16>, vector<512x128xbf16>, vector<32x128xf32> -> vector<32x128xf32>
    %c5_136 = arith.constant 5 : index
    %c0_137 = arith.constant 0 : index
    %c0_138 = arith.constant 0 : index
    %165 = vector.load %arg3[%c5_136, %c0_137, %c0_138] : memref<8x1x128xf32, #tpu.memory_space<vmem>>, vector<1x1x128xf32>
    %166 = vector.shape_cast %165 : vector<1x1x128xf32> to vector<1x128xf32>
    %167 = vector.broadcast %166 : vector<1x128xf32> to vector<32x128xf32>
    %168 = arith.addf %164, %167 : vector<32x128xf32>
    %cst_139 = arith.constant 0.000000e+00 : f32
    %169 = vector.broadcast %cst_139 : f32 to vector<32x128xf32>
    %170 = arith.maximumf %168, %169 : vector<32x128xf32>
    %171 = vector.extract_strided_slice %170 {offsets = [0, 0], sizes = [16, 128], strides = [1, 1]} : vector<32x128xf32> to vector<16x128xf32>
    %c0_140 = arith.constant 0 : index
    %c0_141 = arith.constant 0 : index
    %172 = vector.load %arg8[%c0_140, %c0_141] : memref<1040x128xf32, #tpu.memory_space<vmem>>, vector<16x128xf32>
    tpu.vector_store %arg8[%c0_140, %c0_141], %171 {strides = array<i32>} : memref<1040x128xf32, #tpu.memory_space<vmem>>, vector<16x128xf32>,
    %173 = vector.extract_strided_slice %170 {offsets = [16, 0], sizes = [16, 128], strides = [1, 1]} : vector<32x128xf32> to vector<16x128xf32>
    %c520_142 = arith.constant 520 : index
    %c0_143 = arith.constant 0 : index
    %174 = vector.load %arg8[%c520_142, %c0_143] : memref<1040x128xf32, #tpu.memory_space<vmem>>, vector<16x128xf32>
    tpu.vector_store %arg8[%c520_142, %c0_143], %173 {strides = array<i32>} : memref<1040x128xf32, #tpu.memory_space<vmem>>, vector<16x128xf32>,
    %c0_144 = arith.constant 0 : index
    %c0_145 = arith.constant 0 : index
    %175 = tpu.strided_load %arg8[%c0_144, %c0_145] {strides = array<i32: 2, 1>} : memref<1040x128xf32, #tpu.memory_space<vmem>>, vector<8x128xf32>
    %176 = arith.truncf %175 : vector<8x128xf32> to vector<8x128xbf16>
    %c1_146 = arith.constant 1 : index
    %c0_147 = arith.constant 0 : index
    %177 = tpu.strided_load %arg8[%c1_146, %c0_147] {strides = array<i32: 2, 1>} : memref<1040x128xf32, #tpu.memory_space<vmem>>, vector<8x128xf32>
    %178 = arith.truncf %177 : vector<8x128xf32> to vector<8x128xbf16>
    %c2_148 = arith.constant 2 : index
    %c0_149 = arith.constant 0 : index
    %179 = tpu.strided_load %arg8[%c2_148, %c0_149] {strides = array<i32: 2, 1>} : memref<1040x128xf32, #tpu.memory_space<vmem>>, vector<8x128xf32>
    %180 = arith.truncf %179 : vector<8x128xf32> to vector<8x128xbf16>
    %c3_150 = arith.constant 3 : index
    %c0_151 = arith.constant 0 : index
    %181 = tpu.strided_load %arg8[%c3_150, %c0_151] {strides = array<i32: 2, 1>} : memref<1040x128xf32, #tpu.memory_space<vmem>>, vector<8x128xf32>
    %182 = arith.truncf %181 : vector<8x128xf32> to vector<8x128xbf16>
    %183 = tpu.concatenate %176, %178, %180, %182 in 1 : vector<8x128xbf16>, vector<8x128xbf16>, vector<8x128xbf16>, vector<8x128xbf16> -> vector<8x512xbf16>
    %c520_152 = arith.constant 520 : index
    %c0_153 = arith.constant 0 : index
    %184 = tpu.strided_load %arg8[%c520_152, %c0_153] {strides = array<i32: 2, 1>} : memref<1040x128xf32, #tpu.memory_space<vmem>>, vector<8x128xf32>
    %185 = arith.truncf %184 : vector<8x128xf32> to vector<8x128xbf16>
    %c521_154 = arith.constant 521 : index
    %c0_155 = arith.constant 0 : index
    %186 = tpu.strided_load %arg8[%c521_154, %c0_155] {strides = array<i32: 2, 1>} : memref<1040x128xf32, #tpu.memory_space<vmem>>, vector<8x128xf32>
    %187 = arith.truncf %186 : vector<8x128xf32> to vector<8x128xbf16>
    %c522_156 = arith.constant 522 : index
    %c0_157 = arith.constant 0 : index
    %188 = tpu.strided_load %arg8[%c522_156, %c0_157] {strides = array<i32: 2, 1>} : memref<1040x128xf32, #tpu.memory_space<vmem>>, vector<8x128xf32>
    %189 = arith.truncf %188 : vector<8x128xf32> to vector<8x128xbf16>
    %c523_158 = arith.constant 523 : index
    %c0_159 = arith.constant 0 : index
    %190 = tpu.strided_load %arg8[%c523_158, %c0_159] {strides = array<i32: 2, 1>} : memref<1040x128xf32, #tpu.memory_space<vmem>>, vector<8x128xf32>
    %191 = arith.truncf %190 : vector<8x128xf32> to vector<8x128xbf16>
    %192 = tpu.concatenate %185, %187, %189, %191 in 1 : vector<8x128xbf16>, vector<8x128xbf16>, vector<8x128xbf16>, vector<8x128xbf16> -> vector<8x512xbf16>
    %193 = tpu.concatenate %183, %192 in 0 : vector<8x512xbf16>, vector<8x512xbf16> -> vector<16x512xbf16>
    %c6 = arith.constant 6 : index
    %c0_160 = arith.constant 0 : index
    %c0_161 = arith.constant 0 : index
    %194 = vector.load %arg2[%c6, %c0_160, %c0_161] : memref<8x512x128xbf16, #tpu.memory_space<vmem>>, vector<1x512x128xbf16>
    %195 = vector.shape_cast %194 : vector<1x512x128xbf16> to vector<512x128xbf16>
    %cst_162 = arith.constant dense<0.000000e+00> : vector<16x128xf32>
    %196 = tpu.matmul %193, %195, %cst_162 {dimension_numbers = #tpu.dot_dimension_numbers<[1], [0], [0], [1], [0, 0, 1, 1], [], []>} : vector<16x512xbf16>, vector<512x128xbf16>, vector<16x128xf32> -> vector<16x128xf32>
    %c6_163 = arith.constant 6 : index
    %c0_164 = arith.constant 0 : index
    %c0_165 = arith.constant 0 : index
    %197 = vector.load %arg3[%c6_163, %c0_164, %c0_165] : memref<8x1x128xf32, #tpu.memory_space<vmem>>, vector<1x1x128xf32>
    %198 = vector.shape_cast %197 : vector<1x1x128xf32> to vector<1x128xf32>
    %199 = vector.broadcast %198 : vector<1x128xf32> to vector<16x128xf32>
    %200 = arith.addf %196, %199 : vector<16x128xf32>
    %cst_166 = arith.constant 0.000000e+00 : f32
    %201 = vector.broadcast %cst_166 : f32 to vector<16x128xf32>
    %202 = arith.maximumf %200, %201 : vector<16x128xf32>
    %203 = vector.extract_strided_slice %202 {offsets = [0, 0], sizes = [8, 128], strides = [1, 1]} : vector<16x128xf32> to vector<8x128xf32>
    %c0_167 = arith.constant 0 : index
    %c0_168 = arith.constant 0 : index
    %204 = vector.load %arg7[%c0_167, %c0_168] : memref<1040x128xf32, #tpu.memory_space<vmem>>, vector<8x128xf32>
    tpu.vector_store %arg7[%c0_167, %c0_168], %203 {strides = array<i32>} : memref<1040x128xf32, #tpu.memory_space<vmem>>, vector<8x128xf32>,
    %205 = vector.extract_strided_slice %202 {offsets = [8, 0], sizes = [8, 128], strides = [1, 1]} : vector<16x128xf32> to vector<8x128xf32>
    %c520_169 = arith.constant 520 : index
    %c0_170 = arith.constant 0 : index
    %206 = vector.load %arg7[%c520_169, %c0_170] : memref<1040x128xf32, #tpu.memory_space<vmem>>, vector<8x128xf32>
    tpu.vector_store %arg7[%c520_169, %c0_170], %205 {strides = array<i32>} : memref<1040x128xf32, #tpu.memory_space<vmem>>, vector<8x128xf32>,
    %c0_171 = arith.constant 0 : index
    %c0_172 = arith.constant 0 : index
    %207 = tpu.strided_load %arg7[%c0_171, %c0_172] {strides = array<i32: 2, 1>} : memref<1040x128xf32, #tpu.memory_space<vmem>>, vector<8x128xf32>
    %208 = arith.truncf %207 : vector<8x128xf32> to vector<8x128xbf16>
    %c1_173 = arith.constant 1 : index
    %c0_174 = arith.constant 0 : index
    %209 = tpu.strided_load %arg7[%c1_173, %c0_174] {strides = array<i32: 2, 1>} : memref<1040x128xf32, #tpu.memory_space<vmem>>, vector<8x128xf32>
    %210 = arith.truncf %209 : vector<8x128xf32> to vector<8x128xbf16>
    %c2_175 = arith.constant 2 : index
    %c0_176 = arith.constant 0 : index
    %211 = tpu.strided_load %arg7[%c2_175, %c0_176] {strides = array<i32: 2, 1>} : memref<1040x128xf32, #tpu.memory_space<vmem>>, vector<8x128xf32>
    %212 = arith.truncf %211 : vector<8x128xf32> to vector<8x128xbf16>
    %c3_177 = arith.constant 3 : index
    %c0_178 = arith.constant 0 : index
    %213 = tpu.strided_load %arg7[%c3_177, %c0_178] {strides = array<i32: 2, 1>} : memref<1040x128xf32, #tpu.memory_space<vmem>>, vector<8x128xf32>
    %214 = arith.truncf %213 : vector<8x128xf32> to vector<8x128xbf16>
    %215 = tpu.concatenate %208, %210, %212, %214 in 1 : vector<8x128xbf16>, vector<8x128xbf16>, vector<8x128xbf16>, vector<8x128xbf16> -> vector<8x512xbf16>
    %c520_179 = arith.constant 520 : index
    %c0_180 = arith.constant 0 : index
    %216 = tpu.strided_load %arg7[%c520_179, %c0_180] {strides = array<i32: 2, 1>} : memref<1040x128xf32, #tpu.memory_space<vmem>>, vector<8x128xf32>
    %217 = arith.truncf %216 : vector<8x128xf32> to vector<8x128xbf16>
    %c521_181 = arith.constant 521 : index
    %c0_182 = arith.constant 0 : index
    %218 = tpu.strided_load %arg7[%c521_181, %c0_182] {strides = array<i32: 2, 1>} : memref<1040x128xf32, #tpu.memory_space<vmem>>, vector<8x128xf32>
    %219 = arith.truncf %218 : vector<8x128xf32> to vector<8x128xbf16>
    %c522_183 = arith.constant 522 : index
    %c0_184 = arith.constant 0 : index
    %220 = tpu.strided_load %arg7[%c522_183, %c0_184] {strides = array<i32: 2, 1>} : memref<1040x128xf32, #tpu.memory_space<vmem>>, vector<8x128xf32>
    %221 = arith.truncf %220 : vector<8x128xf32> to vector<8x128xbf16>
    %c523_185 = arith.constant 523 : index
    %c0_186 = arith.constant 0 : index
    %222 = tpu.strided_load %arg7[%c523_185, %c0_186] {strides = array<i32: 2, 1>} : memref<1040x128xf32, #tpu.memory_space<vmem>>, vector<8x128xf32>
    %223 = arith.truncf %222 : vector<8x128xf32> to vector<8x128xbf16>
    %224 = tpu.concatenate %217, %219, %221, %223 in 1 : vector<8x128xbf16>, vector<8x128xbf16>, vector<8x128xbf16>, vector<8x128xbf16> -> vector<8x512xbf16>
    %225 = tpu.concatenate %215, %224 in 0 : vector<8x512xbf16>, vector<8x512xbf16> -> vector<16x512xbf16>
    %c7 = arith.constant 7 : index
    %c0_187 = arith.constant 0 : index
    %c0_188 = arith.constant 0 : index
    %226 = vector.load %arg2[%c7, %c0_187, %c0_188] : memref<8x512x128xbf16, #tpu.memory_space<vmem>>, vector<1x512x128xbf16>
    %227 = vector.shape_cast %226 : vector<1x512x128xbf16> to vector<512x128xbf16>
    %cst_189 = arith.constant dense<0.000000e+00> : vector<16x128xf32>
    %228 = tpu.matmul %225, %227, %cst_189 {dimension_numbers = #tpu.dot_dimension_numbers<[1], [0], [0], [1], [0, 0, 1, 1], [], []>} : vector<16x512xbf16>, vector<512x128xbf16>, vector<16x128xf32> -> vector<16x128xf32>
    %c7_190 = arith.constant 7 : index
    %c0_191 = arith.constant 0 : index
    %c0_192 = arith.constant 0 : index
    %229 = vector.load %arg3[%c7_190, %c0_191, %c0_192] : memref<8x1x128xf32, #tpu.memory_space<vmem>>, vector<1x1x128xf32>
    %230 = vector.shape_cast %229 : vector<1x1x128xf32> to vector<1x128xf32>
    %231 = vector.broadcast %230 : vector<1x128xf32> to vector<16x128xf32>
    %232 = arith.addf %228, %231 : vector<16x128xf32>
    %cst_193 = arith.constant 0.000000e+00 : f32
    %233 = vector.broadcast %cst_193 : f32 to vector<16x128xf32>
    %234 = arith.maximumf %232, %233 : vector<16x128xf32>
    %235 = vector.shape_cast %234 : vector<16x128xf32> to vector<2x8x128xf32>
    %236 = vector.extract_strided_slice %235 {offsets = [0, 0, 0], sizes = [2, 2, 128], strides = [1, 1, 1]} : vector<2x8x128xf32> to vector<2x2x128xf32>
    %237 = vector.shape_cast %236 : vector<2x2x128xf32> to vector<2x256xf32>
    %238 = arith.truncf %237 : vector<2x256xf32> to vector<2x256xbf16>
    %c0_194 = arith.constant 0 : index
    %c0_195 = arith.constant 0 : index
    %239 = vector.load %arg4[%c0_194, %c0_195] : memref<256x1024xbf16, #tpu.memory_space<vmem>>, vector<256x1024xbf16>
    %cst_196 = arith.constant dense<0.000000e+00> : vector<2x1024xf32>
    %240 = tpu.matmul %238, %239, %cst_196 {dimension_numbers = #tpu.dot_dimension_numbers<[1], [0], [0], [1], [0, 0, 1, 1], [], []>} : vector<2x256xbf16>, vector<256x1024xbf16>, vector<2x1024xf32> -> vector<2x1024xf32>
    %c0_197 = arith.constant 0 : index
    %c0_198 = arith.constant 0 : index
    %241 = vector.load %arg5[%c0_197, %c0_198] : memref<1x1024xf32, #tpu.memory_space<vmem>>, vector<1x1024xf32>
    %242 = vector.broadcast %241 : vector<1x1024xf32> to vector<2x1024xf32>
    %243 = arith.addf %240, %242 : vector<2x1024xf32>
    %cst_199 = arith.constant 0.000000e+00 : f32
    %244 = vector.broadcast %cst_199 : f32 to vector<2x1024xf32>
    %245 = arith.maximumf %243, %244 : vector<2x1024xf32>
    %246 = vector.shape_cast %245 : vector<2x1024xf32> to vector<1x2x1024xf32>
    %c0_200 = arith.constant 0 : index
    %c0_201 = arith.constant 0 : index
    %c0_202 = arith.constant 0 : index
    %247 = vector.load %arg6[%c0_200, %c0_201, %c0_202] : memref<1x2x1024xf32, #tpu.memory_space<vmem>>, vector<1x2x1024xf32>
    tpu.vector_store %arg6[%c0_200, %c0_201, %c0_202], %246 {strides = array<i32>} : memref<1x2x1024xf32, #tpu.memory_space<vmem>>, vector<1x2x1024xf32>,
    return
  }
  func.func @transform_0(%arg0: i32) -> (i32, i32, i32) {
    %c0_i32 = arith.constant 0 : i32
    %c0_i32_0 = arith.constant 0 : i32
    %c0_i32_1 = arith.constant 0 : i32
    return %arg0, %c0_i32, %c0_i32_0 : i32, i32, i32
  }
  func.func @transform_1(%arg0: i32) -> (i32, i32, i32) {
    %c0_i32 = arith.constant 0 : i32
    %c0_i32_0 = arith.constant 0 : i32
    %c0_i32_1 = arith.constant 0 : i32
    %c0_i32_2 = arith.constant 0 : i32
    return %c0_i32, %c0_i32_0, %c0_i32_1 : i32, i32, i32
  }
  func.func @transform_2(%arg0: i32) -> (i32, i32, i32) {
    %c0_i32 = arith.constant 0 : i32
    %c0_i32_0 = arith.constant 0 : i32
    %c0_i32_1 = arith.constant 0 : i32
    %c0_i32_2 = arith.constant 0 : i32
    return %c0_i32, %c0_i32_0, %c0_i32_1 : i32, i32, i32
  }
  func.func @transform_3(%arg0: i32) -> (i32, i32) {
    %c0_i32 = arith.constant 0 : i32
    %c0_i32_0 = arith.constant 0 : i32
    %c0_i32_1 = arith.constant 0 : i32
    return %c0_i32, %c0_i32_0 : i32, i32
  }
  func.func @transform_4(%arg0: i32) -> (i32, i32) {
    %c0_i32 = arith.constant 0 : i32
    %c0_i32_0 = arith.constant 0 : i32
    %c0_i32_1 = arith.constant 0 : i32
    return %c0_i32, %c0_i32_0 : i32, i32
  }
  func.func @transform_5(%arg0: i32) -> (i32, i32, i32) {
    %c0_i32 = arith.constant 0 : i32
    %c0_i32_0 = arith.constant 0 : i32
    %c0_i32_1 = arith.constant 0 : i32
    return %arg0, %c0_i32, %c0_i32_0 : i32, i32, i32
  }
}

</mosaic_0001>

<bundles_post_ra>
// kernel: encoder_forward.1
= control target key start
LH: loop header
LB: loop body
LE: loop exit
PB: predicated region body
PF: predicated region fallthrough
CT: control target
= control target key end

     0   :  { %s12237_s18 = smov 0   ;;  %s14204_s0 = inlined_call_operand.vmem [shape: bf16[4,512,512], index: 0, kind: input, shape index: {}]   ;;  %s14205_s1 = inlined_call_operand.vmem [shape: bf16[8,512,128], index: 1, kind: input, shape index: {}]   ;;  %s14206_s2 = inlined_call_operand.vmem [shape: f32[8,1,128], index: 2, kind: input, shape index: {}]   ;;  %s14207_s3 = inlined_call_operand.vmem [shape: bf16[256,1024], index: 3, kind: input, shape index: {}]   ;;  %s14208_s4 = inlined_call_operand.vmem [shape: f32[1,1024], index: 4, kind: input, shape index: {}]   ;;  %s14209_s5 = inlined_call_operand.vmem [shape: f32[2,2,1024], index: 5, kind: output, shape index: {}]  }
   0x1 LB: > { %s12243_s19 = sadd.s32 4294967295, %s12201_s18   ;;  %p9276_p0 = scmp.ge.s32.totalorder %s12201_s18, 1  ;;  %s12201_s18 = sphi %s12237_s18, %s15_s18  }
   0x2   : > { %p189_p1 = scmp.lt.s32.totalorder %s12201_s18, 3 }
   0x4   : > { %p190_p2 = pnand %p9276_p0, %p189_p1 }
   0x5   : > { %v11553_v0 = vld [vmem:[%s14205_s1] sm:$0xff] (!%p190_p2)   ;;  %v12203_v1 = vmov (!%p190_p2), 0   ;;  %s9277_s22 = sshll.u32 (!%p190_p2), %s12243_s19, 1  ;;  %v11554_v2 = vld [vmem:[%s14205_s1 + $0x8] sm:$0xff] (!%p190_p2)   ;;  %v11555_v3 = vld [vmem:[%s14205_s1 + $0x10] sm:$0xff] (!%p190_p2)   ;;  %vm7421_vm0 = vcmask (!%p190_p2), 1043456  }
   0x6   : > { %193 = sbr.rel (%p190_p2) target bundleno = 3736 (0xe98), region = 40  ;;  %2030 = vmatprep.subr.bf16.mxu0 (!%p190_p2), %v12203_v1  ;;  %4280 = vmatprep.subr.bf16.mxu1 (!%p190_p2), %v12203_v1  ;;  %p219_p3 = scmp.lt.s32.totalorder (!%p190_p2), %s9277_s22, 3  ;;  %v11556_v4 = vld [vmem:[%s14205_s1 + $0x18] sm:$0xff] (!%p190_p2)   ;;  %v11557_v5 = vld [vmem:[%s14205_s1 + $0x20] sm:$0xff] (!%p190_p2)   ;;  %v11558_v7 = vld [vmem:[%s14205_s1 + $0x28] sm:$0xff] (!%p190_p2)  }
   0x7   : > { %2031 = vmatpush1.bf16.msra.mxu0 (!%p190_p2), %v11553_v0  ;;  %v11559_v8 = vld [vmem:[%s14205_s1 + $0x30] sm:$0xff] (!%p190_p2)   ;;  %v11560_v9 = vld [vmem:[%s14205_s1 + $0x38] sm:$0xff] (!%p190_p2)   ;;  %v11561_v10 = vld [vmem:[%s14205_s1 + $0x40] sm:$0xff] (!%p190_p2)   ;;  %p225_p4 = scmp.lt.s32.totalorder (!%p190_p2), %s12243_s19, 1 }
   0x8   : > { %2032 = vmatprep.subr.bf16.mxu0 (!%p190_p2), %v12203_v1  ;;  %v11562_v11 = vld [vmem:[%s14205_s1 + $0x48] sm:$0xff] (!%p190_p2)   ;;  %v11563_v12 = vld [vmem:[%s14205_s1 + $0x50] sm:$0xff] (!%p190_p2)   ;;  %v11564_v13 = vld [vmem:[%s14205_s1 + $0x58] sm:$0xff] (!%p190_p2)  }
   0x9   : > { %v11565_v14 = vld [vmem:[%s14205_s1 + $0x60] sm:$0xff] (!%p190_p2)   ;;  %v11566_v15 = vld [vmem:[%s14205_s1 + $0x68] sm:$0xff] (!%p190_p2)   ;;  %v11567_v16 = vld [vmem:[%s14205_s1 + $0x70] sm:$0xff] (!%p190_p2)  }
   0xa   : > { %v11568_v17 = vld [vmem:[%s14205_s1 + $0x78] sm:$0xff] (!%p190_p2)   ;;  %v11572_v19 = vld [vmem:[%s14205_s1 + $0x80] sm:$0xff] (!%p190_p2)   ;;  %v11585_v21 = vld [vmem:[%s14205_s1 + $0x88] sm:$0xff] (!%p190_p2)  }
   0xb   : > { %2033 = vmatpush1.bf16.msra.mxu0 (!%p190_p2), %v11554_v2  ;;  %v11598_v24 = vld [vmem:[%s14205_s1 + $0x90] sm:$0xff] (!%p190_p2)   ;;  %v11611_v25 = vld [vmem:[%s14205_s1 + $0x98] sm:$0xff] (!%p190_p2)   ;;  %v11624_v28 = vld [vmem:[%s14205_s1 + $0xa0] sm:$0xff] (!%p190_p2)  }
   0xc   : > { %2034 = vmatprep.subr.bf16.mxu0 (!%p190_p2), %v12203_v1  ;;  %v11637_v33 = vld [vmem:[%s14205_s1 + $0xa8] sm:$0xff] (!%p190_p2)   ;;  %v11650_v42 = vld [vmem:[%s14205_s1 + $0xb0] sm:$0xff] (!%p190_p2)   ;;  %v11663_v51 = vld [vmem:[%s14205_s1 + $0xb8] sm:$0xff] (!%p190_p2)  }
   0xd   : > { %s14211_s22 = smov (!%p219_p3, %s9277_s22), 3  ;;  %v11676_v60 = vld [vmem:[%s14205_s1 + $0xc0] sm:$0xff]   ;;  %s14213_s19 = smov (!%p225_p4, %s12243_s19), 1 }
   0xe   : > { %s10387_s29 = sshll.u32 %s14211_s22, 10  ;;  %s10388_s12 = sshll.u32 %s14213_s19, 4 }
   0xf   : > { %2035 = vmatpush1.bf16.msra.mxu0 %v11555_v3  ;;  %s12271_s9 = scalar_lea.vmem %s14204_s0, %s10387_s29  ;;  %s14193_s15 = scalar_lea.vmem %s14209_s5, %s10388_s12 }
  0x10   : > { %2036 = vmatprep.subr.bf16.mxu0 %v12203_v1  ;;  %v11571_v6 = vld [vmem:[%s12271_s9 + $0x4] ss:$16 sps:$4 sm:$0xff]   ;;  %v11569_v18 = vld [vmem:[%s12271_s9] ss:$16 sps:$4 sm:$0xff]  }
  0x11   : > { %2062 = vmatprep.mubr.bf16.mxu0 %v11571_v6  ;;  %v11573_v20 = vld [vmem:[%s12271_s9 + $0x24] ss:$16 sps:$4 sm:$0xff]   ;;  %v11575_v22 = vld [vmem:[%s12271_s9 + $0x20] ss:$16 sps:$4 sm:$0xff]   ;;  %v11689_v6 = vld [vmem:[%s14205_s1 + $0xc8] sm:$0xff]  }
  0x12   : > { %v11576_v23 = vld [vmem:[%s12271_s9 + $0x44] ss:$16 sps:$4 sm:$0xff]   ;;  %v11578_v26 = vld [vmem:[%s12271_s9 + $0x40] ss:$16 sps:$4 sm:$0xff]  }
  0x13   : > { %2037 = vmatpush1.bf16.msra.mxu0 %v11556_v4  ;;  %v11579_v27 = vld [vmem:[%s12271_s9 + $0x64] ss:$16 sps:$4 sm:$0xff]   ;;  %v11581_v29 = vld [vmem:[%s12271_s9 + $0x60] ss:$16 sps:$4 sm:$0xff]  }
  0x14   : > { %2038 = vmatprep.subr.bf16.mxu0 %v12203_v1  ;;  %v11582_v30 = vld [vmem:[%s12271_s9 + $0x84] ss:$16 sps:$4 sm:$0xff]   ;;  %v11584_v31 = vld [vmem:[%s12271_s9 + $0x80] ss:$16 sps:$4 sm:$0xff]  }
  0x15   : > { %v11586_v32 = vld [vmem:[%s12271_s9 + $0xa4] ss:$16 sps:$4 sm:$0xff]   ;;  %v11588_v34 = vld [vmem:[%s12271_s9 + $0xa0] ss:$16 sps:$4 sm:$0xff]  }
  0x16   : > { %v11589_v35 = vld [vmem:[%s12271_s9 + $0xc4] ss:$16 sps:$4 sm:$0xff]   ;;  %v11591_v36 = vld [vmem:[%s12271_s9 + $0xc0] ss:$16 sps:$4 sm:$0xff]  }
  0x17   : > { %2039 = vmatpush1.bf16.msra.mxu0 %v11557_v5  ;;  %v11592_v37 = vld [vmem:[%s12271_s9 + $0xe4] ss:$16 sps:$4 sm:$0xff]   ;;  %v11594_v38 = vld [vmem:[%s12271_s9 + $0xe0] ss:$16 sps:$4 sm:$0xff]  }
  0x18   : > { %2040 = vmatprep.subr.bf16.mxu0 %v12203_v1  ;;  %v11595_v39 = vld [vmem:[%s12271_s9 + $0x104] ss:$16 sps:$4 sm:$0xff]   ;;  %v11597_v40 = vld [vmem:[%s12271_s9 + $0x100] ss:$16 sps:$4 sm:$0xff]  }
  0x19   : > { %v11599_v41 = vld [vmem:[%s12271_s9 + $0x124] ss:$16 sps:$4 sm:$0xff]   ;;  %v11601_v43 = vld [vmem:[%s12271_s9 + $0x120] ss:$16 sps:$4 sm:$0xff]  }
  0x1a   : > { %v11602_v44 = vld [vmem:[%s12271_s9 + $0x144] ss:$16 sps:$4 sm:$0xff]   ;;  %v11604_v45 = vld [vmem:[%s12271_s9 + $0x140] ss:$16 sps:$4 sm:$0xff]  }
  0x1b   : > { %2041 = vmatpush1.bf16.msra.mxu0 %v11558_v7  ;;  %v11605_v46 = vld [vmem:[%s12271_s9 + $0x164] ss:$16 sps:$4 sm:$0xff]   ;;  %v11607_v47 = vld [vmem:[%s12271_s9 + $0x160] ss:$16 sps:$4 sm:$0xff]  }
  0x1c   : > { %2042 = vmatprep.subr.bf16.mxu0 %v12203_v1  ;;  %v11608_v48 = vld [vmem:[%s12271_s9 + $0x184] ss:$16 sps:$4 sm:$0xff]   ;;  %v11610_v49 = vld [vmem:[%s12271_s9 + $0x180] ss:$16 sps:$4 sm:$0xff]  }
  0x1d   : > { %v11612_v50 = vld [vmem:[%s12271_s9 + $0x1a4] ss:$16 sps:$4 sm:$0xff]   ;;  %v11614_v52 = vld [vmem:[%s12271_s9 + $0x1a0] ss:$16 sps:$4 sm:$0xff]  }
  0x1e   : > { %v11615_v53 = vld [vmem:[%s12271_s9 + $0x1c4] ss:$16 sps:$4 sm:$0xff]   ;;  %v11617_v54 = vld [vmem:[%s12271_s9 + $0x1c0] ss:$16 sps:$4 sm:$0xff]  }
  0x1f   : > { %2043 = vmatpush1.bf16.msra.mxu0 %v11559_v8  ;;  %v11618_v55 = vld [vmem:[%s12271_s9 + $0x1e4] ss:$16 sps:$4 sm:$0xff]   ;;  %v11620_v56 = vld [vmem:[%s12271_s9 + $0x1e0] ss:$16 sps:$4 sm:$0xff]  }
  0x20   : > { %2044 = vmatprep.subr.bf16.mxu0 %v12203_v1  ;;  %v11621_v57 = vld [vmem:[%s12271_s9 + $0x204] ss:$16 sps:$4 sm:$0xff]   ;;  %v11623_v58 = vld [vmem:[%s12271_s9 + $0x200] ss:$16 sps:$4 sm:$0xff]  }
  0x21   : > { %v11625_v59 = vld [vmem:[%s12271_s9 + $0x224] ss:$16 sps:$4 sm:$0xff]   ;;  %v11627_v61 = vld [vmem:[%s12271_s9 + $0x220] ss:$16 sps:$4 sm:$0xff]  }
  0x22   : > { %v11628_v62 = vld [vmem:[%s12271_s9 + $0x244] ss:$16 sps:$4 sm:$0xff]   ;;  %v11630_v63 = vld [vmem:[%s12271_s9 + $0x240] ss:$16 sps:$4 sm:$0xff]  }
  0x23   : > { %2045 = vmatpush1.bf16.msra.mxu0 %v11560_v9  ;;  %v11631_v0 = vld [vmem:[%s12271_s9 + $0x264] ss:$16 sps:$4 sm:$0xff]   ;;  %v11633_v2 = vld [vmem:[%s12271_s9 + $0x260] ss:$16 sps:$4 sm:$0xff]  }
  0x24   : > { %2046 = vmatprep.subr.bf16.mxu0 %v12203_v1  ;;  %v11634_v3 = vld [vmem:[%s12271_s9 + $0x284] ss:$16 sps:$4 sm:$0xff]   ;;  %v11636_v4 = vld [vmem:[%s12271_s9 + $0x280] ss:$16 sps:$4 sm:$0xff]  }
  0x25   : > { %v11638_v5 = vld [vmem:[%s12271_s9 + $0x2a4] ss:$16 sps:$4 sm:$0xff]   ;;  %v11640_v7 = vld [vmem:[%s12271_s9 + $0x2a0] ss:$16 sps:$4 sm:$0xff]  }
  0x26   : > { %v11641_v8 = vld [vmem:[%s12271_s9 + $0x2c4] ss:$16 sps:$4 sm:$0xff]   ;;  %v11643_v9 = vld [vmem:[%s12271_s9 + $0x2c0] ss:$16 sps:$4 sm:$0xff]  }
  0x27   : > { %2047 = vmatpush1.bf16.msra.mxu0 %v11561_v10  ;;  %v11644_v10 = vld [vmem:[%s12271_s9 + $0x2e4] ss:$16 sps:$4 sm:$0xff]  }
  0x28   : > { %2048 = vmatprep.subr.bf16.mxu0 %v12203_v1 }
  0x2b   : > { %2049 = vmatpush1.bf16.msra.mxu0 %v11562_v11  ;;  %v11646_v11 = vld [vmem:[%s12271_s9 + $0x2e0] ss:$16 sps:$4 sm:$0xff]  }
  0x2c   : > { %2050 = vmatprep.subr.bf16.mxu0 %v12203_v1 }
  0x2f   : > { %2051 = vmatpush1.bf16.msra.mxu0 %v11563_v12  ;;  %v11647_v12 = vld [vmem:[%s12271_s9 + $0x304] ss:$16 sps:$4 sm:$0xff]  }
  0x30   : > { %2052 = vmatprep.subr.bf16.mxu0 %v12203_v1 }
  0x33   : > { %2053 = vmatpush1.bf16.msra.mxu0 %v11564_v13  ;;  %v11649_v13 = vld [vmem:[%s12271_s9 + $0x300] ss:$16 sps:$4 sm:$0xff]  }
  0x34   : > { %2054 = vmatprep.subr.bf16.mxu0 %v12203_v1 }
  0x37   : > { %2055 = vmatpush1.bf16.msra.mxu0 %v11565_v14  ;;  %v11651_v14 = vld [vmem:[%s12271_s9 + $0x324] ss:$16 sps:$4 sm:$0xff]  }
  0x38   : > { %2056 = vmatprep.subr.bf16.mxu0 %v12203_v1 }
  0x3b   : > { %2057 = vmatpush1.bf16.msra.mxu0 %v11566_v15  ;;  %v11702_v15 = vld [vmem:[%s14205_s1 + $0xd0] sm:$0xff]  }
  0x3c   : > { %2058 = vmatprep.subr.bf16.mxu0 %v12203_v1 }
  0x3f   : > { %2059 = vmatpush1.bf16.msra.mxu0 %v11567_v16  ;;  %v11653_v16 = vld [vmem:[%s12271_s9 + $0x320] ss:$16 sps:$4 sm:$0xff]  }
  0x40   : > { %2060 = vmatprep.subr.bf16.mxu0 %v12203_v1 }
  0x43   : > { %2061 = vmatpush1.bf16.msra.mxu0 %v11568_v17  ;;  %v11654_v17 = vld [vmem:[%s12271_s9 + $0x344] ss:$16 sps:$4 sm:$0xff]  }
  0x44   : > { %2575 = vmatprep.subr.bf16.mxu0 %v12203_v1 }
  0x46   : > { %2063 = vmatmul.mubr.bf16.vlgmr.msra.gmra.mrb[0].mxu0 %v11569_v18  ;;  %v11656_v18 = vld [vmem:[%s12271_s9 + $0x340] ss:$16 sps:$4 sm:$0xff]  }
  0x47   : > { %2576 = vmatpush1.bf16.msra.mxu0 %v11572_v19  ;;  %2070 = vmatprep.mubr.bf16.mxu0 %v11573_v20  ;;  %v11657_v19 = vld [vmem:[%s12271_s9 + $0x364] ss:$16 sps:$4 sm:$0xff]   ;;  %v11659_v20 = vld [vmem:[%s12271_s9 + $0x360] ss:$16 sps:$4 sm:$0xff]  }
  0x48   : > { %2577 = vmatprep.subr.bf16.mxu0 %v12203_v1 }
  0x4b   : > { %2578 = vmatpush1.bf16.msra.mxu0 %v11585_v21  ;;  %v11660_v21 = vld [vmem:[%s12271_s9 + $0x384] ss:$16 sps:$4 sm:$0xff]  }
  0x4c   : > { %2579 = vmatprep.subr.bf16.mxu0 %v12203_v1 }
  0x4e   : > { %2071 = vmatmul.mubr.bf16.gmra.mrb[4].mxu0 %v11575_v22  ;;  %v11662_v22 = vld [vmem:[%s12271_s9 + $0x380] ss:$16 sps:$4 sm:$0xff]  }
  0x4f   : > { %2078 = vmatprep.mubr.bf16.mxu0 %v11576_v23  ;;  %2580 = vmatpush1.bf16.msra.mxu0 %v11598_v24  ;;  %v11664_v23 = vld [vmem:[%s12271_s9 + $0x3a4] ss:$16 sps:$4 sm:$0xff]   ;;  %v11715_v24 = vld [vmem:[%s14205_s1 + $0xd8] sm:$0xff]  }
  0x50   : > { %2581 = vmatprep.subr.bf16.mxu0 %v12203_v1 }
  0x53   : > { %2582 = vmatpush1.bf16.msra.mxu0 %v11611_v25  ;;  %v11666_v25 = vld [vmem:[%s12271_s9 + $0x3a0] ss:$16 sps:$4 sm:$0xff]  }
  0x54   : > { %2583 = vmatprep.subr.bf16.mxu0 %v12203_v1 }
  0x56   : > { %2079 = vmatmul.mubr.bf16.gmra.mrb[8].mxu0 %v11578_v26  ;;  %v11667_v26 = vld [vmem:[%s12271_s9 + $0x3c4] ss:$16 sps:$4 sm:$0xff]  }
  0x57   : > { %2086 = vmatprep.mubr.bf16.mxu0 %v11579_v27  ;;  %2584 = vmatpush1.bf16.msra.mxu0 %v11624_v28  ;;  %v11669_v27 = vld [vmem:[%s12271_s9 + $0x3c0] ss:$16 sps:$4 sm:$0xff]   ;;  %v11670_v28 = vld [vmem:[%s12271_s9 + $0x3e4] ss:$16 sps:$4 sm:$0xff]  }
  0x58   : > { %2585 = vmatprep.subr.bf16.mxu0 %v12203_v1 }
  0x5b   : > { %2586 = vmatpush1.bf16.msra.mxu0 %v11637_v33  ;;  %v11728_v33 = vld [vmem:[%s14205_s1 + $0xe0] sm:$0xff]  }
  0x5c   : > { %2587 = vmatprep.subr.bf16.mxu0 %v12203_v1 }
  0x5e   : > { %2087 = vmatmul.mubr.bf16.gmra.mrb[12].mxu0 %v11581_v29  ;;  %v11672_v29 = vld [vmem:[%s12271_s9 + $0x3e0] ss:$16 sps:$4 sm:$0xff]  }
  0x5f   : > { %2094 = vmatprep.mubr.bf16.mxu0 %v11582_v30  ;;  %2588 = vmatpush1.bf16.msra.mxu0 %v11650_v42  ;;  %v11673_v30 = vld [vmem:[%s12271_s9 + $0x404] ss:$16 sps:$4 sm:$0xff]   ;;  %v11741_v42 = vld [vmem:[%s14205_s1 + $0xe8] sm:$0xff]  }
  0x60   : > { %2589 = vmatprep.subr.bf16.mxu0 %v12203_v1 }
  0x63   : > { %2590 = vmatpush1.bf16.msra.mxu0 %v11663_v51  ;;  %v11754_v51 = vld [vmem:[%s14205_s1 + $0xf0] sm:$0xff]  }
  0x64   : > { %2591 = vmatprep.subr.bf16.mxu0 %v12203_v1 }
  0x66   : > { %2095 = vmatmul.mubr.bf16.gmra.mrb[16].mxu0 %v11584_v31  ;;  %v11675_v31 = vld [vmem:[%s12271_s9 + $0x400] ss:$16 sps:$4 sm:$0xff]  }
  0x67   : > { %2102 = vmatprep.mubr.bf16.mxu0 %v11586_v32  ;;  %2592 = vmatpush1.bf16.msra.mxu0 %v11676_v60  ;;  %v11677_v32 = vld [vmem:[%s12271_s9 + $0x424] ss:$16 sps:$4 sm:$0xff]   ;;  %v11767_v60 = vld [vmem:[%s14205_s1 + $0xf8] sm:$0xff]  }
  0x68   : > { %2593 = vmatprep.subr.bf16.mxu0 %v12203_v1 }
  0x6b   : > { %2594 = vmatpush1.bf16.msra.mxu0 %v11689_v6  ;;  %v11731_v6 = vld [vmem:[%s12271_s9 + $0x620] ss:$16 sps:$4 sm:$0xff]  }
  0x6c   : > { %2595 = vmatprep.subr.bf16.mxu0 %v12203_v1 }
  0x6e   : > { %2103 = vmatmul.mubr.bf16.gmra.mrb[20].mxu0 %v11588_v34  ;;  %v11679_v34 = vld [vmem:[%s12271_s9 + $0x420] ss:$16 sps:$4 sm:$0xff]  }
  0x6f   : > { %2110 = vmatprep.mubr.bf16.mxu0 %v11589_v35  ;;  %2596 = vmatpush1.bf16.msra.mxu0 %v11702_v15  ;;  %v11680_v35 = vld [vmem:[%s12271_s9 + $0x444] ss:$16 sps:$4 sm:$0xff]  }
  0x70   : > { %2597 = vmatprep.subr.bf16.mxu0 %v12203_v1  ;;  %v11745_v15 = vld [vmem:[%s12271_s9 + $0x6c4] ss:$16 sps:$4 sm:$0xff]  }
  0x73   : > { %2598 = vmatpush1.bf16.msra.mxu0 %v11715_v24  ;;  %v11760_v24 = vld [vmem:[%s12271_s9 + $0x740] ss:$16 sps:$4 sm:$0xff]  }
  0x74   : > { %2599 = vmatprep.subr.bf16.mxu0 %v12203_v1 }
  0x76   : > { %2111 = vmatmul.mubr.bf16.gmra.mrb[24].mxu0 %v11591_v36  ;;  %v11682_v36 = vld [vmem:[%s12271_s9 + $0x440] ss:$16 sps:$4 sm:$0xff]  }
  0x77   : > { %2118 = vmatprep.mubr.bf16.mxu0 %v11592_v37  ;;  %2600 = vmatpush1.bf16.msra.mxu0 %v11728_v33  ;;  %v11683_v37 = vld [vmem:[%s12271_s9 + $0x464] ss:$16 sps:$4 sm:$0xff]  }
  0x78   : > { %2601 = vmatprep.subr.bf16.mxu0 %v12203_v1  ;;  %v11774_v33 = vld [vmem:[%s12271_s9 + $0x7e4] ss:$16 sps:$4 sm:$0xff]  }
  0x7b   : > { %2602 = vmatpush1.bf16.msra.mxu0 %v11741_v42  ;;  %v11788_v42 = vld [vmem:[%s12271_s9 + $0x68] ss:$16 sps:$4 sm:$0xff]  }
  0x7c   : > { %2603 = vmatprep.subr.bf16.mxu0 %v12203_v1 }
  0x7e   : > { %2119 = vmatmul.mubr.bf16.gmra.mrb[28].mxu0 %v11594_v38  ;;  %v11685_v38 = vld [vmem:[%s12271_s9 + $0x460] ss:$16 sps:$4 sm:$0xff]  }
  0x7f   : > { %2126 = vmatprep.mubr.bf16.mxu0 %v11595_v39  ;;  %v11686_v39 = vld [vmem:[%s12271_s9 + $0x484] ss:$16 sps:$4 sm:$0xff]   ;;  %2604 = vmatpush1.bf16.msra.mxu0 %v11754_v51  ;;  %v11847_v51 = vld [vmem:[%s14205_s1 + $0x108] sm:$0xff]  }
  0x80   : > { %2605 = vmatprep.subr.bf16.mxu0 %v12203_v1 }
  0x83   : > { %2606 = vmatpush1.bf16.msra.mxu0 %v11767_v60  ;;  %v11858_v60 = vld [vmem:[%s14205_s1 + $0x130] sm:$0xff]  }
  0x86   : > { %2127 = vmatmul.mubr.bf16.gmra.mrb[32].mxu0 %v11597_v40  ;;  %v11688_v40 = vld [vmem:[%s12271_s9 + $0x480] ss:$16 sps:$4 sm:$0xff]  }
  0x87   : > { %2134 = vmatprep.mubr.bf16.mxu0 %v11599_v41  ;;  %v11690_v41 = vld [vmem:[%s12271_s9 + $0x4a4] ss:$16 sps:$4 sm:$0xff]  }
  0x8e   : > { %2135 = vmatmul.mubr.bf16.gmra.mrb[36].mxu0 %v11601_v43  ;;  %v11692_v43 = vld [vmem:[%s12271_s9 + $0x4a0] ss:$16 sps:$4 sm:$0xff]  }
  0x8f   : > { %2142 = vmatprep.mubr.bf16.mxu0 %v11602_v44  ;;  %v11693_v44 = vld [vmem:[%s12271_s9 + $0x4c4] ss:$16 sps:$4 sm:$0xff]  }
  0x96   : > { %2143 = vmatmul.mubr.bf16.gmra.mrb[40].mxu0 %v11604_v45  ;;  %v11695_v45 = vld [vmem:[%s12271_s9 + $0x4c0] ss:$16 sps:$4 sm:$0xff]  }
  0x97   : > { %2150 = vmatprep.mubr.bf16.mxu0 %v11605_v46  ;;  %v11696_v46 = vld [vmem:[%s12271_s9 + $0x4e4] ss:$16 sps:$4 sm:$0xff]  }
  0x9e   : > { %2151 = vmatmul.mubr.bf16.gmra.mrb[44].mxu0 %v11607_v47  ;;  %v11698_v47 = vld [vmem:[%s12271_s9 + $0x4e0] ss:$16 sps:$4 sm:$0xff]  }
  0x9f   : > { %2158 = vmatprep.mubr.bf16.mxu0 %v11608_v48  ;;  %v11699_v48 = vld [vmem:[%s12271_s9 + $0x504] ss:$16 sps:$4 sm:$0xff]  }
  0xa6   : > { %2159 = vmatmul.mubr.bf16.gmra.mrb[48].mxu0 %v11610_v49  ;;  %v11701_v49 = vld [vmem:[%s12271_s9 + $0x500] ss:$16 sps:$4 sm:$0xff]  }
  0xa7   : > { %2166 = vmatprep.mubr.bf16.mxu0 %v11612_v50  ;;  %v11703_v50 = vld [vmem:[%s12271_s9 + $0x524] ss:$16 sps:$4 sm:$0xff]  }
  0xae   : > { %2167 = vmatmul.mubr.bf16.gmra.mrb[52].mxu0 %v11614_v52  ;;  %v11705_v52 = vld [vmem:[%s12271_s9 + $0x520] ss:$16 sps:$4 sm:$0xff]  }
  0xaf   : > { %2174 = vmatprep.mubr.bf16.mxu0 %v11615_v53  ;;  %v11706_v53 = vld [vmem:[%s12271_s9 + $0x544] ss:$16 sps:$4 sm:$0xff]  }
  0xb6   : > { %2175 = vmatmul.mubr.bf16.gmra.mrb[56].mxu0 %v11617_v54  ;;  %v11708_v54 = vld [vmem:[%s12271_s9 + $0x540] ss:$16 sps:$4 sm:$0xff]  }
  0xb7   : > { %2182 = vmatprep.mubr.bf16.mxu0 %v11618_v55  ;;  %v11709_v55 = vld [vmem:[%s12271_s9 + $0x564] ss:$16 sps:$4 sm:$0xff]  }
  0xbe   : > { %2183 = vmatmul.mubr.bf16.gmra.mrb[60].mxu0 %v11620_v56  ;;  %v11711_v56 = vld [vmem:[%s12271_s9 + $0x560] ss:$16 sps:$4 sm:$0xff]  }
  0xbf   : > { %2190 = vmatprep.mubr.bf16.mxu0 %v11621_v57  ;;  %v11712_v57 = vld [vmem:[%s12271_s9 + $0x584] ss:$16 sps:$4 sm:$0xff]  }
  0xc6   : > { %2191 = vmatmul.mubr.bf16.gmra.mrb[64].mxu0 %v11623_v58  ;;  %v11714_v58 = vld [vmem:[%s12271_s9 + $0x580] ss:$16 sps:$4 sm:$0xff]  }
  0xc7   : > { %2198 = vmatprep.mubr.bf16.mxu0 %v11625_v59  ;;  %v11716_v59 = vld [vmem:[%s12271_s9 + $0x5a4] ss:$16 sps:$4 sm:$0xff]  }
  0xce   : > { %2199 = vmatmul.mubr.bf16.gmra.mrb[68].mxu0 %v11627_v61  ;;  %v11718_v61 = vld [vmem:[%s12271_s9 + $0x5a0] ss:$16 sps:$4 sm:$0xff]  }
  0xcf   : > { %2206 = vmatprep.mubr.bf16.mxu0 %v11628_v62  ;;  %v11719_v62 = vld [vmem:[%s12271_s9 + $0x5c4] ss:$16 sps:$4 sm:$0xff]  }
  0xd6   : > { %2207 = vmatmul.mubr.bf16.gmra.mrb[72].mxu0 %v11630_v63  ;;  %v11721_v63 = vld [vmem:[%s12271_s9 + $0x5c0] ss:$16 sps:$4 sm:$0xff]  }
  0xd7   : > { %2214 = vmatprep.mubr.bf16.mxu0 %v11631_v0  ;;  %v11722_v0 = vld [vmem:[%s12271_s9 + $0x5e4] ss:$16 sps:$4 sm:$0xff]  }
  0xde   : > { %2215 = vmatmul.mubr.bf16.gmra.mrb[76].mxu0 %v11633_v2  ;;  %v11724_v2 = vld [vmem:[%s12271_s9 + $0x5e0] ss:$16 sps:$4 sm:$0xff]  }
  0xdf   : > { %2222 = vmatprep.mubr.bf16.mxu0 %v11634_v3  ;;  %v11725_v3 = vld [vmem:[%s12271_s9 + $0x604] ss:$16 sps:$4 sm:$0xff]  }
  0xe6   : > { %2223 = vmatmul.mubr.bf16.gmra.mrb[80].mxu0 %v11636_v4  ;;  %v11727_v4 = vld [vmem:[%s12271_s9 + $0x600] ss:$16 sps:$4 sm:$0xff]  }
  0xe7   : > { %2230 = vmatprep.mubr.bf16.mxu0 %v11638_v5  ;;  %v11729_v5 = vld [vmem:[%s12271_s9 + $0x624] ss:$16 sps:$4 sm:$0xff]  }
  0xee   : > { %2231 = vmatmul.mubr.bf16.gmra.mrb[84].mxu0 %v11640_v7  ;;  %v11732_v7 = vld [vmem:[%s12271_s9 + $0x644] ss:$16 sps:$4 sm:$0xff]  }
  0xef   : > { %2238 = vmatprep.mubr.bf16.mxu0 %v11641_v8  ;;  %v11734_v8 = vld [vmem:[%s12271_s9 + $0x640] ss:$16 sps:$4 sm:$0xff]  }
  0xf6   : > { %2239 = vmatmul.mubr.bf16.gmra.mrb[88].mxu0 %v11643_v9  ;;  %v11735_v9 = vld [vmem:[%s12271_s9 + $0x664] ss:$16 sps:$4 sm:$0xff]  }
  0xf7   : > { %2246 = vmatprep.mubr.bf16.mxu0 %v11644_v10  ;;  %v11737_v10 = vld [vmem:[%s12271_s9 + $0x660] ss:$16 sps:$4 sm:$0xff]  }
  0xfe   : > { %2247 = vmatmul.mubr.bf16.gmra.mrb[92].mxu0 %v11646_v11  ;;  %v11738_v11 = vld [vmem:[%s12271_s9 + $0x684] ss:$16 sps:$4 sm:$0xff]  }
  0xff   : > { %2254 = vmatprep.mubr.bf16.mxu0 %v11647_v12  ;;  %v11740_v12 = vld [vmem:[%s12271_s9 + $0x680] ss:$16 sps:$4 sm:$0xff]  }
 0x106   : > { %2255 = vmatmul.mubr.bf16.gmra.mrb[96].mxu0 %v11649_v13  ;;  %v11742_v13 = vld [vmem:[%s12271_s9 + $0x6a4] ss:$16 sps:$4 sm:$0xff]  }
 0x107   : > { %2262 = vmatprep.mubr.bf16.mxu0 %v11651_v14  ;;  %v11744_v14 = vld [vmem:[%s12271_s9 + $0x6a0] ss:$16 sps:$4 sm:$0xff]  }
 0x10e   : > { %2263 = vmatmul.mubr.bf16.gmra.mrb[100].mxu0 %v11653_v16  ;;  %v11747_v16 = vld [vmem:[%s12271_s9 + $0x6c0] ss:$16 sps:$4 sm:$0xff]  }
 0x10f   : > { %2270 = vmatprep.mubr.bf16.mxu0 %v11654_v17  ;;  %v11748_v17 = vld [vmem:[%s12271_s9 + $0x6e4] ss:$16 sps:$4 sm:$0xff]  }
 0x116   : > { %2271 = vmatmul.mubr.bf16.gmra.mrb[104].mxu0 %v11656_v18  ;;  %v11750_v18 = vld [vmem:[%s12271_s9 + $0x6e0] ss:$16 sps:$4 sm:$0xff]  }
 0x117   : > { %2278 = vmatprep.mubr.bf16.mxu0 %v11657_v19  ;;  %v11751_v19 = vld [vmem:[%s12271_s9 + $0x704] ss:$16 sps:$4 sm:$0xff]  }
 0x11e   : > { %2279 = vmatmul.mubr.bf16.gmra.mrb[108].mxu0 %v11659_v20  ;;  %v11753_v20 = vld [vmem:[%s12271_s9 + $0x700] ss:$16 sps:$4 sm:$0xff]  }
 0x11f   : > { %2286 = vmatprep.mubr.bf16.mxu0 %v11660_v21  ;;  %v11755_v21 = vld [vmem:[%s12271_s9 + $0x724] ss:$16 sps:$4 sm:$0xff]  }
 0x126   : > { %2287 = vmatmul.mubr.bf16.gmra.mrb[112].mxu0 %v11662_v22  ;;  %v11757_v22 = vld [vmem:[%s12271_s9 + $0x720] ss:$16 sps:$4 sm:$0xff]  }
 0x127   : > { %2294 = vmatprep.mubr.bf16.mxu0 %v11664_v23  ;;  %v11758_v23 = vld [vmem:[%s12271_s9 + $0x744] ss:$16 sps:$4 sm:$0xff]  }
 0x12e   : > { %2295 = vmatmul.mubr.bf16.gmra.mrb[116].mxu0 %v11666_v25  ;;  %v11761_v25 = vld [vmem:[%s12271_s9 + $0x764] ss:$16 sps:$4 sm:$0xff]  }
 0x12f   : > { %2302 = vmatprep.mubr.bf16.mxu0 %v11667_v26  ;;  %v11763_v26 = vld [vmem:[%s12271_s9 + $0x760] ss:$16 sps:$4 sm:$0xff]  }
 0x136   : > { %2303 = vmatmul.mubr.bf16.gmra.mrb[120].mxu0 %v11669_v27  ;;  %v11764_v27 = vld [vmem:[%s12271_s9 + $0x784] ss:$16 sps:$4 sm:$0xff]  }
 0x137   : > { %2310 = vmatprep.mubr.bf16.mxu0 %v11670_v28  ;;  %v11766_v28 = vld [vmem:[%s12271_s9 + $0x780] ss:$16 sps:$4 sm:$0xff]  }
 0x13e   : > { %2311 = vmatmul.mubr.bf16.gmra.mrb[124].mxu0 %v11672_v29  ;;  %v11768_v29 = vld [vmem:[%s12271_s9 + $0x7a4] ss:$16 sps:$4 sm:$0xff]  }
 0x13f   : > { %2318 = vmatprep.mubr.bf16.mxu0 %v11673_v30  ;;  %v11770_v30 = vld [vmem:[%s12271_s9 + $0x7a0] ss:$16 sps:$4 sm:$0xff]  }
 0x146   : > { %2319 = vmatmul.mubr.bf16.gmra.mrb[128].mxu0 %v11675_v31  ;;  %v11771_v31 = vld [vmem:[%s12271_s9 + $0x7c4] ss:$16 sps:$4 sm:$0xff]  }
 0x147   : > { %2326 = vmatprep.mubr.bf16.mxu0 %v11677_v32  ;;  %v11773_v32 = vld [vmem:[%s12271_s9 + $0x7c0] ss:$16 sps:$4 sm:$0xff]  }
 0x14e   : > { %2327 = vmatmul.mubr.bf16.gmra.mrb[132].mxu0 %v11679_v34  ;;  %v11776_v34 = vld [vmem:[%s12271_s9 + $0x7e0] ss:$16 sps:$4 sm:$0xff]  }
 0x14f   : > { %2334 = vmatprep.mubr.bf16.mxu0 %v11680_v35  ;;  %v11779_v35 = vld [vmem:[%s12271_s9 + $0xc] ss:$16 sps:$4 sm:$0xff]  }
 0x156   : > { %2335 = vmatmul.mubr.bf16.gmra.mrb[136].mxu0 %v11682_v36  ;;  %v11777_v36 = vld [vmem:[%s12271_s9 + $0x8] ss:$16 sps:$4 sm:$0xff]  }
 0x157   : > { %2342 = vmatprep.mubr.bf16.mxu0 %v11683_v37  ;;  %v11780_v37 = vld [vmem:[%s12271_s9 + $0x2c] ss:$16 sps:$4 sm:$0xff]  }
 0x15e   : > { %2343 = vmatmul.mubr.bf16.gmra.mrb[140].mxu0 %v11685_v38  ;;  %v11782_v38 = vld [vmem:[%s12271_s9 + $0x28] ss:$16 sps:$4 sm:$0xff]  }
 0x15f   : > { %2350 = vmatprep.mubr.bf16.mxu0 %v11686_v39  ;;  %v11783_v39 = vld [vmem:[%s12271_s9 + $0x4c] ss:$16 sps:$4 sm:$0xff]  }
 0x166   : > { %2351 = vmatmul.mubr.bf16.gmra.mrb[144].mxu0 %v11688_v40  ;;  %v11785_v40 = vld [vmem:[%s12271_s9 + $0x48] ss:$16 sps:$4 sm:$0xff]  }
 0x167   : > { %2358 = vmatprep.mubr.bf16.mxu0 %v11690_v41  ;;  %v11786_v41 = vld [vmem:[%s12271_s9 + $0x6c] ss:$16 sps:$4 sm:$0xff]  }
 0x16e   : > { %2359 = vmatmul.mubr.bf16.gmra.mrb[148].mxu0 %v11692_v43  ;;  %v11789_v43 = vld [vmem:[%s12271_s9 + $0x8c] ss:$16 sps:$4 sm:$0xff]  }
 0x16f   : > { %2366 = vmatprep.mubr.bf16.mxu0 %v11693_v44  ;;  %v11791_v44 = vld [vmem:[%s12271_s9 + $0x88] ss:$16 sps:$4 sm:$0xff]  }
 0x176   : > { %2367 = vmatmul.mubr.bf16.gmra.mrb[152].mxu0 %v11695_v45  ;;  %v11792_v45 = vld [vmem:[%s12271_s9 + $0xac] ss:$16 sps:$4 sm:$0xff]  }
 0x177   : > { %2374 = vmatprep.mubr.bf16.mxu0 %v11696_v46  ;;  %v11794_v46 = vld [vmem:[%s12271_s9 + $0xa8] ss:$16 sps:$4 sm:$0xff]  }
 0x17e   : > { %2375 = vmatmul.mubr.bf16.gmra.mrb[156].mxu0 %v11698_v47  ;;  %v11795_v47 = vld [vmem:[%s12271_s9 + $0xcc] ss:$16 sps:$4 sm:$0xff]  }
 0x17f   : > { %2382 = vmatprep.mubr.bf16.mxu0 %v11699_v48  ;;  %v11843_v48 = vld [vmem:[%s14205_s1 + $0x100] sm:$0xff]  }
 0x180   : > { %4281 = vmatpush1.bf16.msra.mxu1 %v11843_v48 }
 0x181   : > { %4282 = vmatprep.subr.bf16.mxu1 %v12203_v1 }
 0x184   : > { %4283 = vmatpush1.bf16.msra.mxu1 %v11847_v51 }
 0x185   : > { %4284 = vmatprep.subr.bf16.mxu1 %v12203_v1 }
 0x186   : > { %2383 = vmatmul.mubr.bf16.gmra.mrb[160].mxu0 %v11701_v49  ;;  %v11797_v49 = vld [vmem:[%s12271_s9 + $0xc8] ss:$16 sps:$4 sm:$0xff]  }
 0x187   : > { %2390 = vmatprep.mubr.bf16.mxu0 %v11703_v50  ;;  %v11798_v50 = vld [vmem:[%s12271_s9 + $0xec] ss:$16 sps:$4 sm:$0xff]  }
 0x18e   : > { %2391 = vmatmul.mubr.bf16.gmra.mrb[164].mxu0 %v11705_v52  ;;  %v11848_v52 = vld [vmem:[%s14205_s1 + $0x110] sm:$0xff]  }
 0x18f   : > { %2398 = vmatprep.mubr.bf16.mxu0 %v11706_v53  ;;  %v11800_v53 = vld [vmem:[%s12271_s9 + $0xe8] ss:$16 sps:$4 sm:$0xff]   ;;  %4285 = vmatpush1.bf16.msra.mxu1 %v11848_v52 }
 0x190   : > { %4286 = vmatprep.subr.bf16.mxu1 %v12203_v1 }
 0x196   : > { %2399 = vmatmul.mubr.bf16.gmra.mrb[168].mxu0 %v11708_v54  ;;  %v11801_v54 = vld [vmem:[%s12271_s9 + $0x10c] ss:$16 sps:$4 sm:$0xff]  }
 0x197   : > { %2406 = vmatprep.mubr.bf16.mxu0 %v11709_v55  ;;  %v11852_v55 = vld [vmem:[%s14205_s1 + $0x118] sm:$0xff]  }
 0x198   : > { %4287 = vmatpush1.bf16.msra.mxu1 %v11852_v55 }
 0x199   : > { %4288 = vmatprep.subr.bf16.mxu1 %v12203_v1 }
 0x19e   : > { %2407 = vmatmul.mubr.bf16.gmra.mrb[172].mxu0 %v11711_v56  ;;  %v11853_v56 = vld [vmem:[%s14205_s1 + $0x120] sm:$0xff]  }
 0x19f   : > { %2414 = vmatprep.mubr.bf16.mxu0 %v11712_v57  ;;  %v11803_v57 = vld [vmem:[%s12271_s9 + $0x108] ss:$16 sps:$4 sm:$0xff]   ;;  %4289 = vmatpush1.bf16.msra.mxu1 %v11853_v56 }
 0x1a0   : > { %4290 = vmatprep.subr.bf16.mxu1 %v12203_v1 }
 0x1a6   : > { %2415 = vmatmul.mubr.bf16.gmra.mrb[176].mxu0 %v11714_v58  ;;  %v11804_v58 = vld [vmem:[%s12271_s9 + $0x12c] ss:$16 sps:$4 sm:$0xff]  }
 0x1a7   : > { %2422 = vmatprep.mubr.bf16.mxu0 %v11716_v59  ;;  %v11857_v59 = vld [vmem:[%s14205_s1 + $0x128] sm:$0xff]  }
 0x1a8   : > { %4291 = vmatpush1.bf16.msra.mxu1 %v11857_v59  ;;  %v11879_v59 = vld [vmem:[%s12271_s9 + $0x3ac] ss:$16 sps:$4 sm:$0xff]  }
 0x1a9   : > { %4292 = vmatprep.subr.bf16.mxu1 %v12203_v1 }
 0x1ac   : > { %4293 = vmatpush1.bf16.msra.mxu1 %v11858_v60 }
 0x1ad   : > { %4294 = vmatprep.subr.bf16.mxu1 %v12203_v1 }
 0x1ae   : > { %2423 = vmatmul.mubr.bf16.gmra.mrb[180].mxu0 %v11718_v61  ;;  %v11806_v61 = vld [vmem:[%s12271_s9 + $0x128] ss:$16 sps:$4 sm:$0xff]  }
 0x1af   : > { %2430 = vmatprep.mubr.bf16.mxu0 %v11719_v62  ;;  %v11807_v62 = vld [vmem:[%s12271_s9 + $0x14c] ss:$16 sps:$4 sm:$0xff]  }
 0x1b6   : > { %2431 = vmatmul.mubr.bf16.gmra.mrb[184].mxu0 %v11721_v63  ;;  %v11862_v63 = vld [vmem:[%s14205_s1 + $0x138] sm:$0xff]  }
 0x1b7   : > { %2438 = vmatprep.mubr.bf16.mxu0 %v11722_v0  ;;  %4295 = vmatpush1.bf16.msra.mxu1 %v11862_v63  ;;  %v11863_v0 = vld [vmem:[%s14205_s1 + $0x140] sm:$0xff]  }
 0x1b8   : > { %4296 = vmatprep.subr.bf16.mxu1 %v12203_v1 }
 0x1bb   : > { %4297 = vmatpush1.bf16.msra.mxu1 %v11863_v0 }
 0x1bc   : > { %4298 = vmatprep.subr.bf16.mxu1 %v12203_v1 }
 0x1be   : > { %2439 = vmatmul.mubr.bf16.gmra.mrb[188].mxu0 %v11724_v2  ;;  %v11809_v2 = vld [vmem:[%s12271_s9 + $0x148] ss:$16 sps:$4 sm:$0xff]  }
 0x1bf   : > { %2446 = vmatprep.mubr.bf16.mxu0 %v11725_v3  ;;  %v11810_v3 = vld [vmem:[%s12271_s9 + $0x16c] ss:$16 sps:$4 sm:$0xff]  }
 0x1c6   : > { %2447 = vmatmul.mubr.bf16.gmra.mrb[192].mxu0 %v11727_v4  ;;  %v11867_v4 = vld [vmem:[%s14205_s1 + $0x148] sm:$0xff]  }
 0x1c7   : > { %2454 = vmatprep.mubr.bf16.mxu0 %v11729_v5  ;;  %4299 = vmatpush1.bf16.msra.mxu1 %v11867_v4  ;;  %v11812_v5 = vld [vmem:[%s12271_s9 + $0x168] ss:$16 sps:$4 sm:$0xff]  }
 0x1c8   : > { %4300 = vmatprep.subr.bf16.mxu1 %v12203_v1  ;;  %v11881_v4 = vld [vmem:[%s12271_s9 + $0x3a8] ss:$16 sps:$4 sm:$0xff]  }
 0x1ce   : > { %2455 = vmatmul.mubr.bf16.gmra.mrb[196].mxu0 %v11731_v6  ;;  %v11868_v6 = vld [vmem:[%s14205_s1 + $0x150] sm:$0xff]  }
 0x1cf   : > { %2462 = vmatprep.mubr.bf16.mxu0 %v11732_v7  ;;  %v11813_v7 = vld [vmem:[%s12271_s9 + $0x18c] ss:$16 sps:$4 sm:$0xff]   ;;  %4301 = vmatpush1.bf16.msra.mxu1 %v11868_v6 }
 0x1d0   : > { %4302 = vmatprep.subr.bf16.mxu1 %v12203_v1  ;;  %v11883_v6 = vld [vmem:[%s12271_s9 + $0x3cc] ss:$16 sps:$4 sm:$0xff]  }
 0x1d6   : > { %2463 = vmatmul.mubr.bf16.gmra.mrb[200].mxu0 %v11734_v8  ;;  %v11872_v8 = vld [vmem:[%s14205_s1 + $0x158] sm:$0xff]  }
 0x1d7   : > { %2470 = vmatprep.mubr.bf16.mxu0 %v11735_v9  ;;  %4303 = vmatpush1.bf16.msra.mxu1 %v11872_v8  ;;  %v11815_v9 = vld [vmem:[%s12271_s9 + $0x188] ss:$16 sps:$4 sm:$0xff]  }
 0x1d8   : > { %4304 = vmatprep.subr.bf16.mxu1 %v12203_v1 }
 0x1de   : > { %2471 = vmatmul.mubr.bf16.gmra.mrb[204].mxu0 %v11737_v10  ;;  %v11873_v10 = vld [vmem:[%s14205_s1 + $0x160] sm:$0xff]  }
 0x1df   : > { %2478 = vmatprep.mubr.bf16.mxu0 %v11738_v11  ;;  %v11816_v11 = vld [vmem:[%s12271_s9 + $0x1ac] ss:$16 sps:$4 sm:$0xff]   ;;  %4305 = vmatpush1.bf16.msra.mxu1 %v11873_v10 }
 0x1e0   : > { %4306 = vmatprep.subr.bf16.mxu1 %v12203_v1 }
 0x1e6   : > { %2479 = vmatmul.mubr.bf16.gmra.mrb[208].mxu0 %v11740_v12  ;;  %v11877_v12 = vld [vmem:[%s14205_s1 + $0x168] sm:$0xff]  }
 0x1e7   : > { %2486 = vmatprep.mubr.bf16.mxu0 %v11742_v13  ;;  %4307 = vmatpush1.bf16.msra.mxu1 %v11877_v12  ;;  %v11818_v13 = vld [vmem:[%s12271_s9 + $0x1a8] ss:$16 sps:$4 sm:$0xff]  }
 0x1e8   : > { %4308 = vmatprep.subr.bf16.mxu1 %v12203_v1 }
 0x1ee   : > { %2487 = vmatmul.mubr.bf16.gmra.mrb[212].mxu0 %v11744_v14  ;;  %v11878_v14 = vld [vmem:[%s14205_s1 + $0x170] sm:$0xff]  }
 0x1ef   : > { %2494 = vmatprep.mubr.bf16.mxu0 %v11745_v15  ;;  %v11819_v15 = vld [vmem:[%s12271_s9 + $0x1cc] ss:$16 sps:$4 sm:$0xff]   ;;  %4309 = vmatpush1.bf16.msra.mxu1 %v11878_v14 }
 0x1f0   : > { %4310 = vmatprep.subr.bf16.mxu1 %v12203_v1 }
 0x1f6   : > { %2495 = vmatmul.mubr.bf16.gmra.mrb[216].mxu0 %v11747_v16  ;;  %v11882_v16 = vld [vmem:[%s14205_s1 + $0x178] sm:$0xff]  }
 0x1f7   : > { %2502 = vmatprep.mubr.bf16.mxu0 %v11748_v17  ;;  %4311 = vmatpush1.bf16.msra.mxu1 %v11882_v16  ;;  %v11821_v17 = vld [vmem:[%s12271_s9 + $0x1c8] ss:$16 sps:$4 sm:$0xff]  }
 0x1f8   : > { %4569 = vmatprep.subr.bf16.mxu1 %v12203_v1 }
 0x1fe   : > { %2503 = vmatmul.mubr.bf16.gmra.mrb[220].mxu0 %v11750_v18  ;;  %v11822_v18 = vld [vmem:[%s12271_s9 + $0x1ec] ss:$16 sps:$4 sm:$0xff]  }
 0x1ff   : > { %2510 = vmatprep.mubr.bf16.mxu0 %v11751_v19  ;;  %v11824_v19 = vld [vmem:[%s12271_s9 + $0x1e8] ss:$16 sps:$4 sm:$0xff]  }
 0x206   : > { %2511 = vmatmul.mubr.bf16.gmra.mrb[224].mxu0 %v11753_v20  ;;  %v11825_v20 = vld [vmem:[%s12271_s9 + $0x20c] ss:$16 sps:$4 sm:$0xff]  }
 0x207   : > { %2518 = vmatprep.mubr.bf16.mxu0 %v11755_v21  ;;  %v11827_v21 = vld [vmem:[%s12271_s9 + $0x208] ss:$16 sps:$4 sm:$0xff]  }
 0x20e   : > { %2519 = vmatmul.mubr.bf16.gmra.mrb[228].mxu0 %v11757_v22  ;;  %v11828_v22 = vld [vmem:[%s12271_s9 + $0x22c] ss:$16 sps:$4 sm:$0xff]  }
 0x20f   : > { %2526 = vmatprep.mubr.bf16.mxu0 %v11758_v23  ;;  %v11830_v23 = vld [vmem:[%s12271_s9 + $0x228] ss:$16 sps:$4 sm:$0xff]  }
 0x216   : > { %2527 = vmatmul.mubr.bf16.gmra.mrb[232].mxu0 %v11760_v24  ;;  %v11831_v24 = vld [vmem:[%s12271_s9 + $0x24c] ss:$16 sps:$4 sm:$0xff]  }
 0x217   : > { %2534 = vmatprep.mubr.bf16.mxu0 %v11761_v25  ;;  %v11833_v25 = vld [vmem:[%s12271_s9 + $0x248] ss:$16 sps:$4 sm:$0xff]  }
 0x21e   : > { %2535 = vmatmul.mubr.bf16.gmra.mrb[236].mxu0 %v11763_v26  ;;  %v11834_v26 = vld [vmem:[%s12271_s9 + $0x26c] ss:$16 sps:$4 sm:$0xff]  }
 0x21f   : > { %2542 = vmatprep.mubr.bf16.mxu0 %v11764_v27  ;;  %v11836_v27 = vld [vmem:[%s12271_s9 + $0x268] ss:$16 sps:$4 sm:$0xff]  }
 0x226   : > { %2543 = vmatmul.mubr.bf16.gmra.mrb[240].mxu0 %v11766_v28  ;;  %v11837_v28 = vld [vmem:[%s12271_s9 + $0x28c] ss:$16 sps:$4 sm:$0xff]  }
 0x227   : > { %2550 = vmatprep.mubr.bf16.mxu0 %v11768_v29  ;;  %v11839_v29 = vld [vmem:[%s12271_s9 + $0x288] ss:$16 sps:$4 sm:$0xff]  }
 0x22e   : > { %2551 = vmatmul.mubr.bf16.gmra.mrb[244].mxu0 %v11770_v30  ;;  %v11840_v30 = vld [vmem:[%s12271_s9 + $0x2ac] ss:$16 sps:$4 sm:$0xff]  }
 0x22f   : > { %2558 = vmatprep.mubr.bf16.mxu0 %v11771_v31  ;;  %v11842_v31 = vld [vmem:[%s12271_s9 + $0x2a8] ss:$16 sps:$4 sm:$0xff]  }
 0x236   : > { %2559 = vmatmul.mubr.bf16.gmra.mrb[248].mxu0 %v11773_v32  ;;  %v11844_v32 = vld [vmem:[%s12271_s9 + $0x2cc] ss:$16 sps:$4 sm:$0xff]  }
 0x237   : > { %2566 = vmatprep.mubr.bf16.mxu0 %v11774_v33  ;;  %v11846_v33 = vld [vmem:[%s12271_s9 + $0x2c8] ss:$16 sps:$4 sm:$0xff]  }
 0x23e   : > { %2567 = vmatmul.mubr.bf16.gmra.mrb[252].mxu0 %v11776_v34  ;;  %v11849_v34 = vld [vmem:[%s12271_s9 + $0x2ec] ss:$16 sps:$4 sm:$0xff]  }
 0x23f   : > { %2607 = vmatprep.mubr.bf16.mxu0 %v11779_v35  ;;  %v11851_v35 = vld [vmem:[%s12271_s9 + $0x2e8] ss:$16 sps:$4 sm:$0xff]  }
 0x246   : > { %2608 = vmatmul.mubr.bf16.vlgmr.msra.gmra.mrb[0].mxu0 %v11777_v36  ;;  %v11854_v36 = vld [vmem:[%s12271_s9 + $0x30c] ss:$16 sps:$4 sm:$0xff]  }
 0x247   : > { %2615 = vmatprep.mubr.bf16.mxu0 %v11780_v37  ;;  %v11856_v37 = vld [vmem:[%s12271_s9 + $0x308] ss:$16 sps:$4 sm:$0xff]  }
 0x24e   : > { %2616 = vmatmul.mubr.bf16.gmra.mrb[4].mxu0 %v11782_v38  ;;  %v11859_v38 = vld [vmem:[%s12271_s9 + $0x32c] ss:$16 sps:$4 sm:$0xff]  }
 0x24f   : > { %2623 = vmatprep.mubr.bf16.mxu0 %v11783_v39  ;;  %v11861_v39 = vld [vmem:[%s12271_s9 + $0x328] ss:$16 sps:$4 sm:$0xff]  }
 0x256   : > { %2624 = vmatmul.mubr.bf16.gmra.mrb[8].mxu0 %v11785_v40  ;;  %v11864_v40 = vld [vmem:[%s12271_s9 + $0x34c] ss:$16 sps:$4 sm:$0xff]  }
 0x257   : > { %2631 = vmatprep.mubr.bf16.mxu0 %v11786_v41  ;;  %v11866_v41 = vld [vmem:[%s12271_s9 + $0x348] ss:$16 sps:$4 sm:$0xff]  }
 0x25e   : > { %2632 = vmatmul.mubr.bf16.gmra.mrb[12].mxu0 %v11788_v42  ;;  %v11869_v42 = vld [vmem:[%s12271_s9 + $0x36c] ss:$16 sps:$4 sm:$0xff]  }
 0x25f   : > { %2639 = vmatprep.mubr.bf16.mxu0 %v11789_v43  ;;  %v12632_v43 = vld [vmem:[%s14206_s2] ss:$0 sm:$0xff] }
 0x266   : > { %2640 = vmatmul.mubr.bf16.gmra.mrb[16].mxu0 %v11791_v44 }
 0x267   : > { %2647 = vmatprep.mubr.bf16.mxu0 %v11792_v45 }
 0x26e   : > { %2648 = vmatmul.mubr.bf16.gmra.mrb[20].mxu0 %v11794_v46 }
 0x26f   : > { %2655 = vmatprep.mubr.bf16.mxu0 %v11795_v47  ;;  %v11871_v47 = vld [vmem:[%s12271_s9 + $0x368] ss:$16 sps:$4 sm:$0xff]  }
 0x276   : > { %2656 = vmatmul.mubr.bf16.gmra.mrb[24].mxu0 %v11797_v49  ;;  %v11874_v49 = vld [vmem:[%s12271_s9 + $0x38c] ss:$16 sps:$4 sm:$0xff]  }
 0x277   : > { %2663 = vmatprep.mubr.bf16.mxu0 %v11798_v50 }
 0x27e   : > { %2664 = vmatmul.mubr.bf16.gmra.mrb[28].mxu0 %v11800_v53 }
 0x27f   : > { %2671 = vmatprep.mubr.bf16.mxu0 %v11801_v54 }
 0x286   : > { %2672 = vmatmul.mubr.bf16.gmra.mrb[32].mxu0 %v11803_v57  ;;  %v11876_v57 = vld [vmem:[%s12271_s9 + $0x388] ss:$16 sps:$4 sm:$0xff]  }
 0x287   : > { %2679 = vmatprep.mubr.bf16.mxu0 %v11804_v58 }
 0x28e   : > { %2680 = vmatmul.mubr.bf16.gmra.mrb[36].mxu0 %v11806_v61 }
 0x28f   : > { %2687 = vmatprep.mubr.bf16.mxu0 %v11807_v62 }
 0x296   : > { %2688 = vmatmul.mubr.bf16.gmra.mrb[40].mxu0 %v11809_v2 }
 0x297   : > { %2695 = vmatprep.mubr.bf16.mxu0 %v11810_v3 }
 0x29e   : > { %2696 = vmatmul.mubr.bf16.gmra.mrb[44].mxu0 %v11812_v5 }
 0x29f   : > { %2703 = vmatprep.mubr.bf16.mxu0 %v11813_v7 }
 0x2a6   : > { %2704 = vmatmul.mubr.bf16.gmra.mrb[48].mxu0 %v11815_v9 }
 0x2a7   : > { %2711 = vmatprep.mubr.bf16.mxu0 %v11816_v11 }
 0x2ae   : > { %2712 = vmatmul.mubr.bf16.gmra.mrb[52].mxu0 %v11818_v13 }
 0x2af   : > { %2719 = vmatprep.mubr.bf16.mxu0 %v11819_v15 }
 0x2b6   : > { %2720 = vmatmul.mubr.bf16.gmra.mrb[56].mxu0 %v11821_v17 }
 0x2b7   : > { %2727 = vmatprep.mubr.bf16.mxu0 %v11822_v18 }
 0x2be   : > { %2728 = vmatmul.mubr.bf16.gmra.mrb[60].mxu0 %v11824_v19 }
 0x2bf   : > { %2735 = vmatprep.mubr.bf16.mxu0 %v11825_v20  ;;  %v11885_v20 = vld [vmem:[%s12271_s9 + $0x3c8] ss:$16 sps:$4 sm:$0xff]  }
 0x2c6   : > { %2736 = vmatmul.mubr.bf16.gmra.mrb[64].mxu0 %v11827_v21 }
 0x2c7   : > { %2743 = vmatprep.mubr.bf16.mxu0 %v11828_v22  ;;  %v11886_v22 = vld [vmem:[%s12271_s9 + $0x3ec] ss:$16 sps:$4 sm:$0xff]  }
 0x2ce   : > { %2744 = vmatmul.mubr.bf16.gmra.mrb[68].mxu0 %v11830_v23 }
 0x2cf   : > { %2751 = vmatprep.mubr.bf16.mxu0 %v11831_v24 }
 0x2d6   : > { %2752 = vmatmul.mubr.bf16.gmra.mrb[72].mxu0 %v11833_v25 }
 0x2d7   : > { %2759 = vmatprep.mubr.bf16.mxu0 %v11834_v26 }
 0x2de   : > { %2760 = vmatmul.mubr.bf16.gmra.mrb[76].mxu0 %v11836_v27 }
 0x2df   : > { %2767 = vmatprep.mubr.bf16.mxu0 %v11837_v28 }
 0x2e6   : > { %2768 = vmatmul.mubr.bf16.gmra.mrb[80].mxu0 %v11839_v29 }
 0x2e7   : > { %2775 = vmatprep.mubr.bf16.mxu0 %v11840_v30  ;;  %v11888_v30 = vld [vmem:[%s12271_s9 + $0x3e8] ss:$16 sps:$4 sm:$0xff]  }
 0x2ee   : > { %2776 = vmatmul.mubr.bf16.gmra.mrb[84].mxu0 %v11842_v31 }
 0x2ef   : > { %2783 = vmatprep.mubr.bf16.mxu0 %v11844_v32  ;;  %v11889_v32 = vld [vmem:[%s12271_s9 + $0x40c] ss:$16 sps:$4 sm:$0xff]  }
 0x2f6   : > { %2784 = vmatmul.mubr.bf16.gmra.mrb[88].mxu0 %v11846_v33 }
 0x2f7   : > { %2791 = vmatprep.mubr.bf16.mxu0 %v11849_v34 }
 0x2fe   : > { %2792 = vmatmul.mubr.bf16.gmra.mrb[92].mxu0 %v11851_v35 }
 0x2ff   : > { %2799 = vmatprep.mubr.bf16.mxu0 %v11854_v36 }
 0x306   : > { %2800 = vmatmul.mubr.bf16.gmra.mrb[96].mxu0 %v11856_v37 }
 0x307   : > { %2807 = vmatprep.mubr.bf16.mxu0 %v11859_v38 }
 0x30e   : > { %2808 = vmatmul.mubr.bf16.gmra.mrb[100].mxu0 %v11861_v39 }
 0x30f   : > { %2815 = vmatprep.mubr.bf16.mxu0 %v11864_v40 }
 0x316   : > { %2816 = vmatmul.mubr.bf16.gmra.mrb[104].mxu0 %v11866_v41 }
 0x317   : > { %2823 = vmatprep.mubr.bf16.mxu0 %v11869_v42 }
 0x319   : > { %v2609_v44 = vpop.f32.mrb[0].mxu0 }
 0x31a   : > { %v10965_v45 = vadd.f32 %v12632_v43, %v2609_v44  ;;  %v2611_v46 = vpop.f32.mrb[1].mxu0 }
 0x31b   : > { %v2612_v48 = vpop.f32.mrb[2].mxu0 }
 0x31c   : > { %v3120_v50 = vmax.f32 %v10965_v45, 0.0  ;;  %v10966_v51 = vadd.f32 %v12632_v43, %v2612_v48  ;;  %v2614_v52 = vpop.f32.mrb[3].mxu0 }
 0x31e   : > { %3248 = vst [vmem:[#allocation2] sm:$0xff] %v3120_v50  ;;  %v3121_v53 = vmax.f32 %v10966_v51, 0.0  ;;  %2824 = vmatmul.mubr.bf16.gmra.mrb[108].mxu0 %v11871_v47  ;;  %v11891_v47 = vld [vmem:[%s12271_s9 + $0x408] ss:$16 sps:$4 sm:$0xff]  }
 0x31f   : > { %2831 = vmatprep.mubr.bf16.mxu0 %v11874_v49  ;;  %v11892_v49 = vld [vmem:[%s12271_s9 + $0x42c] ss:$16 sps:$4 sm:$0xff]  }
 0x320   : > { %3249 = vst [vmem:[#allocation2 + $0x8] sm:$0xff] %v3121_v53 }
 0x321   : > { %v2617_v54 = vpop.f32.mrb[4].mxu0 }
 0x322   : > { %v10967_v55 = vadd.f32 %v12632_v43, %v2617_v54  ;;  %v2619_v56 = vpop.f32.mrb[5].mxu0 }
 0x323   : > { %v2620_v58 = vpop.f32.mrb[6].mxu0 }
 0x324   : > { %v3122_v60 = vmax.f32 %v10967_v55, 0.0  ;;  %v10968_v61 = vadd.f32 %v12632_v43, %v2620_v58  ;;  %v2622_v62 = vpop.f32.mrb[7].mxu0 }
 0x326   : > { %3250 = vst [vmem:[#allocation2 + $0x10] sm:$0xff] %v3122_v60  ;;  %v3123_v63 = vmax.f32 %v10968_v61, 0.0  ;;  %2832 = vmatmul.mubr.bf16.gmra.mrb[112].mxu0 %v11876_v57  ;;  %v11894_v57 = vld [vmem:[%s12271_s9 + $0x428] ss:$16 sps:$4 sm:$0xff]  }
 0x327   : > { %2839 = vmatprep.mubr.bf16.mxu0 %v11879_v59  ;;  %v3456_v11 = vld [vmem:[#allocation2 + $0x1] ss:$2 sm:$0xff]  ;;  %v3376_v13 = vld [vmem:[#allocation2] ss:$2 sm:$0xff] }
 0x328   : > { %3251 = vst [vmem:[#allocation2 + $0x18] sm:$0xff] %v3123_v63  ;;  %v11895_v59 = vld [vmem:[%s12271_s9 + $0x44c] ss:$16 sps:$4 sm:$0xff]  }
 0x329   : > { %v2625_v0 = vpop.f32.mrb[8].mxu0 }
 0x32a   : > { %v10969_v2 = vadd.f32 %v12632_v43, %v2625_v0  ;;  %v2627_v3 = vpop.f32.mrb[9].mxu0 }
 0x32b   : > { %v2628_v5 = vpop.f32.mrb[10].mxu0 }
 0x32c   : > { %v3124_v7 = vmax.f32 %v10969_v2, 0.0  ;;  %v10970_v8 = vadd.f32 %v12632_v43, %v2628_v5  ;;  %v2630_v9 = vpop.f32.mrb[11].mxu0 }
 0x32e   : > { %3252 = vst [vmem:[#allocation2 + $0x20] sm:$0xff] %v3124_v7  ;;  %v3125_v10 = vmax.f32 %v10970_v8, 0.0  ;;  %2840 = vmatmul.mubr.bf16.gmra.mrb[116].mxu0 %v11881_v4 }
 0x32f   : > { %v3458_v12 = vld [vmem:[#allocation2 + $0x11] ss:$2 sm:$0xff]  ;;  %v3378_v14 = vld [vmem:[#allocation2 + $0x10] ss:$2 sm:$0xff]  ;;  %2847 = vmatprep.mubr.bf16.mxu0 %v11883_v6 }
 0x330   : > { %3253 = vst [vmem:[#allocation2 + $0x28] sm:$0xff] %v3125_v10  ;;  %v3519_v15 = vpack.c.bf16 %v3458_v12, %v3456_v11  ;;  %v3439_v16 = vpack.c.bf16 %v3378_v14, %v3376_v13  ;;  %v11897_v10 = vld [vmem:[%s12271_s9 + $0x448] ss:$16 sps:$4 sm:$0xff]   ;;  %v11898_v12 = vld [vmem:[%s12271_s9 + $0x46c] ss:$16 sps:$4 sm:$0xff]  }
 0x331   : > { %v2633_v17 = vpop.f32.mrb[12].mxu0 }
 0x332   : > { %v10971_v18 = vadd.f32 %v12632_v43, %v2633_v17  ;;  %v2635_v19 = vpop.f32.mrb[13].mxu0  ;;  %4312 = vmatprep.mubr.bf16.mxu1 %v3519_v15 }
 0x333   : > { %v2636_v21 = vpop.f32.mrb[14].mxu0  ;;  %4313 = vmatmul.mubr.bf16.vlgmr.msra.gmra.mrb[0].mxu1 %v3439_v16 }
 0x334   : > { %v3126_v23 = vmax.f32 %v10971_v18, 0.0  ;;  %v10972_v24 = vadd.f32 %v12632_v43, %v2636_v21  ;;  %v2638_v25 = vpop.f32.mrb[15].mxu0 }
 0x336   : > { %3254 = vst [vmem:[#allocation2 + $0x30] sm:$0xff] %v3126_v23  ;;  %v3127_v26 = vmax.f32 %v10972_v24, 0.0  ;;  %2848 = vmatmul.mubr.bf16.gmra.mrb[120].mxu0 %v11885_v20  ;;  %v11900_v20 = vld [vmem:[%s12271_s9 + $0x468] ss:$16 sps:$4 sm:$0xff]  }
 0x337   : > { %2855 = vmatprep.mubr.bf16.mxu0 %v11886_v22  ;;  %v3460_v37 = vld [vmem:[#allocation2 + $0x21] ss:$2 sm:$0xff]  ;;  %v3380_v39 = vld [vmem:[#allocation2 + $0x20] ss:$2 sm:$0xff] }
 0x338   : > { %3255 = vst [vmem:[#allocation2 + $0x38] sm:$0xff] %v3127_v26  ;;  %v11901_v22 = vld [vmem:[%s12271_s9 + $0x48c] ss:$16 sps:$4 sm:$0xff]  }
 0x339   : > { %v2641_v27 = vpop.f32.mrb[16].mxu0 }
 0x33a   : > { %v10973_v28 = vadd.f32 %v12632_v43, %v2641_v27  ;;  %v2643_v29 = vpop.f32.mrb[17].mxu0 }
 0x33b   : > { %v2644_v31 = vpop.f32.mrb[18].mxu0 }
 0x33c   : > { %v3128_v33 = vmax.f32 %v10973_v28, 0.0  ;;  %v10974_v34 = vadd.f32 %v12632_v43, %v2644_v31  ;;  %v2646_v35 = vpop.f32.mrb[19].mxu0 }
 0x33e   : > { %3256 = vst [vmem:[#allocation2 + $0x40] sm:$0xff] %v3128_v33  ;;  %v3129_v36 = vmax.f32 %v10974_v34, 0.0  ;;  %2856 = vmatmul.mubr.bf16.gmra.mrb[124].mxu0 %v11888_v30 }
 0x33f   : > { %v3462_v38 = vld [vmem:[#allocation2 + $0x31] ss:$2 sm:$0xff]  ;;  %v3382_v40 = vld [vmem:[#allocation2 + $0x30] ss:$2 sm:$0xff]  ;;  %2863 = vmatprep.mubr.bf16.mxu0 %v11889_v32 }
 0x340   : > { %3257 = vst [vmem:[#allocation2 + $0x48] sm:$0xff] %v3129_v36  ;;  %v3520_v41 = vpack.c.bf16 %v3462_v38, %v3460_v37  ;;  %v3440_v42 = vpack.c.bf16 %v3382_v40, %v3380_v39  ;;  %v11903_v36 = vld [vmem:[%s12271_s9 + $0x488] ss:$16 sps:$4 sm:$0xff]   ;;  %v11904_v38 = vld [vmem:[%s12271_s9 + $0x4ac] ss:$16 sps:$4 sm:$0xff]  }
 0x341   : > { %v2649_v44 = vpop.f32.mrb[20].mxu0 }
 0x342   : > { %v10975_v45 = vadd.f32 %v12632_v43, %v2649_v44  ;;  %v2651_v46 = vpop.f32.mrb[21].mxu0  ;;  %4320 = vmatprep.mubr.bf16.mxu1 %v3520_v41 }
 0x343   : > { %v2652_v48 = vpop.f32.mrb[22].mxu0  ;;  %4321 = vmatmul.mubr.bf16.gmra.mrb[4].mxu1 %v3440_v42 }
 0x344   : > { %v3130_v50 = vmax.f32 %v10975_v45, 0.0  ;;  %v10976_v51 = vadd.f32 %v12632_v43, %v2652_v48  ;;  %v2654_v52 = vpop.f32.mrb[23].mxu0 }
 0x346   : > { %3258 = vst [vmem:[#allocation2 + $0x50] sm:$0xff] %v3130_v50  ;;  %v3131_v53 = vmax.f32 %v10976_v51, 0.0  ;;  %2864 = vmatmul.mubr.bf16.gmra.mrb[128].mxu0 %v11891_v47  ;;  %v11906_v47 = vld [vmem:[%s12271_s9 + $0x4a8] ss:$16 sps:$4 sm:$0xff]  }
 0x347   : > { %2871 = vmatprep.mubr.bf16.mxu0 %v11892_v49  ;;  %v3464_v0 = vld [vmem:[#allocation2 + $0x41] ss:$2 sm:$0xff]  ;;  %v3384_v3 = vld [vmem:[#allocation2 + $0x40] ss:$2 sm:$0xff] }
 0x348   : > { %3259 = vst [vmem:[#allocation2 + $0x58] sm:$0xff] %v3131_v53  ;;  %v11907_v49 = vld [vmem:[%s12271_s9 + $0x4cc] ss:$16 sps:$4 sm:$0xff]  }
 0x349   : > { %v2657_v54 = vpop.f32.mrb[24].mxu0 }
 0x34a   : > { %v10977_v55 = vadd.f32 %v12632_v43, %v2657_v54  ;;  %v2659_v56 = vpop.f32.mrb[25].mxu0 }
 0x34b   : > { %v2660_v58 = vpop.f32.mrb[26].mxu0 }
 0x34c   : > { %v3132_v60 = vmax.f32 %v10977_v55, 0.0  ;;  %v10978_v61 = vadd.f32 %v12632_v43, %v2660_v58  ;;  %v2662_v62 = vpop.f32.mrb[27].mxu0 }
 0x34e   : > { %3260 = vst [vmem:[#allocation2 + $0x60] sm:$0xff] %v3132_v60  ;;  %v3133_v63 = vmax.f32 %v10978_v61, 0.0  ;;  %2872 = vmatmul.mubr.bf16.gmra.mrb[132].mxu0 %v11894_v57 }
 0x34f   : > { %v3466_v2 = vld [vmem:[#allocation2 + $0x51] ss:$2 sm:$0xff]  ;;  %v3386_v4 = vld [vmem:[#allocation2 + $0x50] ss:$2 sm:$0xff]  ;;  %2879 = vmatprep.mubr.bf16.mxu0 %v11895_v59 }
 0x350   : > { %3261 = vst [vmem:[#allocation2 + $0x68] sm:$0xff] %v3133_v63  ;;  %v3521_v5 = vpack.c.bf16 %v3466_v2, %v3464_v0  ;;  %v3441_v6 = vpack.c.bf16 %v3386_v4, %v3384_v3  ;;  %v11909_v63 = vld [vmem:[%s12271_s9 + $0x4c8] ss:$16 sps:$4 sm:$0xff]   ;;  %v11910_v2 = vld [vmem:[%s12271_s9 + $0x4ec] ss:$16 sps:$4 sm:$0xff]  }
 0x351   : > { %v2665_v7 = vpop.f32.mrb[28].mxu0 }
 0x352   : > { %v10979_v8 = vadd.f32 %v12632_v43, %v2665_v7  ;;  %v2667_v9 = vpop.f32.mrb[29].mxu0  ;;  %4328 = vmatprep.mubr.bf16.mxu1 %v3521_v5 }
 0x353   : > { %v2668_v11 = vpop.f32.mrb[30].mxu0  ;;  %4329 = vmatmul.mubr.bf16.gmra.mrb[8].mxu1 %v3441_v6 }
 0x354   : > { %v3134_v13 = vmax.f32 %v10979_v8, 0.0  ;;  %v10980_v14 = vadd.f32 %v12632_v43, %v2668_v11  ;;  %v2670_v15 = vpop.f32.mrb[31].mxu0 }
 0x356   : > { %3262 = vst [vmem:[#allocation2 + $0x70] sm:$0xff] %v3134_v13  ;;  %v3135_v16 = vmax.f32 %v10980_v14, 0.0  ;;  %2880 = vmatmul.mubr.bf16.gmra.mrb[136].mxu0 %v11897_v10  ;;  %v11912_v10 = vld [vmem:[%s12271_s9 + $0x4e8] ss:$16 sps:$4 sm:$0xff]  }
 0x357   : > { %2887 = vmatprep.mubr.bf16.mxu0 %v11898_v12  ;;  %v3468_v27 = vld [vmem:[#allocation2 + $0x61] ss:$2 sm:$0xff]  ;;  %v3388_v29 = vld [vmem:[#allocation2 + $0x60] ss:$2 sm:$0xff] }
 0x358   : > { %3263 = vst [vmem:[#allocation2 + $0x78] sm:$0xff] %v3135_v16  ;;  %v11913_v12 = vld [vmem:[%s12271_s9 + $0x50c] ss:$16 sps:$4 sm:$0xff]  }
 0x359   : > { %v2673_v17 = vpop.f32.mrb[32].mxu0 }
 0x35a   : > { %v10981_v18 = vadd.f32 %v12632_v43, %v2673_v17  ;;  %v2675_v19 = vpop.f32.mrb[33].mxu0 }
 0x35b   : > { %v2676_v21 = vpop.f32.mrb[34].mxu0 }
 0x35c   : > { %v3136_v23 = vmax.f32 %v10981_v18, 0.0  ;;  %v10982_v24 = vadd.f32 %v12632_v43, %v2676_v21  ;;  %v2678_v25 = vpop.f32.mrb[35].mxu0 }
 0x35e   : > { %3264 = vst [vmem:[#allocation2 + $0x80] sm:$0xff] %v3136_v23  ;;  %v3137_v26 = vmax.f32 %v10982_v24, 0.0  ;;  %2888 = vmatmul.mubr.bf16.gmra.mrb[140].mxu0 %v11900_v20 }
 0x35f   : > { %v3470_v28 = vld [vmem:[#allocation2 + $0x71] ss:$2 sm:$0xff]  ;;  %v3390_v30 = vld [vmem:[#allocation2 + $0x70] ss:$2 sm:$0xff]  ;;  %2895 = vmatprep.mubr.bf16.mxu0 %v11901_v22 }
 0x360   : > { %3265 = vst [vmem:[#allocation2 + $0x88] sm:$0xff] %v3137_v26  ;;  %v3522_v31 = vpack.c.bf16 %v3470_v28, %v3468_v27  ;;  %v3442_v32 = vpack.c.bf16 %v3390_v30, %v3388_v29  ;;  %v11915_v26 = vld [vmem:[%s12271_s9 + $0x508] ss:$16 sps:$4 sm:$0xff]   ;;  %v11916_v28 = vld [vmem:[%s12271_s9 + $0x52c] ss:$16 sps:$4 sm:$0xff]  }
 0x361   : > { %v2681_v33 = vpop.f32.mrb[36].mxu0 }
 0x362   : > { %v10983_v34 = vadd.f32 %v12632_v43, %v2681_v33  ;;  %v2683_v35 = vpop.f32.mrb[37].mxu0  ;;  %4336 = vmatprep.mubr.bf16.mxu1 %v3522_v31 }
 0x363   : > { %v2684_v37 = vpop.f32.mrb[38].mxu0  ;;  %4337 = vmatmul.mubr.bf16.gmra.mrb[12].mxu1 %v3442_v32 }
 0x364   : > { %v3138_v39 = vmax.f32 %v10983_v34, 0.0  ;;  %v10984_v40 = vadd.f32 %v12632_v43, %v2684_v37  ;;  %v2686_v41 = vpop.f32.mrb[39].mxu0 }
 0x366   : > { %3266 = vst [vmem:[#allocation2 + $0x90] sm:$0xff] %v3138_v39  ;;  %v3139_v42 = vmax.f32 %v10984_v40, 0.0  ;;  %2896 = vmatmul.mubr.bf16.gmra.mrb[144].mxu0 %v11903_v36  ;;  %v11918_v36 = vld [vmem:[%s12271_s9 + $0x528] ss:$16 sps:$4 sm:$0xff]  }
 0x367   : > { %2903 = vmatprep.mubr.bf16.mxu0 %v11904_v38  ;;  %v3472_v54 = vld [vmem:[#allocation2 + $0x81] ss:$2 sm:$0xff]  ;;  %v3392_v56 = vld [vmem:[#allocation2 + $0x80] ss:$2 sm:$0xff] }
 0x368   : > { %3267 = vst [vmem:[#allocation2 + $0x98] sm:$0xff] %v3139_v42  ;;  %v11919_v38 = vld [vmem:[%s12271_s9 + $0x54c] ss:$16 sps:$4 sm:$0xff]  }
 0x369   : > { %v2689_v44 = vpop.f32.mrb[40].mxu0 }
 0x36a   : > { %v10985_v45 = vadd.f32 %v12632_v43, %v2689_v44  ;;  %v2691_v46 = vpop.f32.mrb[41].mxu0 }
 0x36b   : > { %v2692_v48 = vpop.f32.mrb[42].mxu0 }
 0x36c   : > { %v3140_v50 = vmax.f32 %v10985_v45, 0.0  ;;  %v10986_v51 = vadd.f32 %v12632_v43, %v2692_v48  ;;  %v2694_v52 = vpop.f32.mrb[43].mxu0 }
 0x36e   : > { %3268 = vst [vmem:[#allocation2 + $0xa0] sm:$0xff] %v3140_v50  ;;  %v3141_v53 = vmax.f32 %v10986_v51, 0.0  ;;  %2904 = vmatmul.mubr.bf16.gmra.mrb[148].mxu0 %v11906_v47 }
 0x36f   : > { %v3474_v55 = vld [vmem:[#allocation2 + $0x91] ss:$2 sm:$0xff]  ;;  %v3394_v57 = vld [vmem:[#allocation2 + $0x90] ss:$2 sm:$0xff]  ;;  %2911 = vmatprep.mubr.bf16.mxu0 %v11907_v49 }
 0x370   : > { %3269 = vst [vmem:[#allocation2 + $0xa8] sm:$0xff] %v3141_v53  ;;  %v3523_v58 = vpack.c.bf16 %v3474_v55, %v3472_v54  ;;  %v3443_v59 = vpack.c.bf16 %v3394_v57, %v3392_v56  ;;  %v11921_v53 = vld [vmem:[%s12271_s9 + $0x548] ss:$16 sps:$4 sm:$0xff]   ;;  %v11922_v55 = vld [vmem:[%s12271_s9 + $0x56c] ss:$16 sps:$4 sm:$0xff]  }
 0x371   : > { %v2697_v60 = vpop.f32.mrb[44].mxu0 }
 0x372   : > { %v10987_v61 = vadd.f32 %v12632_v43, %v2697_v60  ;;  %v2699_v62 = vpop.f32.mrb[45].mxu0  ;;  %4344 = vmatprep.mubr.bf16.mxu1 %v3523_v58 }
 0x373   : > { %v2700_v0 = vpop.f32.mrb[46].mxu0  ;;  %4345 = vmatmul.mubr.bf16.gmra.mrb[16].mxu1 %v3443_v59 }
 0x374   : > { %v3142_v3 = vmax.f32 %v10987_v61, 0.0  ;;  %v10988_v4 = vadd.f32 %v12632_v43, %v2700_v0  ;;  %v2702_v5 = vpop.f32.mrb[47].mxu0 }
 0x376   : > { %3270 = vst [vmem:[#allocation2 + $0xb0] sm:$0xff] %v3142_v3  ;;  %v3143_v6 = vmax.f32 %v10988_v4, 0.0  ;;  %2912 = vmatmul.mubr.bf16.gmra.mrb[152].mxu0 %v11909_v63  ;;  %v11924_v63 = vld [vmem:[%s12271_s9 + $0x568] ss:$16 sps:$4 sm:$0xff]  }
 0x377   : > { %2919 = vmatprep.mubr.bf16.mxu0 %v11910_v2  ;;  %v3476_v17 = vld [vmem:[#allocation2 + $0xa1] ss:$2 sm:$0xff]  ;;  %v3396_v19 = vld [vmem:[#allocation2 + $0xa0] ss:$2 sm:$0xff] }
 0x378   : > { %3271 = vst [vmem:[#allocation2 + $0xb8] sm:$0xff] %v3143_v6  ;;  %v11925_v2 = vld [vmem:[%s12271_s9 + $0x58c] ss:$16 sps:$4 sm:$0xff]  }
 0x379   : > { %v2705_v7 = vpop.f32.mrb[48].mxu0 }
 0x37a   : > { %v10989_v8 = vadd.f32 %v12632_v43, %v2705_v7  ;;  %v2707_v9 = vpop.f32.mrb[49].mxu0 }
 0x37b   : > { %v2708_v11 = vpop.f32.mrb[50].mxu0 }
 0x37c   : > { %v3144_v13 = vmax.f32 %v10989_v8, 0.0  ;;  %v10990_v14 = vadd.f32 %v12632_v43, %v2708_v11  ;;  %v2710_v15 = vpop.f32.mrb[51].mxu0 }
 0x37e   : > { %3272 = vst [vmem:[#allocation2 + $0xc0] sm:$0xff] %v3144_v13  ;;  %v3145_v16 = vmax.f32 %v10990_v14, 0.0  ;;  %2920 = vmatmul.mubr.bf16.gmra.mrb[156].mxu0 %v11912_v10 }
 0x37f   : > { %v3478_v18 = vld [vmem:[#allocation2 + $0xb1] ss:$2 sm:$0xff]  ;;  %v3398_v20 = vld [vmem:[#allocation2 + $0xb0] ss:$2 sm:$0xff]  ;;  %2927 = vmatprep.mubr.bf16.mxu0 %v11913_v12 }
 0x380   : > { %3273 = vst [vmem:[#allocation2 + $0xc8] sm:$0xff] %v3145_v16  ;;  %v3524_v21 = vpack.c.bf16 %v3478_v18, %v3476_v17  ;;  %v3444_v22 = vpack.c.bf16 %v3398_v20, %v3396_v19  ;;  %v11927_v16 = vld [vmem:[%s12271_s9 + $0x588] ss:$16 sps:$4 sm:$0xff]   ;;  %v11928_v18 = vld [vmem:[%s12271_s9 + $0x5ac] ss:$16 sps:$4 sm:$0xff]  }
 0x381   : > { %v2713_v23 = vpop.f32.mrb[52].mxu0 }
 0x382   : > { %v10991_v24 = vadd.f32 %v12632_v43, %v2713_v23  ;;  %v2715_v25 = vpop.f32.mrb[53].mxu0  ;;  %4352 = vmatprep.mubr.bf16.mxu1 %v3524_v21 }
 0x383   : > { %v2716_v27 = vpop.f32.mrb[54].mxu0  ;;  %4353 = vmatmul.mubr.bf16.gmra.mrb[20].mxu1 %v3444_v22 }
 0x384   : > { %v3146_v29 = vmax.f32 %v10991_v24, 0.0  ;;  %v10992_v30 = vadd.f32 %v12632_v43, %v2716_v27  ;;  %v2718_v31 = vpop.f32.mrb[55].mxu0 }
 0x386   : > { %3274 = vst [vmem:[#allocation2 + $0xd0] sm:$0xff] %v3146_v29  ;;  %v3147_v32 = vmax.f32 %v10992_v30, 0.0  ;;  %2928 = vmatmul.mubr.bf16.gmra.mrb[160].mxu0 %v11915_v26  ;;  %v11930_v26 = vld [vmem:[%s12271_s9 + $0x5a8] ss:$16 sps:$4 sm:$0xff]  }
 0x387   : > { %2935 = vmatprep.mubr.bf16.mxu0 %v11916_v28  ;;  %v3480_v44 = vld [vmem:[#allocation2 + $0xc1] ss:$2 sm:$0xff]  ;;  %v3400_v46 = vld [vmem:[#allocation2 + $0xc0] ss:$2 sm:$0xff] }
 0x388   : > { %3275 = vst [vmem:[#allocation2 + $0xd8] sm:$0xff] %v3147_v32  ;;  %v11931_v28 = vld [vmem:[%s12271_s9 + $0x5cc] ss:$16 sps:$4 sm:$0xff]  }
 0x389   : > { %v2721_v33 = vpop.f32.mrb[56].mxu0 }
 0x38a   : > { %v10993_v34 = vadd.f32 %v12632_v43, %v2721_v33  ;;  %v2723_v35 = vpop.f32.mrb[57].mxu0 }
 0x38b   : > { %v2724_v37 = vpop.f32.mrb[58].mxu0 }
 0x38c   : > { %v3148_v39 = vmax.f32 %v10993_v34, 0.0  ;;  %v10994_v40 = vadd.f32 %v12632_v43, %v2724_v37  ;;  %v2726_v41 = vpop.f32.mrb[59].mxu0 }
 0x38e   : > { %3276 = vst [vmem:[#allocation2 + $0xe0] sm:$0xff] %v3148_v39  ;;  %v3149_v42 = vmax.f32 %v10994_v40, 0.0  ;;  %2936 = vmatmul.mubr.bf16.gmra.mrb[164].mxu0 %v11918_v36  ;;  %v11976_v39 = vld [vmem:[%s14205_s1 + $0x180] sm:$0xff]  }
 0x38f   : > { %v3482_v45 = vld [vmem:[#allocation2 + $0xd1] ss:$2 sm:$0xff]  ;;  %v3402_v47 = vld [vmem:[#allocation2 + $0xd0] ss:$2 sm:$0xff]  ;;  %2943 = vmatprep.mubr.bf16.mxu0 %v11919_v38  ;;  %4570 = vmatpush1.bf16.msra.mxu1 %v11976_v39 }
 0x390   : > { %3277 = vst [vmem:[#allocation2 + $0xe8] sm:$0xff] %v3149_v42  ;;  %v3525_v48 = vpack.c.bf16 %v3482_v45, %v3480_v44  ;;  %v3445_v49 = vpack.c.bf16 %v3402_v47, %v3400_v46  ;;  %v11933_v44 = vld [vmem:[%s12271_s9 + $0x5c8] ss:$16 sps:$4 sm:$0xff]   ;;  %v11934_v46 = vld [vmem:[%s12271_s9 + $0x5ec] ss:$16 sps:$4 sm:$0xff]   ;;  %4571 = vmatprep.subr.bf16.mxu1 %v12203_v1 }
 0x391   : > { %v2729_v50 = vpop.f32.mrb[60].mxu0 }
 0x392   : > { %v10995_v51 = vadd.f32 %v12632_v43, %v2729_v50  ;;  %v2731_v52 = vpop.f32.mrb[61].mxu0  ;;  %4360 = vmatprep.mubr.bf16.mxu1 %v3525_v48 }
 0x393   : > { %v2732_v54 = vpop.f32.mrb[62].mxu0  ;;  %4361 = vmatmul.mubr.bf16.gmra.mrb[24].mxu1 %v3445_v49 }
 0x394   : > { %v3150_v56 = vmax.f32 %v10995_v51, 0.0  ;;  %v10996_v57 = vadd.f32 %v12632_v43, %v2732_v54  ;;  %v2734_v58 = vpop.f32.mrb[63].mxu0  ;;  %v11936_v54 = vld [vmem:[%s12271_s9 + $0x5e8] ss:$16 sps:$4 sm:$0xff]  }
 0x396   : > { %3278 = vst [vmem:[#allocation2 + $0xf0] sm:$0xff] %v3150_v56  ;;  %v3151_v59 = vmax.f32 %v10996_v57, 0.0  ;;  %2944 = vmatmul.mubr.bf16.gmra.mrb[168].mxu0 %v11921_v53  ;;  %v11937_v56 = vld [vmem:[%s12271_s9 + $0x60c] ss:$16 sps:$4 sm:$0xff]  }
 0x397   : > { %2951 = vmatprep.mubr.bf16.mxu0 %v11922_v55  ;;  %v3484_v7 = vld [vmem:[#allocation2 + $0xe1] ss:$2 sm:$0xff]  ;;  %v3404_v9 = vld [vmem:[#allocation2 + $0xe0] ss:$2 sm:$0xff] }
 0x398   : > { %3279 = vst [vmem:[#allocation2 + $0xf8] sm:$0xff] %v3151_v59 }
 0x399   : > { %v2737_v60 = vpop.f32.mrb[64].mxu0 }
 0x39a   : > { %v10997_v61 = vadd.f32 %v12632_v43, %v2737_v60  ;;  %v2739_v62 = vpop.f32.mrb[65].mxu0 }
 0x39b   : > { %v2740_v0 = vpop.f32.mrb[66].mxu0 }
 0x39c   : > { %v3152_v3 = vmax.f32 %v10997_v61, 0.0  ;;  %v10998_v4 = vadd.f32 %v12632_v43, %v2740_v0  ;;  %v2742_v5 = vpop.f32.mrb[67].mxu0 }
 0x39e   : > { %3280 = vst [vmem:[#allocation2 + $0x100] sm:$0xff] %v3152_v3  ;;  %v3153_v6 = vmax.f32 %v10998_v4, 0.0  ;;  %2952 = vmatmul.mubr.bf16.gmra.mrb[172].mxu0 %v11924_v63  ;;  %v11983_v4 = vld [vmem:[%s14205_s1 + $0x188] sm:$0xff]  }
 0x39f   : > { %v3486_v8 = vld [vmem:[#allocation2 + $0xf1] ss:$2 sm:$0xff]  ;;  %v3406_v10 = vld [vmem:[#allocation2 + $0xf0] ss:$2 sm:$0xff]  ;;  %2959 = vmatprep.mubr.bf16.mxu0 %v11925_v2  ;;  %4572 = vmatpush1.bf16.msra.mxu1 %v11983_v4 }
 0x3a0   : > { %3281 = vst [vmem:[#allocation2 + $0x108] sm:$0xff] %v3153_v6  ;;  %v3526_v11 = vpack.c.bf16 %v3486_v8, %v3484_v7  ;;  %v3446_v12 = vpack.c.bf16 %v3406_v10, %v3404_v9  ;;  %v11939_v8 = vld [vmem:[%s12271_s9 + $0x608] ss:$16 sps:$4 sm:$0xff]   ;;  %v11940_v10 = vld [vmem:[%s12271_s9 + $0x62c] ss:$16 sps:$4 sm:$0xff]   ;;  %4573 = vmatprep.subr.bf16.mxu1 %v12203_v1 }
 0x3a1   : > { %v2745_v13 = vpop.f32.mrb[68].mxu0 }
 0x3a2   : > { %v10999_v14 = vadd.f32 %v12632_v43, %v2745_v13  ;;  %v2747_v15 = vpop.f32.mrb[69].mxu0  ;;  %4368 = vmatprep.mubr.bf16.mxu1 %v3526_v11 }
 0x3a3   : > { %v2748_v17 = vpop.f32.mrb[70].mxu0  ;;  %4369 = vmatmul.mubr.bf16.gmra.mrb[28].mxu1 %v3446_v12 }
 0x3a4   : > { %v3154_v19 = vmax.f32 %v10999_v14, 0.0  ;;  %v11000_v20 = vadd.f32 %v12632_v43, %v2748_v17  ;;  %v2750_v21 = vpop.f32.mrb[71].mxu0 }
 0x3a6   : > { %3282 = vst [vmem:[#allocation2 + $0x110] sm:$0xff] %v3154_v19  ;;  %v3155_v22 = vmax.f32 %v11000_v20, 0.0  ;;  %2960 = vmatmul.mubr.bf16.gmra.mrb[176].mxu0 %v11927_v16  ;;  %v11943_v20 = vld [vmem:[%s12271_s9 + $0x64c] ss:$16 sps:$4 sm:$0xff]  }
 0x3a7   : > { %2967 = vmatprep.mubr.bf16.mxu0 %v11928_v18  ;;  %v3488_v33 = vld [vmem:[#allocation2 + $0x101] ss:$2 sm:$0xff]  ;;  %v3408_v35 = vld [vmem:[#allocation2 + $0x100] ss:$2 sm:$0xff] }
 0x3a8   : > { %3283 = vst [vmem:[#allocation2 + $0x118] sm:$0xff] %v3155_v22  ;;  %v11942_v18 = vld [vmem:[%s12271_s9 + $0x628] ss:$16 sps:$4 sm:$0xff]  }
 0x3a9   : > { %v2753_v23 = vpop.f32.mrb[72].mxu0 }
 0x3aa   : > { %v11001_v24 = vadd.f32 %v12632_v43, %v2753_v23  ;;  %v2755_v25 = vpop.f32.mrb[73].mxu0 }
 0x3ab   : > { %v2756_v27 = vpop.f32.mrb[74].mxu0 }
 0x3ac   : > { %v3156_v29 = vmax.f32 %v11001_v24, 0.0  ;;  %v11002_v30 = vadd.f32 %v12632_v43, %v2756_v27  ;;  %v2758_v31 = vpop.f32.mrb[75].mxu0 }
 0x3ad   : > { %v11987_v31 = vld [vmem:[%s14205_s1 + $0x190] sm:$0xff]  }
 0x3ae   : > { %3284 = vst [vmem:[#allocation2 + $0x120] sm:$0xff] %v3156_v29  ;;  %v3157_v32 = vmax.f32 %v11002_v30, 0.0  ;;  %2968 = vmatmul.mubr.bf16.gmra.mrb[180].mxu0 %v11930_v26  ;;  %4574 = vmatpush1.bf16.msra.mxu1 %v11987_v31 }
 0x3af   : > { %v3490_v34 = vld [vmem:[#allocation2 + $0x111] ss:$2 sm:$0xff]  ;;  %v3410_v36 = vld [vmem:[#allocation2 + $0x110] ss:$2 sm:$0xff]  ;;  %2975 = vmatprep.mubr.bf16.mxu0 %v11931_v28  ;;  %4575 = vmatprep.subr.bf16.mxu1 %v12203_v1 }
 0x3b0   : > { %3285 = vst [vmem:[#allocation2 + $0x128] sm:$0xff] %v3157_v32  ;;  %v3527_v37 = vpack.c.bf16 %v3490_v34, %v3488_v33  ;;  %v3447_v38 = vpack.c.bf16 %v3410_v36, %v3408_v35  ;;  %v11945_v35 = vld [vmem:[%s12271_s9 + $0x648] ss:$16 sps:$4 sm:$0xff]  }
 0x3b1   : > { %v2761_v40 = vpop.f32.mrb[76].mxu0 }
 0x3b2   : > { %v11003_v41 = vadd.f32 %v12632_v43, %v2761_v40  ;;  %v2763_v42 = vpop.f32.mrb[77].mxu0  ;;  %4376 = vmatprep.mubr.bf16.mxu1 %v3527_v37  ;;  %v11946_v37 = vld [vmem:[%s12271_s9 + $0x66c] ss:$16 sps:$4 sm:$0xff]  }
 0x3b3   : > { %v2764_v45 = vpop.f32.mrb[78].mxu0  ;;  %4377 = vmatmul.mubr.bf16.gmra.mrb[32].mxu1 %v3447_v38 }
 0x3b4   : > { %v3158_v47 = vmax.f32 %v11003_v41, 0.0  ;;  %v11004_v48 = vadd.f32 %v12632_v43, %v2764_v45  ;;  %v2766_v49 = vpop.f32.mrb[79].mxu0 }
 0x3b6   : > { %3286 = vst [vmem:[#allocation2 + $0x130] sm:$0xff] %v3158_v47  ;;  %v3159_v50 = vmax.f32 %v11004_v48, 0.0  ;;  %2976 = vmatmul.mubr.bf16.gmra.mrb[184].mxu0 %v11933_v44  ;;  %v11949_v48 = vld [vmem:[%s12271_s9 + $0x68c] ss:$16 sps:$4 sm:$0xff]  }
 0x3b7   : > { %2983 = vmatprep.mubr.bf16.mxu0 %v11934_v46  ;;  %v3492_v61 = vld [vmem:[#allocation2 + $0x121] ss:$2 sm:$0xff]  ;;  %v3412_v63 = vld [vmem:[#allocation2 + $0x120] ss:$2 sm:$0xff] }
 0x3b8   : > { %3287 = vst [vmem:[#allocation2 + $0x138] sm:$0xff] %v3159_v50  ;;  %v11948_v46 = vld [vmem:[%s12271_s9 + $0x668] ss:$16 sps:$4 sm:$0xff]  }
 0x3b9   : > { %v2769_v51 = vpop.f32.mrb[80].mxu0 }
 0x3ba   : > { %v11005_v52 = vadd.f32 %v12632_v43, %v2769_v51  ;;  %v2771_v53 = vpop.f32.mrb[81].mxu0 }
 0x3bb   : > { %v2772_v55 = vpop.f32.mrb[82].mxu0 }
 0x3bc   : > { %v3160_v57 = vmax.f32 %v11005_v52, 0.0  ;;  %v11006_v58 = vadd.f32 %v12632_v43, %v2772_v55  ;;  %v2774_v59 = vpop.f32.mrb[83].mxu0 }
 0x3bd   : > { %v11988_v59 = vld [vmem:[%s14205_s1 + $0x198] sm:$0xff]  }
 0x3be   : > { %3288 = vst [vmem:[#allocation2 + $0x140] sm:$0xff] %v3160_v57  ;;  %v3161_v60 = vmax.f32 %v11006_v58, 0.0  ;;  %2984 = vmatmul.mubr.bf16.gmra.mrb[188].mxu0 %v11936_v54  ;;  %4576 = vmatpush1.bf16.msra.mxu1 %v11988_v59 }
 0x3bf   : > { %v3494_v62 = vld [vmem:[#allocation2 + $0x131] ss:$2 sm:$0xff]  ;;  %v3414_v0 = vld [vmem:[#allocation2 + $0x130] ss:$2 sm:$0xff]  ;;  %2991 = vmatprep.mubr.bf16.mxu0 %v11937_v56  ;;  %4577 = vmatprep.subr.bf16.mxu1 %v12203_v1 }
 0x3c0   : > { %3289 = vst [vmem:[#allocation2 + $0x148] sm:$0xff] %v3161_v60  ;;  %v3528_v2 = vpack.c.bf16 %v3494_v62, %v3492_v61  ;;  %v3448_v3 = vpack.c.bf16 %v3414_v0, %v3412_v63  ;;  %v11951_v63 = vld [vmem:[%s12271_s9 + $0x688] ss:$16 sps:$4 sm:$0xff]  }
 0x3c1   : > { %v2777_v5 = vpop.f32.mrb[84].mxu0 }
 0x3c2   : > { %v11007_v6 = vadd.f32 %v12632_v43, %v2777_v5  ;;  %v2779_v7 = vpop.f32.mrb[85].mxu0  ;;  %4384 = vmatprep.mubr.bf16.mxu1 %v3528_v2  ;;  %v11952_v2 = vld [vmem:[%s12271_s9 + $0x6ac] ss:$16 sps:$4 sm:$0xff]  }
 0x3c3   : > { %v2780_v9 = vpop.f32.mrb[86].mxu0  ;;  %4385 = vmatmul.mubr.bf16.gmra.mrb[36].mxu1 %v3448_v3 }
 0x3c4   : > { %v3162_v11 = vmax.f32 %v11007_v6, 0.0  ;;  %v11008_v12 = vadd.f32 %v12632_v43, %v2780_v9  ;;  %v2782_v13 = vpop.f32.mrb[87].mxu0 }
 0x3c6   : > { %3290 = vst [vmem:[#allocation2 + $0x150] sm:$0xff] %v3162_v11  ;;  %v3163_v14 = vmax.f32 %v11008_v12, 0.0  ;;  %2992 = vmatmul.mubr.bf16.gmra.mrb[192].mxu0 %v11939_v8  ;;  %v11955_v12 = vld [vmem:[%s12271_s9 + $0x6cc] ss:$16 sps:$4 sm:$0xff]  }
 0x3c7   : > { %2999 = vmatprep.mubr.bf16.mxu0 %v11940_v10  ;;  %v3496_v25 = vld [vmem:[#allocation2 + $0x141] ss:$2 sm:$0xff]  ;;  %v3416_v27 = vld [vmem:[#allocation2 + $0x140] ss:$2 sm:$0xff] }
 0x3c8   : > { %3291 = vst [vmem:[#allocation2 + $0x158] sm:$0xff] %v3163_v14  ;;  %v11954_v10 = vld [vmem:[%s12271_s9 + $0x6a8] ss:$16 sps:$4 sm:$0xff]  }
 0x3c9   : > { %v2785_v15 = vpop.f32.mrb[88].mxu0 }
 0x3ca   : > { %v11009_v16 = vadd.f32 %v12632_v43, %v2785_v15  ;;  %v2787_v17 = vpop.f32.mrb[89].mxu0 }
 0x3cb   : > { %v2788_v19 = vpop.f32.mrb[90].mxu0 }
 0x3cc   : > { %v3164_v21 = vmax.f32 %v11009_v16, 0.0  ;;  %v11010_v22 = vadd.f32 %v12632_v43, %v2788_v19  ;;  %v2790_v23 = vpop.f32.mrb[91].mxu0 }
 0x3cd   : > { %v11989_v23 = vld [vmem:[%s14205_s1 + $0x1a0] sm:$0xff]  }
 0x3ce   : > { %3292 = vst [vmem:[#allocation2 + $0x160] sm:$0xff] %v3164_v21  ;;  %v3165_v24 = vmax.f32 %v11010_v22, 0.0  ;;  %3000 = vmatmul.mubr.bf16.gmra.mrb[196].mxu0 %v11942_v18  ;;  %4578 = vmatpush1.bf16.msra.mxu1 %v11989_v23 }
 0x3cf   : > { %v3498_v26 = vld [vmem:[#allocation2 + $0x151] ss:$2 sm:$0xff]  ;;  %v3418_v28 = vld [vmem:[#allocation2 + $0x150] ss:$2 sm:$0xff]  ;;  %3007 = vmatprep.mubr.bf16.mxu0 %v11943_v20  ;;  %4579 = vmatprep.subr.bf16.mxu1 %v12203_v1 }
 0x3d0   : > { %3293 = vst [vmem:[#allocation2 + $0x168] sm:$0xff] %v3165_v24  ;;  %v3529_v29 = vpack.c.bf16 %v3498_v26, %v3496_v25  ;;  %v3449_v30 = vpack.c.bf16 %v3418_v28, %v3416_v27  ;;  %v11957_v27 = vld [vmem:[%s12271_s9 + $0x6c8] ss:$16 sps:$4 sm:$0xff]  }
 0x3d1   : > { %v2793_v32 = vpop.f32.mrb[92].mxu0 }
 0x3d2   : > { %v11011_v33 = vadd.f32 %v12632_v43, %v2793_v32  ;;  %v2795_v34 = vpop.f32.mrb[93].mxu0  ;;  %4392 = vmatprep.mubr.bf16.mxu1 %v3529_v29  ;;  %v11958_v29 = vld [vmem:[%s12271_s9 + $0x6ec] ss:$16 sps:$4 sm:$0xff]  }
 0x3d3   : > { %v2796_v36 = vpop.f32.mrb[94].mxu0  ;;  %4393 = vmatmul.mubr.bf16.gmra.mrb[40].mxu1 %v3449_v30 }
 0x3d4   : > { %v3166_v38 = vmax.f32 %v11011_v33, 0.0  ;;  %v11012_v39 = vadd.f32 %v12632_v43, %v2796_v36  ;;  %v2798_v40 = vpop.f32.mrb[95].mxu0 }
 0x3d5   : > { %v11961_v40 = vld [vmem:[%s12271_s9 + $0x70c] ss:$16 sps:$4 sm:$0xff]  }
 0x3d6   : > { %3294 = vst [vmem:[#allocation2 + $0x170] sm:$0xff] %v3166_v38  ;;  %v3167_v41 = vmax.f32 %v11012_v39, 0.0  ;;  %3008 = vmatmul.mubr.bf16.gmra.mrb[200].mxu0 %v11945_v35  ;;  %v12769_v35 = vld [vmem:[%s14206_s2] ss:$0 sm:$0xff]  ;;  %v11960_v38 = vld [vmem:[%s12271_s9 + $0x6e8] ss:$16 sps:$4 sm:$0xff]  }
 0x3d7   : > { %3015 = vmatprep.mubr.bf16.mxu0 %v11946_v37  ;;  %v3500_v53 = vld [vmem:[#allocation2 + $0x161] ss:$2 sm:$0xff]  ;;  %v3420_v55 = vld [vmem:[#allocation2 + $0x160] ss:$2 sm:$0xff] }
 0x3d8   : > { %3295 = vst [vmem:[#allocation2 + $0x178] sm:$0xff] %v3167_v41 }
 0x3d9   : > { %v2801_v42 = vpop.f32.mrb[96].mxu0 }
 0x3da   : > { %v11013_v44 = vadd.f32 %v12632_v43, %v2801_v42  ;;  %v2803_v45 = vpop.f32.mrb[97].mxu0 }
 0x3db   : > { %v2804_v47 = vpop.f32.mrb[98].mxu0 }
 0x3dc   : > { %v3168_v49 = vmax.f32 %v11013_v44, 0.0  ;;  %v11014_v50 = vadd.f32 %v12632_v43, %v2804_v47  ;;  %v2806_v51 = vpop.f32.mrb[99].mxu0 }
 0x3dd   : > { %v11990_v51 = vld [vmem:[%s14205_s1 + $0x1a8] sm:$0xff]  }
 0x3de   : > { %3296 = vst [vmem:[#allocation2 + $0x180] sm:$0xff] %v3168_v49  ;;  %v3169_v52 = vmax.f32 %v11014_v50, 0.0  ;;  %3016 = vmatmul.mubr.bf16.gmra.mrb[204].mxu0 %v11948_v46  ;;  %4580 = vmatpush1.bf16.msra.mxu1 %v11990_v51 }
 0x3df   : > { %v3502_v54 = vld [vmem:[#allocation2 + $0x171] ss:$2 sm:$0xff]  ;;  %v3422_v56 = vld [vmem:[#allocation2 + $0x170] ss:$2 sm:$0xff]  ;;  %3023 = vmatprep.mubr.bf16.mxu0 %v11949_v48  ;;  %4581 = vmatprep.subr.bf16.mxu1 %v12203_v1 }
 0x3e0   : > { %3297 = vst [vmem:[#allocation2 + $0x188] sm:$0xff] %v3169_v52  ;;  %v3530_v57 = vpack.c.bf16 %v3502_v54, %v3500_v53  ;;  %v3450_v58 = vpack.c.bf16 %v3422_v56, %v3420_v55  ;;  %v11963_v55 = vld [vmem:[%s12271_s9 + $0x708] ss:$16 sps:$4 sm:$0xff]  }
 0x3e1   : > { %v2809_v60 = vpop.f32.mrb[100].mxu0 }
 0x3e2   : > { %v11015_v61 = vadd.f32 %v12632_v43, %v2809_v60  ;;  %v2811_v62 = vpop.f32.mrb[101].mxu0  ;;  %4400 = vmatprep.mubr.bf16.mxu1 %v3530_v57  ;;  %v11964_v57 = vld [vmem:[%s12271_s9 + $0x72c] ss:$16 sps:$4 sm:$0xff]  }
 0x3e3   : > { %v2812_v0 = vpop.f32.mrb[102].mxu0  ;;  %4401 = vmatmul.mubr.bf16.gmra.mrb[44].mxu1 %v3450_v58 }
 0x3e4   : > { %v3170_v3 = vmax.f32 %v11015_v61, 0.0  ;;  %v11016_v4 = vadd.f32 %v12632_v43, %v2812_v0  ;;  %v2814_v5 = vpop.f32.mrb[103].mxu0 }
 0x3e6   : > { %3298 = vst [vmem:[#allocation2 + $0x190] sm:$0xff] %v3170_v3  ;;  %v3171_v6 = vmax.f32 %v11016_v4, 0.0  ;;  %3024 = vmatmul.mubr.bf16.gmra.mrb[208].mxu0 %v11951_v63  ;;  %v11967_v4 = vld [vmem:[%s12271_s9 + $0x74c] ss:$16 sps:$4 sm:$0xff]  }
 0x3e7   : > { %3031 = vmatprep.mubr.bf16.mxu0 %v11952_v2  ;;  %v3504_v17 = vld [vmem:[#allocation2 + $0x181] ss:$2 sm:$0xff]  ;;  %v3424_v19 = vld [vmem:[#allocation2 + $0x180] ss:$2 sm:$0xff] }
 0x3e8   : > { %3299 = vst [vmem:[#allocation2 + $0x198] sm:$0xff] %v3171_v6  ;;  %v11966_v2 = vld [vmem:[%s12271_s9 + $0x728] ss:$16 sps:$4 sm:$0xff]  }
 0x3e9   : > { %v2817_v7 = vpop.f32.mrb[104].mxu0 }
 0x3ea   : > { %v11017_v8 = vadd.f32 %v12632_v43, %v2817_v7  ;;  %v2819_v9 = vpop.f32.mrb[105].mxu0 }
 0x3eb   : > { %v2820_v11 = vpop.f32.mrb[106].mxu0 }
 0x3ec   : > { %v3172_v13 = vmax.f32 %v11017_v8, 0.0  ;;  %v11018_v14 = vadd.f32 %v12632_v43, %v2820_v11  ;;  %v2822_v15 = vpop.f32.mrb[107].mxu0 }
 0x3ed   : > { %v11991_v15 = vld [vmem:[%s14205_s1 + $0x1b0] sm:$0xff]  }
 0x3ee   : > { %3300 = vst [vmem:[#allocation2 + $0x1a0] sm:$0xff] %v3172_v13  ;;  %v3173_v16 = vmax.f32 %v11018_v14, 0.0  ;;  %3032 = vmatmul.mubr.bf16.gmra.mrb[212].mxu0 %v11954_v10  ;;  %4582 = vmatpush1.bf16.msra.mxu1 %v11991_v15 }
 0x3ef   : > { %v3506_v18 = vld [vmem:[#allocation2 + $0x191] ss:$2 sm:$0xff]  ;;  %v3426_v20 = vld [vmem:[#allocation2 + $0x190] ss:$2 sm:$0xff]  ;;  %3039 = vmatprep.mubr.bf16.mxu0 %v11955_v12  ;;  %4583 = vmatprep.subr.bf16.mxu1 %v12203_v1 }
 0x3f0   : > { %3301 = vst [vmem:[#allocation2 + $0x1a8] sm:$0xff] %v3173_v16  ;;  %v3531_v21 = vpack.c.bf16 %v3506_v18, %v3504_v17  ;;  %v3451_v22 = vpack.c.bf16 %v3426_v20, %v3424_v19  ;;  %v11969_v19 = vld [vmem:[%s12271_s9 + $0x748] ss:$16 sps:$4 sm:$0xff]  }
 0x3f1   : > { %v2825_v24 = vpop.f32.mrb[108].mxu0 }
 0x3f2   : > { %v11019_v25 = vadd.f32 %v12632_v43, %v2825_v24  ;;  %v2827_v26 = vpop.f32.mrb[109].mxu0  ;;  %4408 = vmatprep.mubr.bf16.mxu1 %v3531_v21  ;;  %v11970_v21 = vld [vmem:[%s12271_s9 + $0x76c] ss:$16 sps:$4 sm:$0xff]  }
 0x3f3   : > { %v2828_v28 = vpop.f32.mrb[110].mxu0  ;;  %4409 = vmatmul.mubr.bf16.gmra.mrb[48].mxu1 %v3451_v22 }
 0x3f4   : > { %v3174_v30 = vmax.f32 %v11019_v25, 0.0  ;;  %v11020_v31 = vadd.f32 %v12632_v43, %v2828_v28  ;;  %v2830_v32 = vpop.f32.mrb[111].mxu0 }
 0x3f6   : > { %3302 = vst [vmem:[#allocation2 + $0x1b0] sm:$0xff] %v3174_v30  ;;  %v3175_v33 = vmax.f32 %v11020_v31, 0.0  ;;  %3040 = vmatmul.mubr.bf16.gmra.mrb[216].mxu0 %v11957_v27  ;;  %v11973_v31 = vld [vmem:[%s12271_s9 + $0x78c] ss:$16 sps:$4 sm:$0xff]  }
 0x3f7   : > { %3047 = vmatprep.mubr.bf16.mxu0 %v11958_v29  ;;  %v3508_v45 = vld [vmem:[#allocation2 + $0x1a1] ss:$2 sm:$0xff]  ;;  %v3428_v47 = vld [vmem:[#allocation2 + $0x1a0] ss:$2 sm:$0xff] }
 0x3f8   : > { %3303 = vst [vmem:[#allocation2 + $0x1b8] sm:$0xff] %v3175_v33  ;;  %v11972_v29 = vld [vmem:[%s12271_s9 + $0x768] ss:$16 sps:$4 sm:$0xff]  }
 0x3f9   : > { %v2833_v34 = vpop.f32.mrb[112].mxu0 }
 0x3fa   : > { %v11021_v36 = vadd.f32 %v12769_v35, %v2833_v34  ;;  %v2835_v37 = vpop.f32.mrb[113].mxu0 }
 0x3fb   : > { %v2836_v39 = vpop.f32.mrb[114].mxu0 }
 0x3fc   : > { %v3176_v41 = vmax.f32 %v11021_v36, 0.0  ;;  %v11022_v43 = vadd.f32 %v12769_v35, %v2836_v39  ;;  %v2838_v42 = vpop.f32.mrb[115].mxu0 }
 0x3fd   : > { %v11992_v42 = vld [vmem:[%s14205_s1 + $0x1b8] sm:$0xff]  }
 0x3fe   : > { %3304 = vst [vmem:[#allocation2 + $0x1c0] sm:$0xff] %v3176_v41  ;;  %v3177_v44 = vmax.f32 %v11022_v43, 0.0  ;;  %3048 = vmatmul.mubr.bf16.gmra.mrb[220].mxu0 %v11960_v38  ;;  %4584 = vmatpush1.bf16.msra.mxu1 %v11992_v42 }
 0x3ff   : > { %v3510_v46 = vld [vmem:[#allocation2 + $0x1b1] ss:$2 sm:$0xff]  ;;  %v3430_v48 = vld [vmem:[#allocation2 + $0x1b0] ss:$2 sm:$0xff]  ;;  %3055 = vmatprep.mubr.bf16.mxu0 %v11961_v40  ;;  %4585 = vmatprep.subr.bf16.mxu1 %v12203_v1 }
 0x400   : > { %3305 = vst [vmem:[#allocation2 + $0x1c8] sm:$0xff] %v3177_v44  ;;  %v3532_v49 = vpack.c.bf16 %v3510_v46, %v3508_v45  ;;  %v3452_v50 = vpack.c.bf16 %v3430_v48, %v3428_v47  ;;  %v11975_v47 = vld [vmem:[%s12271_s9 + $0x788] ss:$16 sps:$4 sm:$0xff]  }
 0x401   : > { %v2841_v52 = vpop.f32.mrb[116].mxu0 }
 0x402   : > { %v11023_v53 = vadd.f32 %v12769_v35, %v2841_v52  ;;  %v2843_v54 = vpop.f32.mrb[117].mxu0  ;;  %4416 = vmatprep.mubr.bf16.mxu1 %v3532_v49  ;;  %v11977_v49 = vld [vmem:[%s12271_s9 + $0x7ac] ss:$16 sps:$4 sm:$0xff]  }
 0x403   : > { %v2844_v56 = vpop.f32.mrb[118].mxu0  ;;  %4417 = vmatmul.mubr.bf16.gmra.mrb[52].mxu1 %v3452_v50 }
 0x404   : > { %v3178_v58 = vmax.f32 %v11023_v53, 0.0  ;;  %v11024_v59 = vadd.f32 %v12769_v35, %v2844_v56  ;;  %v2846_v60 = vpop.f32.mrb[119].mxu0 }
 0x406   : > { %3306 = vst [vmem:[#allocation2 + $0x1d0] sm:$0xff] %v3178_v58  ;;  %v3179_v61 = vmax.f32 %v11024_v59, 0.0  ;;  %3056 = vmatmul.mubr.bf16.gmra.mrb[224].mxu0 %v11963_v55  ;;  %v11980_v59 = vld [vmem:[%s12271_s9 + $0x7cc] ss:$16 sps:$4 sm:$0xff]  }
 0x407   : > { %3063 = vmatprep.mubr.bf16.mxu0 %v11964_v57  ;;  %v3512_v9 = vld [vmem:[#allocation2 + $0x1c1] ss:$2 sm:$0xff]  ;;  %v3432_v11 = vld [vmem:[#allocation2 + $0x1c0] ss:$2 sm:$0xff] }
 0x408   : > { %3307 = vst [vmem:[#allocation2 + $0x1d8] sm:$0xff] %v3179_v61  ;;  %v11979_v57 = vld [vmem:[%s12271_s9 + $0x7a8] ss:$16 sps:$4 sm:$0xff]  }
 0x409   : > { %v2849_v62 = vpop.f32.mrb[120].mxu0 }
 0x40a   : > { %v11025_v63 = vadd.f32 %v12769_v35, %v2849_v62  ;;  %v2851_v0 = vpop.f32.mrb[121].mxu0 }
 0x40b   : > { %v2852_v3 = vpop.f32.mrb[122].mxu0 }
 0x40c   : > { %v3180_v5 = vmax.f32 %v11025_v63, 0.0  ;;  %v11026_v6 = vadd.f32 %v12769_v35, %v2852_v3  ;;  %v2854_v7 = vpop.f32.mrb[123].mxu0 }
 0x40d   : > { %v11993_v7 = vld [vmem:[%s14205_s1 + $0x1c0] sm:$0xff]  }
 0x40e   : > { %3308 = vst [vmem:[#allocation2 + $0x1e0] sm:$0xff] %v3180_v5  ;;  %v3181_v8 = vmax.f32 %v11026_v6, 0.0  ;;  %3064 = vmatmul.mubr.bf16.gmra.mrb[228].mxu0 %v11966_v2  ;;  %4586 = vmatpush1.bf16.msra.mxu1 %v11993_v7 }
 0x40f   : > { %v3514_v10 = vld [vmem:[#allocation2 + $0x1d1] ss:$2 sm:$0xff]  ;;  %v3434_v12 = vld [vmem:[#allocation2 + $0x1d0] ss:$2 sm:$0xff]  ;;  %3071 = vmatprep.mubr.bf16.mxu0 %v11967_v4  ;;  %4587 = vmatprep.subr.bf16.mxu1 %v12203_v1 }
 0x410   : > { %3309 = vst [vmem:[#allocation2 + $0x1e8] sm:$0xff] %v3181_v8  ;;  %v3533_v13 = vpack.c.bf16 %v3514_v10, %v3512_v9  ;;  %v3453_v14 = vpack.c.bf16 %v3434_v12, %v3432_v11  ;;  %v11982_v11 = vld [vmem:[%s12271_s9 + $0x7c8] ss:$16 sps:$4 sm:$0xff]  }
 0x411   : > { %v2857_v16 = vpop.f32.mrb[124].mxu0 }
 0x412   : > { %v11027_v17 = vadd.f32 %v12769_v35, %v2857_v16  ;;  %v2859_v18 = vpop.f32.mrb[125].mxu0  ;;  %4424 = vmatprep.mubr.bf16.mxu1 %v3533_v13  ;;  %v11984_v13 = vld [vmem:[%s12271_s9 + $0x7ec] ss:$16 sps:$4 sm:$0xff]  }
 0x413   : > { %v2860_v20 = vpop.f32.mrb[126].mxu0  ;;  %4425 = vmatmul.mubr.bf16.gmra.mrb[56].mxu1 %v3453_v14 }
 0x414   : > { %v3182_v22 = vmax.f32 %v11027_v17, 0.0  ;;  %v11028_v23 = vadd.f32 %v12769_v35, %v2860_v20  ;;  %v2862_v24 = vpop.f32.mrb[127].mxu0 }
 0x416   : > { %3310 = vst [vmem:[#allocation2 + $0x1f0] sm:$0xff] %v3182_v22  ;;  %v3183_v25 = vmax.f32 %v11028_v23, 0.0  ;;  %3072 = vmatmul.mubr.bf16.gmra.mrb[232].mxu0 %v11969_v19 }
 0x417   : > { %3079 = vmatprep.mubr.bf16.mxu0 %v11970_v21  ;;  %v3516_v37 = vld [vmem:[#allocation2 + $0x1e1] ss:$2 sm:$0xff]  ;;  %v3436_v39 = vld [vmem:[#allocation2 + $0x1e0] ss:$2 sm:$0xff] }
 0x418   : > { %3311 = vst [vmem:[#allocation2 + $0x1f8] sm:$0xff] %v3183_v25  ;;  %v11986_v21 = vld [vmem:[%s12271_s9 + $0x7e8] ss:$16 sps:$4 sm:$0xff]  }
 0x419   : > { %v2865_v26 = vpop.f32.mrb[128].mxu0 }
 0x41a   : > { %v11029_v27 = vadd.f32 %v12769_v35, %v2865_v26  ;;  %v2867_v28 = vpop.f32.mrb[129].mxu0 }
 0x41b   : > { %v2868_v30 = vpop.f32.mrb[130].mxu0 }
 0x41c   : > { %v3184_v32 = vmax.f32 %v11029_v27, 0.0  ;;  %v11030_v33 = vadd.f32 %v12769_v35, %v2868_v30  ;;  %v2870_v34 = vpop.f32.mrb[131].mxu0 }
 0x41e   : > { %3312 = vst [vmem:[#allocation2 + $0x208] sm:$0xff] %v3184_v32  ;;  %v3185_v36 = vmax.f32 %v11030_v33, 0.0  ;;  %3080 = vmatmul.mubr.bf16.gmra.mrb[236].mxu0 %v11972_v29  ;;  %v11994_v33 = vld [vmem:[%s14205_s1 + $0x1c8] sm:$0xff]  }
 0x41f   : > { %v3518_v38 = vld [vmem:[#allocation2 + $0x1f1] ss:$2 sm:$0xff]  ;;  %v3438_v40 = vld [vmem:[#allocation2 + $0x1f0] ss:$2 sm:$0xff]  ;;  %3087 = vmatprep.mubr.bf16.mxu0 %v11973_v31  ;;  %4588 = vmatpush1.bf16.msra.mxu1 %v11994_v33 }
 0x420   : > { %3313 = vst [vmem:[#allocation2 + $0x210] sm:$0xff] %v3185_v36  ;;  %v3534_v41 = vpack.c.bf16 %v3518_v38, %v3516_v37  ;;  %v3454_v43 = vpack.c.bf16 %v3438_v40, %v3436_v39  ;;  %4589 = vmatprep.subr.bf16.mxu1 %v12203_v1 }
 0x421   : > { %v2873_v44 = vpop.f32.mrb[132].mxu0 }
 0x422   : > { %v11031_v45 = vadd.f32 %v12769_v35, %v2873_v44  ;;  %v2875_v46 = vpop.f32.mrb[133].mxu0  ;;  %4432 = vmatprep.mubr.bf16.mxu1 %v3534_v41 }
 0x423   : > { %v2876_v48 = vpop.f32.mrb[134].mxu0  ;;  %4433 = vmatmul.mubr.bf16.gmra.mrb[60].mxu1 %v3454_v43 }
 0x424   : > { %v3186_v50 = vmax.f32 %v11031_v45, 0.0  ;;  %v11032_v51 = vadd.f32 %v12769_v35, %v2876_v48  ;;  %v2878_v52 = vpop.f32.mrb[135].mxu0 }
 0x426   : > { %3314 = vst [vmem:[#allocation2 + $0x218] sm:$0xff] %v3186_v50  ;;  %v3187_v53 = vmax.f32 %v11032_v51, 0.0  ;;  %3088 = vmatmul.mubr.bf16.gmra.mrb[240].mxu0 %v11975_v47 }
 0x427   : > { %3095 = vmatprep.mubr.bf16.mxu0 %v11977_v49  ;;  %v3776_v0 = vld [vmem:[#allocation2 + $0x209] ss:$2 sm:$0xff]  ;;  %v3696_v3 = vld [vmem:[#allocation2 + $0x208] ss:$2 sm:$0xff] }
 0x428   : > { %3315 = vst [vmem:[#allocation2 + $0x220] sm:$0xff] %v3187_v53 }
 0x429   : > { %v2881_v54 = vpop.f32.mrb[136].mxu0 }
 0x42a   : > { %v11033_v55 = vadd.f32 %v12769_v35, %v2881_v54  ;;  %v2883_v56 = vpop.f32.mrb[137].mxu0 }
 0x42b   : > { %v2884_v58 = vpop.f32.mrb[138].mxu0 }
 0x42c   : > { %v3188_v60 = vmax.f32 %v11033_v55, 0.0  ;;  %v11034_v61 = vadd.f32 %v12769_v35, %v2884_v58  ;;  %v2886_v62 = vpop.f32.mrb[139].mxu0 }
 0x42e   : > { %3316 = vst [vmem:[#allocation2 + $0x228] sm:$0xff] %v3188_v60  ;;  %v3189_v63 = vmax.f32 %v11034_v61, 0.0  ;;  %3096 = vmatmul.mubr.bf16.gmra.mrb[244].mxu0 %v11979_v57  ;;  %v11995_v57 = vld [vmem:[%s14205_s1 + $0x1d0] sm:$0xff]  }
 0x42f   : > { %v3778_v2 = vld [vmem:[#allocation2 + $0x219] ss:$2 sm:$0xff]  ;;  %v3698_v4 = vld [vmem:[#allocation2 + $0x218] ss:$2 sm:$0xff]  ;;  %3103 = vmatprep.mubr.bf16.mxu0 %v11980_v59  ;;  %4590 = vmatpush1.bf16.msra.mxu1 %v11995_v57 }
 0x430   : > { %3317 = vst [vmem:[#allocation2 + $0x230] sm:$0xff] %v3189_v63  ;;  %v3839_v5 = vpack.c.bf16 %v3778_v2, %v3776_v0  ;;  %v3759_v6 = vpack.c.bf16 %v3698_v4, %v3696_v3  ;;  %4591 = vmatprep.subr.bf16.mxu1 %v12203_v1 }
 0x431   : > { %v2889_v8 = vpop.f32.mrb[140].mxu0 }
 0x432   : > { %v11035_v9 = vadd.f32 %v12769_v35, %v2889_v8  ;;  %v2891_v10 = vpop.f32.mrb[141].mxu0  ;;  %4440 = vmatprep.mubr.bf16.mxu1 %v3839_v5 }
 0x433   : > { %v2892_v12 = vpop.f32.mrb[142].mxu0  ;;  %4441 = vmatmul.mubr.bf16.gmra.mrb[64].mxu1 %v3759_v6 }
 0x434   : > { %v3190_v14 = vmax.f32 %v11035_v9, 0.0  ;;  %v11036_v15 = vadd.f32 %v12769_v35, %v2892_v12  ;;  %v2894_v16 = vpop.f32.mrb[143].mxu0 }
 0x436   : > { %3318 = vst [vmem:[#allocation2 + $0x238] sm:$0xff] %v3190_v14  ;;  %v3191_v17 = vmax.f32 %v11036_v15, 0.0  ;;  %3104 = vmatmul.mubr.bf16.gmra.mrb[248].mxu0 %v11982_v11 }
 0x437   : > { %3111 = vmatprep.mubr.bf16.mxu0 %v11984_v13  ;;  %v3780_v27 = vld [vmem:[#allocation2 + $0x229] ss:$2 sm:$0xff]  ;;  %v3700_v29 = vld [vmem:[#allocation2 + $0x228] ss:$2 sm:$0xff] }
 0x438   : > { %3319 = vst [vmem:[#allocation2 + $0x240] sm:$0xff] %v3191_v17  ;;  %v11996_v17 = vld [vmem:[%s14205_s1 + $0x1d8] sm:$0xff]  }
 0x439   : > { %v2897_v18 = vpop.f32.mrb[144].mxu0  ;;  %4592 = vmatpush1.bf16.msra.mxu1 %v11996_v17 }
 0x43a   : > { %v11037_v19 = vadd.f32 %v12769_v35, %v2897_v18  ;;  %v2899_v20 = vpop.f32.mrb[145].mxu0  ;;  %4593 = vmatprep.subr.bf16.mxu1 %v12203_v1 }
 0x43b   : > { %v2900_v22 = vpop.f32.mrb[146].mxu0 }
 0x43c   : > { %v3192_v23 = vmax.f32 %v11037_v19, 0.0  ;;  %v11038_v24 = vadd.f32 %v12769_v35, %v2900_v22  ;;  %v2902_v25 = vpop.f32.mrb[147].mxu0 }
 0x43e   : > { %3320 = vst [vmem:[#allocation2 + $0x248] sm:$0xff] %v3192_v23  ;;  %v3193_v26 = vmax.f32 %v11038_v24, 0.0  ;;  %3112 = vmatmul.mubr.bf16.gmra.mrb[252].mxu0 %v11986_v21 }
 0x43f   : > { %v3782_v28 = vld [vmem:[#allocation2 + $0x239] ss:$2 sm:$0xff]  ;;  %v3702_v30 = vld [vmem:[#allocation2 + $0x238] ss:$2 sm:$0xff] }
 0x440   : > { %3321 = vst [vmem:[#allocation2 + $0x250] sm:$0xff] %v3193_v26  ;;  %v3840_v31 = vpack.c.bf16 %v3782_v28, %v3780_v27  ;;  %v3760_v32 = vpack.c.bf16 %v3702_v30, %v3700_v29 }
 0x441   : > { %v2905_v34 = vpop.f32.mrb[148].mxu0 }
 0x442   : > { %v11039_v36 = vadd.f32 %v12769_v35, %v2905_v34  ;;  %v2907_v37 = vpop.f32.mrb[149].mxu0  ;;  %4448 = vmatprep.mubr.bf16.mxu1 %v3840_v31 }
 0x443   : > { %v2908_v38 = vpop.f32.mrb[150].mxu0  ;;  %4449 = vmatmul.mubr.bf16.gmra.mrb[68].mxu1 %v3760_v32 }
 0x444   : > { %v3194_v39 = vmax.f32 %v11039_v36, 0.0  ;;  %v11040_v40 = vadd.f32 %v12769_v35, %v2908_v38  ;;  %v2910_v41 = vpop.f32.mrb[151].mxu0 }
 0x445   : > { %v11997_v41 = vld [vmem:[%s14205_s1 + $0x1e0] sm:$0xff]  }
 0x446   : > { %3322 = vst [vmem:[#allocation2 + $0x258] sm:$0xff] %v3194_v39  ;;  %v3195_v43 = vmax.f32 %v11040_v40, 0.0  ;;  %4594 = vmatpush1.bf16.msra.mxu1 %v11997_v41 }
 0x447   : > { %v3784_v51 = vld [vmem:[#allocation2 + $0x249] ss:$2 sm:$0xff]  ;;  %v3704_v53 = vld [vmem:[#allocation2 + $0x248] ss:$2 sm:$0xff]  ;;  %4595 = vmatprep.subr.bf16.mxu1 %v12203_v1 }
 0x448   : > { %3323 = vst [vmem:[#allocation2 + $0x260] sm:$0xff] %v3195_v43 }
 0x449   : > { %v2913_v42 = vpop.f32.mrb[152].mxu0 }
 0x44a   : > { %v11041_v44 = vadd.f32 %v12769_v35, %v2913_v42  ;;  %v2915_v45 = vpop.f32.mrb[153].mxu0 }
 0x44b   : > { %v2916_v46 = vpop.f32.mrb[154].mxu0 }
 0x44c   : > { %v3196_v47 = vmax.f32 %v11041_v44, 0.0  ;;  %v11042_v48 = vadd.f32 %v12769_v35, %v2916_v46  ;;  %v2918_v49 = vpop.f32.mrb[155].mxu0 }
 0x44e   : > { %3324 = vst [vmem:[#allocation2 + $0x268] sm:$0xff] %v3196_v47  ;;  %v3197_v50 = vmax.f32 %v11042_v48, 0.0 }
 0x44f   : > { %v3786_v52 = vld [vmem:[#allocation2 + $0x259] ss:$2 sm:$0xff]  ;;  %v3706_v54 = vld [vmem:[#allocation2 + $0x258] ss:$2 sm:$0xff] }
 0x450   : > { %3325 = vst [vmem:[#allocation2 + $0x270] sm:$0xff] %v3197_v50  ;;  %v3841_v55 = vpack.c.bf16 %v3786_v52, %v3784_v51  ;;  %v3761_v56 = vpack.c.bf16 %v3706_v54, %v3704_v53 }
 0x451   : > { %v2921_v58 = vpop.f32.mrb[156].mxu0 }
 0x452   : > { %v11043_v59 = vadd.f32 %v12769_v35, %v2921_v58  ;;  %v2923_v60 = vpop.f32.mrb[157].mxu0  ;;  %4456 = vmatprep.mubr.bf16.mxu1 %v3841_v55 }
 0x453   : > { %v2924_v61 = vpop.f32.mrb[158].mxu0  ;;  %4457 = vmatmul.mubr.bf16.gmra.mrb[72].mxu1 %v3761_v56 }
 0x454   : > { %v3198_v62 = vmax.f32 %v11043_v59, 0.0  ;;  %v11044_v63 = vadd.f32 %v12769_v35, %v2924_v61  ;;  %v2926_v0 = vpop.f32.mrb[159].mxu0 }
 0x455   : > { %v11998_v0 = vld [vmem:[%s14205_s1 + $0x1e8] sm:$0xff]  }
 0x456   : > { %3326 = vst [vmem:[#allocation2 + $0x278] sm:$0xff] %v3198_v62  ;;  %v3199_v2 = vmax.f32 %v11044_v63, 0.0  ;;  %4596 = vmatpush1.bf16.msra.mxu1 %v11998_v0 }
 0x457   : > { %v3788_v11 = vld [vmem:[#allocation2 + $0x269] ss:$2 sm:$0xff]  ;;  %v3708_v13 = vld [vmem:[#allocation2 + $0x268] ss:$2 sm:$0xff]  ;;  %4597 = vmatprep.subr.bf16.mxu1 %v12203_v1 }
 0x458   : > { %3327 = vst [vmem:[#allocation2 + $0x280] sm:$0xff] %v3199_v2 }
 0x459   : > { %v2929_v3 = vpop.f32.mrb[160].mxu0 }
 0x45a   : > { %v11045_v4 = vadd.f32 %v12769_v35, %v2929_v3  ;;  %v2931_v5 = vpop.f32.mrb[161].mxu0 }
 0x45b   : > { %v2932_v6 = vpop.f32.mrb[162].mxu0 }
 0x45c   : > { %v3200_v7 = vmax.f32 %v11045_v4, 0.0  ;;  %v11046_v8 = vadd.f32 %v12769_v35, %v2932_v6  ;;  %v2934_v9 = vpop.f32.mrb[163].mxu0 }
 0x45e   : > { %3328 = vst [vmem:[#allocation2 + $0x288] sm:$0xff] %v3200_v7  ;;  %v3201_v10 = vmax.f32 %v11046_v8, 0.0 }
 0x45f   : > { %v3790_v12 = vld [vmem:[#allocation2 + $0x279] ss:$2 sm:$0xff]  ;;  %v3710_v14 = vld [vmem:[#allocation2 + $0x278] ss:$2 sm:$0xff] }
 0x460   : > { %3329 = vst [vmem:[#allocation2 + $0x290] sm:$0xff] %v3201_v10  ;;  %v3842_v15 = vpack.c.bf16 %v3790_v12, %v3788_v11  ;;  %v3762_v16 = vpack.c.bf16 %v3710_v14, %v3708_v13 }
 0x461   : > { %v2937_v18 = vpop.f32.mrb[164].mxu0 }
 0x462   : > { %v11047_v19 = vadd.f32 %v12769_v35, %v2937_v18  ;;  %v2939_v20 = vpop.f32.mrb[165].mxu0  ;;  %4464 = vmatprep.mubr.bf16.mxu1 %v3842_v15 }
 0x463   : > { %v2940_v21 = vpop.f32.mrb[166].mxu0  ;;  %4465 = vmatmul.mubr.bf16.gmra.mrb[76].mxu1 %v3762_v16 }
 0x464   : > { %v3202_v22 = vmax.f32 %v11047_v19, 0.0  ;;  %v11048_v23 = vadd.f32 %v12769_v35, %v2940_v21  ;;  %v2942_v24 = vpop.f32.mrb[167].mxu0 }
 0x465   : > { %v11999_v24 = vld [vmem:[%s14205_s1 + $0x1f0] sm:$0xff]  }
 0x466   : > { %3330 = vst [vmem:[#allocation2 + $0x298] sm:$0xff] %v3202_v22  ;;  %v3203_v25 = vmax.f32 %v11048_v23, 0.0  ;;  %4598 = vmatpush1.bf16.msra.mxu1 %v11999_v24 }
 0x467   : > { %v3792_v34 = vld [vmem:[#allocation2 + $0x289] ss:$2 sm:$0xff]  ;;  %v3712_v37 = vld [vmem:[#allocation2 + $0x288] ss:$2 sm:$0xff]  ;;  %4599 = vmatprep.subr.bf16.mxu1 %v12203_v1 }
 0x468   : > { %3331 = vst [vmem:[#allocation2 + $0x2a0] sm:$0xff] %v3203_v25 }
 0x469   : > { %v2945_v26 = vpop.f32.mrb[168].mxu0 }
 0x46a   : > { %v11049_v27 = vadd.f32 %v12769_v35, %v2945_v26  ;;  %v2947_v28 = vpop.f32.mrb[169].mxu0 }
 0x46b   : > { %v2948_v29 = vpop.f32.mrb[170].mxu0 }
 0x46c   : > { %v3204_v30 = vmax.f32 %v11049_v27, 0.0  ;;  %v11050_v31 = vadd.f32 %v12769_v35, %v2948_v29  ;;  %v2950_v32 = vpop.f32.mrb[171].mxu0 }
 0x46e   : > { %3332 = vst [vmem:[#allocation2 + $0x2a8] sm:$0xff] %v3204_v30  ;;  %v3205_v33 = vmax.f32 %v11050_v31, 0.0 }
 0x46f   : > { %v3794_v36 = vld [vmem:[#allocation2 + $0x299] ss:$2 sm:$0xff]  ;;  %v3714_v38 = vld [vmem:[#allocation2 + $0x298] ss:$2 sm:$0xff] }
 0x470   : > { %3333 = vst [vmem:[#allocation2 + $0x2b0] sm:$0xff] %v3205_v33  ;;  %v3843_v39 = vpack.c.bf16 %v3794_v36, %v3792_v34  ;;  %v3763_v40 = vpack.c.bf16 %v3714_v38, %v3712_v37  ;;  %v12000_v33 = vld [vmem:[%s14205_s1 + $0x1f8] sm:$0xff]  }
 0x471   : > { %v2953_v43 = vpop.f32.mrb[172].mxu0  ;;  %4600 = vmatpush1.bf16.msra.mxu1 %v12000_v33 }
 0x472   : > { %v11051_v42 = vadd.f32 %v12769_v35, %v2953_v43  ;;  %v2955_v44 = vpop.f32.mrb[173].mxu0  ;;  %4472 = vmatprep.mubr.bf16.mxu1 %v3843_v39 }
 0x473   : > { %v2956_v45 = vpop.f32.mrb[174].mxu0  ;;  %4473 = vmatmul.mubr.bf16.gmra.mrb[80].mxu1 %v3763_v40 }
 0x474   : > { %v3206_v46 = vmax.f32 %v11051_v42, 0.0  ;;  %v11052_v47 = vadd.f32 %v12769_v35, %v2956_v45  ;;  %v2958_v48 = vpop.f32.mrb[175].mxu0 }
 0x476   : > { %3334 = vst [vmem:[#allocation2 + $0x2b8] sm:$0xff] %v3206_v46  ;;  %v3207_v49 = vmax.f32 %v11052_v47, 0.0 }
 0x477   : > { %v3796_v58 = vld [vmem:[#allocation2 + $0x2a9] ss:$2 sm:$0xff]  ;;  %v3716_v60 = vld [vmem:[#allocation2 + $0x2a8] ss:$2 sm:$0xff] }
 0x478   : > { %3335 = vst [vmem:[#allocation2 + $0x2c0] sm:$0xff] %v3207_v49 }
 0x479   : > { %v2961_v50 = vpop.f32.mrb[176].mxu0 }
 0x47a   : > { %v11053_v51 = vadd.f32 %v12769_v35, %v2961_v50  ;;  %v2963_v52 = vpop.f32.mrb[177].mxu0 }
 0x47b   : > { %v2964_v53 = vpop.f32.mrb[178].mxu0 }
 0x47c   : > { %v3208_v54 = vmax.f32 %v11053_v51, 0.0  ;;  %v11054_v55 = vadd.f32 %v12769_v35, %v2964_v53  ;;  %v2966_v56 = vpop.f32.mrb[179].mxu0 }
 0x47e   : > { %3336 = vst [vmem:[#allocation2 + $0x2c8] sm:$0xff] %v3208_v54  ;;  %v3209_v57 = vmax.f32 %v11054_v55, 0.0 }
 0x47f   : > { %v3798_v59 = vld [vmem:[#allocation2 + $0x2b9] ss:$2 sm:$0xff]  ;;  %v3718_v61 = vld [vmem:[#allocation2 + $0x2b8] ss:$2 sm:$0xff] }
 0x480   : > { %3337 = vst [vmem:[#allocation2 + $0x2d0] sm:$0xff] %v3209_v57  ;;  %v3844_v62 = vpack.c.bf16 %v3798_v59, %v3796_v58  ;;  %v3764_v63 = vpack.c.bf16 %v3718_v61, %v3716_v60 }
 0x481   : > { %v2969_v2 = vpop.f32.mrb[180].mxu0 }
 0x482   : > { %v11055_v3 = vadd.f32 %v12769_v35, %v2969_v2  ;;  %v2971_v4 = vpop.f32.mrb[181].mxu0  ;;  %4480 = vmatprep.mubr.bf16.mxu1 %v3844_v62 }
 0x483   : > { %v2972_v5 = vpop.f32.mrb[182].mxu0  ;;  %4481 = vmatmul.mubr.bf16.gmra.mrb[84].mxu1 %v3764_v63 }
 0x484   : > { %v3210_v6 = vmax.f32 %v11055_v3, 0.0  ;;  %v11056_v7 = vadd.f32 %v12769_v35, %v2972_v5  ;;  %v2974_v8 = vpop.f32.mrb[183].mxu0 }
 0x486   : > { %3338 = vst [vmem:[#allocation2 + $0x2d8] sm:$0xff] %v3210_v6  ;;  %v3211_v9 = vmax.f32 %v11056_v7, 0.0 }
 0x487   : > { %v3800_v18 = vld [vmem:[#allocation2 + $0x2c9] ss:$2 sm:$0xff]  ;;  %v3720_v20 = vld [vmem:[#allocation2 + $0x2c8] ss:$2 sm:$0xff] }
 0x488   : > { %3339 = vst [vmem:[#allocation2 + $0x2e0] sm:$0xff] %v3211_v9 }
 0x489   : > { %v2977_v10 = vpop.f32.mrb[184].mxu0 }
 0x48a   : > { %v11057_v11 = vadd.f32 %v12769_v35, %v2977_v10  ;;  %v2979_v12 = vpop.f32.mrb[185].mxu0 }
 0x48b   : > { %v2980_v13 = vpop.f32.mrb[186].mxu0 }
 0x48c   : > { %v3212_v14 = vmax.f32 %v11057_v11, 0.0  ;;  %v11058_v15 = vadd.f32 %v12769_v35, %v2980_v13  ;;  %v2982_v16 = vpop.f32.mrb[187].mxu0 }
 0x48e   : > { %3340 = vst [vmem:[#allocation2 + $0x2e8] sm:$0xff] %v3212_v14  ;;  %v3213_v17 = vmax.f32 %v11058_v15, 0.0 }
 0x48f   : > { %v3802_v19 = vld [vmem:[#allocation2 + $0x2d9] ss:$2 sm:$0xff]  ;;  %v3722_v21 = vld [vmem:[#allocation2 + $0x2d8] ss:$2 sm:$0xff] }
 0x490   : > { %3341 = vst [vmem:[#allocation2 + $0x2f0] sm:$0xff] %v3213_v17  ;;  %v3845_v22 = vpack.c.bf16 %v3802_v19, %v3800_v18  ;;  %v3765_v23 = vpack.c.bf16 %v3722_v21, %v3720_v20 }
 0x491   : > { %v2985_v25 = vpop.f32.mrb[188].mxu0 }
 0x492   : > { %v11059_v26 = vadd.f32 %v12769_v35, %v2985_v25  ;;  %v2987_v27 = vpop.f32.mrb[189].mxu0  ;;  %4488 = vmatprep.mubr.bf16.mxu1 %v3845_v22 }
 0x493   : > { %v2988_v28 = vpop.f32.mrb[190].mxu0  ;;  %4489 = vmatmul.mubr.bf16.gmra.mrb[88].mxu1 %v3765_v23 }
 0x494   : > { %v3214_v29 = vmax.f32 %v11059_v26, 0.0  ;;  %v11060_v30 = vadd.f32 %v12769_v35, %v2988_v28  ;;  %v2990_v31 = vpop.f32.mrb[191].mxu0 }
 0x496   : > { %3342 = vst [vmem:[#allocation2 + $0x2f8] sm:$0xff] %v3214_v29  ;;  %v3215_v32 = vmax.f32 %v11060_v30, 0.0 }
 0x497   : > { %v3804_v43 = vld [vmem:[#allocation2 + $0x2e9] ss:$2 sm:$0xff]  ;;  %v3724_v44 = vld [vmem:[#allocation2 + $0x2e8] ss:$2 sm:$0xff] }
 0x498   : > { %3343 = vst [vmem:[#allocation2 + $0x300] sm:$0xff] %v3215_v32 }
 0x499   : > { %v2993_v34 = vpop.f32.mrb[192].mxu0 }
 0x49a   : > { %v11061_v36 = vadd.f32 %v12769_v35, %v2993_v34  ;;  %v2995_v37 = vpop.f32.mrb[193].mxu0 }
 0x49b   : > { %v2996_v38 = vpop.f32.mrb[194].mxu0 }
 0x49c   : > { %v3216_v39 = vmax.f32 %v11061_v36, 0.0  ;;  %v11062_v1 = vadd.f32 %v12769_v35, %v2996_v38  ;;  %v2998_v40 = vpop.f32.mrb[195].mxu0 }
 0x49e   : > { %3344 = vst [vmem:[#allocation2 + $0x308] sm:$0xff] %v3216_v39  ;;  %v3217_v41 = vmax.f32 %v11062_v1, 0.0 }
 0x49f   : > { %v3806_v42 = vld [vmem:[#allocation2 + $0x2f9] ss:$2 sm:$0xff]  ;;  %v3726_v45 = vld [vmem:[#allocation2 + $0x2f8] ss:$2 sm:$0xff] }
 0x4a0   : > { %3345 = vst [vmem:[#allocation2 + $0x310] sm:$0xff] %v3217_v41  ;;  %v3846_v46 = vpack.c.bf16 %v3806_v42, %v3804_v43  ;;  %v3766_v47 = vpack.c.bf16 %v3726_v45, %v3724_v44 }
 0x4a1   : > { %v3001_v48 = vpop.f32.mrb[196].mxu0 }
 0x4a2   : > { %v11063_v49 = vadd.f32 %v12769_v35, %v3001_v48  ;;  %v3003_v50 = vpop.f32.mrb[197].mxu0  ;;  %4496 = vmatprep.mubr.bf16.mxu1 %v3846_v46 }
 0x4a3   : > { %v3004_v51 = vpop.f32.mrb[198].mxu0  ;;  %4497 = vmatmul.mubr.bf16.gmra.mrb[92].mxu1 %v3766_v47 }
 0x4a4   : > { %v3218_v52 = vmax.f32 %v11063_v49, 0.0  ;;  %v11064_v53 = vadd.f32 %v12769_v35, %v3004_v51  ;;  %v3006_v54 = vpop.f32.mrb[199].mxu0 }
 0x4a6   : > { %3346 = vst [vmem:[#allocation2 + $0x318] sm:$0xff] %v3218_v52  ;;  %v3219_v55 = vmax.f32 %v11064_v53, 0.0 }
 0x4a7   : > { %v3808_v0 = vld [vmem:[#allocation2 + $0x309] ss:$2 sm:$0xff]  ;;  %v3728_v3 = vld [vmem:[#allocation2 + $0x308] ss:$2 sm:$0xff] }
 0x4a8   : > { %3347 = vst [vmem:[#allocation2 + $0x320] sm:$0xff] %v3219_v55 }
 0x4a9   : > { %v3009_v56 = vpop.f32.mrb[200].mxu0 }
 0x4aa   : > { %v11065_v57 = vadd.f32 %v12769_v35, %v3009_v56  ;;  %v3011_v58 = vpop.f32.mrb[201].mxu0 }
 0x4ab   : > { %v3012_v59 = vpop.f32.mrb[202].mxu0 }
 0x4ac   : > { %v3220_v60 = vmax.f32 %v11065_v57, 0.0  ;;  %v11066_v61 = vadd.f32 %v12769_v35, %v3012_v59  ;;  %v3014_v62 = vpop.f32.mrb[203].mxu0 }
 0x4ae   : > { %3348 = vst [vmem:[#allocation2 + $0x328] sm:$0xff] %v3220_v60  ;;  %v3221_v63 = vmax.f32 %v11066_v61, 0.0 }
 0x4af   : > { %v3810_v2 = vld [vmem:[#allocation2 + $0x319] ss:$2 sm:$0xff]  ;;  %v3730_v4 = vld [vmem:[#allocation2 + $0x318] ss:$2 sm:$0xff] }
 0x4b0   : > { %3349 = vst [vmem:[#allocation2 + $0x330] sm:$0xff] %v3221_v63  ;;  %v3847_v5 = vpack.c.bf16 %v3810_v2, %v3808_v0  ;;  %v3767_v6 = vpack.c.bf16 %v3730_v4, %v3728_v3 }
 0x4b1   : > { %v3017_v7 = vpop.f32.mrb[204].mxu0 }
 0x4b2   : > { %v11067_v8 = vadd.f32 %v12769_v35, %v3017_v7  ;;  %v3019_v9 = vpop.f32.mrb[205].mxu0  ;;  %4504 = vmatprep.mubr.bf16.mxu1 %v3847_v5 }
 0x4b3   : > { %v3020_v10 = vpop.f32.mrb[206].mxu0  ;;  %4505 = vmatmul.mubr.bf16.gmra.mrb[96].mxu1 %v3767_v6 }
 0x4b4   : > { %v3222_v11 = vmax.f32 %v11067_v8, 0.0  ;;  %v11068_v12 = vadd.f32 %v12769_v35, %v3020_v10  ;;  %v3022_v13 = vpop.f32.mrb[207].mxu0 }
 0x4b6   : > { %3350 = vst [vmem:[#allocation2 + $0x338] sm:$0xff] %v3222_v11  ;;  %v3223_v14 = vmax.f32 %v11068_v12, 0.0 }
 0x4b7   : > { %v3812_v23 = vld [vmem:[#allocation2 + $0x329] ss:$2 sm:$0xff]  ;;  %v3732_v25 = vld [vmem:[#allocation2 + $0x328] ss:$2 sm:$0xff] }
 0x4b8   : > { %3351 = vst [vmem:[#allocation2 + $0x340] sm:$0xff] %v3223_v14 }
 0x4b9   : > { %v3025_v15 = vpop.f32.mrb[208].mxu0 }
 0x4ba   : > { %v11069_v16 = vadd.f32 %v12769_v35, %v3025_v15  ;;  %v3027_v17 = vpop.f32.mrb[209].mxu0 }
 0x4bb   : > { %v3028_v18 = vpop.f32.mrb[210].mxu0 }
 0x4bc   : > { %v3224_v19 = vmax.f32 %v11069_v16, 0.0  ;;  %v11070_v20 = vadd.f32 %v12769_v35, %v3028_v18  ;;  %v3030_v21 = vpop.f32.mrb[211].mxu0 }
 0x4be   : > { %3352 = vst [vmem:[#allocation2 + $0x348] sm:$0xff] %v3224_v19  ;;  %v3225_v22 = vmax.f32 %v11070_v20, 0.0 }
 0x4bf   : > { %v3814_v24 = vld [vmem:[#allocation2 + $0x339] ss:$2 sm:$0xff]  ;;  %v3734_v26 = vld [vmem:[#allocation2 + $0x338] ss:$2 sm:$0xff] }
 0x4c0   : > { %3353 = vst [vmem:[#allocation2 + $0x350] sm:$0xff] %v3225_v22  ;;  %v3848_v27 = vpack.c.bf16 %v3814_v24, %v3812_v23  ;;  %v3768_v28 = vpack.c.bf16 %v3734_v26, %v3732_v25 }
 0x4c1   : > { %v3033_v29 = vpop.f32.mrb[212].mxu0 }
 0x4c2   : > { %v11071_v30 = vadd.f32 %v12769_v35, %v3033_v29  ;;  %v3035_v31 = vpop.f32.mrb[213].mxu0  ;;  %4512 = vmatprep.mubr.bf16.mxu1 %v3848_v27 }
 0x4c3   : > { %v3036_v32 = vpop.f32.mrb[214].mxu0  ;;  %4513 = vmatmul.mubr.bf16.gmra.mrb[100].mxu1 %v3768_v28 }
 0x4c4   : > { %v3226_v33 = vmax.f32 %v11071_v30, 0.0  ;;  %v11072_v34 = vadd.f32 %v12769_v35, %v3036_v32  ;;  %v3038_v36 = vpop.f32.mrb[215].mxu0 }
 0x4c6   : > { %3354 = vst [vmem:[#allocation2 + $0x358] sm:$0xff] %v3226_v33  ;;  %v3227_v37 = vmax.f32 %v11072_v34, 0.0 }
 0x4c7   : > { %v3816_v45 = vld [vmem:[#allocation2 + $0x349] ss:$2 sm:$0xff]  ;;  %v3736_v47 = vld [vmem:[#allocation2 + $0x348] ss:$2 sm:$0xff] }
 0x4c8   : > { %3355 = vst [vmem:[#allocation2 + $0x360] sm:$0xff] %v3227_v37 }
 0x4c9   : > { %v3041_v38 = vpop.f32.mrb[216].mxu0 }
 0x4ca   : > { %v11073_v39 = vadd.f32 %v12769_v35, %v3041_v38  ;;  %v3043_v1 = vpop.f32.mrb[217].mxu0 }
 0x4cb   : > { %v3044_v40 = vpop.f32.mrb[218].mxu0 }
 0x4cc   : > { %v3228_v41 = vmax.f32 %v11073_v39, 0.0  ;;  %v11074_v43 = vadd.f32 %v12769_v35, %v3044_v40  ;;  %v3046_v42 = vpop.f32.mrb[219].mxu0 }
 0x4ce   : > { %3356 = vst [vmem:[#allocation2 + $0x368] sm:$0xff] %v3228_v41  ;;  %v3229_v44 = vmax.f32 %v11074_v43, 0.0  ;;  %v12194_v41 = vld [vmem:[%s14206_s2] ss:$0 sm:$0xff] }
 0x4cf   : > { %v3818_v46 = vld [vmem:[#allocation2 + $0x359] ss:$2 sm:$0xff]  ;;  %v3738_v48 = vld [vmem:[#allocation2 + $0x358] ss:$2 sm:$0xff] }
 0x4d0   : > { %3357 = vst [vmem:[#allocation2 + $0x370] sm:$0xff] %v3229_v44  ;;  %v3849_v49 = vpack.c.bf16 %v3818_v46, %v3816_v45  ;;  %v3769_v50 = vpack.c.bf16 %v3738_v48, %v3736_v47 }
 0x4d1   : > { %v3049_v51 = vpop.f32.mrb[220].mxu0 }
 0x4d2   : > { %v11075_v52 = vadd.f32 %v12769_v35, %v3049_v51  ;;  %v3051_v53 = vpop.f32.mrb[221].mxu0  ;;  %4520 = vmatprep.mubr.bf16.mxu1 %v3849_v49 }
 0x4d3   : > { %v3052_v54 = vpop.f32.mrb[222].mxu0  ;;  %4521 = vmatmul.mubr.bf16.gmra.mrb[104].mxu1 %v3769_v50 }
 0x4d4   : > { %v3230_v55 = vmax.f32 %v11075_v52, 0.0  ;;  %v11076_v56 = vadd.f32 %v12769_v35, %v3052_v54  ;;  %v3054_v57 = vpop.f32.mrb[223].mxu0 }
 0x4d6   : > { %3358 = vst [vmem:[#allocation2 + $0x378] sm:$0xff] %v3230_v55  ;;  %v3231_v58 = vmax.f32 %v11076_v56, 0.0 }
 0x4d7   : > { %v3820_v4 = vld [vmem:[#allocation2 + $0x369] ss:$2 sm:$0xff]  ;;  %v3740_v6 = vld [vmem:[#allocation2 + $0x368] ss:$2 sm:$0xff] }
 0x4d8   : > { %3359 = vst [vmem:[#allocation2 + $0x380] sm:$0xff] %v3231_v58 }
 0x4d9   : > { %v3057_v59 = vpop.f32.mrb[224].mxu0 }
 0x4da   : > { %v11077_v60 = vadd.f32 %v12769_v35, %v3057_v59  ;;  %v3059_v61 = vpop.f32.mrb[225].mxu0 }
 0x4db   : > { %v3060_v62 = vpop.f32.mrb[226].mxu0 }
 0x4dc   : > { %v3232_v63 = vmax.f32 %v11077_v60, 0.0  ;;  %v11078_v0 = vadd.f32 %v12769_v35, %v3060_v62  ;;  %v3062_v2 = vpop.f32.mrb[227].mxu0 }
 0x4de   : > { %3360 = vst [vmem:[#allocation2 + $0x388] sm:$0xff] %v3232_v63  ;;  %v3233_v3 = vmax.f32 %v11078_v0, 0.0 }
 0x4df   : > { %v3822_v5 = vld [vmem:[#allocation2 + $0x379] ss:$2 sm:$0xff]  ;;  %v3742_v7 = vld [vmem:[#allocation2 + $0x378] ss:$2 sm:$0xff] }
 0x4e0   : > { %3361 = vst [vmem:[#allocation2 + $0x390] sm:$0xff] %v3233_v3  ;;  %v3850_v8 = vpack.c.bf16 %v3822_v5, %v3820_v4  ;;  %v3770_v9 = vpack.c.bf16 %v3742_v7, %v3740_v6  ;;  %v12001_v6 = vld [vmem:[%s14205_s1 + $0x240] sm:$0xff]  }
 0x4e1   : > { %v3065_v10 = vpop.f32.mrb[228].mxu0  ;;  %10389 = vmatprep.subr.bf16.mxu1 %v12001_v6  ;;  %v3640_v6 = vld [vmem:[#allocation2 + $0xc3] ss:$2 sm:$0xff] }
 0x4e2   : > { %v11079_v11 = vadd.f32 %v12769_v35, %v3065_v10  ;;  %v3067_v12 = vpop.f32.mrb[229].mxu0  ;;  %4528 = vmatprep.mubr.bf16.mxu1 %v3850_v8 }
 0x4e3   : > { %v3068_v13 = vpop.f32.mrb[230].mxu0  ;;  %4529 = vmatmul.mubr.bf16.gmra.mrb[108].mxu1 %v3770_v9 }
 0x4e4   : > { %v3234_v14 = vmax.f32 %v11079_v11, 0.0  ;;  %v11080_v15 = vadd.f32 %v12769_v35, %v3068_v13  ;;  %v3070_v16 = vpop.f32.mrb[231].mxu0 }
 0x4e6   : > { %3362 = vst [vmem:[#allocation2 + $0x398] sm:$0xff] %v3234_v14  ;;  %v3235_v17 = vmax.f32 %v11080_v15, 0.0 }
 0x4e7   : > { %v3824_v26 = vld [vmem:[#allocation2 + $0x389] ss:$2 sm:$0xff]  ;;  %v3744_v28 = vld [vmem:[#allocation2 + $0x388] ss:$2 sm:$0xff] }
 0x4e8   : > { %3363 = vst [vmem:[#allocation2 + $0x3a0] sm:$0xff] %v3235_v17 }
 0x4e9   : > { %v3073_v18 = vpop.f32.mrb[232].mxu0 }
 0x4ea   : > { %v11081_v19 = vadd.f32 %v12769_v35, %v3073_v18  ;;  %v3075_v20 = vpop.f32.mrb[233].mxu0 }
 0x4eb   : > { %v3076_v21 = vpop.f32.mrb[234].mxu0 }
 0x4ec   : > { %v3236_v22 = vmax.f32 %v11081_v19, 0.0  ;;  %v11082_v23 = vadd.f32 %v12769_v35, %v3076_v21  ;;  %v3078_v24 = vpop.f32.mrb[235].mxu0 }
 0x4ee   : > { %3364 = vst [vmem:[#allocation2 + $0x3a8] sm:$0xff] %v3236_v22  ;;  %v3237_v25 = vmax.f32 %v11082_v23, 0.0  ;;  %v3618_v23 = vld [vmem:[#allocation2 + $0x13] ss:$2 sm:$0xff] }
 0x4ef   : > { %v3826_v27 = vld [vmem:[#allocation2 + $0x399] ss:$2 sm:$0xff]  ;;  %v3746_v29 = vld [vmem:[#allocation2 + $0x398] ss:$2 sm:$0xff] }
 0x4f0   : > { %3365 = vst [vmem:[#allocation2 + $0x3b0] sm:$0xff] %v3237_v25  ;;  %v3851_v30 = vpack.c.bf16 %v3826_v27, %v3824_v26  ;;  %v3771_v31 = vpack.c.bf16 %v3746_v29, %v3744_v28  ;;  %v3616_v29 = vld [vmem:[#allocation2 + $0x3] ss:$2 sm:$0xff] }
 0x4f1   : > { %v3081_v32 = vpop.f32.mrb[236].mxu0 }
 0x4f2   : > { %v11083_v33 = vadd.f32 %v12769_v35, %v3081_v32  ;;  %v3083_v34 = vpop.f32.mrb[237].mxu0  ;;  %4536 = vmatprep.mubr.bf16.mxu1 %v3851_v30  ;;  %v3679_v30 = vpack.c.bf16 %v3618_v23, %v3616_v29  ;;  %v3622_v32 = vld [vmem:[#allocation2 + $0x33] ss:$2 sm:$0xff] }
 0x4f3   : > { %v3084_v36 = vpop.f32.mrb[238].mxu0  ;;  %4537 = vmatmul.mubr.bf16.gmra.mrb[112].mxu1 %v3771_v31  ;;  %v3538_v31 = vld [vmem:[#allocation2 + $0x12] ss:$2 sm:$0xff]  ;;  %v3658_v29 = vld [vmem:[#allocation2 + $0x153] ss:$2 sm:$0xff] }
 0x4f4   : > { %v3238_v37 = vmax.f32 %v11083_v33, 0.0  ;;  %v11084_v38 = vadd.f32 %v12769_v35, %v3084_v36  ;;  %v3086_v39 = vpop.f32.mrb[239].mxu0  ;;  %v3536_v33 = vld [vmem:[#allocation2 + $0x2] ss:$2 sm:$0xff]  ;;  %v12002_v34 = vld [vmem:[%s14205_s1 + $0x200] sm:$0xff]  }
 0x4f5   : > { %v3599_v36 = vpack.c.bf16 %v3538_v31, %v3536_v33  ;;  %v12003_v39 = vld [vmem:[%s14205_s1 + $0x248] sm:$0xff]  }
 0x4f6   : > { %3366 = vst [vmem:[#allocation2 + $0x3b8] sm:$0xff] %v3238_v37  ;;  %v3239_v1 = vmax.f32 %v11084_v38, 0.0  ;;  %v3620_v37 = vld [vmem:[#allocation2 + $0x23] ss:$2 sm:$0xff] }
 0x4f7   : > { %v3828_v49 = vld [vmem:[#allocation2 + $0x3a9] ss:$2 sm:$0xff]  ;;  %v3748_v35 = vld [vmem:[#allocation2 + $0x3a8] ss:$2 sm:$0xff]  ;;  %v3680_v38 = vpack.c.bf16 %v3622_v32, %v3620_v37 }
 0x4f8   : > { %3367 = vst [vmem:[#allocation2 + $0x3c0] sm:$0xff] %v3239_v1  ;;  %v12004_v1 = vld [vmem:[%s14205_s1 + $0x208] sm:$0xff]  }
 0x4f9   : > { %v3089_v40 = vpop.f32.mrb[240].mxu0  ;;  %v3656_v32 = vld [vmem:[#allocation2 + $0x143] ss:$2 sm:$0xff]  ;;  %v3576_v37 = vld [vmem:[#allocation2 + $0x142] ss:$2 sm:$0xff] }
 0x4fa   : > { %v11085_v43 = vadd.f32 %v12194_v41, %v3089_v40  ;;  %v3091_v42 = vpop.f32.mrb[241].mxu0  ;;  %v3542_v40 = vld [vmem:[#allocation2 + $0x32] ss:$2 sm:$0xff]  ;;  %v3689_v33 = vpack.c.bf16 %v3658_v29, %v3656_v32 }
 0x4fb   : > { %v3092_v44 = vpop.f32.mrb[242].mxu0  ;;  %v3870_v32 = vld [vmem:[#allocation2 + $0x27a] ss:$2 sm:$0xff] }
 0x4fc   : > { %v3240_v45 = vmax.f32 %v11085_v43, 0.0  ;;  %v11086_v46 = vadd.f32 %v12194_v41, %v3092_v44  ;;  %v3094_v47 = vpop.f32.mrb[243].mxu0  ;;  %v3540_v43 = vld [vmem:[#allocation2 + $0x22] ss:$2 sm:$0xff]  ;;  %v3624_v44 = vld [vmem:[#allocation2 + $0x43] ss:$2 sm:$0xff] }
 0x4fd   : > { %v3600_v42 = vpack.c.bf16 %v3542_v40, %v3540_v43  ;;  %v3630_v47 = vld [vmem:[#allocation2 + $0x73] ss:$2 sm:$0xff]  ;;  %v3582_v40 = vld [vmem:[#allocation2 + $0x172] ss:$2 sm:$0xff]  ;;  %v3580_v43 = vld [vmem:[#allocation2 + $0x162] ss:$2 sm:$0xff] }
 0x4fe   : > { %3368 = vst [vmem:[#allocation2 + $0x3c8] sm:$0xff] %v3240_v45  ;;  %v3241_v48 = vmax.f32 %v11086_v46, 0.0  ;;  %v3546_v46 = vld [vmem:[#allocation2 + $0x52] ss:$2 sm:$0xff] }
 0x4ff   : > { %v3830_v50 = vld [vmem:[#allocation2 + $0x3b9] ss:$2 sm:$0xff]  ;;  %v3750_v51 = vld [vmem:[#allocation2 + $0x3b8] ss:$2 sm:$0xff] }
 0x500   : > { %3369 = vst [vmem:[#allocation2 + $0x3d0] sm:$0xff] %v3241_v48  ;;  %v3852_v52 = vpack.c.bf16 %v3830_v50, %v3828_v49  ;;  %v3772_v53 = vpack.c.bf16 %v3750_v51, %v3748_v35  ;;  %v3544_v48 = vld [vmem:[#allocation2 + $0x42] ss:$2 sm:$0xff]  ;;  %v3628_v50 = vld [vmem:[#allocation2 + $0x63] ss:$2 sm:$0xff] }
 0x501   : > { %v3097_v54 = vpop.f32.mrb[244].mxu0  ;;  %v3601_v49 = vpack.c.bf16 %v3546_v46, %v3544_v48  ;;  %v3682_v35 = vpack.c.bf16 %v3630_v47, %v3628_v50  ;;  %v3550_v51 = vld [vmem:[#allocation2 + $0x72] ss:$2 sm:$0xff]  ;;  %v3670_v47 = vld [vmem:[#allocation2 + $0x1b3] ss:$2 sm:$0xff] }
 0x502   : > { %v11087_v55 = vadd.f32 %v12194_v41, %v3097_v54  ;;  %v3099_v56 = vpop.f32.mrb[245].mxu0  ;;  %4544 = vmatprep.mubr.bf16.mxu1 %v3852_v52  ;;  %v3634_v52 = vld [vmem:[#allocation2 + $0x93] ss:$2 sm:$0xff]  ;;  %v3586_v46 = vld [vmem:[#allocation2 + $0x192] ss:$2 sm:$0xff] }
 0x503   : > { %v3100_v57 = vpop.f32.mrb[246].mxu0  ;;  %4545 = vmatmul.mubr.bf16.gmra.mrb[116].mxu1 %v3772_v53  ;;  %v3548_v53 = vld [vmem:[#allocation2 + $0x62] ss:$2 sm:$0xff]  ;;  %v3668_v50 = vld [vmem:[#allocation2 + $0x1a3] ss:$2 sm:$0xff] }
 0x504   : > { %v3242_v58 = vmax.f32 %v11087_v55, 0.0  ;;  %v11088_v59 = vadd.f32 %v12194_v41, %v3100_v57  ;;  %v3102_v60 = vpop.f32.mrb[247].mxu0  ;;  %v3602_v54 = vpack.c.bf16 %v3550_v51, %v3548_v53  ;;  %v3632_v55 = vld [vmem:[#allocation2 + $0x83] ss:$2 sm:$0xff]  ;;  %v3554_v57 = vld [vmem:[#allocation2 + $0x92] ss:$2 sm:$0xff] }
 0x505   : > { %v3683_v56 = vpack.c.bf16 %v3634_v52, %v3632_v55  ;;  %v3584_v48 = vld [vmem:[#allocation2 + $0x182] ss:$2 sm:$0xff]  ;;  %v3590_v51 = vld [vmem:[#allocation2 + $0x1b2] ss:$2 sm:$0xff]  ;;  %v3674_v52 = vld [vmem:[#allocation2 + $0x1d3] ss:$2 sm:$0xff] }
 0x506   : > { %3370 = vst [vmem:[#allocation2 + $0x3d8] sm:$0xff] %v3242_v58  ;;  %v3243_v61 = vmax.f32 %v11088_v59, 0.0  ;;  %v3638_v58 = vld [vmem:[#allocation2 + $0xb3] ss:$2 sm:$0xff]  ;;  %v3552_v59 = vld [vmem:[#allocation2 + $0x82] ss:$2 sm:$0xff] }
 0x507   : > { %v3832_v8 = vld [vmem:[#allocation2 + $0x3c9] ss:$2 sm:$0xff]  ;;  %v3752_v10 = vld [vmem:[#allocation2 + $0x3c8] ss:$2 sm:$0xff]  ;;  %v3603_v60 = vpack.c.bf16 %v3554_v57, %v3552_v59  ;;  %v12009_v57 = vld [vmem:[%s14205_s1 + $0x260] sm:$0xff]  }
 0x508   : > { %3371 = vst [vmem:[#allocation2 + $0x3e0] sm:$0xff] %v3243_v61  ;;  %v3636_v61 = vld [vmem:[#allocation2 + $0xa3] ss:$2 sm:$0xff]  ;;  %v3588_v53 = vld [vmem:[#allocation2 + $0x1a2] ss:$2 sm:$0xff] }
 0x509   : > { %v3105_v62 = vpop.f32.mrb[248].mxu0  ;;  %v3672_v55 = vld [vmem:[#allocation2 + $0x1c3] ss:$2 sm:$0xff]  ;;  %v3594_v59 = vld [vmem:[#allocation2 + $0x1d2] ss:$2 sm:$0xff] }
 0x50a   : > { %v11089_v63 = vadd.f32 %v12194_v41, %v3105_v62  ;;  %v3107_v0 = vpop.f32.mrb[249].mxu0  ;;  %v3684_v62 = vpack.c.bf16 %v3638_v58, %v3636_v61  ;;  %v12010_v58 = vld [vmem:[%s14205_s1 + $0x220] sm:$0xff]   ;;  %v3592_v61 = vld [vmem:[#allocation2 + $0x1c2] ss:$2 sm:$0xff] }
 0x50b   : > { %v3108_v2 = vpop.f32.mrb[250].mxu0  ;;  %v12006_v0 = vld [vmem:[%s14205_s1 + $0x210] sm:$0xff]  }
 0x50c   : > { %v3244_v3 = vmax.f32 %v11089_v63, 0.0  ;;  %v11090_v4 = vadd.f32 %v12194_v41, %v3108_v2  ;;  %v3110_v5 = vpop.f32.mrb[251].mxu0  ;;  %v12005_v63 = vld [vmem:[%s14205_s1 + $0x250] sm:$0xff]   ;;  %v3558_v2 = vld [vmem:[#allocation2 + $0xb2] ss:$2 sm:$0xff] }
 0x50e   : > { %3372 = vst [vmem:[#allocation2 + $0x3e8] sm:$0xff] %v3244_v3  ;;  %v3245_v7 = vmax.f32 %v11090_v4, 0.0  ;;  %v3642_v3 = vld [vmem:[#allocation2 + $0xd3] ss:$2 sm:$0xff]  ;;  %v3556_v4 = vld [vmem:[#allocation2 + $0xa2] ss:$2 sm:$0xff] }
 0x50f   : > { %v3834_v9 = vld [vmem:[#allocation2 + $0x3d9] ss:$2 sm:$0xff]  ;;  %v3754_v11 = vld [vmem:[#allocation2 + $0x3d8] ss:$2 sm:$0xff]  ;;  %v3604_v5 = vpack.c.bf16 %v3558_v2, %v3556_v4 }
 0x510   : > { %3373 = vst [vmem:[#allocation2 + $0x3f0] sm:$0xff] %v3245_v7  ;;  %v3853_v12 = vpack.c.bf16 %v3834_v9, %v3832_v8  ;;  %v3773_v13 = vpack.c.bf16 %v3754_v11, %v3752_v10  ;;  %v3685_v7 = vpack.c.bf16 %v3642_v3, %v3640_v6  ;;  %v3562_v8 = vld [vmem:[#allocation2 + $0xd2] ss:$2 sm:$0xff]  ;;  %v3646_v9 = vld [vmem:[#allocation2 + $0xf3] ss:$2 sm:$0xff] }
 0x511   : > { %v3113_v14 = vpop.f32.mrb[252].mxu0  ;;  %v3560_v10 = vld [vmem:[#allocation2 + $0xc2] ss:$2 sm:$0xff]  ;;  %v3598_v2 = vld [vmem:[#allocation2 + $0x1f2] ss:$2 sm:$0xff] }
 0x512   : > { %v11091_v15 = vadd.f32 %v12194_v41, %v3113_v14  ;;  %v3115_v16 = vpop.f32.mrb[253].mxu0  ;;  %4552 = vmatprep.mubr.bf16.mxu1 %v3853_v12  ;;  %v3605_v11 = vpack.c.bf16 %v3562_v8, %v3560_v10  ;;  %v3644_v12 = vld [vmem:[#allocation2 + $0xe3] ss:$2 sm:$0xff]  ;;  %v3566_v14 = vld [vmem:[#allocation2 + $0xf2] ss:$2 sm:$0xff] }
 0x513   : > { %v3116_v17 = vpop.f32.mrb[254].mxu0  ;;  %4553 = vmatmul.mubr.bf16.gmra.mrb[120].mxu1 %v3773_v13  ;;  %v3686_v13 = vpack.c.bf16 %v3646_v9, %v3644_v12  ;;  %v3564_v16 = vld [vmem:[#allocation2 + $0xe2] ss:$2 sm:$0xff]  ;;  %v3938_v4 = vld [vmem:[#allocation2 + $0x21b] ss:$2 sm:$0xff] }
 0x514   : > { %v3246_v18 = vmax.f32 %v11091_v15, 0.0  ;;  %v11092_v19 = vadd.f32 %v12194_v41, %v3116_v17  ;;  %v3118_v20 = vpop.f32.mrb[255].mxu0  ;;  %v3626_v41 = vld [vmem:[#allocation2 + $0x53] ss:$2 sm:$0xff]  ;;  %v3606_v17 = vpack.c.bf16 %v3566_v14, %v3564_v16  ;;  %v3596_v6 = vld [vmem:[#allocation2 + $0x1e2] ss:$2 sm:$0xff] }
 0x515   : > { %v3681_v45 = vpack.c.bf16 %v3626_v41, %v3624_v44  ;;  %v3650_v15 = vld [vmem:[#allocation2 + $0x113] ss:$2 sm:$0xff]  ;;  %v3570_v20 = vld [vmem:[#allocation2 + $0x112] ss:$2 sm:$0xff]  ;;  %v3664_v44 = vld [vmem:[#allocation2 + $0x183] ss:$2 sm:$0xff] }
 0x516   : > { %3374 = vst [vmem:[#allocation2 + $0x3f8] sm:$0xff] %v3246_v18  ;;  %v3247_v21 = vmax.f32 %v11092_v19, 0.0  ;;  %v3648_v18 = vld [vmem:[#allocation2 + $0x103] ss:$2 sm:$0xff]  ;;  %v3666_v41 = vld [vmem:[#allocation2 + $0x193] ss:$2 sm:$0xff] }
 0x517   : > { %v3836_v22 = vld [vmem:[#allocation2 + $0x3e9] ss:$2 sm:$0xff]  ;;  %v3756_v25 = vld [vmem:[#allocation2 + $0x3e8] ss:$2 sm:$0xff]  ;;  %v3687_v19 = vpack.c.bf16 %v3650_v15, %v3648_v18  ;;  %v12011_v3 = vld [vmem:[%s14205_s1 + $0x268] sm:$0xff]  }
 0x518   : > { %3375 = vst [vmem:[#allocation2 + $0x400] sm:$0xff] %v3247_v21  ;;  %v3654_v21 = vld [vmem:[#allocation2 + $0x133] ss:$2 sm:$0xff]  ;;  %v12013_v10 = vld [vmem:[%s14205_s1 + $0x270] sm:$0xff]  }
 0x519   : > { %v3936_v8 = vld [vmem:[#allocation2 + $0x20b] ss:$2 sm:$0xff]  ;;  %v3858_v12 = vld [vmem:[#allocation2 + $0x21a] ss:$2 sm:$0xff]  ;;  %v3942_v14 = vld [vmem:[#allocation2 + $0x23b] ss:$2 sm:$0xff] }
 0x51a   : > { %v3999_v9 = vpack.c.bf16 %v3938_v4, %v3936_v8  ;;  %v12016_v15 = vld [vmem:[%s14205_s1 + $0x238] sm:$0xff]   ;;  %v3894_v4 = vld [vmem:[#allocation2 + $0x33a] ss:$2 sm:$0xff] }
 0x51b   : > { %v3856_v16 = vld [vmem:[#allocation2 + $0x20a] ss:$2 sm:$0xff]  ;;  %v3940_v18 = vld [vmem:[#allocation2 + $0x22b] ss:$2 sm:$0xff] }
 0x51c   : > { %v3976_v8 = vld [vmem:[#allocation2 + $0x34b] ss:$2 sm:$0xff] }
 0x51f   : > { %v3838_v24 = vld [vmem:[#allocation2 + $0x3f9] ss:$2 sm:$0xff]  ;;  %v3758_v26 = vld [vmem:[#allocation2 + $0x3f8] ss:$2 sm:$0xff] }
 0x520   : > { %v3854_v27 = vpack.c.bf16 %v3838_v24, %v3836_v22  ;;  %v3774_v28 = vpack.c.bf16 %v3758_v26, %v3756_v25  ;;  %v3568_v22 = vld [vmem:[#allocation2 + $0x102] ss:$2 sm:$0xff]  ;;  %v3652_v24 = vld [vmem:[#allocation2 + $0x123] ss:$2 sm:$0xff] }
 0x521   : > { %v3607_v23 = vpack.c.bf16 %v3570_v20, %v3568_v22  ;;  %v3688_v25 = vpack.c.bf16 %v3654_v21, %v3652_v24  ;;  %v12007_v26 = vld [vmem:[%s14205_s1 + $0x258] sm:$0xff]   ;;  %v3862_v20 = vld [vmem:[#allocation2 + $0x23a] ss:$2 sm:$0xff]  ;;  %v3946_v21 = vld [vmem:[#allocation2 + $0x25b] ss:$2 sm:$0xff] }
 0x522   : > { %4560 = vmatprep.mubr.bf16.mxu1 %v3854_v27  ;;  %v12008_v27 = vld [vmem:[%s14205_s1 + $0x218] sm:$0xff]  }
 0x523   : > { %4561 = vmatmul.mubr.bf16.gmra.mrb[124].mxu1 %v3774_v28  ;;  %v3574_v28 = vld [vmem:[#allocation2 + $0x132] ss:$2 sm:$0xff]  ;;  %v3944_v24 = vld [vmem:[#allocation2 + $0x24b] ss:$2 sm:$0xff] }
 0x524   : > { %4601 = vmatprep.mubr.bf16.mxu1 %v3679_v30  ;;  %v3572_v30 = vld [vmem:[#allocation2 + $0x122] ss:$2 sm:$0xff] }
 0x525   : > { %v3608_v31 = vpack.c.bf16 %v3574_v28, %v3572_v30  ;;  %v3860_v22 = vld [vmem:[#allocation2 + $0x22a] ss:$2 sm:$0xff]  ;;  %v3948_v30 = vld [vmem:[#allocation2 + $0x26b] ss:$2 sm:$0xff] }
 0x526   : > { %v3864_v28 = vld [vmem:[#allocation2 + $0x24a] ss:$2 sm:$0xff] }
 0x52b   : > { %4602 = vmatmul.mubr.bf16.vlgmr.msra.gmra.mrb[0].mxu1 %v3599_v36  ;;  %v3662_v36 = vld [vmem:[#allocation2 + $0x173] ss:$2 sm:$0xff] }
 0x52c   : > { %4609 = vmatprep.mubr.bf16.mxu1 %v3680_v38  ;;  %10390 = vmatpush3.bf16.msra.mxu1 %v12002_v34  ;;  %v3578_v34 = vld [vmem:[#allocation2 + $0x152] ss:$2 sm:$0xff] }
 0x52d   : > { %10391 = vmatprep.subr.bf16.mxu1 %v12003_v39  ;;  %v3609_v38 = vpack.c.bf16 %v3578_v34, %v3576_v37  ;;  %v3660_v39 = vld [vmem:[#allocation2 + $0x163] ss:$2 sm:$0xff]  ;;  %v3868_v34 = vld [vmem:[#allocation2 + $0x26a] ss:$2 sm:$0xff] }
 0x52e   : > { %v3952_v37 = vld [vmem:[#allocation2 + $0x28b] ss:$2 sm:$0xff] }
 0x530   : > { %10392 = vmatpush3.bf16.msra.mxu1 %v12004_v1  ;;  %v3690_v1 = vpack.c.bf16 %v3662_v36, %v3660_v39  ;;  %v3922_v36 = vpack.c.bf16 %v3870_v32, %v3868_v34  ;;  %v3874_v39 = vld [vmem:[#allocation2 + $0x29a] ss:$2 sm:$0xff] }
 0x531   : > { %10393 = vmatprep.subr.bf16.mxu1 %v12005_v63  ;;  %v3676_v63 = vld [vmem:[#allocation2 + $0x1e3] ss:$2 sm:$0xff]  ;;  %v3906_v32 = vld [vmem:[#allocation2 + $0x39a] ss:$2 sm:$0xff] }
 0x533   : > { %4610 = vmatmul.mubr.bf16.gmra.mrb[4].mxu1 %v3600_v42  ;;  %v3610_v42 = vpack.c.bf16 %v3582_v40, %v3580_v43  ;;  %v3872_v40 = vld [vmem:[#allocation2 + $0x28a] ss:$2 sm:$0xff]  ;;  %v3956_v43 = vld [vmem:[#allocation2 + $0x2ab] ss:$2 sm:$0xff] }
 0x534   : > { %4617 = vmatprep.mubr.bf16.mxu1 %v3681_v45  ;;  %10394 = vmatpush3.bf16.msra.mxu1 %v12006_v0  ;;  %v3691_v45 = vpack.c.bf16 %v3666_v41, %v3664_v44  ;;  %v3923_v41 = vpack.c.bf16 %v3874_v39, %v3872_v40  ;;  %v3878_v44 = vld [vmem:[#allocation2 + $0x2ba] ss:$2 sm:$0xff] }
 0x535   : > { %10395 = vmatprep.subr.bf16.mxu1 %v12007_v26  ;;  %v3866_v26 = vld [vmem:[#allocation2 + $0x25a] ss:$2 sm:$0xff] }
 0x536   : > { %v3921_v29 = vpack.c.bf16 %v3866_v26, %v3864_v28  ;;  %v3984_v28 = vld [vmem:[#allocation2 + $0x38b] ss:$2 sm:$0xff] }
 0x538   : > { %10396 = vmatpush3.bf16.msra.mxu1 %v12008_v27  ;;  %v3950_v27 = vld [vmem:[#allocation2 + $0x27b] ss:$2 sm:$0xff] }
 0x539   : > { %10397 = vmatprep.subr.bf16.mxu1 %v12009_v57  ;;  %v3884_v57 = vld [vmem:[#allocation2 + $0x2ea] ss:$2 sm:$0xff] }
 0x53b   : > { %4618 = vmatmul.mubr.bf16.gmra.mrb[8].mxu1 %v3601_v49  ;;  %v3611_v49 = vpack.c.bf16 %v3586_v46, %v3584_v48  ;;  %v3876_v46 = vld [vmem:[#allocation2 + $0x2aa] ss:$2 sm:$0xff]  ;;  %v3960_v48 = vld [vmem:[#allocation2 + $0x2cb] ss:$2 sm:$0xff] }
 0x53c   : > { %4625 = vmatprep.mubr.bf16.mxu1 %v3682_v35  ;;  %v3692_v35 = vpack.c.bf16 %v3670_v47, %v3668_v50  ;;  %10398 = vmatpush3.bf16.msra.mxu1 %v12010_v58  ;;  %v3924_v47 = vpack.c.bf16 %v3878_v44, %v3876_v46  ;;  %v3882_v50 = vld [vmem:[#allocation2 + $0x2da] ss:$2 sm:$0xff] }
 0x53d   : > { %10399 = vmatprep.subr.bf16.mxu1 %v12011_v3  ;;  %v3910_v46 = vld [vmem:[#allocation2 + $0x3ba] ss:$2 sm:$0xff] }
 0x543   : > { %4626 = vmatmul.mubr.bf16.gmra.mrb[12].mxu1 %v3602_v54  ;;  %v3612_v54 = vpack.c.bf16 %v3590_v51, %v3588_v53  ;;  %v3880_v51 = vld [vmem:[#allocation2 + $0x2ca] ss:$2 sm:$0xff]  ;;  %v3964_v53 = vld [vmem:[#allocation2 + $0x2eb] ss:$2 sm:$0xff] }
 0x544   : > { %4633 = vmatprep.mubr.bf16.mxu1 %v3683_v56  ;;  %v3693_v56 = vpack.c.bf16 %v3674_v52, %v3672_v55  ;;  %v3925_v52 = vpack.c.bf16 %v3882_v50, %v3880_v51  ;;  %v3886_v55 = vld [vmem:[#allocation2 + $0x2fa] ss:$2 sm:$0xff] }
 0x545   : > { %v3926_v58 = vpack.c.bf16 %v3886_v55, %v3884_v57  ;;  %v3992_v55 = vld [vmem:[#allocation2 + $0x3cb] ss:$2 sm:$0xff] }
 0x54b   : > { %4634 = vmatmul.mubr.bf16.gmra.mrb[16].mxu1 %v3603_v60  ;;  %v3678_v60 = vld [vmem:[#allocation2 + $0x1f3] ss:$2 sm:$0xff] }
 0x54c   : > { %4641 = vmatprep.mubr.bf16.mxu1 %v3684_v62  ;;  %v3613_v62 = vpack.c.bf16 %v3594_v59, %v3592_v61  ;;  %v3694_v0 = vpack.c.bf16 %v3678_v60, %v3676_v63  ;;  %v3968_v59 = vld [vmem:[#allocation2 + $0x30b] ss:$2 sm:$0xff]  ;;  %v3890_v61 = vld [vmem:[#allocation2 + $0x31a] ss:$2 sm:$0xff]  ;;  %v3888_v63 = vld [vmem:[#allocation2 + $0x30a] ss:$2 sm:$0xff] }
 0x553   : > { %4642 = vmatmul.mubr.bf16.gmra.mrb[20].mxu1 %v3604_v5  ;;  %v12012_v5 = vld [vmem:[%s14205_s1 + $0x228] sm:$0xff]  }
 0x554   : > { %4649 = vmatprep.mubr.bf16.mxu1 %v3685_v7  ;;  %v3614_v7 = vpack.c.bf16 %v3598_v2, %v3596_v6  ;;  %10400 = vmatpush3.bf16.msra.mxu1 %v12012_v5  ;;  %v3972_v2 = vld [vmem:[#allocation2 + $0x32b] ss:$2 sm:$0xff]  ;;  %v3978_v5 = vld [vmem:[#allocation2 + $0x35b] ss:$2 sm:$0xff]  ;;  %v3892_v6 = vld [vmem:[#allocation2 + $0x32a] ss:$2 sm:$0xff] }
 0x555   : > { %10401 = vmatprep.subr.bf16.mxu1 %v12013_v10  ;;  %v3898_v10 = vld [vmem:[#allocation2 + $0x35a] ss:$2 sm:$0xff] }
 0x55b   : > { %4650 = vmatmul.mubr.bf16.gmra.mrb[24].mxu1 %v3605_v11  ;;  %v12014_v11 = vld [vmem:[%s14205_s1 + $0x230] sm:$0xff]  }
 0x55c   : > { %4657 = vmatprep.mubr.bf16.mxu1 %v3686_v13  ;;  %10402 = vmatpush3.bf16.msra.mxu1 %v12014_v11  ;;  %v12015_v13 = vld [vmem:[%s14205_s1 + $0x278] sm:$0xff]   ;;  %v3982_v11 = vld [vmem:[#allocation2 + $0x37b] ss:$2 sm:$0xff] }
 0x55d   : > { %10403 = vmatprep.subr.bf16.mxu1 %v12015_v13 }
 0x560   : > { %10404 = vmatpush3.bf16.msra.mxu1 %v12016_v15 }
 0x563   : > { %4658 = vmatmul.mubr.bf16.gmra.mrb[28].mxu1 %v3606_v17  ;;  %v3919_v17 = vpack.c.bf16 %v3858_v12, %v3856_v16  ;;  %v3896_v12 = vld [vmem:[#allocation2 + $0x34a] ss:$2 sm:$0xff]  ;;  %v12949_v16 = vld [vmem:[%s14206_s2 + $0x1] ss:$0 sm:$0xff] }
 0x564   : > { %4665 = vmatprep.mubr.bf16.mxu1 %v3687_v19  ;;  %v4000_v19 = vpack.c.bf16 %v3942_v14, %v3940_v18  ;;  %v3929_v13 = vpack.c.bf16 %v3898_v10, %v3896_v12  ;;  %v3980_v14 = vld [vmem:[#allocation2 + $0x36b] ss:$2 sm:$0xff]  ;;  %v3902_v18 = vld [vmem:[#allocation2 + $0x37a] ss:$2 sm:$0xff] }
 0x565   : > { %v4010_v15 = vpack.c.bf16 %v3982_v11, %v3980_v14  ;;  %v3918_v11 = vld [vmem:[#allocation2 + $0x3fa] ss:$2 sm:$0xff] }
 0x56b   : > { %4666 = vmatmul.mubr.bf16.gmra.mrb[32].mxu1 %v3607_v23  ;;  %v3920_v23 = vpack.c.bf16 %v3862_v20, %v3860_v22 }
 0x56c   : > { %4673 = vmatprep.mubr.bf16.mxu1 %v3688_v25  ;;  %v4001_v25 = vpack.c.bf16 %v3946_v21, %v3944_v24  ;;  %v3986_v21 = vld [vmem:[#allocation2 + $0x39b] ss:$2 sm:$0xff] }
 0x573   : > { %4674 = vmatmul.mubr.bf16.gmra.mrb[36].mxu1 %v3608_v31  ;;  %v4002_v31 = vpack.c.bf16 %v3950_v27, %v3948_v30 }
 0x574   : > { %4681 = vmatprep.mubr.bf16.mxu1 %v3689_v33  ;;  %v3954_v33 = vld [vmem:[#allocation2 + $0x29b] ss:$2 sm:$0xff] }
 0x57b   : > { %4682 = vmatmul.mubr.bf16.gmra.mrb[40].mxu1 %v3609_v38  ;;  %v4003_v38 = vpack.c.bf16 %v3954_v33, %v3952_v37 }
 0x57c   : > { %4689 = vmatprep.mubr.bf16.mxu1 %v3690_v1  ;;  %v3958_v1 = vld [vmem:[#allocation2 + $0x2bb] ss:$2 sm:$0xff] }
 0x583   : > { %4690 = vmatmul.mubr.bf16.gmra.mrb[44].mxu1 %v3610_v42  ;;  %v4004_v42 = vpack.c.bf16 %v3958_v1, %v3956_v43  ;;  %v3988_v43 = vld [vmem:[#allocation2 + $0x3ab] ss:$2 sm:$0xff] }
 0x584   : > { %4697 = vmatprep.mubr.bf16.mxu1 %v3691_v45  ;;  %v3962_v45 = vld [vmem:[#allocation2 + $0x2db] ss:$2 sm:$0xff] }
 0x58b   : > { %4698 = vmatmul.mubr.bf16.gmra.mrb[48].mxu1 %v3611_v49  ;;  %v4005_v49 = vpack.c.bf16 %v3962_v45, %v3960_v48 }
 0x58c   : > { %4705 = vmatprep.mubr.bf16.mxu1 %v3692_v35  ;;  %v3966_v35 = vld [vmem:[#allocation2 + $0x2fb] ss:$2 sm:$0xff] }
 0x593   : > { %4706 = vmatmul.mubr.bf16.gmra.mrb[52].mxu1 %v3612_v54  ;;  %v4006_v54 = vpack.c.bf16 %v3966_v35, %v3964_v53  ;;  %v3908_v35 = vld [vmem:[#allocation2 + $0x3aa] ss:$2 sm:$0xff] }
 0x594   : > { %4713 = vmatprep.mubr.bf16.mxu1 %v3693_v56  ;;  %v3970_v56 = vld [vmem:[#allocation2 + $0x31b] ss:$2 sm:$0xff] }
 0x595   : > { %v4007_v60 = vpack.c.bf16 %v3970_v56, %v3968_v59 }
 0x59b   : > { %4714 = vmatmul.mubr.bf16.gmra.mrb[56].mxu1 %v3613_v62  ;;  %v3974_v62 = vld [vmem:[#allocation2 + $0x33b] ss:$2 sm:$0xff] }
 0x59c   : > { %4721 = vmatprep.mubr.bf16.mxu1 %v3694_v0  ;;  %v3927_v0 = vpack.c.bf16 %v3890_v61, %v3888_v63  ;;  %v4008_v3 = vpack.c.bf16 %v3974_v62, %v3972_v2  ;;  %v3998_v63 = vld [vmem:[#allocation2 + $0x3fb] ss:$2 sm:$0xff]  ;;  %v3912_v2 = vld [vmem:[#allocation2 + $0x3ca] ss:$2 sm:$0xff] }
 0x5a3   : > { %4722 = vmatmul.mubr.bf16.gmra.mrb[60].mxu1 %v3614_v7  ;;  %v3928_v7 = vpack.c.bf16 %v3894_v4, %v3892_v6 }
 0x5a4   : > { %4729 = vmatprep.mubr.bf16.mxu1 %v3999_v9  ;;  %v4009_v9 = vpack.c.bf16 %v3978_v5, %v3976_v8 }
 0x5ab   : > { %4730 = vmatmul.mubr.bf16.gmra.mrb[64].mxu1 %v3919_v17 }
 0x5ac   : > { %4737 = vmatprep.mubr.bf16.mxu1 %v4000_v19 }
 0x5b3   : > { %4738 = vmatmul.mubr.bf16.gmra.mrb[68].mxu1 %v3920_v23  ;;  %v3900_v23 = vld [vmem:[#allocation2 + $0x36a] ss:$2 sm:$0xff] }
 0x5b4   : > { %4745 = vmatprep.mubr.bf16.mxu1 %v4001_v25  ;;  %v3930_v27 = vpack.c.bf16 %v3902_v18, %v3900_v23 }
 0x5bb   : > { %4746 = vmatmul.mubr.bf16.gmra.mrb[72].mxu1 %v3921_v29  ;;  %v4011_v29 = vpack.c.bf16 %v3986_v21, %v3984_v28 }
 0x5bc   : > { %4753 = vmatprep.mubr.bf16.mxu1 %v4002_v31 }
 0x5c3   : > { %4754 = vmatmul.mubr.bf16.gmra.mrb[76].mxu1 %v3922_v36  ;;  %v3990_v36 = vld [vmem:[#allocation2 + $0x3bb] ss:$2 sm:$0xff] }
 0x5c4   : > { %4761 = vmatprep.mubr.bf16.mxu1 %v4003_v38  ;;  %v3904_v38 = vld [vmem:[#allocation2 + $0x38a] ss:$2 sm:$0xff] }
 0x5cb   : > { %4762 = vmatmul.mubr.bf16.gmra.mrb[80].mxu1 %v3923_v41  ;;  %v3931_v41 = vpack.c.bf16 %v3906_v32, %v3904_v38  ;;  %v12018_v32 = vld [vmem:[%s14205_s1 + $0x280] sm:$0xff]  }
 0x5cc   : > { %4769 = vmatprep.mubr.bf16.mxu1 %v4004_v42  ;;  %v4012_v42 = vpack.c.bf16 %v3990_v36, %v3988_v43 }
 0x5d3   : > { %4770 = vmatmul.mubr.bf16.gmra.mrb[84].mxu1 %v3924_v47 }
 0x5d4   : > { %4777 = vmatprep.mubr.bf16.mxu1 %v4005_v49  ;;  %v3994_v49 = vld [vmem:[#allocation2 + $0x3db] ss:$2 sm:$0xff] }
 0x5d5   : > { %v4013_v56 = vpack.c.bf16 %v3994_v49, %v3992_v55  ;;  %v12021_v55 = vld [vmem:[%s14205_s1 + $0x2d0] sm:$0xff]  }
 0x5db   : > { %4778 = vmatmul.mubr.bf16.gmra.mrb[88].mxu1 %v3925_v52 }
 0x5dc   : > { %4785 = vmatprep.mubr.bf16.mxu1 %v4006_v54  ;;  %v3932_v54 = vpack.c.bf16 %v3910_v46, %v3908_v35 }
 0x5e3   : > { %4786 = vmatmul.mubr.bf16.gmra.mrb[92].mxu1 %v3926_v58  ;;  %v12017_v58 = vld [vmem:[%s14205_s1 + $0x2c0] sm:$0xff]  }
 0x5e4   : > { %4793 = vmatprep.mubr.bf16.mxu1 %v4007_v60  ;;  %v3914_v60 = vld [vmem:[#allocation2 + $0x3da] ss:$2 sm:$0xff]  ;;  %10501 = vmatprep.subr.bf16.mxu1 %v12017_v58 }
 0x5e5   : > { %v3933_v6 = vpack.c.bf16 %v3914_v60, %v3912_v2 }
 0x5eb   : > { %4794 = vmatmul.mubr.bf16.gmra.mrb[96].mxu1 %v3927_v0 }
 0x5ec   : > { %4801 = vmatprep.mubr.bf16.mxu1 %v4008_v3 }
 0x5f3   : > { %4802 = vmatmul.mubr.bf16.gmra.mrb[100].mxu1 %v3928_v7  ;;  %v3996_v7 = vld [vmem:[#allocation2 + $0x3eb] ss:$2 sm:$0xff] }
 0x5f4   : > { %4809 = vmatprep.mubr.bf16.mxu1 %v4009_v9  ;;  %v4014_v8 = vpack.c.bf16 %v3998_v63, %v3996_v7 }
 0x5fb   : > { %4810 = vmatmul.mubr.bf16.gmra.mrb[104].mxu1 %v3929_v13 }
 0x5fc   : > { %4817 = vmatprep.mubr.bf16.mxu1 %v4010_v15 }
 0x5fe   : > { %v4603_v17 = vpop.f32.mrb[0].mxu1 }
 0x5ff   : > { %v11093_v19 = vadd.f32 %v12949_v16, %v4603_v17  ;;  %v4605_v20 = vpop.f32.mrb[1].mxu1  ;;  %v3916_v17 = vld [vmem:[#allocation2 + $0x3ea] ss:$2 sm:$0xff] }
 0x600   : > { %v4606_v22 = vpop.f32.mrb[2].mxu1  ;;  %v3934_v21 = vpack.c.bf16 %v3918_v11, %v3916_v17 }
 0x601   : > { %v4858_v24 = vmax.f32 %v11093_v19, 0.0  ;;  %v11094_v25 = vadd.f32 %v12949_v16, %v4606_v22  ;;  %v4608_v26 = vpop.f32.mrb[3].mxu1 }
 0x603   : > { %4922 = vst [vmem:[#allocation3] sm:$0xff] %v4858_v24  ;;  %v4859_v30 = vmax.f32 %v11094_v25, 0.0  ;;  %4818 = vmatmul.mubr.bf16.gmra.mrb[108].mxu1 %v3930_v27 }
 0x604   : > { %4825 = vmatprep.mubr.bf16.mxu1 %v4011_v29 }
 0x605   : > { %4923 = vst [vmem:[#allocation3 + $0x8] sm:$0xff] %v4859_v30 }
 0x606   : > { %v4611_v31 = vpop.f32.mrb[4].mxu1 }
 0x607   : > { %v11095_v33 = vadd.f32 %v12949_v16, %v4611_v31  ;;  %v4613_v34 = vpop.f32.mrb[5].mxu1 }
 0x608   : > { %v4614_v37 = vpop.f32.mrb[6].mxu1 }
 0x609   : > { %v4860_v39 = vmax.f32 %v11095_v33, 0.0  ;;  %v11096_v1 = vadd.f32 %v12949_v16, %v4614_v37  ;;  %v4616_v40 = vpop.f32.mrb[7].mxu1 }
 0x60b   : > { %4924 = vst [vmem:[#allocation3 + $0x10] sm:$0xff] %v4860_v39  ;;  %v4861_v44 = vmax.f32 %v11096_v1, 0.0  ;;  %4826 = vmatmul.mubr.bf16.gmra.mrb[112].mxu1 %v3931_v41  ;;  %v12019_v39 = vld [vmem:[%s14205_s1 + $0x2c8] sm:$0xff]  }
 0x60c   : > { %4833 = vmatprep.mubr.bf16.mxu1 %v4012_v42  ;;  %v5026_v22 = vld [vmem:[#allocation3 + $0x1] ss:$2 sm:$0xff]  ;;  %v4986_v31 = vld [vmem:[#allocation3] ss:$2 sm:$0xff]  ;;  %v12020_v41 = vld [vmem:[%s14205_s1 + $0x288] sm:$0xff]  }
 0x60d   : > { %4925 = vst [vmem:[#allocation3 + $0x18] sm:$0xff] %v4861_v44 }
 0x60e   : > { %v4619_v45 = vpop.f32.mrb[8].mxu1 }
 0x60f   : > { %v11097_v47 = vadd.f32 %v12949_v16, %v4619_v45  ;;  %v4621_v48 = vpop.f32.mrb[9].mxu1 }
 0x610   : > { %v4622_v50 = vpop.f32.mrb[10].mxu1 }
 0x611   : > { %v4862_v51 = vmax.f32 %v11097_v47, 0.0  ;;  %v11098_v52 = vadd.f32 %v12949_v16, %v4622_v50  ;;  %v4624_v53 = vpop.f32.mrb[11].mxu1 }
 0x613   : > { %4926 = vst [vmem:[#allocation3 + $0x20] sm:$0xff] %v4862_v51  ;;  %v4863_v57 = vmax.f32 %v11098_v52, 0.0  ;;  %4834 = vmatmul.mubr.bf16.gmra.mrb[116].mxu1 %v3932_v54 }
 0x614   : > { %4841 = vmatprep.mubr.bf16.mxu1 %v4013_v56  ;;  %v5028_v14 = vld [vmem:[#allocation3 + $0x11] ss:$2 sm:$0xff]  ;;  %v4988_v26 = vld [vmem:[#allocation3 + $0x10] ss:$2 sm:$0xff] }
 0x615   : > { %4927 = vst [vmem:[#allocation3 + $0x28] sm:$0xff] %v4863_v57  ;;  %v5057_v23 = vpack.c.bf16 %v5028_v14, %v5026_v22  ;;  %v5017_v37 = vpack.c.bf16 %v4988_v26, %v4986_v31  ;;  %v12022_v56 = vld [vmem:[%s14205_s1 + $0x290] sm:$0xff]  }
 0x616   : > { %v4627_v59 = vpop.f32.mrb[12].mxu1 }
 0x617   : > { %v11099_v61 = vadd.f32 %v12949_v16, %v4627_v59  ;;  %v4629_v62 = vpop.f32.mrb[13].mxu1 }
 0x618   : > { %v4630_v0 = vpop.f32.mrb[14].mxu1 }
 0x619   : > { %v4864_v3 = vmax.f32 %v11099_v61, 0.0  ;;  %v11100_v4 = vadd.f32 %v12949_v16, %v4630_v0  ;;  %v4632_v5 = vpop.f32.mrb[15].mxu1 }
 0x61b   : > { %4928 = vst [vmem:[#allocation3 + $0x30] sm:$0xff] %v4864_v3  ;;  %v4865_v9 = vmax.f32 %v11100_v4, 0.0  ;;  %4842 = vmatmul.mubr.bf16.gmra.mrb[120].mxu1 %v3933_v6 }
 0x61c   : > { %4849 = vmatprep.mubr.bf16.mxu1 %v4014_v8  ;;  %v5030_v38 = vld [vmem:[#allocation3 + $0x21] ss:$2 sm:$0xff]  ;;  %v4990_v47 = vld [vmem:[#allocation3 + $0x20] ss:$2 sm:$0xff] }
 0x61d   : > { %4929 = vst [vmem:[#allocation3 + $0x38] sm:$0xff] %v4865_v9 }
 0x61e   : > { %v4635_v10 = vpop.f32.mrb[16].mxu1 }
 0x61f   : > { %v11101_v12 = vadd.f32 %v12949_v16, %v4635_v10  ;;  %v4637_v13 = vpop.f32.mrb[17].mxu1 }
 0x620   : > { %v4638_v15 = vpop.f32.mrb[18].mxu1 }
 0x621   : > { %v4866_v18 = vmax.f32 %v11101_v12, 0.0  ;;  %v11102_v19 = vadd.f32 %v12949_v16, %v4638_v15  ;;  %v4640_v20 = vpop.f32.mrb[19].mxu1 }
 0x622   : > { %v12023_v20 = vld [vmem:[%s14205_s1 + $0x2d8] sm:$0xff]  }
 0x623   : > { %4930 = vst [vmem:[#allocation3 + $0x40] sm:$0xff] %v4866_v18  ;;  %v4867_v24 = vmax.f32 %v11102_v19, 0.0  ;;  %4850 = vmatmul.mubr.bf16.gmra.mrb[124].mxu1 %v3934_v21  ;;  %v12024_v21 = vld [vmem:[%s14205_s1 + $0x298] sm:$0xff]  }
 0x624   : > { %5602 = vmatprep.mubr.bf16.mxu1 %v5057_v23  ;;  %v5032_v29 = vld [vmem:[#allocation3 + $0x31] ss:$2 sm:$0xff]  ;;  %v4992_v42 = vld [vmem:[#allocation3 + $0x30] ss:$2 sm:$0xff] }
 0x625   : > { %4931 = vst [vmem:[#allocation3 + $0x48] sm:$0xff] %v4867_v24  ;;  %v5058_v1 = vpack.c.bf16 %v5032_v29, %v5030_v38  ;;  %v5018_v35 = vpack.c.bf16 %v4992_v42, %v4990_v47 }
 0x626   : > { %v4643_v25 = vpop.f32.mrb[20].mxu1 }
 0x627   : > { %v11103_v27 = vadd.f32 %v12949_v16, %v4643_v25  ;;  %v4645_v28 = vpop.f32.mrb[21].mxu1 }
 0x628   : > { %v4646_v30 = vpop.f32.mrb[22].mxu1 }
 0x629   : > { %v4868_v33 = vmax.f32 %v11103_v27, 0.0  ;;  %v11104_v34 = vadd.f32 %v12949_v16, %v4646_v30  ;;  %v4648_v36 = vpop.f32.mrb[23].mxu1 }
 0x62b   : > { %4932 = vst [vmem:[#allocation3 + $0x50] sm:$0xff] %v4868_v33  ;;  %v4869_v40 = vmax.f32 %v11104_v34, 0.0  ;;  %5603 = vmatmul.mubr.bf16.vlgmr.msra.gmra.mrb[128].mxu1 %v5017_v37 }
 0x62c   : > { %5610 = vmatprep.mubr.bf16.mxu1 %v5058_v1  ;;  %10502 = vmatpush3.bf16.msra.mxu1 %v12018_v32  ;;  %v5034_v52 = vld [vmem:[#allocation3 + $0x41] ss:$2 sm:$0xff]  ;;  %v4994_v62 = vld [vmem:[#allocation3 + $0x40] ss:$2 sm:$0xff] }
 0x62d   : > { %4933 = vst [vmem:[#allocation3 + $0x58] sm:$0xff] %v4869_v40  ;;  %10503 = vmatprep.subr.bf16.mxu1 %v12019_v39 }
 0x62e   : > { %v4651_v43 = vpop.f32.mrb[24].mxu1 }
 0x62f   : > { %v11105_v44 = vadd.f32 %v12949_v16, %v4651_v43  ;;  %v4653_v45 = vpop.f32.mrb[25].mxu1 }
 0x630   : > { %v4654_v46 = vpop.f32.mrb[26].mxu1  ;;  %10504 = vmatpush3.bf16.msra.mxu1 %v12020_v41  ;;  %v12026_v45 = vld [vmem:[%s14205_s1 + $0x2a0] sm:$0xff]  }
 0x631   : > { %v4870_v48 = vmax.f32 %v11105_v44, 0.0  ;;  %v11106_v49 = vadd.f32 %v12949_v16, %v4654_v46  ;;  %v4656_v50 = vpop.f32.mrb[27].mxu1  ;;  %10505 = vmatprep.subr.bf16.mxu1 %v12021_v55  ;;  %v12025_v44 = vld [vmem:[%s14205_s1 + $0x2e0] sm:$0xff]  }
 0x633   : > { %4934 = vst [vmem:[#allocation3 + $0x60] sm:$0xff] %v4870_v48  ;;  %v4871_v51 = vmax.f32 %v11106_v49, 0.0  ;;  %5611 = vmatmul.mubr.bf16.gmra.mrb[132].mxu1 %v5018_v35 }
 0x634   : > { %v5036_v53 = vld [vmem:[#allocation3 + $0x51] ss:$2 sm:$0xff]  ;;  %v4996_v58 = vld [vmem:[#allocation3 + $0x50] ss:$2 sm:$0xff]  ;;  %10506 = vmatpush3.bf16.msra.mxu1 %v12022_v56 }
 0x635   : > { %4935 = vst [vmem:[#allocation3 + $0x68] sm:$0xff] %v4871_v51  ;;  %v5059_v54 = vpack.c.bf16 %v5036_v53, %v5034_v52  ;;  %v5019_v3 = vpack.c.bf16 %v4996_v58, %v4994_v62  ;;  %10507 = vmatprep.subr.bf16.mxu1 %v12023_v20 }
 0x636   : > { %v4659_v57 = vpop.f32.mrb[28].mxu1 }
 0x637   : > { %v11107_v59 = vadd.f32 %v12949_v16, %v4659_v57  ;;  %v4661_v60 = vpop.f32.mrb[29].mxu1  ;;  %5618 = vmatprep.mubr.bf16.mxu1 %v5059_v54 }
 0x638   : > { %v4662_v61 = vpop.f32.mrb[30].mxu1  ;;  %10508 = vmatpush3.bf16.msra.mxu1 %v12024_v21 }
 0x639   : > { %v4872_v63 = vmax.f32 %v11107_v59, 0.0  ;;  %v11108_v0 = vadd.f32 %v12949_v16, %v4662_v61  ;;  %v4664_v2 = vpop.f32.mrb[31].mxu1  ;;  %10509 = vmatprep.subr.bf16.mxu1 %v12025_v44 }
 0x63b   : > { %4936 = vst [vmem:[#allocation3 + $0x70] sm:$0xff] %v4872_v63  ;;  %v4873_v4 = vmax.f32 %v11108_v0, 0.0  ;;  %5619 = vmatmul.mubr.bf16.gmra.mrb[136].mxu1 %v5019_v3 }
 0x63c   : > { %v5038_v13 = vld [vmem:[#allocation3 + $0x61] ss:$2 sm:$0xff]  ;;  %v4998_v15 = vld [vmem:[#allocation3 + $0x60] ss:$2 sm:$0xff]  ;;  %10510 = vmatpush3.bf16.msra.mxu1 %v12026_v45 }
 0x63d   : > { %4937 = vst [vmem:[#allocation3 + $0x78] sm:$0xff] %v4873_v4  ;;  %v12027_v4 = vld [vmem:[%s14205_s1 + $0x2e8] sm:$0xff]  }
 0x63e   : > { %v4667_v5 = vpop.f32.mrb[32].mxu1  ;;  %10511 = vmatprep.subr.bf16.mxu1 %v12027_v4 }
 0x63f   : > { %v11109_v6 = vadd.f32 %v12949_v16, %v4667_v5  ;;  %v4669_v7 = vpop.f32.mrb[33].mxu1  ;;  %v12028_v5 = vld [vmem:[%s14205_s1 + $0x2a8] sm:$0xff]  }
 0x640   : > { %v4670_v8 = vpop.f32.mrb[34].mxu1  ;;  %10512 = vmatpush3.bf16.msra.mxu1 %v12028_v5 }
 0x641   : > { %v4874_v9 = vmax.f32 %v11109_v6, 0.0  ;;  %v11110_v10 = vadd.f32 %v12949_v16, %v4670_v8  ;;  %v4672_v11 = vpop.f32.mrb[35].mxu1 }
 0x643   : > { %4938 = vst [vmem:[#allocation3 + $0x80] sm:$0xff] %v4874_v9  ;;  %v4875_v12 = vmax.f32 %v11110_v10, 0.0 }
 0x644   : > { %v5040_v14 = vld [vmem:[#allocation3 + $0x71] ss:$2 sm:$0xff]  ;;  %v5000_v17 = vld [vmem:[#allocation3 + $0x70] ss:$2 sm:$0xff] }
 0x645   : > { %4939 = vst [vmem:[#allocation3 + $0x88] sm:$0xff] %v4875_v12  ;;  %v5060_v18 = vpack.c.bf16 %v5040_v14, %v5038_v13  ;;  %v5020_v19 = vpack.c.bf16 %v5000_v17, %v4998_v15 }
 0x646   : > { %v4675_v22 = vpop.f32.mrb[36].mxu1 }
 0x647   : > { %v11111_v23 = vadd.f32 %v12949_v16, %v4675_v22  ;;  %v4677_v24 = vpop.f32.mrb[37].mxu1  ;;  %5626 = vmatprep.mubr.bf16.mxu1 %v5060_v18 }
 0x648   : > { %v4678_v25 = vpop.f32.mrb[38].mxu1  ;;  %5627 = vmatmul.mubr.bf16.gmra.mrb[140].mxu1 %v5020_v19 }
 0x649   : > { %v4876_v26 = vmax.f32 %v11111_v23, 0.0  ;;  %v11112_v27 = vadd.f32 %v12949_v16, %v4678_v25  ;;  %v4680_v28 = vpop.f32.mrb[39].mxu1 }
 0x64b   : > { %4940 = vst [vmem:[#allocation3 + $0x90] sm:$0xff] %v4876_v26  ;;  %v4877_v29 = vmax.f32 %v11112_v27, 0.0 }
 0x64c   : > { %v5042_v39 = vld [vmem:[#allocation3 + $0x81] ss:$2 sm:$0xff]  ;;  %v5002_v40 = vld [vmem:[#allocation3 + $0x80] ss:$2 sm:$0xff] }
 0x64d   : > { %4941 = vst [vmem:[#allocation3 + $0x98] sm:$0xff] %v4877_v29  ;;  %v12029_v29 = vld [vmem:[%s14205_s1 + $0x2f0] sm:$0xff]  }
 0x64e   : > { %v4683_v30 = vpop.f32.mrb[40].mxu1  ;;  %10513 = vmatprep.subr.bf16.mxu1 %v12029_v29 }
 0x64f   : > { %v11113_v31 = vadd.f32 %v12949_v16, %v4683_v30  ;;  %v4685_v32 = vpop.f32.mrb[41].mxu1  ;;  %v12030_v30 = vld [vmem:[%s14205_s1 + $0x2b0] sm:$0xff]  }
 0x650   : > { %v4686_v33 = vpop.f32.mrb[42].mxu1  ;;  %10514 = vmatpush3.bf16.msra.mxu1 %v12030_v30 }
 0x651   : > { %v4878_v34 = vmax.f32 %v11113_v31, 0.0  ;;  %v11114_v36 = vadd.f32 %v12949_v16, %v4686_v33  ;;  %v4688_v37 = vpop.f32.mrb[43].mxu1 }
 0x653   : > { %4942 = vst [vmem:[#allocation3 + $0xa0] sm:$0xff] %v4878_v34  ;;  %v4879_v38 = vmax.f32 %v11114_v36, 0.0 }
 0x654   : > { %v5044_v1 = vld [vmem:[#allocation3 + $0x91] ss:$2 sm:$0xff]  ;;  %v5004_v41 = vld [vmem:[#allocation3 + $0x90] ss:$2 sm:$0xff] }
 0x655   : > { %4943 = vst [vmem:[#allocation3 + $0xa8] sm:$0xff] %v4879_v38  ;;  %v5061_v43 = vpack.c.bf16 %v5044_v1, %v5042_v39  ;;  %v5021_v42 = vpack.c.bf16 %v5004_v41, %v5002_v40 }
 0x656   : > { %v4691_v46 = vpop.f32.mrb[44].mxu1 }
 0x657   : > { %v11115_v47 = vadd.f32 %v12949_v16, %v4691_v46  ;;  %v4693_v48 = vpop.f32.mrb[45].mxu1  ;;  %5634 = vmatprep.mubr.bf16.mxu1 %v5061_v43  ;;  %v12031_v46 = vld [vmem:[%s14205_s1 + $0x2f8] sm:$0xff]  }
 0x658   : > { %v4694_v49 = vpop.f32.mrb[46].mxu1  ;;  %5635 = vmatmul.mubr.bf16.gmra.mrb[144].mxu1 %v5021_v42  ;;  %10515 = vmatprep.subr.bf16.mxu1 %v12031_v46 }
 0x659   : > { %v4880_v50 = vmax.f32 %v11115_v47, 0.0  ;;  %v11116_v35 = vadd.f32 %v12949_v16, %v4694_v49  ;;  %v4696_v51 = vpop.f32.mrb[47].mxu1 }
 0x65a   : > { %v12032_v51 = vld [vmem:[%s14205_s1 + $0x2b8] sm:$0xff]  }
 0x65b   : > { %4944 = vst [vmem:[#allocation3 + $0xb0] sm:$0xff] %v4880_v50  ;;  %v4881_v52 = vmax.f32 %v11116_v35, 0.0  ;;  %10516 = vmatpush3.bf16.msra.mxu1 %v12032_v51 }
 0x65c   : > { %v5046_v61 = vld [vmem:[#allocation3 + $0xa1] ss:$2 sm:$0xff]  ;;  %v5006_v63 = vld [vmem:[#allocation3 + $0xa0] ss:$2 sm:$0xff] }
 0x65d   : > { %4945 = vst [vmem:[#allocation3 + $0xb8] sm:$0xff] %v4881_v52 }
 0x65e   : > { %v4699_v53 = vpop.f32.mrb[48].mxu1 }
 0x65f   : > { %v11117_v54 = vadd.f32 %v12949_v16, %v4699_v53  ;;  %v4701_v55 = vpop.f32.mrb[49].mxu1 }
 0x660   : > { %v4702_v56 = vpop.f32.mrb[50].mxu1 }
 0x661   : > { %v4882_v57 = vmax.f32 %v11117_v54, 0.0  ;;  %v11118_v58 = vadd.f32 %v12949_v16, %v4702_v56  ;;  %v4704_v59 = vpop.f32.mrb[51].mxu1 }
 0x663   : > { %4946 = vst [vmem:[#allocation3 + $0xc0] sm:$0xff] %v4882_v57  ;;  %v4883_v60 = vmax.f32 %v11118_v58, 0.0 }
 0x664   : > { %v5048_v62 = vld [vmem:[#allocation3 + $0xb1] ss:$2 sm:$0xff]  ;;  %v5008_v0 = vld [vmem:[#allocation3 + $0xb0] ss:$2 sm:$0xff] }
 0x665   : > { %4947 = vst [vmem:[#allocation3 + $0xc8] sm:$0xff] %v4883_v60  ;;  %v5062_v2 = vpack.c.bf16 %v5048_v62, %v5046_v61  ;;  %v5022_v3 = vpack.c.bf16 %v5008_v0, %v5006_v63 }
 0x666   : > { %v4707_v6 = vpop.f32.mrb[52].mxu1 }
 0x667   : > { %v11119_v7 = vadd.f32 %v12949_v16, %v4707_v6  ;;  %v4709_v8 = vpop.f32.mrb[53].mxu1  ;;  %5642 = vmatprep.mubr.bf16.mxu1 %v5062_v2 }
 0x668   : > { %v4710_v9 = vpop.f32.mrb[54].mxu1  ;;  %5643 = vmatmul.mubr.bf16.gmra.mrb[148].mxu1 %v5022_v3 }
 0x669   : > { %v4884_v10 = vmax.f32 %v11119_v7, 0.0  ;;  %v11120_v11 = vadd.f32 %v12949_v16, %v4710_v9  ;;  %v4712_v12 = vpop.f32.mrb[55].mxu1 }
 0x66b   : > { %4948 = vst [vmem:[#allocation3 + $0xd0] sm:$0xff] %v4884_v10  ;;  %v4885_v13 = vmax.f32 %v11120_v11, 0.0 }
 0x66c   : > { %v5050_v23 = vld [vmem:[#allocation3 + $0xc1] ss:$2 sm:$0xff]  ;;  %v5010_v25 = vld [vmem:[#allocation3 + $0xc0] ss:$2 sm:$0xff] }
 0x66d   : > { %4949 = vst [vmem:[#allocation3 + $0xd8] sm:$0xff] %v4885_v13 }
 0x66e   : > { %v4715_v14 = vpop.f32.mrb[56].mxu1 }
 0x66f   : > { %v11121_v15 = vadd.f32 %v12949_v16, %v4715_v14  ;;  %v4717_v17 = vpop.f32.mrb[57].mxu1 }
 0x670   : > { %v4718_v18 = vpop.f32.mrb[58].mxu1 }
 0x671   : > { %v4886_v19 = vmax.f32 %v11121_v15, 0.0  ;;  %v11122_v20 = vadd.f32 %v12949_v16, %v4718_v18  ;;  %v4720_v21 = vpop.f32.mrb[59].mxu1 }
 0x673   : > { %4950 = vst [vmem:[#allocation3 + $0xe0] sm:$0xff] %v4886_v19  ;;  %v4887_v22 = vmax.f32 %v11122_v20, 0.0 }
 0x674   : > { %v5052_v24 = vld [vmem:[#allocation3 + $0xd1] ss:$2 sm:$0xff]  ;;  %v5012_v26 = vld [vmem:[#allocation3 + $0xd0] ss:$2 sm:$0xff] }
 0x675   : > { %4951 = vst [vmem:[#allocation3 + $0xe8] sm:$0xff] %v4887_v22  ;;  %v5063_v27 = vpack.c.bf16 %v5052_v24, %v5050_v23  ;;  %v5023_v28 = vpack.c.bf16 %v5012_v26, %v5010_v25 }
 0x676   : > { %v4723_v31 = vpop.f32.mrb[60].mxu1 }
 0x677   : > { %v11123_v32 = vadd.f32 %v12949_v16, %v4723_v31  ;;  %v4725_v33 = vpop.f32.mrb[61].mxu1  ;;  %5650 = vmatprep.mubr.bf16.mxu1 %v5063_v27 }
 0x678   : > { %v4726_v34 = vpop.f32.mrb[62].mxu1  ;;  %5651 = vmatmul.mubr.bf16.gmra.mrb[152].mxu1 %v5023_v28 }
 0x679   : > { %v4888_v36 = vmax.f32 %v11123_v32, 0.0  ;;  %v11124_v37 = vadd.f32 %v12949_v16, %v4726_v34  ;;  %v4728_v38 = vpop.f32.mrb[63].mxu1 }
 0x67b   : > { %4952 = vst [vmem:[#allocation3 + $0xf0] sm:$0xff] %v4888_v36  ;;  %v4889_v39 = vmax.f32 %v11124_v37, 0.0 }
 0x67c   : > { %v5054_v48 = vld [vmem:[#allocation3 + $0xe1] ss:$2 sm:$0xff]  ;;  %v5014_v49 = vld [vmem:[#allocation3 + $0xe0] ss:$2 sm:$0xff] }
 0x67d   : > { %4953 = vst [vmem:[#allocation3 + $0xf8] sm:$0xff] %v4889_v39 }
 0x67e   : > { %v4731_v1 = vpop.f32.mrb[64].mxu1 }
 0x67f   : > { %v11125_v40 = vadd.f32 %v12949_v16, %v4731_v1  ;;  %v4733_v41 = vpop.f32.mrb[65].mxu1 }
 0x680   : > { %v4734_v43 = vpop.f32.mrb[66].mxu1 }
 0x681   : > { %v4890_v42 = vmax.f32 %v11125_v40, 0.0  ;;  %v11126_v44 = vadd.f32 %v12949_v16, %v4734_v43  ;;  %v4736_v45 = vpop.f32.mrb[67].mxu1 }
 0x683   : > { %4954 = vst [vmem:[#allocation3 + $0x208] sm:$0xff] %v4890_v42  ;;  %v4891_v47 = vmax.f32 %v11126_v44, 0.0 }
 0x684   : > { %v5056_v50 = vld [vmem:[#allocation3 + $0xf1] ss:$2 sm:$0xff]  ;;  %v5016_v35 = vld [vmem:[#allocation3 + $0xf0] ss:$2 sm:$0xff] }
 0x685   : > { %4955 = vst [vmem:[#allocation3 + $0x210] sm:$0xff] %v4891_v47  ;;  %v5064_v52 = vpack.c.bf16 %v5056_v50, %v5054_v48  ;;  %v5024_v53 = vpack.c.bf16 %v5016_v35, %v5014_v49 }
 0x686   : > { %v4739_v54 = vpop.f32.mrb[68].mxu1 }
 0x687   : > { %v11127_v55 = vadd.f32 %v12949_v16, %v4739_v54  ;;  %v4741_v56 = vpop.f32.mrb[69].mxu1  ;;  %5658 = vmatprep.mubr.bf16.mxu1 %v5064_v52 }
 0x688   : > { %v4742_v57 = vpop.f32.mrb[70].mxu1  ;;  %5659 = vmatmul.mubr.bf16.gmra.mrb[156].mxu1 %v5024_v53 }
 0x689   : > { %v4892_v58 = vmax.f32 %v11127_v55, 0.0  ;;  %v11128_v59 = vadd.f32 %v12949_v16, %v4742_v57  ;;  %v4744_v60 = vpop.f32.mrb[71].mxu1 }
 0x68b   : > { %4956 = vst [vmem:[#allocation3 + $0x218] sm:$0xff] %v4892_v58  ;;  %v4893_v61 = vmax.f32 %v11128_v59, 0.0 }
 0x68c   : > { %v5186_v7 = vld [vmem:[#allocation3 + $0x209] ss:$2 sm:$0xff]  ;;  %v5146_v9 = vld [vmem:[#allocation3 + $0x208] ss:$2 sm:$0xff] }
 0x68d   : > { %4957 = vst [vmem:[#allocation3 + $0x220] sm:$0xff] %v4893_v61 }
 0x68e   : > { %v4747_v62 = vpop.f32.mrb[72].mxu1 }
 0x68f   : > { %v11129_v63 = vadd.f32 %v12949_v16, %v4747_v62  ;;  %v4749_v0 = vpop.f32.mrb[73].mxu1 }
 0x690   : > { %v4750_v2 = vpop.f32.mrb[74].mxu1 }
 0x691   : > { %v4894_v3 = vmax.f32 %v11129_v63, 0.0  ;;  %v11130_v4 = vadd.f32 %v12949_v16, %v4750_v2  ;;  %v4752_v5 = vpop.f32.mrb[75].mxu1 }
 0x693   : > { %4958 = vst [vmem:[#allocation3 + $0x228] sm:$0xff] %v4894_v3  ;;  %v4895_v6 = vmax.f32 %v11130_v4, 0.0 }
 0x694   : > { %v5188_v8 = vld [vmem:[#allocation3 + $0x219] ss:$2 sm:$0xff]  ;;  %v5148_v10 = vld [vmem:[#allocation3 + $0x218] ss:$2 sm:$0xff] }
 0x695   : > { %4959 = vst [vmem:[#allocation3 + $0x230] sm:$0xff] %v4895_v6  ;;  %v5217_v11 = vpack.c.bf16 %v5188_v8, %v5186_v7  ;;  %v5177_v12 = vpack.c.bf16 %v5148_v10, %v5146_v9 }
 0x696   : > { %v4755_v13 = vpop.f32.mrb[76].mxu1 }
 0x697   : > { %v11131_v14 = vadd.f32 %v12949_v16, %v4755_v13  ;;  %v4757_v15 = vpop.f32.mrb[77].mxu1  ;;  %5666 = vmatprep.mubr.bf16.mxu1 %v5217_v11 }
 0x698   : > { %v4758_v17 = vpop.f32.mrb[78].mxu1  ;;  %5667 = vmatmul.mubr.bf16.gmra.mrb[160].mxu1 %v5177_v12 }
 0x699   : > { %v4896_v18 = vmax.f32 %v11131_v14, 0.0  ;;  %v11132_v19 = vadd.f32 %v12949_v16, %v4758_v17  ;;  %v4760_v20 = vpop.f32.mrb[79].mxu1 }
 0x69b   : > { %4960 = vst [vmem:[#allocation3 + $0x238] sm:$0xff] %v4896_v18  ;;  %v4897_v21 = vmax.f32 %v11132_v19, 0.0 }
 0x69c   : > { %v5190_v30 = vld [vmem:[#allocation3 + $0x229] ss:$2 sm:$0xff]  ;;  %v5150_v32 = vld [vmem:[#allocation3 + $0x228] ss:$2 sm:$0xff] }
 0x69d   : > { %4961 = vst [vmem:[#allocation3 + $0x240] sm:$0xff] %v4897_v21 }
 0x69e   : > { %v4763_v22 = vpop.f32.mrb[80].mxu1 }
 0x69f   : > { %v11133_v23 = vadd.f32 %v12949_v16, %v4763_v22  ;;  %v4765_v24 = vpop.f32.mrb[81].mxu1 }
 0x6a0   : > { %v4766_v25 = vpop.f32.mrb[82].mxu1 }
 0x6a1   : > { %v4898_v26 = vmax.f32 %v11133_v23, 0.0  ;;  %v11134_v27 = vadd.f32 %v12949_v16, %v4766_v25  ;;  %v4768_v28 = vpop.f32.mrb[83].mxu1 }
 0x6a3   : > { %4962 = vst [vmem:[#allocation3 + $0x248] sm:$0xff] %v4898_v26  ;;  %v4899_v29 = vmax.f32 %v11134_v27, 0.0 }
 0x6a4   : > { %v5192_v31 = vld [vmem:[#allocation3 + $0x239] ss:$2 sm:$0xff]  ;;  %v5152_v33 = vld [vmem:[#allocation3 + $0x238] ss:$2 sm:$0xff] }
 0x6a5   : > { %4963 = vst [vmem:[#allocation3 + $0x250] sm:$0xff] %v4899_v29  ;;  %v5218_v34 = vpack.c.bf16 %v5192_v31, %v5190_v30  ;;  %v5178_v36 = vpack.c.bf16 %v5152_v33, %v5150_v32 }
 0x6a6   : > { %v4771_v37 = vpop.f32.mrb[84].mxu1 }
 0x6a7   : > { %v11135_v38 = vadd.f32 %v12949_v16, %v4771_v37  ;;  %v4773_v39 = vpop.f32.mrb[85].mxu1  ;;  %5674 = vmatprep.mubr.bf16.mxu1 %v5218_v34 }
 0x6a8   : > { %v4774_v1 = vpop.f32.mrb[86].mxu1  ;;  %5675 = vmatmul.mubr.bf16.gmra.mrb[164].mxu1 %v5178_v36 }
 0x6a9   : > { %v4900_v40 = vmax.f32 %v11135_v38, 0.0  ;;  %v11136_v41 = vadd.f32 %v12949_v16, %v4774_v1  ;;  %v4776_v43 = vpop.f32.mrb[87].mxu1 }
 0x6ab   : > { %4964 = vst [vmem:[#allocation3 + $0x258] sm:$0xff] %v4900_v40  ;;  %v4901_v42 = vmax.f32 %v11136_v41, 0.0 }
 0x6ac   : > { %v5194_v51 = vld [vmem:[#allocation3 + $0x249] ss:$2 sm:$0xff]  ;;  %v5154_v53 = vld [vmem:[#allocation3 + $0x248] ss:$2 sm:$0xff] }
 0x6ad   : > { %4965 = vst [vmem:[#allocation3 + $0x260] sm:$0xff] %v4901_v42 }
 0x6ae   : > { %v4779_v44 = vpop.f32.mrb[88].mxu1 }
 0x6af   : > { %v11137_v45 = vadd.f32 %v12949_v16, %v4779_v44  ;;  %v4781_v46 = vpop.f32.mrb[89].mxu1 }
 0x6b0   : > { %v4782_v47 = vpop.f32.mrb[90].mxu1 }
 0x6b1   : > { %v4902_v48 = vmax.f32 %v11137_v45, 0.0  ;;  %v11138_v49 = vadd.f32 %v12949_v16, %v4782_v47  ;;  %v4784_v50 = vpop.f32.mrb[91].mxu1 }
 0x6b3   : > { %4966 = vst [vmem:[#allocation3 + $0x268] sm:$0xff] %v4902_v48  ;;  %v4903_v35 = vmax.f32 %v11138_v49, 0.0 }
 0x6b4   : > { %v5196_v52 = vld [vmem:[#allocation3 + $0x259] ss:$2 sm:$0xff]  ;;  %v5156_v54 = vld [vmem:[#allocation3 + $0x258] ss:$2 sm:$0xff] }
 0x6b5   : > { %4967 = vst [vmem:[#allocation3 + $0x270] sm:$0xff] %v4903_v35  ;;  %v5219_v55 = vpack.c.bf16 %v5196_v52, %v5194_v51  ;;  %v5179_v56 = vpack.c.bf16 %v5156_v54, %v5154_v53 }
 0x6b6   : > { %v4787_v57 = vpop.f32.mrb[92].mxu1 }
 0x6b7   : > { %v11139_v58 = vadd.f32 %v12949_v16, %v4787_v57  ;;  %v4789_v59 = vpop.f32.mrb[93].mxu1  ;;  %5682 = vmatprep.mubr.bf16.mxu1 %v5219_v55 }
 0x6b8   : > { %v4790_v60 = vpop.f32.mrb[94].mxu1  ;;  %5683 = vmatmul.mubr.bf16.gmra.mrb[168].mxu1 %v5179_v56 }
 0x6b9   : > { %v4904_v61 = vmax.f32 %v11139_v58, 0.0  ;;  %v11140_v62 = vadd.f32 %v12949_v16, %v4790_v60  ;;  %v4792_v63 = vpop.f32.mrb[95].mxu1 }
 0x6bb   : > { %4968 = vst [vmem:[#allocation3 + $0x278] sm:$0xff] %v4904_v61  ;;  %v4905_v0 = vmax.f32 %v11140_v62, 0.0 }
 0x6bc   : > { %v5198_v10 = vld [vmem:[#allocation3 + $0x269] ss:$2 sm:$0xff]  ;;  %v5158_v12 = vld [vmem:[#allocation3 + $0x268] ss:$2 sm:$0xff] }
 0x6bd   : > { %4969 = vst [vmem:[#allocation3 + $0x280] sm:$0xff] %v4905_v0 }
 0x6be   : > { %v4795_v2 = vpop.f32.mrb[96].mxu1 }
 0x6bf   : > { %v11141_v3 = vadd.f32 %v12949_v16, %v4795_v2  ;;  %v4797_v4 = vpop.f32.mrb[97].mxu1 }
 0x6c0   : > { %v4798_v5 = vpop.f32.mrb[98].mxu1 }
 0x6c1   : > { %v4906_v6 = vmax.f32 %v11141_v3, 0.0  ;;  %v11142_v7 = vadd.f32 %v12949_v16, %v4798_v5  ;;  %v4800_v8 = vpop.f32.mrb[99].mxu1 }
 0x6c3   : > { %4970 = vst [vmem:[#allocation3 + $0x288] sm:$0xff] %v4906_v6  ;;  %v4907_v9 = vmax.f32 %v11142_v7, 0.0 }
 0x6c4   : > { %v5200_v11 = vld [vmem:[#allocation3 + $0x279] ss:$2 sm:$0xff]  ;;  %v5160_v13 = vld [vmem:[#allocation3 + $0x278] ss:$2 sm:$0xff] }
 0x6c5   : > { %4971 = vst [vmem:[#allocation3 + $0x290] sm:$0xff] %v4907_v9  ;;  %v5220_v14 = vpack.c.bf16 %v5200_v11, %v5198_v10  ;;  %v5180_v15 = vpack.c.bf16 %v5160_v13, %v5158_v12 }
 0x6c6   : > { %v4803_v17 = vpop.f32.mrb[100].mxu1 }
 0x6c7   : > { %v11143_v18 = vadd.f32 %v12949_v16, %v4803_v17  ;;  %v4805_v19 = vpop.f32.mrb[101].mxu1  ;;  %5690 = vmatprep.mubr.bf16.mxu1 %v5220_v14 }
 0x6c8   : > { %v4806_v20 = vpop.f32.mrb[102].mxu1  ;;  %5691 = vmatmul.mubr.bf16.gmra.mrb[172].mxu1 %v5180_v15 }
 0x6c9   : > { %v4908_v21 = vmax.f32 %v11143_v18, 0.0  ;;  %v11144_v22 = vadd.f32 %v12949_v16, %v4806_v20  ;;  %v4808_v23 = vpop.f32.mrb[103].mxu1 }
 0x6cb   : > { %4972 = vst [vmem:[#allocation3 + $0x298] sm:$0xff] %v4908_v21  ;;  %v4909_v24 = vmax.f32 %v11144_v22, 0.0 }
 0x6cc   : > { %v5202_v33 = vld [vmem:[#allocation3 + $0x289] ss:$2 sm:$0xff]  ;;  %v5162_v36 = vld [vmem:[#allocation3 + $0x288] ss:$2 sm:$0xff] }
 0x6cd   : > { %4973 = vst [vmem:[#allocation3 + $0x2a0] sm:$0xff] %v4909_v24 }
 0x6ce   : > { %v4811_v25 = vpop.f32.mrb[104].mxu1 }
 0x6cf   : > { %v11145_v26 = vadd.f32 %v12949_v16, %v4811_v25  ;;  %v4813_v27 = vpop.f32.mrb[105].mxu1 }
 0x6d0   : > { %v4814_v28 = vpop.f32.mrb[106].mxu1 }
 0x6d1   : > { %v4910_v29 = vmax.f32 %v11145_v26, 0.0  ;;  %v11146_v30 = vadd.f32 %v12949_v16, %v4814_v28  ;;  %v4816_v31 = vpop.f32.mrb[107].mxu1 }
 0x6d3   : > { %4974 = vst [vmem:[#allocation3 + $0x2a8] sm:$0xff] %v4910_v29  ;;  %v4911_v32 = vmax.f32 %v11146_v30, 0.0 }
 0x6d4   : > { %v5204_v34 = vld [vmem:[#allocation3 + $0x299] ss:$2 sm:$0xff]  ;;  %v5164_v37 = vld [vmem:[#allocation3 + $0x298] ss:$2 sm:$0xff] }
 0x6d5   : > { %4975 = vst [vmem:[#allocation3 + $0x2b0] sm:$0xff] %v4911_v32  ;;  %v5221_v38 = vpack.c.bf16 %v5204_v34, %v5202_v33  ;;  %v5181_v39 = vpack.c.bf16 %v5164_v37, %v5162_v36  ;;  %v5108_v36 = vld [vmem:[#allocation3 + $0x13] ss:$2 sm:$0xff] }
 0x6d6   : > { %v4819_v1 = vpop.f32.mrb[108].mxu1 }
 0x6d7   : > { %v11147_v40 = vadd.f32 %v12949_v16, %v4819_v1  ;;  %v4821_v41 = vpop.f32.mrb[109].mxu1  ;;  %5698 = vmatprep.mubr.bf16.mxu1 %v5221_v38 }
 0x6d8   : > { %v4822_v43 = vpop.f32.mrb[110].mxu1  ;;  %5699 = vmatmul.mubr.bf16.gmra.mrb[176].mxu1 %v5181_v39  ;;  %v5106_v41 = vld [vmem:[#allocation3 + $0x3] ss:$2 sm:$0xff] }
 0x6d9   : > { %v4912_v42 = vmax.f32 %v11147_v40, 0.0  ;;  %v11148_v44 = vadd.f32 %v12949_v16, %v4822_v43  ;;  %v4824_v45 = vpop.f32.mrb[111].mxu1 }
 0x6db   : > { %4976 = vst [vmem:[#allocation3 + $0x2b8] sm:$0xff] %v4912_v42  ;;  %v4913_v46 = vmax.f32 %v11148_v44, 0.0  ;;  %v5137_v42 = vpack.c.bf16 %v5108_v36, %v5106_v41  ;;  %v12033_v36 = vld [vmem:[%s14205_s1 + $0x340] sm:$0xff]  }
 0x6dc   : > { %v5206_v54 = vld [vmem:[#allocation3 + $0x2a9] ss:$2 sm:$0xff]  ;;  %v5166_v56 = vld [vmem:[#allocation3 + $0x2a8] ss:$2 sm:$0xff]  ;;  %10613 = vmatprep.subr.bf16.mxu1 %v12033_v36 }
 0x6dd   : > { %4977 = vst [vmem:[#allocation3 + $0x2c0] sm:$0xff] %v4913_v46  ;;  %v5234_v36 = vld [vmem:[#allocation3 + $0x24a] ss:$2 sm:$0xff] }
 0x6de   : > { %v4827_v47 = vpop.f32.mrb[112].mxu1 }
 0x6df   : > { %v11149_v48 = vadd.f32 %v12949_v16, %v4827_v47  ;;  %v4829_v49 = vpop.f32.mrb[113].mxu1 }
 0x6e0   : > { %v4830_v50 = vpop.f32.mrb[114].mxu1  ;;  %v5112_v49 = vld [vmem:[#allocation3 + $0x33] ss:$2 sm:$0xff] }
 0x6e1   : > { %v4914_v35 = vmax.f32 %v11149_v48, 0.0  ;;  %v11150_v51 = vadd.f32 %v12949_v16, %v4830_v50  ;;  %v4832_v52 = vpop.f32.mrb[115].mxu1  ;;  %v5068_v48 = vld [vmem:[#allocation3 + $0x12] ss:$2 sm:$0xff]  ;;  %v5066_v50 = vld [vmem:[#allocation3 + $0x2] ss:$2 sm:$0xff] }
 0x6e2   : > { %v5110_v52 = vld [vmem:[#allocation3 + $0x23] ss:$2 sm:$0xff] }
 0x6e3   : > { %4978 = vst [vmem:[#allocation3 + $0x2c8] sm:$0xff] %v4914_v35  ;;  %v4915_v53 = vmax.f32 %v11150_v51, 0.0  ;;  %v5097_v51 = vpack.c.bf16 %v5068_v48, %v5066_v50  ;;  %v5090_v50 = vld [vmem:[#allocation3 + $0xc2] ss:$2 sm:$0xff] }
 0x6e4   : > { %v5208_v55 = vld [vmem:[#allocation3 + $0x2b9] ss:$2 sm:$0xff]  ;;  %v5168_v57 = vld [vmem:[#allocation3 + $0x2b8] ss:$2 sm:$0xff] }
 0x6e5   : > { %4979 = vst [vmem:[#allocation3 + $0x2d0] sm:$0xff] %v4915_v53  ;;  %v5222_v58 = vpack.c.bf16 %v5208_v55, %v5206_v54  ;;  %v5182_v59 = vpack.c.bf16 %v5168_v57, %v5166_v56  ;;  %v5138_v54 = vpack.c.bf16 %v5112_v49, %v5110_v52  ;;  %v5134_v52 = vld [vmem:[#allocation3 + $0xe3] ss:$2 sm:$0xff] }
 0x6e6   : > { %v4835_v60 = vpop.f32.mrb[116].mxu1 }
 0x6e7   : > { %v11151_v61 = vadd.f32 %v12949_v16, %v4835_v60  ;;  %v4837_v62 = vpop.f32.mrb[117].mxu1  ;;  %5706 = vmatprep.mubr.bf16.mxu1 %v5222_v58  ;;  %v5116_v60 = vld [vmem:[#allocation3 + $0x53] ss:$2 sm:$0xff] }
 0x6e8   : > { %v4838_v63 = vpop.f32.mrb[118].mxu1  ;;  %5707 = vmatmul.mubr.bf16.gmra.mrb[180].mxu1 %v5182_v59  ;;  %v5072_v59 = vld [vmem:[#allocation3 + $0x32] ss:$2 sm:$0xff] }
 0x6e9   : > { %v4916_v0 = vmax.f32 %v11151_v61, 0.0  ;;  %v11152_v2 = vadd.f32 %v12949_v16, %v4838_v63  ;;  %v4840_v3 = vpop.f32.mrb[119].mxu1  ;;  %v5070_v61 = vld [vmem:[#allocation3 + $0x22] ss:$2 sm:$0xff]  ;;  %v5114_v63 = vld [vmem:[#allocation3 + $0x43] ss:$2 sm:$0xff] }
 0x6ea   : > { %v5098_v62 = vpack.c.bf16 %v5072_v59, %v5070_v61  ;;  %v5076_v3 = vld [vmem:[#allocation3 + $0x52] ss:$2 sm:$0xff]  ;;  %v5094_v61 = vld [vmem:[#allocation3 + $0xe2] ss:$2 sm:$0xff] }
 0x6eb   : > { %4980 = vst [vmem:[#allocation3 + $0x2d8] sm:$0xff] %v4916_v0  ;;  %v4917_v4 = vmax.f32 %v11152_v2, 0.0  ;;  %v5139_v0 = vpack.c.bf16 %v5116_v60, %v5114_v63  ;;  %v5096_v59 = vld [vmem:[#allocation3 + $0xf2] ss:$2 sm:$0xff]  ;;  %v5268_v60 = vld [vmem:[#allocation3 + $0x21b] ss:$2 sm:$0xff] }
 0x6ec   : > { %v5210_v13 = vld [vmem:[#allocation3 + $0x2c9] ss:$2 sm:$0xff]  ;;  %v5170_v15 = vld [vmem:[#allocation3 + $0x2c8] ss:$2 sm:$0xff] }
 0x6ed   : > { %4981 = vst [vmem:[#allocation3 + $0x2e0] sm:$0xff] %v4917_v4  ;;  %v5266_v63 = vld [vmem:[#allocation3 + $0x20b] ss:$2 sm:$0xff] }
 0x6ee   : > { %v4843_v5 = vpop.f32.mrb[120].mxu1 }
 0x6ef   : > { %v11153_v6 = vadd.f32 %v12949_v16, %v4843_v5  ;;  %v4845_v7 = vpop.f32.mrb[121].mxu1  ;;  %v5120_v5 = vld [vmem:[#allocation3 + $0x73] ss:$2 sm:$0xff] }
 0x6f0   : > { %v4846_v8 = vpop.f32.mrb[122].mxu1 }
 0x6f1   : > { %v4918_v9 = vmax.f32 %v11153_v6, 0.0  ;;  %v11154_v10 = vadd.f32 %v12949_v16, %v4846_v8  ;;  %v4848_v11 = vpop.f32.mrb[123].mxu1  ;;  %v5074_v8 = vld [vmem:[#allocation3 + $0x42] ss:$2 sm:$0xff] }
 0x6f2   : > { %v5118_v11 = vld [vmem:[#allocation3 + $0x63] ss:$2 sm:$0xff] }
 0x6f3   : > { %4982 = vst [vmem:[#allocation3 + $0x2e8] sm:$0xff] %v4918_v9  ;;  %v4919_v12 = vmax.f32 %v11154_v10, 0.0  ;;  %v5099_v10 = vpack.c.bf16 %v5076_v3, %v5074_v8  ;;  %v5228_v3 = vld [vmem:[#allocation3 + $0x21a] ss:$2 sm:$0xff] }
 0x6f4   : > { %v5212_v14 = vld [vmem:[#allocation3 + $0x2d9] ss:$2 sm:$0xff]  ;;  %v5172_v17 = vld [vmem:[#allocation3 + $0x2d8] ss:$2 sm:$0xff] }
 0x6f5   : > { %4983 = vst [vmem:[#allocation3 + $0x2f0] sm:$0xff] %v4919_v12  ;;  %v5223_v18 = vpack.c.bf16 %v5212_v14, %v5210_v13  ;;  %v5183_v19 = vpack.c.bf16 %v5172_v17, %v5170_v15  ;;  %v5140_v13 = vpack.c.bf16 %v5120_v5, %v5118_v11  ;;  %v5080_v14 = vld [vmem:[#allocation3 + $0x72] ss:$2 sm:$0xff]  ;;  %v5124_v15 = vld [vmem:[#allocation3 + $0x93] ss:$2 sm:$0xff] }
 0x6f6   : > { %v4851_v20 = vpop.f32.mrb[124].mxu1  ;;  %v5078_v17 = vld [vmem:[#allocation3 + $0x62] ss:$2 sm:$0xff]  ;;  %v5272_v5 = vld [vmem:[#allocation3 + $0x23b] ss:$2 sm:$0xff] }
 0x6f7   : > { %v11155_v21 = vadd.f32 %v12949_v16, %v4851_v20  ;;  %v4853_v22 = vpop.f32.mrb[125].mxu1  ;;  %5714 = vmatprep.mubr.bf16.mxu1 %v5223_v18  ;;  %v5100_v18 = vpack.c.bf16 %v5080_v14, %v5078_v17  ;;  %v12037_v17 = vld [vmem:[%s14205_s1 + $0x350] sm:$0xff]  }
 0x6f8   : > { %v4854_v23 = vpop.f32.mrb[126].mxu1  ;;  %5715 = vmatmul.mubr.bf16.gmra.mrb[184].mxu1 %v5183_v19  ;;  %v5122_v19 = vld [vmem:[#allocation3 + $0x83] ss:$2 sm:$0xff]  ;;  %v5084_v22 = vld [vmem:[#allocation3 + $0x92] ss:$2 sm:$0xff] }
 0x6f9   : > { %v4920_v24 = vmax.f32 %v11155_v21, 0.0  ;;  %v11156_v25 = vadd.f32 %v12949_v16, %v4854_v23  ;;  %v4856_v26 = vpop.f32.mrb[127].mxu1  ;;  %v5141_v20 = vpack.c.bf16 %v5124_v15, %v5122_v19  ;;  %v5232_v19 = vld [vmem:[#allocation3 + $0x23a] ss:$2 sm:$0xff] }
 0x6fb   : > { %4984 = vst [vmem:[#allocation3 + $0x2f8] sm:$0xff] %v4920_v24  ;;  %v4921_v27 = vmax.f32 %v11156_v25, 0.0  ;;  %v5128_v24 = vld [vmem:[#allocation3 + $0xb3] ss:$2 sm:$0xff] }
 0x6fc   : > { %v5214_v34 = vld [vmem:[#allocation3 + $0x2e9] ss:$2 sm:$0xff]  ;;  %v5174_v38 = vld [vmem:[#allocation3 + $0x2e8] ss:$2 sm:$0xff] }
 0x6fd   : > { %4985 = vst [vmem:[#allocation3 + $0x300] sm:$0xff] %v4921_v27  ;;  %v5082_v27 = vld [vmem:[#allocation3 + $0x82] ss:$2 sm:$0xff] }
 0x6fe   : > { %v10405_v28 = vpop.f32.mrb[128].mxu1 }
 0x6ff   : > { %v10406_v29 = vpop.f32.mrb[129].mxu1 }
 0x700   : > { %v13063_v30 = vadd.f32 %v10406_v29, %v10405_v28  ;;  %v10408_v31 = vpop.f32.mrb[130].mxu1  ;;  %v5101_v29 = vpack.c.bf16 %v5084_v22, %v5082_v27  ;;  %v5236_v27 = vld [vmem:[#allocation3 + $0x25a] ss:$2 sm:$0xff] }
 0x701   : > { %v10409_v32 = vpop.f32.mrb[131].mxu1 }
 0x702   : > { %v13065_v33 = vadd.f32 %v10409_v32, %v10408_v31  ;;  %v5126_v31 = vld [vmem:[#allocation3 + $0xa3] ss:$2 sm:$0xff] }
 0x704   : > { %v5216_v37 = vld [vmem:[#allocation3 + $0x2f9] ss:$2 sm:$0xff]  ;;  %v5176_v39 = vld [vmem:[#allocation3 + $0x2f8] ss:$2 sm:$0xff] }
 0x705   : > { %v5224_v1 = vpack.c.bf16 %v5216_v37, %v5214_v34  ;;  %v5184_v40 = vpack.c.bf16 %v5176_v39, %v5174_v38  ;;  %v5142_v34 = vpack.c.bf16 %v5128_v24, %v5126_v31  ;;  %v12034_v37 = vld [vmem:[%s14205_s1 + $0x300] sm:$0xff]   ;;  %v5088_v38 = vld [vmem:[#allocation3 + $0xb2] ss:$2 sm:$0xff]  ;;  %v5132_v39 = vld [vmem:[#allocation3 + $0xd3] ss:$2 sm:$0xff] }
 0x706   : > { %v10411_v16 = vpop.f32.mrb[132].mxu1 }
 0x707   : > { %v10412_v43 = vpop.f32.mrb[133].mxu1  ;;  %5722 = vmatprep.mubr.bf16.mxu1 %v5224_v1  ;;  %v5086_v1 = vld [vmem:[#allocation3 + $0xa2] ss:$2 sm:$0xff] }
 0x708   : > { %v13067_v44 = vadd.f32 %v10412_v43, %v10411_v16  ;;  %v10414_v45 = vpop.f32.mrb[134].mxu1  ;;  %5723 = vmatmul.mubr.bf16.gmra.mrb[188].mxu1 %v5184_v40  ;;  %v5102_v40 = vpack.c.bf16 %v5088_v38, %v5086_v1  ;;  %v5130_v16 = vld [vmem:[#allocation3 + $0xc3] ss:$2 sm:$0xff]  ;;  %v5259_v38 = vpack.c.bf16 %v5236_v27, %v5234_v36 }
 0x709   : > { %v10415_v46 = vpop.f32.mrb[135].mxu1  ;;  %5763 = vmatprep.mubr.bf16.mxu1 %v5137_v42  ;;  %v5143_v41 = vpack.c.bf16 %v5132_v39, %v5130_v16  ;;  %v5092_v42 = vld [vmem:[#allocation3 + $0xd2] ss:$2 sm:$0xff]  ;;  %v5278_v39 = vld [vmem:[#allocation3 + $0x26b] ss:$2 sm:$0xff] }
 0x70a   : > { %v13069_v47 = vadd.f32 %v10415_v46, %v10414_v45  ;;  %v5136_v46 = vld [vmem:[#allocation3 + $0xf3] ss:$2 sm:$0xff]  ;;  %v5240_v16 = vld [vmem:[#allocation3 + $0x27a] ss:$2 sm:$0xff] }
 0x70b   : > { %v5294_v36 = vld [vmem:[#allocation3 + $0x2eb] ss:$2 sm:$0xff] }
 0x70e   : > { %v10417_v35 = vpop.f32.mrb[136].mxu1 }
 0x70f   : > { %v10418_v53 = vpop.f32.mrb[137].mxu1 }
 0x710   : > { %v13071_v55 = vadd.f32 %v10418_v53, %v10417_v35  ;;  %v10420_v56 = vpop.f32.mrb[138].mxu1  ;;  %5764 = vmatmul.mubr.bf16.vlgmr.msra.gmra.mrb[192].mxu1 %v5097_v51  ;;  %v5103_v51 = vpack.c.bf16 %v5092_v42, %v5090_v50  ;;  %v5244_v50 = vld [vmem:[#allocation3 + $0x29a] ss:$2 sm:$0xff] }
 0x711   : > { %v10421_v57 = vpop.f32.mrb[139].mxu1  ;;  %5771 = vmatprep.mubr.bf16.mxu1 %v5138_v54  ;;  %10614 = vmatpush3.bf16.msra.mxu1 %v12034_v37  ;;  %v5144_v54 = vpack.c.bf16 %v5136_v46, %v5134_v52  ;;  %v5288_v52 = vld [vmem:[#allocation3 + $0x2bb] ss:$2 sm:$0xff] }
 0x712   : > { %v13073_v58 = vadd.f32 %v10421_v57, %v10420_v56  ;;  %v12035_v56 = vld [vmem:[%s14205_s1 + $0x348] sm:$0xff]  }
 0x713   : > { %v12036_v57 = vld [vmem:[%s14205_s1 + $0x308] sm:$0xff]   ;;  %10615 = vmatprep.subr.bf16.mxu1 %v12035_v56 }
 0x715   : > { %10616 = vmatpush3.bf16.msra.mxu1 %v12036_v57 }
 0x716   : > { %10617 = vmatprep.subr.bf16.mxu1 %v12037_v17  ;;  %v12045_v17 = vld [vmem:[%s14205_s1 + $0x370] sm:$0xff]  }
 0x718   : > { %5772 = vmatmul.mubr.bf16.gmra.mrb[196].mxu1 %v5098_v62  ;;  %v5104_v62 = vpack.c.bf16 %v5096_v59, %v5094_v61  ;;  %v5242_v59 = vld [vmem:[#allocation3 + $0x28a] ss:$2 sm:$0xff] }
 0x719   : > { %5779 = vmatprep.mubr.bf16.mxu1 %v5139_v0  ;;  %v5297_v0 = vpack.c.bf16 %v5268_v60, %v5266_v63  ;;  %v5261_v61 = vpack.c.bf16 %v5244_v50, %v5242_v59 }
 0x71b   : > { %v10423_v2 = vpop.f32.mrb[140].mxu1 }
 0x71c   : > { %v10424_v4 = vpop.f32.mrb[141].mxu1 }
 0x71d   : > { %v13075_v6 = vadd.f32 %v10424_v4, %v10423_v2  ;;  %v10426_v7 = vpop.f32.mrb[142].mxu1 }
 0x71e   : > { %v10427_v9 = vpop.f32.mrb[143].mxu1 }
 0x71f   : > { %v13077_v12 = vadd.f32 %v10427_v9, %v10426_v7  ;;  %v5226_v9 = vld [vmem:[#allocation3 + $0x20a] ss:$2 sm:$0xff] }
 0x720   : > { %5780 = vmatmul.mubr.bf16.gmra.mrb[200].mxu1 %v5099_v10  ;;  %v5257_v11 = vpack.c.bf16 %v5228_v3, %v5226_v9  ;;  %v12042_v3 = vld [vmem:[%s14205_s1 + $0x320] sm:$0xff]   ;;  %v12044_v9 = vld [vmem:[%s14205_s1 + $0x328] sm:$0xff]  }
 0x721   : > { %5787 = vmatprep.mubr.bf16.mxu1 %v5140_v13  ;;  %v5270_v13 = vld [vmem:[#allocation3 + $0x22b] ss:$2 sm:$0xff] }
 0x722   : > { %v5298_v15 = vpack.c.bf16 %v5272_v5, %v5270_v13  ;;  %v12043_v5 = vld [vmem:[%s14205_s1 + $0x368] sm:$0xff]  }
 0x723   : > { %v5290_v13 = vld [vmem:[#allocation3 + $0x2cb] ss:$2 sm:$0xff] }
 0x728   : > { %5788 = vmatmul.mubr.bf16.gmra.mrb[204].mxu1 %v5100_v18  ;;  %v12038_v18 = vld [vmem:[%s14205_s1 + $0x310] sm:$0xff]  }
 0x729   : > { %5795 = vmatprep.mubr.bf16.mxu1 %v5141_v20  ;;  %v5276_v20 = vld [vmem:[#allocation3 + $0x25b] ss:$2 sm:$0xff]  ;;  %10618 = vmatpush3.bf16.msra.mxu1 %v12038_v18 }
 0x72a   : > { %v12046_v18 = vld [vmem:[%s14205_s1 + $0x330] sm:$0xff]  }
 0x72b   : > { %v10429_v21 = vpop.f32.mrb[144].mxu1 }
 0x72c   : > { %v10430_v23 = vpop.f32.mrb[145].mxu1 }
 0x72d   : > { %v13079_v25 = vadd.f32 %v10430_v23, %v10429_v21  ;;  %v10432_v26 = vpop.f32.mrb[146].mxu1  ;;  %v5230_v21 = vld [vmem:[#allocation3 + $0x22a] ss:$2 sm:$0xff]  ;;  %v5274_v23 = vld [vmem:[#allocation3 + $0x24b] ss:$2 sm:$0xff] }
 0x72e   : > { %v10433_v28 = vpop.f32.mrb[147].mxu1  ;;  %v5258_v22 = vpack.c.bf16 %v5232_v19, %v5230_v21  ;;  %v5299_v24 = vpack.c.bf16 %v5276_v20, %v5274_v23  ;;  %v5252_v20 = vld [vmem:[#allocation3 + $0x2da] ss:$2 sm:$0xff]  ;;  %v5296_v23 = vld [vmem:[#allocation3 + $0x2fb] ss:$2 sm:$0xff] }
 0x72f   : > { %v13081_v32 = vadd.f32 %v10433_v28, %v10432_v26  ;;  %v12047_v21 = vld [vmem:[%s14205_s1 + $0x378] sm:$0xff]  }
 0x730   : > { %5796 = vmatmul.mubr.bf16.gmra.mrb[208].mxu1 %v5101_v29  ;;  %v5280_v29 = vld [vmem:[#allocation3 + $0x27b] ss:$2 sm:$0xff] }
 0x731   : > { %5803 = vmatprep.mubr.bf16.mxu1 %v5142_v34 }
 0x738   : > { %5804 = vmatmul.mubr.bf16.gmra.mrb[212].mxu1 %v5102_v40  ;;  %v5300_v40 = vpack.c.bf16 %v5280_v29, %v5278_v39  ;;  %v5256_v39 = vld [vmem:[#allocation3 + $0x2fa] ss:$2 sm:$0xff] }
 0x739   : > { %5811 = vmatprep.mubr.bf16.mxu1 %v5143_v41  ;;  %v5284_v41 = vld [vmem:[#allocation3 + $0x29b] ss:$2 sm:$0xff] }
 0x73b   : > { %v10435_v43 = vpop.f32.mrb[148].mxu1 }
 0x73c   : > { %v10436_v45 = vpop.f32.mrb[149].mxu1 }
 0x73d   : > { %v13089_v48 = vadd.f32 %v10436_v45, %v10435_v43  ;;  %v10438_v49 = vpop.f32.mrb[150].mxu1  ;;  %v5238_v43 = vld [vmem:[#allocation3 + $0x26a] ss:$2 sm:$0xff]  ;;  %v5282_v45 = vld [vmem:[#allocation3 + $0x28b] ss:$2 sm:$0xff] }
 0x73e   : > { %v10439_v35 = vpop.f32.mrb[151].mxu1  ;;  %v5260_v42 = vpack.c.bf16 %v5240_v16, %v5238_v43  ;;  %v5301_v46 = vpack.c.bf16 %v5284_v41, %v5282_v45 }
 0x73f   : > { %v13091_v53 = vadd.f32 %v10439_v35, %v10438_v49  ;;  %v12039_v35 = vld [vmem:[%s14205_s1 + $0x358] sm:$0xff]  }
 0x740   : > { %5812 = vmatmul.mubr.bf16.gmra.mrb[216].mxu1 %v5103_v51  ;;  %10619 = vmatprep.subr.bf16.mxu1 %v12039_v35 }
 0x741   : > { %5819 = vmatprep.mubr.bf16.mxu1 %v5144_v54  ;;  %v12040_v54 = vld [vmem:[%s14205_s1 + $0x318] sm:$0xff]  }
 0x742   : > { %10620 = vmatpush3.bf16.msra.mxu1 %v12040_v54 }
 0x748   : > { %5820 = vmatmul.mubr.bf16.gmra.mrb[220].mxu1 %v5104_v62  ;;  %v5286_v62 = vld [vmem:[#allocation3 + $0x2ab] ss:$2 sm:$0xff] }
 0x749   : > { %5827 = vmatprep.mubr.bf16.mxu1 %v5297_v0  ;;  %v5302_v0 = vpack.c.bf16 %v5288_v52, %v5286_v62 }
 0x74b   : > { %v10441_v2 = vpop.f32.mrb[152].mxu1 }
 0x74c   : > { %v10442_v4 = vpop.f32.mrb[153].mxu1 }
 0x74d   : > { %v13099_v7 = vadd.f32 %v10442_v4, %v10441_v2  ;;  %v10444_v8 = vpop.f32.mrb[154].mxu1  ;;  %v12041_v2 = vld [vmem:[%s14205_s1 + $0x360] sm:$0xff]  }
 0x74e   : > { %v10445_v10 = vpop.f32.mrb[155].mxu1  ;;  %10621 = vmatprep.subr.bf16.mxu1 %v12041_v2  ;;  %v5248_v4 = vld [vmem:[#allocation3 + $0x2ba] ss:$2 sm:$0xff] }
 0x74f   : > { %v13101_v14 = vadd.f32 %v10445_v10, %v10444_v8  ;;  %10622 = vmatpush3.bf16.msra.mxu1 %v12042_v3  ;;  %v5292_v8 = vld [vmem:[#allocation3 + $0x2db] ss:$2 sm:$0xff]  ;;  %v5246_v10 = vld [vmem:[#allocation3 + $0x2aa] ss:$2 sm:$0xff] }
 0x750   : > { %5828 = vmatmul.mubr.bf16.gmra.mrb[224].mxu1 %v5257_v11  ;;  %10623 = vmatprep.subr.bf16.mxu1 %v12043_v5  ;;  %v5262_v11 = vpack.c.bf16 %v5248_v4, %v5246_v10 }
 0x751   : > { %5835 = vmatprep.mubr.bf16.mxu1 %v5298_v15  ;;  %v5303_v15 = vpack.c.bf16 %v5292_v8, %v5290_v13 }
 0x753   : > { %10624 = vmatpush3.bf16.msra.mxu1 %v12044_v9  ;;  %v12049_v9 = vld [vmem:[%s14205_s1 + $0x3c0] sm:$0xff]  }
 0x754   : > { %10625 = vmatprep.subr.bf16.mxu1 %v12045_v17 }
 0x757   : > { %10626 = vmatpush3.bf16.msra.mxu1 %v12046_v18 }
 0x758   : > { %5836 = vmatmul.mubr.bf16.gmra.mrb[228].mxu1 %v5258_v22  ;;  %10627 = vmatprep.subr.bf16.mxu1 %v12047_v21 }
 0x759   : > { %5843 = vmatprep.mubr.bf16.mxu1 %v5299_v24  ;;  %v12048_v24 = vld [vmem:[%s14205_s1 + $0x338] sm:$0xff]  }
 0x75b   : > { %v10447_v26 = vpop.f32.mrb[156].mxu1  ;;  %10628 = vmatpush3.bf16.msra.mxu1 %v12048_v24 }
 0x75c   : > { %v10448_v28 = vpop.f32.mrb[157].mxu1  ;;  %10677 = vmatprep.subr.bf16.mxu1 %v12049_v9 }
 0x75d   : > { %v13109_v31 = vadd.f32 %v10448_v28, %v10447_v26  ;;  %v10450_v34 = vpop.f32.mrb[158].mxu1  ;;  %v5250_v28 = vld [vmem:[#allocation3 + $0x2ca] ss:$2 sm:$0xff] }
 0x75e   : > { %v10451_v37 = vpop.f32.mrb[159].mxu1 }
 0x75f   : > { %v13111_v1 = vadd.f32 %v10451_v37, %v10450_v34  ;;  %v5263_v34 = vpack.c.bf16 %v5252_v20, %v5250_v28 }
 0x760   : > { %5844 = vmatmul.mubr.bf16.gmra.mrb[232].mxu1 %v5259_v38  ;;  %v5304_v38 = vpack.c.bf16 %v5296_v23, %v5294_v36 }
 0x761   : > { %5851 = vmatprep.mubr.bf16.mxu1 %v5300_v40  ;;  %v5254_v40 = vld [vmem:[#allocation3 + $0x2ea] ss:$2 sm:$0xff] }
 0x762   : > { %v5264_v16 = vpack.c.bf16 %v5256_v39, %v5254_v40 }
 0x768   : > { %5852 = vmatmul.mubr.bf16.gmra.mrb[236].mxu1 %v5260_v42 }
 0x769   : > { %5859 = vmatprep.mubr.bf16.mxu1 %v5301_v46 }
 0x76b   : > { %v10453_v49 = vpop.f32.mrb[160].mxu1 }
 0x76c   : > { %v10454_v51 = vpop.f32.mrb[161].mxu1 }
 0x76d   : > { %v13119_v56 = vadd.f32 %v10454_v51, %v10453_v49  ;;  %v10456_v57 = vpop.f32.mrb[162].mxu1 }
 0x76e   : > { %v10457_v60 = vpop.f32.mrb[163].mxu1 }
 0x76f   : > { %v13121_v63 = vadd.f32 %v10457_v60, %v10456_v57 }
 0x770   : > { %5860 = vmatmul.mubr.bf16.gmra.mrb[240].mxu1 %v5261_v61 }
 0x771   : > { %5867 = vmatprep.mubr.bf16.mxu1 %v5302_v0 }
 0x778   : > { %5868 = vmatmul.mubr.bf16.gmra.mrb[244].mxu1 %v5262_v11 }
 0x779   : > { %5875 = vmatprep.mubr.bf16.mxu1 %v5303_v15 }
 0x77b   : > { %v10459_v19 = vpop.f32.mrb[164].mxu1 }
 0x77c   : > { %v10460_v22 = vpop.f32.mrb[165].mxu1 }
 0x77d   : > { %v13147_v26 = vadd.f32 %v10460_v22, %v10459_v19  ;;  %v10462_v27 = vpop.f32.mrb[166].mxu1 }
 0x77e   : > { %v10463_v29 = vpop.f32.mrb[167].mxu1 }
 0x77f   : > { %v13149_v37 = vadd.f32 %v10463_v29, %v10462_v27  ;;  %v13181_v29 = vld [vmem:[%s14206_s2 + $0x2] ss:$0 sm:$0xff] }
 0x780   : > { %5876 = vmatmul.mubr.bf16.gmra.mrb[248].mxu1 %v5263_v34 }
 0x781   : > { %5883 = vmatprep.mubr.bf16.mxu1 %v5304_v38  ;;  %v5605_v38 = vadd.f32 %v13063_v30, %v13181_v29 }
 0x788   : > { %5884 = vmatmul.mubr.bf16.gmra.mrb[252].mxu1 %v5264_v16 }
 0x78b   : > { %v10465_v41 = vpop.f32.mrb[168].mxu1 }
 0x78c   : > { %v10466_v43 = vpop.f32.mrb[169].mxu1 }
 0x78d   : > { %v13151_v42 = vadd.f32 %v10466_v43, %v10465_v41  ;;  %v10468_v45 = vpop.f32.mrb[170].mxu1  ;;  %v5608_v41 = vadd.f32 %v13065_v33, %v13181_v29 }
 0x78e   : > { %v10469_v46 = vpop.f32.mrb[171].mxu1 }
 0x78f   : > { %v13153_v49 = vadd.f32 %v10469_v46, %v10468_v45 }
 0x79b   : > { %v10471_v50 = vpop.f32.mrb[172].mxu1 }
 0x79c   : > { %v10472_v35 = vpop.f32.mrb[173].mxu1 }
 0x79d   : > { %v13155_v51 = vadd.f32 %v10472_v35, %v10471_v50  ;;  %v10474_v52 = vpop.f32.mrb[174].mxu1 }
 0x79e   : > { %v10475_v54 = vpop.f32.mrb[175].mxu1 }
 0x79f   : > { %v13157_v57 = vadd.f32 %v10475_v54, %v10474_v52 }
 0x7ab   : > { %v10477_v59 = vpop.f32.mrb[176].mxu1 }
 0x7ac   : > { %v10478_v60 = vpop.f32.mrb[177].mxu1 }
 0x7ad   : > { %v13159_v61 = vadd.f32 %v10478_v60, %v10477_v59  ;;  %v10480_v62 = vpop.f32.mrb[178].mxu1  ;;  %v5613_v59 = vadd.f32 %v13067_v44, %v13181_v29 }
 0x7ae   : > { %v10481_v0 = vpop.f32.mrb[179].mxu1 }
 0x7af   : > { %v13161_v2 = vadd.f32 %v10481_v0, %v10480_v62  ;;  %v5616_v0 = vadd.f32 %v13069_v47, %v13181_v29 }
 0x7bb   : > { %v10483_v3 = vpop.f32.mrb[180].mxu1 }
 0x7bc   : > { %v10484_v4 = vpop.f32.mrb[181].mxu1 }
 0x7bd   : > { %v13163_v5 = vadd.f32 %v10484_v4, %v10483_v3  ;;  %v10486_v8 = vpop.f32.mrb[182].mxu1 }
 0x7be   : > { %v10487_v10 = vpop.f32.mrb[183].mxu1 }
 0x7bf   : > { %v13168_v11 = vadd.f32 %v10487_v10, %v10486_v8 }
 0x7cb   : > { %v10489_v13 = vpop.f32.mrb[184].mxu1 }
 0x7cc   : > { %v10490_v15 = vpop.f32.mrb[185].mxu1 }
 0x7cd   : > { %v13170_v17 = vadd.f32 %v10490_v15, %v10489_v13  ;;  %v10492_v18 = vpop.f32.mrb[186].mxu1  ;;  %v5621_v15 = vadd.f32 %v13071_v55, %v13181_v29  ;;  %v5629_v55 = vadd.f32 %v13075_v6, %v13181_v29 }
 0x7ce   : > { %v10493_v19 = vpop.f32.mrb[187].mxu1 }
 0x7cf   : > { %v13172_v20 = vadd.f32 %v10493_v19, %v10492_v18 }
 0x7db   : > { %v10495_v21 = vpop.f32.mrb[188].mxu1 }
 0x7dc   : > { %v10496_v22 = vpop.f32.mrb[189].mxu1 }
 0x7dd   : > { %v13174_v23 = vadd.f32 %v10496_v22, %v10495_v21  ;;  %v10498_v24 = vpop.f32.mrb[190].mxu1  ;;  %v5624_v21 = vadd.f32 %v13073_v58, %v13181_v29 }
 0x7de   : > { %v10499_v27 = vpop.f32.mrb[191].mxu1 }
 0x7df   : > { %v13176_v28 = vadd.f32 %v10499_v27, %v10498_v24 }
 0x7e3   : > { %v10517_v34 = vpop.f32.mrb[192].mxu1 }
 0x7e4   : > { %v10518_v36 = vpop.f32.mrb[193].mxu1 }
 0x7e5   : > { %v10519_v39 = vadd.f32 %v10518_v36, %v10517_v34  ;;  %v10520_v40 = vpop.f32.mrb[194].mxu1 }
 0x7e6   : > { %v10521_v16 = vpop.f32.mrb[195].mxu1 }
 0x7e7   : > { %v5766_v43 = vadd.f32 %v10519_v39, %v5605_v38  ;;  %v10522_v45 = vadd.f32 %v10521_v16, %v10520_v40 }
 0x7e9   : > { %v5892_v46 = vmax.f32 %v5766_v43, 0.0  ;;  %v5769_v50 = vadd.f32 %v10522_v45, %v5608_v41 }
 0x7eb   : > { %5924 = vst [vmem:[#allocation2] sm:$0xff] %v5892_v46  ;;  %v5893_v35 = vmax.f32 %v5769_v50, 0.0  ;;  %v10523_v52 = vpop.f32.mrb[196].mxu1  ;;  %v12050_v50 = vld [vmem:[%s14205_s1 + $0x380] sm:$0xff]  }
 0x7ec   : > { %v10524_v54 = vpop.f32.mrb[197].mxu1 }
 0x7ed   : > { %5925 = vst [vmem:[#allocation2 + $0x8] sm:$0xff] %v5893_v35  ;;  %v10525_v60 = vadd.f32 %v10524_v54, %v10523_v52  ;;  %v10526_v30 = vpop.f32.mrb[198].mxu1  ;;  %v12051_v52 = vld [vmem:[%s14205_s1 + $0x3c8] sm:$0xff]   ;;  %v5632_v54 = vadd.f32 %v13077_v12, %v13181_v29 }
 0x7ee   : > { %v10527_v62 = vpop.f32.mrb[199].mxu1 }
 0x7ef   : > { %v5774_v3 = vadd.f32 %v10525_v60, %v5613_v59  ;;  %v10528_v33 = vadd.f32 %v10527_v62, %v10526_v30  ;;  %v12052_v62 = vld [vmem:[%s14205_s1 + $0x388] sm:$0xff]  }
 0x7f1   : > { %v5894_v4 = vmax.f32 %v5774_v3, 0.0  ;;  %v5777_v8 = vadd.f32 %v10528_v33, %v5616_v0  ;;  %v12053_v0 = vld [vmem:[%s14205_s1 + $0x3d0] sm:$0xff]  }
 0x7f3   : > { %5926 = vst [vmem:[#allocation2 + $0x10] sm:$0xff] %v5894_v4  ;;  %v5895_v9 = vmax.f32 %v5777_v8, 0.0  ;;  %v10529_v10 = vpop.f32.mrb[200].mxu1  ;;  %v5637_v4 = vadd.f32 %v13079_v25, %v13181_v29 }
 0x7f4   : > { %v10530_v13 = vpop.f32.mrb[201].mxu1  ;;  %v5968_v38 = vld [vmem:[#allocation2 + $0x1] ss:$2 sm:$0xff]  ;;  %v5956_v39 = vld [vmem:[#allocation2] ss:$2 sm:$0xff] }
 0x7f5   : > { %5927 = vst [vmem:[#allocation2 + $0x18] sm:$0xff] %v5895_v9  ;;  %v10531_v44 = vadd.f32 %v10530_v13, %v10529_v10  ;;  %v10532_v18 = vpop.f32.mrb[202].mxu1  ;;  %v12054_v10 = vld [vmem:[%s14205_s1 + $0x390] sm:$0xff]  }
 0x7f6   : > { %v10533_v19 = vpop.f32.mrb[203].mxu1 }
 0x7f7   : > { %v5782_v22 = vadd.f32 %v10531_v44, %v5621_v15  ;;  %v10534_v47 = vadd.f32 %v10533_v19, %v10532_v18  ;;  %v12055_v15 = vld [vmem:[%s14205_s1 + $0x3d8] sm:$0xff]   ;;  %v5640_v44 = vadd.f32 %v13081_v32, %v13181_v29 }
 0x7f9   : > { %v5896_v24 = vmax.f32 %v5782_v22, 0.0  ;;  %v5785_v27 = vadd.f32 %v10534_v47, %v5624_v21  ;;  %v12056_v22 = vld [vmem:[%s14205_s1 + $0x398] sm:$0xff]   ;;  %v12057_v47 = vld [vmem:[%s14205_s1 + $0x3e0] sm:$0xff]  }
 0x7fb   : > { %5928 = vst [vmem:[#allocation2 + $0x20] sm:$0xff] %v5896_v24  ;;  %v5897_v34 = vmax.f32 %v5785_v27, 0.0  ;;  %v10535_v36 = vpop.f32.mrb[204].mxu1 }
 0x7fc   : > { %v10536_v40 = vpop.f32.mrb[205].mxu1  ;;  %v5969_v16 = vld [vmem:[#allocation2 + $0x11] ss:$2 sm:$0xff]  ;;  %v5957_v41 = vld [vmem:[#allocation2 + $0x10] ss:$2 sm:$0xff] }
 0x7fd   : > { %5929 = vst [vmem:[#allocation2 + $0x28] sm:$0xff] %v5897_v34  ;;  %v10537_v43 = vadd.f32 %v10536_v40, %v10535_v36  ;;  %v10538_v45 = vpop.f32.mrb[206].mxu1  ;;  %v5976_v46 = vpack.c.bf16 %v5969_v16, %v5968_v38  ;;  %v5964_v58 = vpack.c.bf16 %v5957_v41, %v5956_v39  ;;  %v5645_v40 = vadd.f32 %v13089_v48, %v13181_v29 }
 0x7fe   : > { %v10539_v35 = vpop.f32.mrb[207].mxu1 }
 0x7ff   : > { %v5790_v59 = vadd.f32 %v10537_v43, %v5629_v55  ;;  %v10540_v60 = vadd.f32 %v10539_v35, %v10538_v45  ;;  %6349 = vmatprep.mubr.bf16.mxu1 %v5976_v46  ;;  %v12058_v45 = vld [vmem:[%s14205_s1 + $0x3a0] sm:$0xff]  }
 0x800   : > { %6350 = vmatmul.mubr.bf16.vlgmr.msra.gmra.mrb[0].mxu1 %v5964_v58  ;;  %v12059_v58 = vld [vmem:[%s14205_s1 + $0x3e8] sm:$0xff]  }
 0x801   : > { %v5898_v6 = vmax.f32 %v5790_v59, 0.0  ;;  %v5793_v30 = vadd.f32 %v10540_v60, %v5632_v54  ;;  %10678 = vmatpush3.bf16.msra.mxu1 %v12050_v50  ;;  %v5648_v50 = vadd.f32 %v13091_v53, %v13181_v29  ;;  %v12060_v59 = vld [vmem:[%s14205_s1 + $0x3a8] sm:$0xff]   ;;  %v12061_v60 = vld [vmem:[%s14205_s1 + $0x3f0] sm:$0xff]  }
 0x802   : > { %10679 = vmatprep.subr.bf16.mxu1 %v12051_v52 }
 0x803   : > { %5930 = vst [vmem:[#allocation2 + $0x30] sm:$0xff] %v5898_v6  ;;  %v5899_v3 = vmax.f32 %v5793_v30, 0.0  ;;  %v10541_v33 = vpop.f32.mrb[208].mxu1 }
 0x804   : > { %v10542_v12 = vpop.f32.mrb[209].mxu1  ;;  %v5970_v34 = vld [vmem:[#allocation2 + $0x21] ss:$2 sm:$0xff]  ;;  %v5958_v36 = vld [vmem:[#allocation2 + $0x20] ss:$2 sm:$0xff] }
 0x805   : > { %5931 = vst [vmem:[#allocation2 + $0x38] sm:$0xff] %v5899_v3  ;;  %v10543_v8 = vadd.f32 %v10542_v12, %v10541_v33  ;;  %v10544_v9 = vpop.f32.mrb[210].mxu1  ;;  %10680 = vmatpush3.bf16.msra.mxu1 %v12052_v62  ;;  %v5653_v62 = vadd.f32 %v13099_v7, %v13181_v29  ;;  %v12062_v33 = vld [vmem:[%s14205_s1 + $0x3b0] sm:$0xff]  }
 0x806   : > { %v10545_v13 = vpop.f32.mrb[211].mxu1  ;;  %10681 = vmatprep.subr.bf16.mxu1 %v12053_v0 }
 0x807   : > { %v5798_v18 = vadd.f32 %v10543_v8, %v5637_v4  ;;  %v10546_v19 = vadd.f32 %v10545_v13, %v10544_v9  ;;  %v12063_v4 = vld [vmem:[%s14205_s1 + $0x3f8] sm:$0xff]   ;;  %v5656_v8 = vadd.f32 %v13101_v14, %v13181_v29  ;;  %v5661_v14 = vadd.f32 %v13109_v31, %v13181_v29 }
 0x809   : > { %v5900_v25 = vmax.f32 %v5798_v18, 0.0  ;;  %v5801_v21 = vadd.f32 %v10546_v19, %v5640_v44  ;;  %10682 = vmatpush3.bf16.msra.mxu1 %v12054_v10 }
 0x80a   : > { %10683 = vmatprep.subr.bf16.mxu1 %v12055_v15  ;;  %v12064_v15 = vld [vmem:[%s14205_s1 + $0x3b8] sm:$0xff]  }
 0x80b   : > { %5932 = vst [vmem:[#allocation2 + $0x40] sm:$0xff] %v5900_v25  ;;  %v5901_v24 = vmax.f32 %v5801_v21, 0.0  ;;  %v10547_v27 = vpop.f32.mrb[212].mxu1 }
 0x80c   : > { %v10548_v32 = vpop.f32.mrb[213].mxu1  ;;  %v5971_v38 = vld [vmem:[#allocation2 + $0x31] ss:$2 sm:$0xff]  ;;  %v5959_v39 = vld [vmem:[#allocation2 + $0x30] ss:$2 sm:$0xff] }
 0x80d   : > { %5933 = vst [vmem:[#allocation2 + $0x48] sm:$0xff] %v5901_v24  ;;  %v10549_v16 = vadd.f32 %v10548_v32, %v10547_v27  ;;  %v10550_v41 = vpop.f32.mrb[214].mxu1  ;;  %v5977_v55 = vpack.c.bf16 %v5971_v38, %v5970_v34  ;;  %v5965_v43 = vpack.c.bf16 %v5959_v39, %v5958_v36  ;;  %10684 = vmatpush3.bf16.msra.mxu1 %v12056_v22 }
 0x80e   : > { %v10551_v46 = vpop.f32.mrb[215].mxu1  ;;  %10685 = vmatprep.subr.bf16.mxu1 %v12057_v47  ;;  %v5664_v38 = vadd.f32 %v13111_v1, %v13181_v29  ;;  %v5672_v1 = vadd.f32 %v13121_v63, %v13181_v29 }
 0x80f   : > { %v5806_v48 = vadd.f32 %v10549_v16, %v5645_v40  ;;  %v10552_v35 = vadd.f32 %v10551_v46, %v10550_v41  ;;  %6357 = vmatprep.mubr.bf16.mxu1 %v5977_v55 }
 0x810   : > { %6358 = vmatmul.mubr.bf16.gmra.mrb[4].mxu1 %v5965_v43 }
 0x811   : > { %v5902_v52 = vmax.f32 %v5806_v48, 0.0  ;;  %v5809_v54 = vadd.f32 %v10552_v35, %v5648_v50  ;;  %10686 = vmatpush3.bf16.msra.mxu1 %v12058_v45  ;;  %v5669_v45 = vadd.f32 %v13119_v56, %v13181_v29  ;;  %v5677_v56 = vadd.f32 %v13147_v26, %v13181_v29 }
 0x812   : > { %10687 = vmatprep.subr.bf16.mxu1 %v12059_v58  ;;  %v5685_v26 = vadd.f32 %v13151_v42, %v13181_v29  ;;  %v5693_v42 = vadd.f32 %v13155_v51, %v13181_v29  ;;  %v5701_v51 = vadd.f32 %v13159_v61, %v13181_v29  ;;  %v5709_v61 = vadd.f32 %v13163_v5, %v13181_v29 }
 0x813   : > { %5934 = vst [vmem:[#allocation2 + $0x50] sm:$0xff] %v5902_v52  ;;  %v5903_v6 = vmax.f32 %v5809_v54, 0.0  ;;  %v10553_v30 = vpop.f32.mrb[216].mxu1  ;;  %v5717_v5 = vadd.f32 %v13170_v17, %v13181_v29  ;;  %v5725_v17 = vadd.f32 %v13174_v23, %v13181_v29  ;;  %v5993_v23 = vld [vmem:[#allocation2 + $0x13] ss:$2 sm:$0xff] }
 0x814   : > { %v10554_v53 = vpop.f32.mrb[217].mxu1  ;;  %v5972_v19 = vld [vmem:[#allocation2 + $0x41] ss:$2 sm:$0xff]  ;;  %v5960_v25 = vld [vmem:[#allocation2 + $0x40] ss:$2 sm:$0xff] }
 0x815   : > { %5935 = vst [vmem:[#allocation2 + $0x58] sm:$0xff] %v5903_v6  ;;  %v10555_v0 = vadd.f32 %v10554_v53, %v10553_v30  ;;  %v10556_v3 = vpop.f32.mrb[218].mxu1  ;;  %10688 = vmatpush3.bf16.msra.mxu1 %v12060_v59 }
 0x816   : > { %v10557_v12 = vpop.f32.mrb[219].mxu1  ;;  %10689 = vmatprep.subr.bf16.mxu1 %v12061_v60 }
 0x817   : > { %v5814_v9 = vadd.f32 %v10555_v0, %v5653_v62  ;;  %v10558_v10 = vadd.f32 %v10557_v12, %v10556_v3 }
 0x819   : > { %v5904_v7 = vmax.f32 %v5814_v9, 0.0  ;;  %v5817_v13 = vadd.f32 %v10558_v10, %v5656_v8  ;;  %10690 = vmatpush3.bf16.msra.mxu1 %v12062_v33  ;;  %v5680_v8 = vadd.f32 %v13149_v37, %v13181_v29  ;;  %v5688_v37 = vadd.f32 %v13153_v49, %v13181_v29 }
 0x81a   : > { %10691 = vmatprep.subr.bf16.mxu1 %v12063_v4 }
 0x81b   : > { %5936 = vst [vmem:[#allocation2 + $0x60] sm:$0xff] %v5904_v7  ;;  %v5905_v44 = vmax.f32 %v5817_v13, 0.0  ;;  %v10559_v18 = vpop.f32.mrb[220].mxu1 }
 0x81c   : > { %v10560_v21 = vpop.f32.mrb[221].mxu1  ;;  %v5973_v22 = vld [vmem:[#allocation2 + $0x51] ss:$2 sm:$0xff]  ;;  %v5961_v47 = vld [vmem:[#allocation2 + $0x50] ss:$2 sm:$0xff] }
 0x81d   : > { %5937 = vst [vmem:[#allocation2 + $0x68] sm:$0xff] %v5905_v44  ;;  %v10561_v24 = vadd.f32 %v10560_v21, %v10559_v18  ;;  %v10562_v27 = vpop.f32.mrb[222].mxu1  ;;  %v5978_v34 = vpack.c.bf16 %v5973_v22, %v5972_v19  ;;  %v5966_v36 = vpack.c.bf16 %v5961_v47, %v5960_v25  ;;  %10692 = vmatpush3.bf16.msra.mxu1 %v12064_v15 }
 0x81e   : > { %v10563_v32 = vpop.f32.mrb[223].mxu1 }
 0x81f   : > { %v5822_v39 = vadd.f32 %v10561_v24, %v5661_v14  ;;  %v10564_v40 = vadd.f32 %v10563_v32, %v10562_v27  ;;  %6365 = vmatprep.mubr.bf16.mxu1 %v5978_v34 }
 0x820   : > { %6366 = vmatmul.mubr.bf16.gmra.mrb[8].mxu1 %v5966_v36 }
 0x821   : > { %v5906_v16 = vmax.f32 %v5822_v39, 0.0  ;;  %v5825_v41 = vadd.f32 %v10564_v40, %v5664_v38 }
 0x823   : > { %5938 = vst [vmem:[#allocation2 + $0x70] sm:$0xff] %v5906_v16  ;;  %v5907_v55 = vmax.f32 %v5825_v41, 0.0  ;;  %v10565_v43 = vpop.f32.mrb[224].mxu1 }
 0x824   : > { %v10566_v31 = vpop.f32.mrb[225].mxu1  ;;  %v5974_v6 = vld [vmem:[#allocation2 + $0x61] ss:$2 sm:$0xff]  ;;  %v5962_v30 = vld [vmem:[#allocation2 + $0x60] ss:$2 sm:$0xff] }
 0x825   : > { %5939 = vst [vmem:[#allocation2 + $0x78] sm:$0xff] %v5907_v55  ;;  %v10567_v46 = vadd.f32 %v10566_v31, %v10565_v43  ;;  %v10568_v58 = vpop.f32.mrb[226].mxu1  ;;  %v5696_v31 = vadd.f32 %v13157_v57, %v13181_v29  ;;  %v5704_v57 = vadd.f32 %v13161_v2, %v13181_v29 }
 0x826   : > { %v10569_v50 = vpop.f32.mrb[227].mxu1 }
 0x827   : > { %v5830_v48 = vadd.f32 %v10567_v46, %v5669_v45  ;;  %v10570_v35 = vadd.f32 %v10569_v50, %v10568_v58 }
 0x829   : > { %v5908_v52 = vmax.f32 %v5830_v48, 0.0  ;;  %v5833_v54 = vadd.f32 %v10570_v35, %v5672_v1 }
 0x82b   : > { %5940 = vst [vmem:[#allocation2 + $0x208] sm:$0xff] %v5908_v52  ;;  %v5909_v59 = vmax.f32 %v5833_v54, 0.0  ;;  %v10571_v60 = vpop.f32.mrb[228].mxu1 }
 0x82c   : > { %v10572_v53 = vpop.f32.mrb[229].mxu1  ;;  %v5975_v62 = vld [vmem:[#allocation2 + $0x71] ss:$2 sm:$0xff]  ;;  %v5963_v0 = vld [vmem:[#allocation2 + $0x70] ss:$2 sm:$0xff] }
 0x82d   : > { %5941 = vst [vmem:[#allocation2 + $0x210] sm:$0xff] %v5909_v59  ;;  %v10573_v3 = vadd.f32 %v10572_v53, %v10571_v60  ;;  %v10574_v33 = vpop.f32.mrb[230].mxu1  ;;  %v5979_v12 = vpack.c.bf16 %v5975_v62, %v5974_v6  ;;  %v5967_v63 = vpack.c.bf16 %v5963_v0, %v5962_v30 }
 0x82e   : > { %v10575_v4 = vpop.f32.mrb[231].mxu1 }
 0x82f   : > { %v5838_v9 = vadd.f32 %v10573_v3, %v5677_v56  ;;  %v10576_v10 = vadd.f32 %v10575_v4, %v10574_v33  ;;  %6373 = vmatprep.mubr.bf16.mxu1 %v5979_v12 }
 0x830   : > { %6374 = vmatmul.mubr.bf16.gmra.mrb[12].mxu1 %v5967_v63 }
 0x831   : > { %v5910_v7 = vmax.f32 %v5838_v9, 0.0  ;;  %v5841_v13 = vadd.f32 %v10576_v10, %v5680_v8 }
 0x833   : > { %5942 = vst [vmem:[#allocation2 + $0x218] sm:$0xff] %v5910_v7  ;;  %v5911_v15 = vmax.f32 %v5841_v13, 0.0  ;;  %v10577_v44 = vpop.f32.mrb[232].mxu1  ;;  %v5712_v7 = vadd.f32 %v13168_v11, %v13181_v29  ;;  %v5720_v11 = vadd.f32 %v13172_v20, %v13181_v29 }
 0x834   : > { %v10578_v18 = vpop.f32.mrb[233].mxu1  ;;  %v6016_v36 = vld [vmem:[#allocation2 + $0x209] ss:$2 sm:$0xff]  ;;  %v6004_v32 = vld [vmem:[#allocation2 + $0x208] ss:$2 sm:$0xff] }
 0x835   : > { %5943 = vst [vmem:[#allocation2 + $0x220] sm:$0xff] %v5911_v15  ;;  %v10579_v19 = vadd.f32 %v10578_v18, %v10577_v44  ;;  %v10580_v25 = vpop.f32.mrb[234].mxu1 }
 0x836   : > { %v10581_v21 = vpop.f32.mrb[235].mxu1 }
 0x837   : > { %v5846_v22 = vadd.f32 %v10579_v19, %v5685_v26  ;;  %v10582_v47 = vadd.f32 %v10581_v21, %v10580_v25 }
 0x839   : > { %v5912_v14 = vmax.f32 %v5846_v22, 0.0  ;;  %v5849_v24 = vadd.f32 %v10582_v47, %v5688_v37 }
 0x83b   : > { %5944 = vst [vmem:[#allocation2 + $0x228] sm:$0xff] %v5912_v14  ;;  %v5913_v27 = vmax.f32 %v5849_v24, 0.0  ;;  %v10583_v34 = vpop.f32.mrb[236].mxu1 }
 0x83c   : > { %v10584_v38 = vpop.f32.mrb[237].mxu1  ;;  %v6017_v39 = vld [vmem:[#allocation2 + $0x219] ss:$2 sm:$0xff]  ;;  %v6005_v40 = vld [vmem:[#allocation2 + $0x218] ss:$2 sm:$0xff] }
 0x83d   : > { %5945 = vst [vmem:[#allocation2 + $0x230] sm:$0xff] %v5913_v27  ;;  %v10585_v16 = vadd.f32 %v10584_v38, %v10583_v34  ;;  %v10586_v41 = vpop.f32.mrb[238].mxu1  ;;  %v6024_v55 = vpack.c.bf16 %v6017_v39, %v6016_v36  ;;  %v6012_v49 = vpack.c.bf16 %v6005_v40, %v6004_v32 }
 0x83e   : > { %v10587_v43 = vpop.f32.mrb[239].mxu1 }
 0x83f   : > { %v5854_v45 = vadd.f32 %v10585_v16, %v5693_v42  ;;  %v10588_v46 = vadd.f32 %v10587_v43, %v10586_v41  ;;  %6381 = vmatprep.mubr.bf16.mxu1 %v6024_v55  ;;  %v5728_v43 = vadd.f32 %v13176_v28, %v13181_v29  ;;  %v5981_v28 = vld [vmem:[#allocation2 + $0x12] ss:$2 sm:$0xff]  ;;  %v5995_v29 = vld [vmem:[#allocation2 + $0x33] ss:$2 sm:$0xff] }
 0x840   : > { %6382 = vmatmul.mubr.bf16.gmra.mrb[16].mxu1 %v6012_v49 }
 0x841   : > { %v5914_v58 = vmax.f32 %v5854_v45, 0.0  ;;  %v5857_v50 = vadd.f32 %v10588_v46, %v5696_v31 }
 0x843   : > { %5946 = vst [vmem:[#allocation2 + $0x238] sm:$0xff] %v5914_v58  ;;  %v5915_v1 = vmax.f32 %v5857_v50, 0.0  ;;  %v10589_v48 = vpop.f32.mrb[240].mxu1 }
 0x844   : > { %v10590_v35 = vpop.f32.mrb[241].mxu1  ;;  %v6018_v56 = vld [vmem:[#allocation2 + $0x229] ss:$2 sm:$0xff]  ;;  %v6006_v3 = vld [vmem:[#allocation2 + $0x228] ss:$2 sm:$0xff] }
 0x845   : > { %5947 = vst [vmem:[#allocation2 + $0x240] sm:$0xff] %v5915_v1  ;;  %v10591_v52 = vadd.f32 %v10590_v35, %v10589_v48  ;;  %v10592_v54 = vpop.f32.mrb[242].mxu1 }
 0x846   : > { %v10593_v59 = vpop.f32.mrb[243].mxu1 }
 0x847   : > { %v5862_v60 = vadd.f32 %v10591_v52, %v5701_v51  ;;  %v10594_v6 = vadd.f32 %v10593_v59, %v10592_v54  ;;  %v5992_v59 = vld [vmem:[#allocation2 + $0x3] ss:$2 sm:$0xff] }
 0x849   : > { %v5916_v30 = vmax.f32 %v5862_v60, 0.0  ;;  %v5865_v53 = vadd.f32 %v10594_v6, %v5704_v57  ;;  %v6000_v57 = vpack.c.bf16 %v5993_v23, %v5992_v59  ;;  %v5980_v60 = vld [vmem:[#allocation2 + $0x2] ss:$2 sm:$0xff] }
 0x84a   : > { %v5988_v6 = vpack.c.bf16 %v5981_v28, %v5980_v60  ;;  %v12076_v59 = vld [vmem:[%s14205_s1 + $0x428] sm:$0xff]   ;;  %v12078_v28 = vld [vmem:[%s14205_s1 + $0x430] sm:$0xff]   ;;  %v12079_v60 = vld [vmem:[%s14205_s1 + $0x478] sm:$0xff]  }
 0x84b   : > { %5948 = vst [vmem:[#allocation2 + $0x248] sm:$0xff] %v5916_v30  ;;  %v5917_v62 = vmax.f32 %v5865_v53, 0.0  ;;  %v10595_v0 = vpop.f32.mrb[244].mxu1  ;;  %v5994_v30 = vld [vmem:[#allocation2 + $0x23] ss:$2 sm:$0xff] }
 0x84c   : > { %v10596_v33 = vpop.f32.mrb[245].mxu1  ;;  %v6019_v12 = vld [vmem:[#allocation2 + $0x239] ss:$2 sm:$0xff]  ;;  %v6007_v63 = vld [vmem:[#allocation2 + $0x238] ss:$2 sm:$0xff]  ;;  %v6001_v53 = vpack.c.bf16 %v5995_v29, %v5994_v30  ;;  %v12080_v30 = vld [vmem:[%s14205_s1 + $0x438] sm:$0xff]  }
 0x84d   : > { %5949 = vst [vmem:[#allocation2 + $0x250] sm:$0xff] %v5917_v62  ;;  %v10597_v4 = vadd.f32 %v10596_v33, %v10595_v0  ;;  %v10598_v8 = vpop.f32.mrb[246].mxu1  ;;  %v6025_v9 = vpack.c.bf16 %v6019_v12, %v6018_v56  ;;  %v6013_v2 = vpack.c.bf16 %v6007_v63, %v6006_v3  ;;  %v5983_v62 = vld [vmem:[#allocation2 + $0x32] ss:$2 sm:$0xff]  ;;  %v5997_v0 = vld [vmem:[#allocation2 + $0x53] ss:$2 sm:$0xff] }
 0x84e   : > { %v10599_v10 = vpop.f32.mrb[247].mxu1  ;;  %v5982_v56 = vld [vmem:[#allocation2 + $0x22] ss:$2 sm:$0xff]  ;;  %v5996_v33 = vld [vmem:[#allocation2 + $0x43] ss:$2 sm:$0xff] }
 0x84f   : > { %v5870_v13 = vadd.f32 %v10597_v4, %v5709_v61  ;;  %v10600_v15 = vadd.f32 %v10599_v10, %v10598_v8  ;;  %6389 = vmatprep.mubr.bf16.mxu1 %v6025_v9  ;;  %v5989_v3 = vpack.c.bf16 %v5983_v62, %v5982_v56  ;;  %v6002_v12 = vpack.c.bf16 %v5997_v0, %v5996_v33  ;;  %v5985_v63 = vld [vmem:[#allocation2 + $0x52] ss:$2 sm:$0xff]  ;;  %v5999_v61 = vld [vmem:[#allocation2 + $0x73] ss:$2 sm:$0xff]  ;;  %v5984_v4 = vld [vmem:[#allocation2 + $0x42] ss:$2 sm:$0xff] }
 0x850   : > { %6390 = vmatmul.mubr.bf16.gmra.mrb[20].mxu1 %v6013_v2  ;;  %v5990_v8 = vpack.c.bf16 %v5985_v63, %v5984_v4  ;;  %v5998_v9 = vld [vmem:[#allocation2 + $0x63] ss:$2 sm:$0xff]  ;;  %v5987_v10 = vld [vmem:[#allocation2 + $0x72] ss:$2 sm:$0xff] }
 0x851   : > { %v5918_v44 = vmax.f32 %v5870_v13, 0.0  ;;  %v5873_v18 = vadd.f32 %v10600_v15, %v5712_v7  ;;  %v6003_v2 = vpack.c.bf16 %v5999_v61, %v5998_v9  ;;  %v6041_v7 = vld [vmem:[#allocation2 + $0x21b] ss:$2 sm:$0xff]  ;;  %v5986_v13 = vld [vmem:[#allocation2 + $0x62] ss:$2 sm:$0xff] }
 0x852   : > { %v5991_v15 = vpack.c.bf16 %v5987_v10, %v5986_v13 }
 0x853   : > { %5950 = vst [vmem:[#allocation2 + $0x258] sm:$0xff] %v5918_v44  ;;  %v5919_v26 = vmax.f32 %v5873_v18, 0.0  ;;  %v10601_v19 = vpop.f32.mrb[248].mxu1  ;;  %v6040_v44 = vld [vmem:[#allocation2 + $0x20b] ss:$2 sm:$0xff] }
 0x854   : > { %v10602_v25 = vpop.f32.mrb[249].mxu1  ;;  %v6020_v32 = vld [vmem:[#allocation2 + $0x249] ss:$2 sm:$0xff]  ;;  %v6008_v38 = vld [vmem:[#allocation2 + $0x248] ss:$2 sm:$0xff]  ;;  %v6048_v18 = vpack.c.bf16 %v6041_v7, %v6040_v44 }
 0x855   : > { %5951 = vst [vmem:[#allocation2 + $0x260] sm:$0xff] %v5919_v26  ;;  %v10603_v21 = vadd.f32 %v10602_v25, %v10601_v19  ;;  %v10604_v37 = vpop.f32.mrb[250].mxu1  ;;  %v6029_v26 = vld [vmem:[#allocation2 + $0x21a] ss:$2 sm:$0xff]  ;;  %v6043_v19 = vld [vmem:[#allocation2 + $0x23b] ss:$2 sm:$0xff] }
 0x856   : > { %v10605_v22 = vpop.f32.mrb[251].mxu1  ;;  %v6028_v25 = vld [vmem:[#allocation2 + $0x20a] ss:$2 sm:$0xff] }
 0x857   : > { %v5878_v47 = vadd.f32 %v10603_v21, %v5717_v5  ;;  %v10606_v14 = vadd.f32 %v10605_v22, %v10604_v37  ;;  %v6036_v5 = vpack.c.bf16 %v6029_v26, %v6028_v25  ;;  %v6042_v21 = vld [vmem:[#allocation2 + $0x22b] ss:$2 sm:$0xff]  ;;  %v6031_v22 = vld [vmem:[#allocation2 + $0x23a] ss:$2 sm:$0xff] }
 0x858   : > { %v6049_v37 = vpack.c.bf16 %v6043_v19, %v6042_v21  ;;  %v12097_v21 = vld [vmem:[%s14205_s1 + $0x640] sm:$0xff]  }
 0x859   : > { %v5920_v24 = vmax.f32 %v5878_v47, 0.0  ;;  %v5881_v27 = vadd.f32 %v10606_v14, %v5720_v11  ;;  %v6030_v47 = vld [vmem:[#allocation2 + $0x22a] ss:$2 sm:$0xff]  ;;  %10877 = vmatprep.subr.bf16.mxu0 %v12097_v21 }
 0x85a   : > { %v6037_v14 = vpack.c.bf16 %v6031_v22, %v6030_v47 }
 0x85b   : > { %5952 = vst [vmem:[#allocation2 + $0x268] sm:$0xff] %v5920_v24  ;;  %v5921_v34 = vmax.f32 %v5881_v27, 0.0  ;;  %v10607_v36 = vpop.f32.mrb[252].mxu1  ;;  %v6044_v24 = vld [vmem:[#allocation2 + $0x24b] ss:$2 sm:$0xff] }
 0x85c   : > { %v10608_v39 = vpop.f32.mrb[253].mxu1  ;;  %v6021_v40 = vld [vmem:[#allocation2 + $0x259] ss:$2 sm:$0xff]  ;;  %v6009_v42 = vld [vmem:[#allocation2 + $0x258] ss:$2 sm:$0xff] }
 0x85d   : > { %5953 = vst [vmem:[#allocation2 + $0x270] sm:$0xff] %v5921_v34  ;;  %v10609_v16 = vadd.f32 %v10608_v39, %v10607_v36  ;;  %v10610_v41 = vpop.f32.mrb[254].mxu1  ;;  %v6026_v55 = vpack.c.bf16 %v6021_v40, %v6020_v32  ;;  %v6014_v20 = vpack.c.bf16 %v6009_v42, %v6008_v38  ;;  %v6032_v32 = vld [vmem:[#allocation2 + $0x24a] ss:$2 sm:$0xff] }
 0x85e   : > { %v10611_v49 = vpop.f32.mrb[255].mxu1 }
 0x85f   : > { %v5886_v31 = vadd.f32 %v10609_v16, %v5725_v17  ;;  %v10612_v45 = vadd.f32 %v10611_v49, %v10610_v41  ;;  %6397 = vmatprep.mubr.bf16.mxu1 %v6026_v55  ;;  %v12065_v41 = vld [vmem:[%s14205_s1 + $0x440] sm:$0xff]   ;;  %v12068_v49 = vld [vmem:[%s14205_s1 + $0x408] sm:$0xff]  }
 0x860   : > { %6398 = vmatmul.mubr.bf16.gmra.mrb[24].mxu1 %v6014_v20  ;;  %v12066_v55 = vld [vmem:[%s14205_s1 + $0x400] sm:$0xff]   ;;  %10741 = vmatprep.subr.bf16.mxu1 %v12065_v41  ;;  %v12067_v20 = vld [vmem:[%s14205_s1 + $0x448] sm:$0xff]   ;;  %v12102_v41 = vld [vmem:[%s14205_s1 + $0x610] sm:$0xff]  }
 0x861   : > { %v5922_v46 = vmax.f32 %v5886_v31, 0.0  ;;  %v5889_v58 = vadd.f32 %v10612_v45, %v5728_v43  ;;  %v12069_v43 = vld [vmem:[%s14205_s1 + $0x450] sm:$0xff]  }
 0x862   : > { %v6045_v11 = vld [vmem:[#allocation2 + $0x25b] ss:$2 sm:$0xff]  ;;  %v6033_v34 = vld [vmem:[#allocation2 + $0x25a] ss:$2 sm:$0xff] }
 0x863   : > { %5954 = vst [vmem:[#allocation2 + $0x278] sm:$0xff] %v5922_v46  ;;  %v5923_v50 = vmax.f32 %v5889_v58, 0.0  ;;  %v6050_v27 = vpack.c.bf16 %v6045_v11, %v6044_v24  ;;  %v6038_v38 = vpack.c.bf16 %v6033_v34, %v6032_v32  ;;  %v12070_v31 = vld [vmem:[%s14205_s1 + $0x410] sm:$0xff]   ;;  %v12071_v46 = vld [vmem:[%s14205_s1 + $0x458] sm:$0xff]  }
 0x864   : > { %v6022_v1 = vld [vmem:[#allocation2 + $0x269] ss:$2 sm:$0xff]  ;;  %v6010_v35 = vld [vmem:[#allocation2 + $0x268] ss:$2 sm:$0xff] }
 0x865   : > { %5955 = vst [vmem:[#allocation2 + $0x280] sm:$0xff] %v5923_v50  ;;  %v12072_v50 = vld [vmem:[%s14205_s1 + $0x418] sm:$0xff]  }
 0x86a   : > { %v6046_v39 = vld [vmem:[#allocation2 + $0x26b] ss:$2 sm:$0xff]  ;;  %v6034_v17 = vld [vmem:[#allocation2 + $0x26a] ss:$2 sm:$0xff] }
 0x86c   : > { %v6023_v48 = vld [vmem:[#allocation2 + $0x279] ss:$2 sm:$0xff]  ;;  %v6011_v51 = vld [vmem:[#allocation2 + $0x278] ss:$2 sm:$0xff] }
 0x86d   : > { %v6027_v52 = vpack.c.bf16 %v6023_v48, %v6022_v1  ;;  %v6015_v54 = vpack.c.bf16 %v6011_v51, %v6010_v35  ;;  %v6047_v36 = vld [vmem:[#allocation2 + $0x27b] ss:$2 sm:$0xff]  ;;  %v6035_v42 = vld [vmem:[#allocation2 + $0x27a] ss:$2 sm:$0xff] }
 0x86e   : > { %v6051_v40 = vpack.c.bf16 %v6047_v36, %v6046_v39  ;;  %v6039_v16 = vpack.c.bf16 %v6035_v42, %v6034_v17  ;;  %v12073_v51 = vld [vmem:[%s14205_s1 + $0x460] sm:$0xff]   ;;  %v12099_v42 = vld [vmem:[%s14205_s1 + $0x648] sm:$0xff]  }
 0x86f   : > { %6405 = vmatprep.mubr.bf16.mxu1 %v6027_v52  ;;  %v12074_v52 = vld [vmem:[%s14205_s1 + $0x420] sm:$0xff]   ;;  %v12100_v17 = vld [vmem:[%s14205_s1 + $0x608] sm:$0xff]  }
 0x870   : > { %6406 = vmatmul.mubr.bf16.gmra.mrb[28].mxu1 %v6015_v54  ;;  %v12075_v54 = vld [vmem:[%s14205_s1 + $0x468] sm:$0xff]  }
 0x871   : > { %6446 = vmatprep.mubr.bf16.mxu1 %v6000_v57  ;;  %v12077_v57 = vld [vmem:[%s14205_s1 + $0x470] sm:$0xff]  }
 0x878   : > { %6447 = vmatmul.mubr.bf16.vlgmr.msra.gmra.mrb[32].mxu1 %v5988_v6 }
 0x879   : > { %6454 = vmatprep.mubr.bf16.mxu1 %v6001_v53  ;;  %10742 = vmatpush3.bf16.msra.mxu1 %v12066_v55 }
 0x87a   : > { %10743 = vmatprep.subr.bf16.mxu1 %v12067_v20 }
 0x87d   : > { %10744 = vmatpush3.bf16.msra.mxu1 %v12068_v49 }
 0x87e   : > { %10745 = vmatprep.subr.bf16.mxu1 %v12069_v43 }
 0x880   : > { %6455 = vmatmul.mubr.bf16.gmra.mrb[36].mxu1 %v5989_v3 }
 0x881   : > { %6462 = vmatprep.mubr.bf16.mxu1 %v6002_v12  ;;  %10746 = vmatpush3.bf16.msra.mxu1 %v12070_v31 }
 0x882   : > { %10747 = vmatprep.subr.bf16.mxu1 %v12071_v46  ;;  %v13396_v46 = vld [vmem:[%s14206_s2 + $0x3] ss:$0 sm:$0xff] }
 0x885   : > { %10748 = vmatpush3.bf16.msra.mxu1 %v12072_v50 }
 0x886   : > { %10749 = vmatprep.subr.bf16.mxu1 %v12073_v51 }
 0x888   : > { %6463 = vmatmul.mubr.bf16.gmra.mrb[40].mxu1 %v5990_v8  ;;  %v12081_v8 = vld [vmem:[%s14205_s1 + $0x4c0] sm:$0xff]  }
 0x889   : > { %6470 = vmatprep.mubr.bf16.mxu1 %v6003_v2  ;;  %10750 = vmatpush3.bf16.msra.mxu1 %v12074_v52 }
 0x88a   : > { %10751 = vmatprep.subr.bf16.mxu1 %v12075_v54 }
 0x88d   : > { %10752 = vmatpush3.bf16.msra.mxu1 %v12076_v59 }
 0x88e   : > { %10753 = vmatprep.subr.bf16.mxu1 %v12077_v57 }
 0x890   : > { %6471 = vmatmul.mubr.bf16.gmra.mrb[44].mxu1 %v5991_v15 }
 0x891   : > { %6478 = vmatprep.mubr.bf16.mxu1 %v6048_v18  ;;  %10754 = vmatpush3.bf16.msra.mxu1 %v12078_v28 }
 0x892   : > { %10755 = vmatprep.subr.bf16.mxu1 %v12079_v60 }
 0x895   : > { %10756 = vmatpush3.bf16.msra.mxu1 %v12080_v30 }
 0x896   : > { %10781 = vmatprep.subr.bf16.mxu1 %v12081_v8 }
 0x898   : > { %6479 = vmatmul.mubr.bf16.gmra.mrb[48].mxu1 %v6036_v5 }
 0x899   : > { %6486 = vmatprep.mubr.bf16.mxu1 %v6049_v37  ;;  %v12098_v37 = vld [vmem:[%s14205_s1 + $0x600] sm:$0xff]  }
 0x89a   : > { %10878 = vmatpush3.bf16.msra.mxu0 %v12098_v37 }
 0x89b   : > { %10879 = vmatprep.subr.bf16.mxu0 %v12099_v42 }
 0x89e   : > { %10880 = vmatpush3.bf16.msra.mxu0 %v12100_v17 }
 0x8a0   : > { %6487 = vmatmul.mubr.bf16.gmra.mrb[52].mxu1 %v6037_v14 }
 0x8a1   : > { %6494 = vmatprep.mubr.bf16.mxu1 %v6050_v27 }
 0x8a8   : > { %6495 = vmatmul.mubr.bf16.gmra.mrb[56].mxu1 %v6038_v38 }
 0x8a9   : > { %6502 = vmatprep.mubr.bf16.mxu1 %v6051_v40 }
 0x8b0   : > { %6503 = vmatmul.mubr.bf16.gmra.mrb[60].mxu1 %v6039_v16  ;;  %v12101_v16 = vld [vmem:[%s14205_s1 + $0x650] sm:$0xff]  }
 0x8b1   : > { %10881 = vmatprep.subr.bf16.mxu0 %v12101_v16  ;;  %v12082_v16 = vld [vmem:[%s14205_s1 + $0x480] sm:$0xff]  }
 0x8b2   : > { %10882 = vmatpush3.bf16.msra.mxu0 %v12102_v41 }
 0x8d3   : > { %v10629_v45 = vpop.f32.mrb[0].mxu1 }
 0x8d4   : > { %v10630_v58 = vpop.f32.mrb[1].mxu1 }
 0x8d5   : > { %v13316_v1 = vadd.f32 %v10630_v58, %v10629_v45  ;;  %v10632_v23 = vpop.f32.mrb[2].mxu1 }
 0x8d6   : > { %v10633_v48 = vpop.f32.mrb[3].mxu1 }
 0x8d7   : > { %v13318_v35 = vadd.f32 %v10633_v48, %v10632_v23  ;;  %v6352_v23 = vadd.f32 %v13316_v1, %v13396_v46 }
 0x8d9   : > { %v6355_v54 = vadd.f32 %v13318_v35, %v13396_v46 }
 0x8e3   : > { %v10635_v29 = vpop.f32.mrb[4].mxu1 }
 0x8e4   : > { %v10636_v6 = vpop.f32.mrb[5].mxu1 }
 0x8e5   : > { %v13344_v53 = vadd.f32 %v10636_v6, %v10635_v29  ;;  %v10638_v62 = vpop.f32.mrb[6].mxu1 }
 0x8e6   : > { %v10639_v0 = vpop.f32.mrb[7].mxu1 }
 0x8e7   : > { %v13346_v56 = vadd.f32 %v10639_v0, %v10638_v62  ;;  %v6360_v62 = vadd.f32 %v13344_v53, %v13396_v46 }
 0x8f3   : > { %v10641_v3 = vpop.f32.mrb[8].mxu1 }
 0x8f4   : > { %v10642_v33 = vpop.f32.mrb[9].mxu1 }
 0x8f5   : > { %v13348_v12 = vadd.f32 %v10642_v33, %v10641_v3  ;;  %v10644_v63 = vpop.f32.mrb[10].mxu1  ;;  %v6363_v33 = vadd.f32 %v13346_v56, %v13396_v46 }
 0x8f6   : > { %v10645_v61 = vpop.f32.mrb[11].mxu1 }
 0x8f7   : > { %v13350_v4 = vadd.f32 %v10645_v61, %v10644_v63 }
 0x903   : > { %v10647_v9 = vpop.f32.mrb[12].mxu1 }
 0x904   : > { %v10648_v2 = vpop.f32.mrb[13].mxu1 }
 0x905   : > { %v13355_v10 = vadd.f32 %v10648_v2, %v10647_v9  ;;  %v10650_v7 = vpop.f32.mrb[14].mxu1 }
 0x906   : > { %v10651_v13 = vpop.f32.mrb[15].mxu1 }
 0x907   : > { %v13357_v15 = vadd.f32 %v10651_v13, %v10650_v7  ;;  %v6368_v13 = vadd.f32 %v13348_v12, %v13396_v46  ;;  %v6376_v12 = vadd.f32 %v13355_v10, %v13396_v46 }
 0x913   : > { %v10653_v44 = vpop.f32.mrb[16].mxu1 }
 0x914   : > { %v10654_v18 = vpop.f32.mrb[17].mxu1 }
 0x915   : > { %v13359_v26 = vadd.f32 %v10654_v18, %v10653_v44  ;;  %v10656_v19 = vpop.f32.mrb[18].mxu1 }
 0x916   : > { %v10657_v25 = vpop.f32.mrb[19].mxu1 }
 0x917   : > { %v13361_v5 = vadd.f32 %v10657_v25, %v10656_v19  ;;  %v6371_v19 = vadd.f32 %v13350_v4, %v13396_v46 }
 0x923   : > { %v10659_v22 = vpop.f32.mrb[20].mxu1 }
 0x924   : > { %v10660_v11 = vpop.f32.mrb[21].mxu1 }
 0x925   : > { %v13369_v47 = vadd.f32 %v10660_v11, %v10659_v22  ;;  %v10662_v14 = vpop.f32.mrb[22].mxu1 }
 0x926   : > { %v10663_v24 = vpop.f32.mrb[23].mxu1 }
 0x927   : > { %v13371_v27 = vadd.f32 %v10663_v24, %v10662_v14 }
 0x933   : > { %v10665_v34 = vpop.f32.mrb[24].mxu1 }
 0x934   : > { %v10666_v36 = vpop.f32.mrb[25].mxu1 }
 0x935   : > { %v13373_v32 = vadd.f32 %v10666_v36, %v10665_v34  ;;  %v10668_v38 = vpop.f32.mrb[26].mxu1 }
 0x936   : > { %v10669_v39 = vpop.f32.mrb[27].mxu1 }
 0x937   : > { %v13375_v40 = vadd.f32 %v10669_v39, %v10668_v38 }
 0x943   : > { %v10671_v55 = vpop.f32.mrb[28].mxu1 }
 0x944   : > { %v10672_v20 = vpop.f32.mrb[29].mxu1 }
 0x945   : > { %v13389_v49 = vadd.f32 %v10672_v20, %v10671_v55  ;;  %v10674_v43 = vpop.f32.mrb[30].mxu1  ;;  %v12083_v55 = vld [vmem:[%s14205_s1 + $0x4c8] sm:$0xff]   ;;  %v6379_v20 = vadd.f32 %v13357_v15, %v13396_v46 }
 0x946   : > { %v10675_v31 = vpop.f32.mrb[31].mxu1 }
 0x947   : > { %v13391_v45 = vadd.f32 %v10675_v31, %v10674_v43 }
 0x94b   : > { %v10693_v58 = vpop.f32.mrb[32].mxu1 }
 0x94c   : > { %v10694_v50 = vpop.f32.mrb[33].mxu1 }
 0x94d   : > { %v10695_v48 = vadd.f32 %v10694_v50, %v10693_v58  ;;  %v10696_v51 = vpop.f32.mrb[34].mxu1  ;;  %v12084_v50 = vld [vmem:[%s14205_s1 + $0x488] sm:$0xff]  }
 0x94e   : > { %v10697_v52 = vpop.f32.mrb[35].mxu1 }
 0x94f   : > { %v6449_v59 = vadd.f32 %v10695_v48, %v6352_v23  ;;  %v10698_v57 = vadd.f32 %v10697_v52, %v10696_v51  ;;  %v12085_v23 = vld [vmem:[%s14205_s1 + $0x4d0] sm:$0xff]   ;;  %v6384_v52 = vadd.f32 %v13359_v26, %v13396_v46 }
 0x951   : > { %v6511_v28 = vmax.f32 %v6449_v59, 0.0  ;;  %v6452_v29 = vadd.f32 %v10698_v57, %v6355_v54  ;;  %v12086_v57 = vld [vmem:[%s14205_s1 + $0x490] sm:$0xff]  }
 0x953   : > { %6527 = vst [vmem:[#allocation3] sm:$0xff] %v6511_v28  ;;  %v6512_v60 = vmax.f32 %v6452_v29, 0.0  ;;  %v10699_v6 = vpop.f32.mrb[36].mxu1  ;;  %v12087_v29 = vld [vmem:[%s14205_s1 + $0x4d8] sm:$0xff]  }
 0x954   : > { %v10700_v30 = vpop.f32.mrb[37].mxu1 }
 0x955   : > { %6528 = vst [vmem:[#allocation3 + $0x8] sm:$0xff] %v6512_v60  ;;  %v10701_v0 = vadd.f32 %v10700_v30, %v10699_v6  ;;  %v10702_v1 = vpop.f32.mrb[38].mxu1  ;;  %v6387_v60 = vadd.f32 %v13361_v5, %v13396_v46 }
 0x956   : > { %v10703_v3 = vpop.f32.mrb[39].mxu1 }
 0x957   : > { %v6457_v63 = vadd.f32 %v10701_v0, %v6360_v62  ;;  %v10704_v35 = vadd.f32 %v10703_v3, %v10702_v1  ;;  %v12088_v0 = vld [vmem:[%s14205_s1 + $0x498] sm:$0xff]   ;;  %v12089_v1 = vld [vmem:[%s14205_s1 + $0x4e0] sm:$0xff]  }
 0x959   : > { %v6513_v61 = vmax.f32 %v6457_v63, 0.0  ;;  %v6460_v8 = vadd.f32 %v10704_v35, %v6363_v33 }
 0x95b   : > { %6529 = vst [vmem:[#allocation3 + $0x10] sm:$0xff] %v6513_v61  ;;  %v6514_v9 = vmax.f32 %v6460_v8, 0.0  ;;  %v10705_v2 = vpop.f32.mrb[40].mxu1 }
 0x95c   : > { %v10706_v7 = vpop.f32.mrb[41].mxu1  ;;  %v6549_v14 = vld [vmem:[#allocation3 + $0x1] ss:$2 sm:$0xff]  ;;  %v6543_v24 = vld [vmem:[#allocation3] ss:$2 sm:$0xff] }
 0x95d   : > { %6530 = vst [vmem:[#allocation3 + $0x18] sm:$0xff] %v6514_v9  ;;  %v10707_v53 = vadd.f32 %v10706_v7, %v10705_v2  ;;  %v10708_v44 = vpop.f32.mrb[42].mxu1  ;;  %v6392_v9 = vadd.f32 %v13369_v47, %v13396_v46 }
 0x95e   : > { %v10709_v18 = vpop.f32.mrb[43].mxu1 }
 0x95f   : > { %v6465_v25 = vadd.f32 %v10707_v53, %v6368_v13  ;;  %v10710_v56 = vadd.f32 %v10709_v18, %v10708_v44  ;;  %v12090_v44 = vld [vmem:[%s14205_s1 + $0x4a0] sm:$0xff]  }
 0x961   : > { %v6515_v21 = vmax.f32 %v6465_v25, 0.0  ;;  %v6468_v37 = vadd.f32 %v10710_v56, %v6371_v19  ;;  %v12091_v19 = vld [vmem:[%s14205_s1 + $0x4e8] sm:$0xff]   ;;  %v6395_v25 = vadd.f32 %v13371_v27, %v13396_v46 }
 0x963   : > { %6531 = vst [vmem:[#allocation3 + $0x20] sm:$0xff] %v6515_v21  ;;  %v6516_v22 = vmax.f32 %v6468_v37, 0.0  ;;  %v10711_v11 = vpop.f32.mrb[44].mxu1 }
 0x964   : > { %v10712_v34 = vpop.f32.mrb[45].mxu1  ;;  %v6550_v36 = vld [vmem:[#allocation3 + $0x11] ss:$2 sm:$0xff]  ;;  %v6544_v38 = vld [vmem:[#allocation3 + $0x10] ss:$2 sm:$0xff] }
 0x965   : > { %6532 = vst [vmem:[#allocation3 + $0x28] sm:$0xff] %v6516_v22  ;;  %v10713_v39 = vadd.f32 %v10712_v34, %v10711_v11  ;;  %v10714_v42 = vpop.f32.mrb[46].mxu1  ;;  %v6553_v17 = vpack.c.bf16 %v6550_v36, %v6549_v14  ;;  %v6547_v4 = vpack.c.bf16 %v6544_v38, %v6543_v24  ;;  %v12092_v22 = vld [vmem:[%s14205_s1 + $0x4a8] sm:$0xff]   ;;  %v12093_v11 = vld [vmem:[%s14205_s1 + $0x4f0] sm:$0xff]   ;;  %v6400_v34 = vadd.f32 %v13373_v32, %v13396_v46 }
 0x966   : > { %v10715_v41 = vpop.f32.mrb[47].mxu1 }
 0x967   : > { %v6473_v43 = vadd.f32 %v10713_v39, %v6376_v12  ;;  %v10716_v31 = vadd.f32 %v10715_v41, %v10714_v42  ;;  %6888 = vmatprep.mubr.bf16.mxu1 %v6553_v17  ;;  %v12094_v12 = vld [vmem:[%s14205_s1 + $0x4b0] sm:$0xff]   ;;  %v12095_v42 = vld [vmem:[%s14205_s1 + $0x4f8] sm:$0xff]   ;;  %v6403_v17 = vadd.f32 %v13375_v40, %v13396_v46  ;;  %v6408_v40 = vadd.f32 %v13389_v49, %v13396_v46 }
 0x968   : > { %6889 = vmatmul.mubr.bf16.vlgmr.msra.gmra.mrb[64].mxu1 %v6547_v4 }
 0x969   : > { %v6517_v10 = vmax.f32 %v6473_v43, 0.0  ;;  %v6476_v58 = vadd.f32 %v10716_v31, %v6379_v20  ;;  %10782 = vmatpush3.bf16.msra.mxu1 %v12082_v16 }
 0x96a   : > { %10783 = vmatprep.subr.bf16.mxu1 %v12083_v55  ;;  %v12096_v55 = vld [vmem:[%s14205_s1 + $0x4b8] sm:$0xff]  }
 0x96b   : > { %6533 = vst [vmem:[#allocation3 + $0x30] sm:$0xff] %v6517_v10  ;;  %v6518_v48 = vmax.f32 %v6476_v58, 0.0  ;;  %v10717_v51 = vpop.f32.mrb[48].mxu1 }
 0x96c   : > { %v10718_v15 = vpop.f32.mrb[49].mxu1  ;;  %v6551_v63 = vld [vmem:[#allocation3 + $0x21] ss:$2 sm:$0xff]  ;;  %v6545_v35 = vld [vmem:[#allocation3 + $0x20] ss:$2 sm:$0xff] }
 0x96d   : > { %6534 = vst [vmem:[#allocation3 + $0x38] sm:$0xff] %v6518_v48  ;;  %v10719_v54 = vadd.f32 %v10718_v15, %v10717_v51  ;;  %v10720_v59 = vpop.f32.mrb[50].mxu1  ;;  %10784 = vmatpush3.bf16.msra.mxu1 %v12084_v50 }
 0x96e   : > { %v10721_v28 = vpop.f32.mrb[51].mxu1  ;;  %10785 = vmatprep.subr.bf16.mxu1 %v12085_v23 }
 0x96f   : > { %v6481_v6 = vadd.f32 %v10719_v54, %v6384_v52  ;;  %v10722_v30 = vadd.f32 %v10721_v28, %v10720_v59  ;;  %v6411_v59 = vadd.f32 %v13391_v45, %v13396_v46  ;;  %v6556_v45 = vld [vmem:[#allocation3 + $0x12] ss:$2 sm:$0xff] }
 0x971   : > { %v6519_v26 = vmax.f32 %v6481_v6, 0.0  ;;  %v6484_v62 = vadd.f32 %v10722_v30, %v6387_v60  ;;  %10786 = vmatpush3.bf16.msra.mxu1 %v12086_v57  ;;  %v6562_v30 = vld [vmem:[#allocation3 + $0x13] ss:$2 sm:$0xff] }
 0x972   : > { %10787 = vmatprep.subr.bf16.mxu1 %v12087_v29 }
 0x973   : > { %6535 = vst [vmem:[#allocation3 + $0x208] sm:$0xff] %v6519_v26  ;;  %v6520_v3 = vmax.f32 %v6484_v62, 0.0  ;;  %v10723_v33 = vpop.f32.mrb[52].mxu1 }
 0x974   : > { %v10724_v5 = vpop.f32.mrb[53].mxu1  ;;  %v6552_v61 = vld [vmem:[#allocation3 + $0x31] ss:$2 sm:$0xff]  ;;  %v6546_v8 = vld [vmem:[#allocation3 + $0x30] ss:$2 sm:$0xff] }
 0x975   : > { %6536 = vst [vmem:[#allocation3 + $0x210] sm:$0xff] %v6520_v3  ;;  %v10725_v2 = vadd.f32 %v10724_v5, %v10723_v33  ;;  %v10726_v7 = vpop.f32.mrb[54].mxu1  ;;  %v6554_v13 = vpack.c.bf16 %v6552_v61, %v6551_v63  ;;  %v6548_v53 = vpack.c.bf16 %v6546_v8, %v6545_v35  ;;  %10788 = vmatpush3.bf16.msra.mxu1 %v12088_v0  ;;  %v6561_v33 = vld [vmem:[#allocation3 + $0x3] ss:$2 sm:$0xff]  ;;  %v6564_v46 = vld [vmem:[#allocation3 + $0x33] ss:$2 sm:$0xff] }
 0x976   : > { %v10727_v18 = vpop.f32.mrb[55].mxu1  ;;  %10789 = vmatprep.subr.bf16.mxu1 %v12089_v1  ;;  %v6565_v63 = vpack.c.bf16 %v6562_v30, %v6561_v33  ;;  %v6555_v35 = vld [vmem:[#allocation3 + $0x2] ss:$2 sm:$0xff]  ;;  %v6563_v61 = vld [vmem:[#allocation3 + $0x23] ss:$2 sm:$0xff] }
 0x977   : > { %v6489_v47 = vadd.f32 %v10725_v2, %v6392_v9  ;;  %v10728_v56 = vadd.f32 %v10727_v18, %v10726_v7  ;;  %6896 = vmatprep.mubr.bf16.mxu1 %v6554_v13  ;;  %v6559_v5 = vpack.c.bf16 %v6556_v45, %v6555_v35  ;;  %v6566_v8 = vpack.c.bf16 %v6564_v46, %v6563_v61  ;;  %v6558_v9 = vld [vmem:[#allocation3 + $0x32] ss:$2 sm:$0xff]  ;;  %v6557_v7 = vld [vmem:[#allocation3 + $0x22] ss:$2 sm:$0xff] }
 0x978   : > { %6897 = vmatmul.mubr.bf16.gmra.mrb[68].mxu1 %v6548_v53  ;;  %v6560_v13 = vpack.c.bf16 %v6558_v9, %v6557_v7 }
 0x979   : > { %v6521_v21 = vmax.f32 %v6489_v47, 0.0  ;;  %v6492_v37 = vadd.f32 %v10728_v56, %v6395_v25  ;;  %10790 = vmatpush3.bf16.msra.mxu1 %v12090_v44 }
 0x97a   : > { %10791 = vmatprep.subr.bf16.mxu1 %v12091_v19 }
 0x97b   : > { %6537 = vst [vmem:[#allocation3 + $0x218] sm:$0xff] %v6521_v21  ;;  %v6522_v14 = vmax.f32 %v6492_v37, 0.0  ;;  %v10729_v24 = vpop.f32.mrb[56].mxu1 }
 0x97c   : > { %v10730_v27 = vpop.f32.mrb[57].mxu1  ;;  %v6573_v31 = vld [vmem:[#allocation3 + $0x209] ss:$2 sm:$0xff]  ;;  %v6567_v10 = vld [vmem:[#allocation3 + $0x208] ss:$2 sm:$0xff] }
 0x97d   : > { %6538 = vst [vmem:[#allocation3 + $0x220] sm:$0xff] %v6522_v14  ;;  %v10731_v36 = vadd.f32 %v10730_v27, %v10729_v24  ;;  %v10732_v38 = vpop.f32.mrb[58].mxu1  ;;  %10792 = vmatpush3.bf16.msra.mxu1 %v12092_v22  ;;  %v12103_v14 = vld [vmem:[%s14205_s1 + $0x658] sm:$0xff]   ;;  %v12105_v27 = vld [vmem:[%s14205_s1 + $0x540] sm:$0xff]  }
 0x97e   : > { %v10733_v39 = vpop.f32.mrb[59].mxu1  ;;  %10793 = vmatprep.subr.bf16.mxu1 %v12093_v11  ;;  %v12104_v24 = vld [vmem:[%s14205_s1 + $0x618] sm:$0xff]   ;;  %10883 = vmatprep.subr.bf16.mxu0 %v12103_v14 }
 0x97f   : > { %v6497_v4 = vadd.f32 %v10731_v36, %v6400_v34  ;;  %v10734_v16 = vadd.f32 %v10733_v39, %v10732_v38  ;;  %10884 = vmatpush3.bf16.msra.mxu0 %v12104_v24  ;;  %v12106_v34 = vld [vmem:[%s14205_s1 + $0x500] sm:$0xff]   ;;  %v12107_v36 = vld [vmem:[%s14205_s1 + $0x548] sm:$0xff]   ;;  %v12110_v39 = vld [vmem:[%s14205_s1 + $0x510] sm:$0xff]  }
 0x980   : > { %v12108_v38 = vld [vmem:[%s14205_s1 + $0x508] sm:$0xff]  }
 0x981   : > { %v6523_v32 = vmax.f32 %v6497_v4, 0.0  ;;  %v6500_v41 = vadd.f32 %v10734_v16, %v6403_v17  ;;  %10794 = vmatpush3.bf16.msra.mxu1 %v12094_v12  ;;  %v12109_v12 = vld [vmem:[%s14205_s1 + $0x550] sm:$0xff]   ;;  %v12112_v17 = vld [vmem:[%s14205_s1 + $0x518] sm:$0xff]   ;;  %v12113_v4 = vld [vmem:[%s14205_s1 + $0x560] sm:$0xff]  }
 0x982   : > { %10795 = vmatprep.subr.bf16.mxu1 %v12095_v42  ;;  %v6585_v53 = vld [vmem:[#allocation3 + $0x20b] ss:$2 sm:$0xff]  ;;  %v6579_v25 = vld [vmem:[#allocation3 + $0x20a] ss:$2 sm:$0xff]  ;;  %v12111_v42 = vld [vmem:[%s14205_s1 + $0x558] sm:$0xff]  }
 0x983   : > { %6539 = vst [vmem:[#allocation3 + $0x228] sm:$0xff] %v6523_v32  ;;  %v6524_v20 = vmax.f32 %v6500_v41, 0.0  ;;  %v10735_v43 = vpop.f32.mrb[60].mxu1  ;;  %v12114_v16 = vld [vmem:[%s14205_s1 + $0x520] sm:$0xff]   ;;  %v12115_v32 = vld [vmem:[%s14205_s1 + $0x568] sm:$0xff]  }
 0x984   : > { %v10736_v58 = vpop.f32.mrb[61].mxu1  ;;  %v6574_v50 = vld [vmem:[#allocation3 + $0x219] ss:$2 sm:$0xff]  ;;  %v6568_v23 = vld [vmem:[#allocation3 + $0x218] ss:$2 sm:$0xff]  ;;  %v12116_v41 = vld [vmem:[%s14205_s1 + $0x528] sm:$0xff]  }
 0x985   : > { %6540 = vst [vmem:[#allocation3 + $0x230] sm:$0xff] %v6524_v20  ;;  %v10737_v48 = vadd.f32 %v10736_v58, %v10735_v43  ;;  %v10738_v51 = vpop.f32.mrb[62].mxu1  ;;  %v6577_v15 = vpack.c.bf16 %v6574_v50, %v6573_v31  ;;  %v6571_v52 = vpack.c.bf16 %v6568_v23, %v6567_v10  ;;  %10796 = vmatpush3.bf16.msra.mxu1 %v12096_v55  ;;  %v12117_v55 = vld [vmem:[%s14205_s1 + $0x570] sm:$0xff]   ;;  %v12119_v43 = vld [vmem:[%s14205_s1 + $0x578] sm:$0xff]   ;;  %v12121_v10 = vld [vmem:[%s14205_s1 + $0x5c0] sm:$0xff]  }
 0x986   : > { %v10739_v54 = vpop.f32.mrb[63].mxu1  ;;  %10821 = vmatprep.subr.bf16.mxu1 %v12105_v27  ;;  %v12118_v20 = vld [vmem:[%s14205_s1 + $0x530] sm:$0xff]   ;;  %v12120_v31 = vld [vmem:[%s14205_s1 + $0x538] sm:$0xff]   ;;  %v12131_v58 = vld [vmem:[%s14205_s1 + $0x660] sm:$0xff]  }
 0x987   : > { %v6505_v57 = vadd.f32 %v10737_v48, %v6408_v40  ;;  %v10740_v28 = vadd.f32 %v10739_v54, %v10738_v51  ;;  %6904 = vmatprep.mubr.bf16.mxu1 %v6577_v15  ;;  %v12133_v50 = vld [vmem:[%s14205_s1 + $0x620] sm:$0xff]   ;;  %10885 = vmatprep.subr.bf16.mxu0 %v12131_v58  ;;  %v12139_v23 = vld [vmem:[%s14205_s1 + $0x668] sm:$0xff]   ;;  %v12141_v48 = vld [vmem:[%s14205_s1 + $0x670] sm:$0xff]  }
 0x988   : > { %6905 = vmatmul.mubr.bf16.gmra.mrb[72].mxu1 %v6571_v52  ;;  %10886 = vmatpush3.bf16.msra.mxu0 %v12133_v50  ;;  %v12140_v40 = vld [vmem:[%s14205_s1 + $0x628] sm:$0xff]   ;;  %v12142_v15 = vld [vmem:[%s14205_s1 + $0x630] sm:$0xff]   ;;  %v12143_v54 = vld [vmem:[%s14205_s1 + $0x678] sm:$0xff]  }
 0x989   : > { %v6525_v29 = vmax.f32 %v6505_v57, 0.0  ;;  %v6508_v60 = vadd.f32 %v10740_v28, %v6411_v59  ;;  %10887 = vmatprep.subr.bf16.mxu0 %v12139_v23 }
 0x98a   : > { %v6586_v2 = vld [vmem:[#allocation3 + $0x21b] ss:$2 sm:$0xff]  ;;  %v6580_v18 = vld [vmem:[#allocation3 + $0x21a] ss:$2 sm:$0xff] }
 0x98b   : > { %6541 = vst [vmem:[#allocation3 + $0x238] sm:$0xff] %v6525_v29  ;;  %v6526_v6 = vmax.f32 %v6508_v60, 0.0  ;;  %v6589_v44 = vpack.c.bf16 %v6586_v2, %v6585_v53  ;;  %v6583_v47 = vpack.c.bf16 %v6580_v18, %v6579_v25  ;;  %v9930_v2 = vld [vmem:[%s14206_s2 + $0x4] ss:$0 sm:$0xff] }
 0x98c   : > { %v6575_v49 = vld [vmem:[#allocation3 + $0x229] ss:$2 sm:$0xff]  ;;  %v6569_v62 = vld [vmem:[#allocation3 + $0x228] ss:$2 sm:$0xff]  ;;  %10888 = vmatpush3.bf16.msra.mxu0 %v12140_v40 }
 0x98d   : > { %6542 = vst [vmem:[#allocation3 + $0x240] sm:$0xff] %v6526_v6  ;;  %10889 = vmatprep.subr.bf16.mxu0 %v12141_v48 }
 0x990   : > { %10890 = vmatpush3.bf16.msra.mxu0 %v12142_v15 }
 0x991   : > { %10891 = vmatprep.subr.bf16.mxu0 %v12143_v54 }
 0x992   : > { %v6587_v56 = vld [vmem:[#allocation3 + $0x22b] ss:$2 sm:$0xff]  ;;  %v6581_v22 = vld [vmem:[#allocation3 + $0x22a] ss:$2 sm:$0xff] }
 0x994   : > { %v6576_v26 = vld [vmem:[#allocation3 + $0x239] ss:$2 sm:$0xff]  ;;  %v6570_v0 = vld [vmem:[#allocation3 + $0x238] ss:$2 sm:$0xff] }
 0x995   : > { %v6578_v1 = vpack.c.bf16 %v6576_v26, %v6575_v49  ;;  %v6572_v3 = vpack.c.bf16 %v6570_v0, %v6569_v62  ;;  %v6588_v19 = vld [vmem:[#allocation3 + $0x23b] ss:$2 sm:$0xff]  ;;  %v6582_v37 = vld [vmem:[#allocation3 + $0x23a] ss:$2 sm:$0xff] }
 0x996   : > { %v6590_v21 = vpack.c.bf16 %v6588_v19, %v6587_v56  ;;  %v6584_v11 = vpack.c.bf16 %v6582_v37, %v6581_v22 }
 0x997   : > { %6912 = vmatprep.mubr.bf16.mxu1 %v6578_v1 }
 0x998   : > { %6913 = vmatmul.mubr.bf16.gmra.mrb[76].mxu1 %v6572_v3 }
 0x999   : > { %6953 = vmatprep.mubr.bf16.mxu1 %v6565_v63 }
 0x9a0   : > { %6954 = vmatmul.mubr.bf16.vlgmr.msra.gmra.mrb[80].mxu1 %v6559_v5 }
 0x9a1   : > { %6961 = vmatprep.mubr.bf16.mxu1 %v6566_v8  ;;  %10822 = vmatpush3.bf16.msra.mxu1 %v12106_v34 }
 0x9a2   : > { %10823 = vmatprep.subr.bf16.mxu1 %v12107_v36 }
 0x9a5   : > { %10824 = vmatpush3.bf16.msra.mxu1 %v12108_v38 }
 0x9a6   : > { %10825 = vmatprep.subr.bf16.mxu1 %v12109_v12 }
 0x9a8   : > { %6962 = vmatmul.mubr.bf16.gmra.mrb[84].mxu1 %v6560_v13 }
 0x9a9   : > { %6969 = vmatprep.mubr.bf16.mxu1 %v6589_v44  ;;  %10826 = vmatpush3.bf16.msra.mxu1 %v12110_v39 }
 0x9aa   : > { %10827 = vmatprep.subr.bf16.mxu1 %v12111_v42 }
 0x9ad   : > { %10828 = vmatpush3.bf16.msra.mxu1 %v12112_v17 }
 0x9ae   : > { %10829 = vmatprep.subr.bf16.mxu1 %v12113_v4 }
 0x9b0   : > { %6970 = vmatmul.mubr.bf16.gmra.mrb[88].mxu1 %v6583_v47 }
 0x9b1   : > { %6977 = vmatprep.mubr.bf16.mxu1 %v6590_v21  ;;  %10830 = vmatpush3.bf16.msra.mxu1 %v12114_v16 }
 0x9b2   : > { %10831 = vmatprep.subr.bf16.mxu1 %v12115_v32 }
 0x9b5   : > { %10832 = vmatpush3.bf16.msra.mxu1 %v12116_v41 }
 0x9b6   : > { %10833 = vmatprep.subr.bf16.mxu1 %v12117_v55 }
 0x9b8   : > { %6978 = vmatmul.mubr.bf16.gmra.mrb[92].mxu1 %v6584_v11 }
 0x9b9   : > { %10834 = vmatpush3.bf16.msra.mxu1 %v12118_v20 }
 0x9ba   : > { %10835 = vmatprep.subr.bf16.mxu1 %v12119_v43 }
 0x9bd   : > { %10836 = vmatpush3.bf16.msra.mxu1 %v12120_v31 }
 0x9be   : > { %10849 = vmatprep.subr.bf16.mxu1 %v12121_v10 }
 0xa3b   : > { %v10757_v51 = vpop.f32.mrb[64].mxu1 }
 0xa3c   : > { %v10758_v52 = vpop.f32.mrb[65].mxu1 }
 0xa3d   : > { %v10759_v59 = vadd.f32 %v10758_v52, %v10757_v51  ;;  %v10760_v57 = vpop.f32.mrb[66].mxu1 }
 0xa3e   : > { %v10761_v28 = vpop.f32.mrb[67].mxu1 }
 0xa3f   : > { %v10762_v29 = vadd.f32 %v10761_v28, %v10760_v57  ;;  %v6891_v53 = vadd.f32 %v10759_v59, %v9930_v2 }
 0xa41   : > { %v6894_v25 = vadd.f32 %v10762_v29, %v9930_v2 }
 0xa4b   : > { %v10763_v60 = vpop.f32.mrb[68].mxu1 }
 0xa4c   : > { %v10764_v6 = vpop.f32.mrb[69].mxu1 }
 0xa4d   : > { %v10765_v49 = vadd.f32 %v10764_v6, %v10763_v60  ;;  %v10766_v30 = vpop.f32.mrb[70].mxu1 }
 0xa4e   : > { %v10767_v26 = vpop.f32.mrb[71].mxu1 }
 0xa4f   : > { %v10768_v62 = vadd.f32 %v10767_v26, %v10766_v30  ;;  %v6899_v24 = vadd.f32 %v10765_v49, %v9930_v2  ;;  %v12122_v49 = vld [vmem:[%s14205_s1 + $0x580] sm:$0xff]   ;;  %v12123_v26 = vld [vmem:[%s14205_s1 + $0x5c8] sm:$0xff]  }
 0xa51   : > { %v6902_v38 = vadd.f32 %v10768_v62, %v9930_v2 }
 0xa5b   : > { %v10769_v0 = vpop.f32.mrb[72].mxu1 }
 0xa5c   : > { %v10770_v1 = vpop.f32.mrb[73].mxu1 }
 0xa5d   : > { %v10771_v3 = vadd.f32 %v10770_v1, %v10769_v0  ;;  %v10772_v33 = vpop.f32.mrb[74].mxu1 }
 0xa5e   : > { %v10773_v63 = vpop.f32.mrb[75].mxu1 }
 0xa5f   : > { %v10774_v45 = vadd.f32 %v10773_v63, %v10772_v33  ;;  %v6907_v41 = vadd.f32 %v10771_v3, %v9930_v2  ;;  %v12124_v63 = vld [vmem:[%s14205_s1 + $0x588] sm:$0xff]  }
 0xa61   : > { %v6910_v31 = vadd.f32 %v10774_v45, %v9930_v2  ;;  %v12125_v45 = vld [vmem:[%s14205_s1 + $0x5d0] sm:$0xff]  }
 0xa6b   : > { %v10775_v46 = vpop.f32.mrb[76].mxu1 }
 0xa6c   : > { %v10776_v35 = vpop.f32.mrb[77].mxu1 }
 0xa6d   : > { %v10777_v5 = vadd.f32 %v10776_v35, %v10775_v46  ;;  %v10778_v61 = vpop.f32.mrb[78].mxu1  ;;  %v12126_v35 = vld [vmem:[%s14205_s1 + $0x590] sm:$0xff]  }
 0xa6e   : > { %v10779_v8 = vpop.f32.mrb[79].mxu1 }
 0xa6f   : > { %v10780_v9 = vadd.f32 %v10779_v8, %v10778_v61  ;;  %v6915_v57 = vadd.f32 %v10777_v5, %v9930_v2  ;;  %v12127_v5 = vld [vmem:[%s14205_s1 + $0x5d8] sm:$0xff]   ;;  %v12129_v8 = vld [vmem:[%s14205_s1 + $0x5e0] sm:$0xff]  }
 0xa70   : > { %v12128_v61 = vld [vmem:[%s14205_s1 + $0x598] sm:$0xff]  }
 0xa71   : > { %v6918_v62 = vadd.f32 %v10780_v9, %v9930_v2 }
 0xa73   : > { %v10797_v7 = vpop.f32.mrb[80].mxu1 }
 0xa74   : > { %v10798_v13 = vpop.f32.mrb[81].mxu1 }
 0xa75   : > { %v10799_v44 = vadd.f32 %v10798_v13, %v10797_v7  ;;  %v10800_v18 = vpop.f32.mrb[82].mxu1 }
 0xa76   : > { %v10801_v19 = vpop.f32.mrb[83].mxu1 }
 0xa77   : > { %v6956_v47 = vadd.f32 %v10799_v44, %v6891_v53  ;;  %v10802_v56 = vadd.f32 %v10801_v19, %v10800_v18  ;;  %v12130_v19 = vld [vmem:[%s14205_s1 + $0x5a0] sm:$0xff]  }
 0xa79   : > { %v6986_v21 = vmax.f32 %v6956_v47, 0.0  ;;  %v6959_v37 = vadd.f32 %v10802_v56, %v6894_v25  ;;  %v12132_v47 = vld [vmem:[%s14205_s1 + $0x5e8] sm:$0xff]  }
 0xa7b   : > { %6994 = vst [vmem:[#allocation2] sm:$0xff] %v6986_v21  ;;  %v6987_v22 = vmax.f32 %v6959_v37, 0.0  ;;  %v10803_v11 = vpop.f32.mrb[84].mxu1  ;;  %v12134_v21 = vld [vmem:[%s14205_s1 + $0x5a8] sm:$0xff]   ;;  %v12135_v37 = vld [vmem:[%s14205_s1 + $0x5f0] sm:$0xff]  }
 0xa7c   : > { %v10804_v14 = vpop.f32.mrb[85].mxu1 }
 0xa7d   : > { %6995 = vst [vmem:[#allocation2 + $0x8] sm:$0xff] %v6987_v22  ;;  %v10805_v27 = vadd.f32 %v10804_v14, %v10803_v11  ;;  %v10806_v34 = vpop.f32.mrb[86].mxu1  ;;  %v12136_v22 = vld [vmem:[%s14205_s1 + $0x5b0] sm:$0xff]   ;;  %v12137_v11 = vld [vmem:[%s14205_s1 + $0x5f8] sm:$0xff]  }
 0xa7e   : > { %v10807_v36 = vpop.f32.mrb[87].mxu1  ;;  %v12138_v14 = vld [vmem:[%s14205_s1 + $0x5b8] sm:$0xff]  }
 0xa7f   : > { %v6964_v12 = vadd.f32 %v10805_v27, %v6899_v24  ;;  %v10808_v39 = vadd.f32 %v10807_v36, %v10806_v34 }
 0xa81   : > { %v6988_v42 = vmax.f32 %v6964_v12, 0.0  ;;  %v6967_v17 = vadd.f32 %v10808_v39, %v6902_v38 }
 0xa83   : > { %6996 = vst [vmem:[#allocation2 + $0x10] sm:$0xff] %v6988_v42  ;;  %v6989_v4 = vmax.f32 %v6967_v17, 0.0  ;;  %v10809_v16 = vpop.f32.mrb[88].mxu1 }
 0xa84   : > { %v10810_v32 = vpop.f32.mrb[89].mxu1  ;;  %v7005_v51 = vld [vmem:[#allocation2 + $0x1] ss:$2 sm:$0xff]  ;;  %v7002_v15 = vld [vmem:[#allocation2] ss:$2 sm:$0xff] }
 0xa85   : > { %6997 = vst [vmem:[#allocation2 + $0x18] sm:$0xff] %v6989_v4  ;;  %v10811_v55 = vadd.f32 %v10810_v32, %v10809_v16  ;;  %v10812_v20 = vpop.f32.mrb[90].mxu1  ;;  %v12144_v4 = vld [vmem:[%s14205_s1 + $0x638] sm:$0xff]   ;;  %v12145_v16 = vld [vmem:[%s14205_s1 + $0x6c0] sm:$0xff]  }
 0xa86   : > { %v10813_v43 = vpop.f32.mrb[91].mxu1  ;;  %10892 = vmatpush3.bf16.msra.mxu0 %v12144_v4  ;;  %v12146_v32 = vld [vmem:[%s14205_s1 + $0x680] sm:$0xff]  }
 0xa87   : > { %v6972_v10 = vadd.f32 %v10811_v55, %v6907_v41  ;;  %v10814_v58 = vadd.f32 %v10813_v43, %v10812_v20  ;;  %v12147_v41 = vld [vmem:[%s14205_s1 + $0x6c8] sm:$0xff]   ;;  %v12149_v20 = vld [vmem:[%s14205_s1 + $0x6d0] sm:$0xff]  }
 0xa88   : > { %v12148_v55 = vld [vmem:[%s14205_s1 + $0x688] sm:$0xff]   ;;  %v12150_v43 = vld [vmem:[%s14205_s1 + $0x690] sm:$0xff]  }
 0xa89   : > { %v6990_v50 = vmax.f32 %v6972_v10, 0.0  ;;  %v6975_v23 = vadd.f32 %v10814_v58, %v6910_v31  ;;  %v12151_v31 = vld [vmem:[%s14205_s1 + $0x6d8] sm:$0xff]   ;;  %v12153_v58 = vld [vmem:[%s14205_s1 + $0x6e0] sm:$0xff]  }
 0xa8a   : > { %v7011_v25 = vld [vmem:[#allocation2 + $0x3] ss:$2 sm:$0xff]  ;;  %v7008_v34 = vld [vmem:[#allocation2 + $0x2] ss:$2 sm:$0xff] }
 0xa8b   : > { %6998 = vst [vmem:[#allocation2 + $0x208] sm:$0xff] %v6990_v50  ;;  %v6991_v40 = vmax.f32 %v6975_v23, 0.0  ;;  %v10815_v48 = vpop.f32.mrb[92].mxu1  ;;  %v12152_v10 = vld [vmem:[%s14205_s1 + $0x698] sm:$0xff]   ;;  %v12154_v50 = vld [vmem:[%s14205_s1 + $0x6a0] sm:$0xff]   ;;  %v12155_v23 = vld [vmem:[%s14205_s1 + $0x6e8] sm:$0xff]  }
 0xa8c   : > { %v10816_v52 = vpop.f32.mrb[93].mxu1  ;;  %v7006_v54 = vld [vmem:[#allocation2 + $0x11] ss:$2 sm:$0xff]  ;;  %v7003_v59 = vld [vmem:[#allocation2 + $0x10] ss:$2 sm:$0xff] }
 0xa8d   : > { %6999 = vst [vmem:[#allocation2 + $0x210] sm:$0xff] %v6991_v40  ;;  %v10817_v28 = vadd.f32 %v10816_v52, %v10815_v48  ;;  %v10818_v29 = vpop.f32.mrb[94].mxu1  ;;  %v7007_v60 = vpack.c.bf16 %v7006_v54, %v7005_v51  ;;  %v7004_v6 = vpack.c.bf16 %v7003_v59, %v7002_v15  ;;  %v7012_v2 = vld [vmem:[#allocation2 + $0x13] ss:$2 sm:$0xff]  ;;  %v7009_v24 = vld [vmem:[#allocation2 + $0x12] ss:$2 sm:$0xff] }
 0xa8e   : > { %v10819_v30 = vpop.f32.mrb[95].mxu1  ;;  %v7013_v56 = vpack.c.bf16 %v7012_v2, %v7011_v25  ;;  %v7010_v36 = vpack.c.bf16 %v7009_v24, %v7008_v34  ;;  %v12156_v40 = vld [vmem:[%s14205_s1 + $0x6a8] sm:$0xff]   ;;  %v12157_v48 = vld [vmem:[%s14205_s1 + $0x6f0] sm:$0xff]   ;;  %v12159_v15 = vld [vmem:[%s14205_s1 + $0x6f8] sm:$0xff]  }
 0xa8f   : > { %v6980_v0 = vadd.f32 %v10817_v28, %v6915_v57  ;;  %v10820_v1 = vadd.f32 %v10819_v30, %v10818_v29  ;;  %7323 = vmatprep.mubr.bf16.mxu1 %v7007_v60  ;;  %v12158_v51 = vld [vmem:[%s14205_s1 + $0x6b0] sm:$0xff]   ;;  %v12160_v52 = vld [vmem:[%s14205_s1 + $0x6b8] sm:$0xff]   ;;  %v12161_v54 = vld [vmem:[%s14205_s1 + $0x740] sm:$0xff]  }
 0xa90   : > { %7324 = vmatmul.mubr.bf16.vlgmr.msra.gmra.mrb[96].mxu1 %v7004_v6  ;;  %v12162_v59 = vld [vmem:[%s14205_s1 + $0x7c0] sm:$0xff]   ;;  %10921 = vmatprep.subr.bf16.mxu0 %v12161_v54  ;;  %v12165_v54 = vld [vmem:[%s14205_s1 + $0x748] sm:$0xff]  }
 0xa91   : > { %v6992_v3 = vmax.f32 %v6980_v0, 0.0  ;;  %v6983_v33 = vadd.f32 %v10820_v1, %v6918_v62  ;;  %10850 = vmatpush3.bf16.msra.mxu1 %v12122_v49 }
 0xa92   : > { %10851 = vmatprep.subr.bf16.mxu1 %v12123_v26 }
 0xa93   : > { %7000 = vst [vmem:[#allocation2 + $0x218] sm:$0xff] %v6992_v3  ;;  %v6993_v46 = vmax.f32 %v6983_v33, 0.0  ;;  %v10028_v33 = vld [vmem:[%s14206_s2 + $0x5] ss:$0 sm:$0xff] }
 0xa94   : > { %v7017_v9 = vld [vmem:[#allocation2 + $0x209] ss:$2 sm:$0xff]  ;;  %v7014_v13 = vld [vmem:[#allocation2 + $0x208] ss:$2 sm:$0xff] }
 0xa95   : > { %7001 = vst [vmem:[#allocation2 + $0x220] sm:$0xff] %v6993_v46  ;;  %10852 = vmatpush3.bf16.msra.mxu1 %v12124_v63 }
 0xa96   : > { %10853 = vmatprep.subr.bf16.mxu1 %v12125_v45 }
 0xa99   : > { %10854 = vmatpush3.bf16.msra.mxu1 %v12126_v35 }
 0xa9a   : > { %10855 = vmatprep.subr.bf16.mxu1 %v12127_v5  ;;  %v7023_v38 = vld [vmem:[#allocation2 + $0x20b] ss:$2 sm:$0xff]  ;;  %v7020_v42 = vld [vmem:[#allocation2 + $0x20a] ss:$2 sm:$0xff] }
 0xa9c   : > { %v7018_v7 = vld [vmem:[#allocation2 + $0x219] ss:$2 sm:$0xff]  ;;  %v7015_v53 = vld [vmem:[#allocation2 + $0x218] ss:$2 sm:$0xff] }
 0xa9d   : > { %10856 = vmatpush3.bf16.msra.mxu1 %v12128_v61  ;;  %v7019_v44 = vpack.c.bf16 %v7018_v7, %v7017_v9  ;;  %v7016_v18 = vpack.c.bf16 %v7015_v53, %v7014_v13  ;;  %v7024_v27 = vld [vmem:[#allocation2 + $0x21b] ss:$2 sm:$0xff]  ;;  %v7021_v39 = vld [vmem:[#allocation2 + $0x21a] ss:$2 sm:$0xff] }
 0xa9e   : > { %10857 = vmatprep.subr.bf16.mxu1 %v12129_v8  ;;  %v7025_v12 = vpack.c.bf16 %v7024_v27, %v7023_v38  ;;  %v7022_v17 = vpack.c.bf16 %v7021_v39, %v7020_v42 }
 0xa9f   : > { %7331 = vmatprep.mubr.bf16.mxu1 %v7019_v44 }
 0xaa0   : > { %7332 = vmatmul.mubr.bf16.gmra.mrb[100].mxu1 %v7016_v18 }
 0xaa1   : > { %10858 = vmatpush3.bf16.msra.mxu1 %v12130_v19  ;;  %7372 = vmatprep.mubr.bf16.mxu1 %v7013_v56 }
 0xaa2   : > { %10859 = vmatprep.subr.bf16.mxu1 %v12132_v47 }
 0xaa5   : > { %10860 = vmatpush3.bf16.msra.mxu1 %v12134_v21 }
 0xaa6   : > { %10861 = vmatprep.subr.bf16.mxu1 %v12135_v37 }
 0xaa9   : > { %10862 = vmatpush3.bf16.msra.mxu1 %v12136_v22 }
 0xaaa   : > { %10863 = vmatprep.subr.bf16.mxu1 %v12137_v11 }
 0xaad   : > { %10864 = vmatpush3.bf16.msra.mxu1 %v12138_v14 }
 0xaae   : > { %10899 = vmatprep.subr.bf16.mxu1 %v12145_v16 }
 0xab0   : > { %7373 = vmatmul.mubr.bf16.vlgmr.msra.gmra.mrb[104].mxu1 %v7010_v36 }
 0xab1   : > { %7380 = vmatprep.mubr.bf16.mxu1 %v7025_v12  ;;  %10900 = vmatpush3.bf16.msra.mxu1 %v12146_v32 }
 0xab2   : > { %10901 = vmatprep.subr.bf16.mxu1 %v12147_v41 }
 0xab5   : > { %10902 = vmatpush3.bf16.msra.mxu1 %v12148_v55 }
 0xab6   : > { %10903 = vmatprep.subr.bf16.mxu1 %v12149_v20 }
 0xab8   : > { %7381 = vmatmul.mubr.bf16.gmra.mrb[108].mxu1 %v7022_v17 }
 0xab9   : > { %10904 = vmatpush3.bf16.msra.mxu1 %v12150_v43 }
 0xaba   : > { %10905 = vmatprep.subr.bf16.mxu1 %v12151_v31 }
 0xabd   : > { %10906 = vmatpush3.bf16.msra.mxu1 %v12152_v10 }
 0xabe   : > { %10907 = vmatprep.subr.bf16.mxu1 %v12153_v58 }
 0xac1   : > { %10908 = vmatpush3.bf16.msra.mxu1 %v12154_v50 }
 0xac2   : > { %10909 = vmatprep.subr.bf16.mxu1 %v12155_v23 }
 0xac5   : > { %10910 = vmatpush3.bf16.msra.mxu1 %v12156_v40  ;;  %v12163_v40 = vld [vmem:[%s14205_s1 + $0x700] sm:$0xff]  }
 0xac6   : > { %10911 = vmatprep.subr.bf16.mxu1 %v12157_v48  ;;  %v12164_v48 = vld [vmem:[%s14205_s1 + $0x780] sm:$0xff]  }
 0xac9   : > { %10912 = vmatpush3.bf16.msra.mxu1 %v12158_v51 }
 0xaca   : > { %10913 = vmatprep.subr.bf16.mxu1 %v12159_v15 }
 0xacd   : > { %10914 = vmatpush3.bf16.msra.mxu1 %v12160_v52 }
 0xace   : > { %10943 = vmatprep.subr.bf16.mxu1 %v12162_v59  ;;  %v12166_v59 = vld [vmem:[%s14205_s1 + $0x7c8] sm:$0xff]  }
 0xb63   : > { %v10837_v57 = vpop.f32.mrb[96].mxu1 }
 0xb64   : > { %v10838_v28 = vpop.f32.mrb[97].mxu1 }
 0xb65   : > { %v10839_v29 = vadd.f32 %v10838_v28, %v10837_v57  ;;  %v10840_v60 = vpop.f32.mrb[98].mxu1  ;;  %v12167_v28 = vld [vmem:[%s14205_s1 + $0x708] sm:$0xff]  }
 0xb66   : > { %v10841_v6 = vpop.f32.mrb[99].mxu1 }
 0xb67   : > { %v10842_v49 = vadd.f32 %v10841_v6, %v10840_v60  ;;  %v7326_v46 = vadd.f32 %v10839_v29, %v10028_v33  ;;  %v12168_v29 = vld [vmem:[%s14205_s1 + $0x788] sm:$0xff]   ;;  %v12169_v60 = vld [vmem:[%s14205_s1 + $0x750] sm:$0xff]  }
 0xb68   : > { %v12170_v6 = vld [vmem:[%s14205_s1 + $0x7d0] sm:$0xff]  }
 0xb69   : > { %v7329_v8 = vadd.f32 %v10842_v49, %v10028_v33  ;;  %v12171_v49 = vld [vmem:[%s14205_s1 + $0x710] sm:$0xff]  }
 0xb73   : > { %v10843_v30 = vpop.f32.mrb[100].mxu1 }
 0xb74   : > { %v10844_v26 = vpop.f32.mrb[101].mxu1 }
 0xb75   : > { %v10845_v62 = vadd.f32 %v10844_v26, %v10843_v30  ;;  %v10846_v0 = vpop.f32.mrb[102].mxu1  ;;  %v12172_v30 = vld [vmem:[%s14205_s1 + $0x790] sm:$0xff]   ;;  %v12173_v26 = vld [vmem:[%s14205_s1 + $0x758] sm:$0xff]  }
 0xb76   : > { %v10847_v1 = vpop.f32.mrb[103].mxu1 }
 0xb77   : > { %v10848_v3 = vadd.f32 %v10847_v1, %v10846_v0  ;;  %v7334_v19 = vadd.f32 %v10845_v62, %v10028_v33  ;;  %v12174_v62 = vld [vmem:[%s14205_s1 + $0x7d8] sm:$0xff]  }
 0xb78   : > { %v12175_v0 = vld [vmem:[%s14205_s1 + $0x718] sm:$0xff]  }
 0xb79   : > { %v7337_v21 = vadd.f32 %v10848_v3, %v10028_v33  ;;  %v12176_v1 = vld [vmem:[%s14205_s1 + $0x798] sm:$0xff]   ;;  %v12177_v3 = vld [vmem:[%s14205_s1 + $0x760] sm:$0xff]  }
 0xb7a   : > { %v12178_v33 = vld [vmem:[%s14205_s1 + $0x7e0] sm:$0xff]  }
 0xb83   : > { %v10865_v63 = vpop.f32.mrb[104].mxu1 }
 0xb84   : > { %v10866_v45 = vpop.f32.mrb[105].mxu1 }
 0xb85   : > { %v10867_v35 = vadd.f32 %v10866_v45, %v10865_v63  ;;  %v10868_v5 = vpop.f32.mrb[106].mxu1  ;;  %v12179_v63 = vld [vmem:[%s14205_s1 + $0x720] sm:$0xff]  }
 0xb86   : > { %v10869_v61 = vpop.f32.mrb[107].mxu1  ;;  %v12180_v45 = vld [vmem:[%s14205_s1 + $0x7a0] sm:$0xff]  }
 0xb87   : > { %v7375_v9 = vadd.f32 %v10867_v35, %v7326_v46  ;;  %v10870_v2 = vadd.f32 %v10869_v61, %v10868_v5  ;;  %v12181_v46 = vld [vmem:[%s14205_s1 + $0x768] sm:$0xff]  }
 0xb88   : > { %v12182_v35 = vld [vmem:[%s14205_s1 + $0x7e8] sm:$0xff]  }
 0xb89   : > { %v7389_v7 = vmax.f32 %v7375_v9, 0.0  ;;  %v7378_v13 = vadd.f32 %v10870_v2, %v7329_v8  ;;  %v12183_v5 = vld [vmem:[%s14205_s1 + $0x728] sm:$0xff]   ;;  %v12185_v8 = vld [vmem:[%s14205_s1 + $0x770] sm:$0xff]  }
 0xb8a   : > { %v12184_v61 = vld [vmem:[%s14205_s1 + $0x7a8] sm:$0xff]   ;;  %v12186_v9 = vld [vmem:[%s14205_s1 + $0x7f0] sm:$0xff]  }
 0xb8b   : > { %7393 = vst [vmem:[#allocation3] sm:$0xff] %v7389_v7  ;;  %v7390_v53 = vmax.f32 %v7378_v13, 0.0  ;;  %v10871_v44 = vpop.f32.mrb[108].mxu1  ;;  %v12187_v2 = vld [vmem:[%s14205_s1 + $0x730] sm:$0xff]   ;;  %v12189_v13 = vld [vmem:[%s14205_s1 + $0x778] sm:$0xff]  }
 0xb8c   : > { %v10872_v18 = vpop.f32.mrb[109].mxu1  ;;  %v12188_v7 = vld [vmem:[%s14205_s1 + $0x7b0] sm:$0xff]  }
 0xb8d   : > { %7394 = vst [vmem:[#allocation3 + $0x8] sm:$0xff] %v7390_v53  ;;  %v10873_v25 = vadd.f32 %v10872_v18, %v10871_v44  ;;  %v10874_v47 = vpop.f32.mrb[110].mxu1  ;;  %v12190_v53 = vld [vmem:[%s14205_s1 + $0x7f8] sm:$0xff]  }
 0xb8e   : > { %v10875_v56 = vpop.f32.mrb[111].mxu1  ;;  %v12191_v44 = vld [vmem:[%s14205_s1 + $0x738] sm:$0xff]  }
 0xb8f   : > { %v7383_v37 = vadd.f32 %v10873_v25, %v7334_v19  ;;  %v10876_v22 = vadd.f32 %v10875_v56, %v10874_v47  ;;  %v12192_v18 = vld [vmem:[%s14205_s1 + $0x7b8] sm:$0xff]   ;;  %v13758_v19 = vld [vmem:[%s14207_s3] sm:$0xff]  ;;  %v13768_v47 = vld [vmem:[%s14207_s3 + $0x8] sm:$0xff] }
 0xb90   : > { %v13763_v25 = vld [vmem:[%s14207_s3 + $0x20] sm:$0xff] }
 0xb91   : > { %v7391_v11 = vmax.f32 %v7383_v37, 0.0  ;;  %v7386_v14 = vadd.f32 %v10876_v22, %v7337_v21  ;;  %v10257_v56 = vcombine.low %v13758_v19, %v13763_v25  ;;  %v10258_v21 = vcombine.high %v13758_v19, %v13763_v25  ;;  %v13777_v37 = vld [vmem:[%s14207_s3 + $0x28] sm:$0xff] }
 0xb92   : > { %v10259_v22 = vcombine.low %v13768_v47, %v13777_v37  ;;  %v8214_v19 = vld [vmem:[%s14207_s3 + $0xc8] sm:$0xff] }
 0xb93   : > { %7395 = vst [vmem:[#allocation3 + $0x208] sm:$0xff] %v7391_v11  ;;  %v7392_v24 = vmax.f32 %v7386_v14, 0.0  ;;  %v10260_v11 = vcombine.high %v13768_v47, %v13777_v37  ;;  %v8218_v25 = vld [vmem:[%s14207_s3 + $0xe8] sm:$0xff] }
 0xb94   : > { %v7399_v27 = vld [vmem:[#allocation3 + $0x1] ss:$2 sm:$0xff]  ;;  %v7397_v36 = vld [vmem:[#allocation3] ss:$2 sm:$0xff] }
 0xb95   : > { %7396 = vst [vmem:[#allocation3 + $0x210] sm:$0xff] %v7392_v24  ;;  %v7403_v34 = vld [vmem:[#allocation3 + $0x3] ss:$2 sm:$0xff]  ;;  %v7401_v16 = vld [vmem:[#allocation3 + $0x2] ss:$2 sm:$0xff]  ;;  %v7400_v41 = vpack.c.bf16 %v7399_v27, %v7399_v27  ;;  %v7398_v10 = vpack.c.bf16 %v7397_v36, %v7397_v36 }
 0xb96   : > { %v7404_v55 = vpack.c.bf16 %v7403_v34, %v7403_v34  ;;  %v7402_v50 = vpack.c.bf16 %v7401_v16, %v7401_v16  ;;  %v10126_v27 = vld [vmem:[%s14206_s2 + $0x6] ss:$0 sm:$0xff] }
 0xb9c   : > { %v7407_v38 = vld [vmem:[#allocation3 + $0x209] ss:$2 sm:$0xff]  ;;  %v7405_v39 = vld [vmem:[#allocation3 + $0x208] ss:$2 sm:$0xff] }
 0xb9d   : > { %v7411_v12 = vld [vmem:[#allocation3 + $0x20b] ss:$2 sm:$0xff]  ;;  %v7408_v42 = vpack.c.bf16 %v7407_v38, %v7407_v38  ;;  %v7406_v4 = vpack.c.bf16 %v7405_v39, %v7405_v39  ;;  %v7409_v32 = vld [vmem:[#allocation3 + $0x20a] ss:$2 sm:$0xff] }
 0xb9e   : > { %v7412_v17 = vpack.c.bf16 %v7411_v12, %v7411_v12  ;;  %v7410_v20 = vpack.c.bf16 %v7409_v32, %v7409_v32 }
 0xb9f   : > { %v7418_v43 = vrot.slane %v7408_v42, 4  ;;  %v7417_v58 = vrot.slane %v7406_v4, 4 }
 0xba0   : > { %v7420_v31 = vrot.slane %v7412_v17, 4  ;;  %v7419_v23 = vrot.slane %v7410_v20, 4 }
 0xba1   : > { %v7428_v51 = vsel %vm7421_vm0, %v7400_v41, %v7418_v43  ;;  %v7424_v52 = vsel %vm7421_vm0, %v7398_v10, %v7417_v58 }
 0xba2   : > { %v7436_v15 = vsel %vm7421_vm0, %v7404_v55, %v7420_v31  ;;  %7735 = vmatprep.mubr.bf16.mxu0 %v7428_v51  ;;  %v7432_v57 = vsel %vm7421_vm0, %v7402_v50, %v7419_v23 }
 0xba3   : > { %7776 = vmatprep.mubr.bf16.mxu1 %v7436_v15  ;;  %7736 = vmatmul.mubr.bf16.vlgmr.msra.gmra.mrb[0].mxu0 %v7424_v52 }
 0xba4   : > { %7777 = vmatmul.mubr.bf16.vlgmr.msra.gmra.mrb[112].mxu1 %v7432_v57  ;;  %10922 = vmatpush3.bf16.msra.mxu0 %v12163_v40  ;;  %v8197_v40 = vld [vmem:[%s14207_s3 + $0x40] sm:$0xff] }
 0xba5   : > { %10944 = vmatpush3.bf16.msra.mxu1 %v12164_v48  ;;  %10923 = vmatprep.subr.bf16.mxu0 %v12165_v54 }
 0xba6   : > { %10945 = vmatprep.subr.bf16.mxu1 %v12166_v59 }
 0xba8   : > { %10924 = vmatpush3.bf16.msra.mxu0 %v12167_v28 }
 0xba9   : > { %10946 = vmatpush3.bf16.msra.mxu1 %v12168_v29  ;;  %10925 = vmatprep.subr.bf16.mxu0 %v12169_v60  ;;  %v8201_v29 = vld [vmem:[%s14207_s3 + $0x60] sm:$0xff] }
 0xbaa   : > { %10947 = vmatprep.subr.bf16.mxu1 %v12170_v6 }
 0xbac   : > { %10926 = vmatpush3.bf16.msra.mxu0 %v12171_v49 }
 0xbad   : > { %10948 = vmatpush3.bf16.msra.mxu1 %v12172_v30  ;;  %10927 = vmatprep.subr.bf16.mxu0 %v12173_v26  ;;  %v8198_v30 = vld [vmem:[%s14207_s3 + $0x48] sm:$0xff] }
 0xbae   : > { %10949 = vmatprep.subr.bf16.mxu1 %v12174_v62  ;;  %v8202_v26 = vld [vmem:[%s14207_s3 + $0x68] sm:$0xff] }
 0xbb0   : > { %10928 = vmatpush3.bf16.msra.mxu0 %v12175_v0 }
 0xbb1   : > { %10950 = vmatpush3.bf16.msra.mxu1 %v12176_v1  ;;  %10929 = vmatprep.subr.bf16.mxu0 %v12177_v3 }
 0xbb2   : > { %10951 = vmatprep.subr.bf16.mxu1 %v12178_v33 }
 0xbb4   : > { %10930 = vmatpush3.bf16.msra.mxu0 %v12179_v63 }
 0xbb5   : > { %10952 = vmatpush3.bf16.msra.mxu1 %v12180_v45  ;;  %10931 = vmatprep.subr.bf16.mxu0 %v12181_v46  ;;  %v10266_v45 = vcombine.high %v8197_v40, %v8201_v29 }
 0xbb6   : > { %10953 = vmatprep.subr.bf16.mxu1 %v12182_v35 }
 0xbb8   : > { %10932 = vmatpush3.bf16.msra.mxu0 %v12183_v5 }
 0xbb9   : > { %10954 = vmatpush3.bf16.msra.mxu1 %v12184_v61  ;;  %10933 = vmatprep.subr.bf16.mxu0 %v12185_v8  ;;  %v10268_v61 = vcombine.high %v8198_v30, %v8202_v26  ;;  %v8205_v8 = vld [vmem:[%s14207_s3 + $0x80] sm:$0xff] }
 0xbba   : > { %10955 = vmatprep.subr.bf16.mxu1 %v12186_v9 }
 0xbbc   : > { %10934 = vmatpush3.bf16.msra.mxu0 %v12187_v2  ;;  %v8209_v2 = vld [vmem:[%s14207_s3 + $0xa0] sm:$0xff] }
 0xbbd   : > { %10956 = vmatpush3.bf16.msra.mxu1 %v12188_v7  ;;  %10935 = vmatprep.subr.bf16.mxu0 %v12189_v13  ;;  %v8206_v7 = vld [vmem:[%s14207_s3 + $0x88] sm:$0xff]  ;;  %v10273_v47 = vcombine.low %v8205_v8, %v8209_v2 }
 0xbbe   : > { %10957 = vmatprep.subr.bf16.mxu1 %v12190_v53  ;;  %v8210_v13 = vld [vmem:[%s14207_s3 + $0xa8] sm:$0xff]  ;;  %v10265_v53 = vcombine.low %v8197_v40, %v8201_v29 }
 0xbc0   : > { %10936 = vmatpush3.bf16.msra.mxu0 %v12191_v44  ;;  %v10267_v44 = vcombine.low %v8198_v30, %v8202_v26  ;;  %v8254_v30 = vld [vmem:[%s14207_s3 + $0x208] sm:$0xff] }
 0xbc1   : > { %10958 = vmatpush3.bf16.msra.mxu1 %v12192_v18  ;;  %8999 = vmatprep.subr.bf16.mxu0 %v10258_v21  ;;  %v10274_v18 = vcombine.high %v8205_v8, %v8209_v2  ;;  %v10276_v21 = vcombine.high %v8206_v7, %v8210_v13  ;;  %v8258_v26 = vld [vmem:[%s14207_s3 + $0x228] sm:$0xff]  ;;  %v8273_v2 = vld [vmem:[%s14207_s3 + $0x2a0] sm:$0xff] }
 0xbc2   : > { %9040 = vmatprep.subr.bf16.mxu1 %v10260_v11  ;;  %v8213_v11 = vld [vmem:[%s14207_s3 + $0xc0] sm:$0xff] }
 0xc76   : > { %v10893_v14 = vpop.f32.mrb[0].mxu0 }
 0xc77   : > { %v10915_v24 = vpop.f32.mrb[112].mxu1  ;;  %v10894_v34 = vpop.f32.mrb[1].mxu0 }
 0xc78   : > { %v10916_v36 = vpop.f32.mrb[113].mxu1  ;;  %v10895_v38 = vadd.f32 %v10894_v34, %v10893_v14  ;;  %v10896_v39 = vpop.f32.mrb[2].mxu0  ;;  %v8217_v14 = vld [vmem:[%s14207_s3 + $0xe0] sm:$0xff]  ;;  %v8222_v34 = vld [vmem:[%s14207_s3 + $0x108] sm:$0xff] }
 0xc79   : > { %v10917_v12 = vadd.f32 %v10916_v36, %v10915_v24  ;;  %v10918_v42 = vpop.f32.mrb[114].mxu1  ;;  %v10897_v17 = vpop.f32.mrb[3].mxu0  ;;  %v10282_v37 = vcombine.high %v8213_v11, %v8217_v14  ;;  %v8221_v24 = vld [vmem:[%s14207_s3 + $0x100] sm:$0xff]  ;;  %v8226_v36 = vld [vmem:[%s14207_s3 + $0x128] sm:$0xff] }
 0xc7a   : > { %v10919_v4 = vpop.f32.mrb[115].mxu1  ;;  %v7738_v16 = vadd.f32 %v10895_v38, %v10126_v27  ;;  %v10898_v32 = vadd.f32 %v10897_v17, %v10896_v39  ;;  %v10281_v38 = vcombine.low %v8213_v11, %v8217_v14  ;;  %v8229_v17 = vld [vmem:[%s14207_s3 + $0x140] sm:$0xff] }
 0xc7b   : > { %v10920_v41 = vadd.f32 %v10919_v4, %v10918_v42  ;;  %v10292_v42 = vcombine.high %v8222_v34, %v8226_v36  ;;  %v8233_v4 = vld [vmem:[%s14207_s3 + $0x160] sm:$0xff] }
 0xc7c   : > { %v7779_v55 = vadd.f32 %v10917_v12, %v7738_v16  ;;  %v7741_v20 = vadd.f32 %v10898_v32, %v10126_v27  ;;  %v8225_v27 = vld [vmem:[%s14207_s3 + $0x120] sm:$0xff]  ;;  %v10283_v12 = vcombine.low %v8214_v19, %v8218_v25  ;;  %v8230_v16 = vld [vmem:[%s14207_s3 + $0x148] sm:$0xff] }
 0xc7d   : > { %v10290_v39 = vcombine.high %v8221_v24, %v8225_v27  ;;  %v8234_v32 = vld [vmem:[%s14207_s3 + $0x168] sm:$0xff] }
 0xc7e   : > { %v7785_v43 = vmax.f32 %v7779_v55, 0.0  ;;  %v7782_v31 = vadd.f32 %v10920_v41, %v7741_v20  ;;  %v10289_v41 = vcombine.low %v8221_v24, %v8225_v27  ;;  %v10291_v55 = vcombine.low %v8222_v34, %v8226_v36  ;;  %v8285_v34 = vld [vmem:[%s14207_s3 + $0x300] sm:$0xff] }
 0xc7f   : > { %v10298_v20 = vcombine.high %v8229_v17, %v8233_v4  ;;  %v10299_v40 = vcombine.low %v8230_v16, %v8234_v32  ;;  %v8289_v36 = vld [vmem:[%s14207_s3 + $0x320] sm:$0xff] }
 0xc80   : > { %7787 = vst [vmem:[#allocation2] sm:$0xff] %v7785_v43  ;;  %v7786_v10 = vmax.f32 %v7782_v31, 0.0  ;;  %v10300_v43 = vcombine.high %v8230_v16, %v8234_v32  ;;  %v8237_v31 = vld [vmem:[%s14207_s3 + $0x180] sm:$0xff] }
 0xc81   : > { %v8293_v16 = vld [vmem:[%s14207_s3 + $0x340] sm:$0xff] }
 0xc82   : > { %7788 = vst [vmem:[#allocation2 + $0x208] sm:$0xff] %v7786_v10  ;;  %v8241_v10 = vld [vmem:[%s14207_s3 + $0x1a0] sm:$0xff] }
 0xc83   : > { %v8297_v32 = vld [vmem:[%s14207_s3 + $0x360] sm:$0xff] }
 0xc87   : > { %v7791_v58 = vld [vmem:[#allocation2 + $0x1] ss:$2 sm:$0xff]  ;;  %v7789_v23 = vld [vmem:[#allocation2] ss:$2 sm:$0xff] }
 0xc88   : > { %v7795_v50 = vld [vmem:[#allocation2 + $0x3] ss:$2 sm:$0xff]  ;;  %v7793_v57 = vld [vmem:[#allocation2 + $0x2] ss:$2 sm:$0xff]  ;;  %v7792_v60 = vpack.c.bf16 %v7791_v58, %v7791_v58  ;;  %v7790_v1 = vpack.c.bf16 %v7789_v23, %v7789_v23  ;;  %v10297_v23 = vcombine.low %v8229_v17, %v8233_v4 }
 0xc89   : > { %v7799_v48 = vld [vmem:[#allocation2 + $0x209] ss:$2 sm:$0xff]  ;;  %v7797_v15 = vld [vmem:[#allocation2 + $0x208] ss:$2 sm:$0xff]  ;;  %v7796_v6 = vpack.c.bf16 %v7795_v50, %v7795_v50  ;;  %v7794_v33 = vpack.c.bf16 %v7793_v57, %v7793_v57  ;;  %v8238_v58 = vld [vmem:[%s14207_s3 + $0x188] sm:$0xff]  ;;  %v10305_v57 = vcombine.low %v8237_v31, %v8241_v10 }
 0xc8a   : > { %v7803_v51 = vld [vmem:[#allocation2 + $0x20b] ss:$2 sm:$0xff]  ;;  %v7800_v52 = vpack.c.bf16 %v7799_v48, %v7799_v48  ;;  %v7798_v59 = vpack.c.bf16 %v7797_v15, %v7797_v15  ;;  %v7801_v28 = vld [vmem:[#allocation2 + $0x20a] ss:$2 sm:$0xff]  ;;  %v8242_v50 = vld [vmem:[%s14207_s3 + $0x1a8] sm:$0xff]  ;;  %v10306_v48 = vcombine.high %v8237_v31, %v8241_v10 }
 0xc8b   : > { %v7804_v54 = vpack.c.bf16 %v7803_v51, %v7803_v51  ;;  %v7802_v49 = vpack.c.bf16 %v7801_v28, %v7801_v28  ;;  %v10308_v51 = vcombine.high %v8238_v58, %v8242_v50  ;;  %v8245_v15 = vld [vmem:[%s14207_s3 + $0x1c0] sm:$0xff]  ;;  %v10307_v28 = vcombine.low %v8238_v58, %v8242_v50 }
 0xc8c   : > { %v7810_v62 = vrot.slane %v7800_v52, 4  ;;  %v7809_v3 = vrot.slane %v7798_v59, 4  ;;  %v8249_v52 = vld [vmem:[%s14207_s3 + $0x1e0] sm:$0xff]  ;;  %v8250_v59 = vld [vmem:[%s14207_s3 + $0x1e8] sm:$0xff] }
 0xc8d   : > { %v7812_v0 = vrot.slane %v7804_v54, 4  ;;  %v7811_v63 = vrot.slane %v7802_v49, 4  ;;  %v8246_v54 = vld [vmem:[%s14207_s3 + $0x1c8] sm:$0xff]  ;;  %v10314_v29 = vcombine.high %v8245_v15, %v8249_v52  ;;  %v8257_v49 = vld [vmem:[%s14207_s3 + $0x220] sm:$0xff] }
 0xc8e   : > { %v7819_v46 = vsel %vm7421_vm0, %v7792_v60, %v7810_v62  ;;  %v7815_v5 = vsel %vm7421_vm0, %v7790_v1, %v7809_v3  ;;  %v10316_v60 = vcombine.high %v8246_v54, %v8250_v59  ;;  %v10313_v62 = vcombine.low %v8245_v15, %v8249_v52  ;;  %v8301_v58 = vld [vmem:[%s14207_s3 + $0x380] sm:$0xff] }
 0xc8f   : > { %v7827_v35 = vsel %vm7421_vm0, %v7796_v6, %v7812_v0  ;;  %8126 = vmatprep.mubr.bf16.mxu0 %v7819_v46  ;;  %v7823_v9 = vsel %vm7421_vm0, %v7794_v33, %v7811_v63  ;;  %v8253_v6 = vld [vmem:[%s14207_s3 + $0x200] sm:$0xff]  ;;  %v10315_v0 = vcombine.low %v8246_v54, %v8250_v59  ;;  %v10324_v3 = vcombine.high %v8254_v30, %v8258_v26  ;;  %v8266_v46 = vld [vmem:[%s14207_s3 + $0x268] sm:$0xff] }
 0xc90   : > { %8167 = vmatprep.mubr.bf16.mxu1 %v7827_v35  ;;  %8127 = vmatmul.mubr.bf16.vlgmr.msra.gmra.mrb[4].mxu0 %v7815_v5  ;;  %v10322_v1 = vcombine.high %v8253_v6, %v8257_v49  ;;  %v8261_v33 = vld [vmem:[%s14207_s3 + $0x240] sm:$0xff]  ;;  %v10321_v35 = vcombine.low %v8253_v6, %v8257_v49  ;;  %v10323_v5 = vcombine.low %v8254_v30, %v8258_v26  ;;  %v8191_v30 = vld [vmem:[%s14207_s3 + $0x10] sm:$0xff] }
 0xc91   : > { %8168 = vmatmul.mubr.bf16.vlgmr.msra.gmra.mrb[116].mxu1 %v7823_v9  ;;  %9000 = vmatpush1.bf16.msra.mxu0 %v10257_v56  ;;  %v10275_v56 = vcombine.low %v8206_v7, %v8210_v13  ;;  %v8265_v63 = vld [vmem:[%s14207_s3 + $0x260] sm:$0xff]  ;;  %v8270_v7 = vld [vmem:[%s14207_s3 + $0x288] sm:$0xff]  ;;  %v8195_v26 = vld [vmem:[%s14207_s3 + $0x30] sm:$0xff] }
 0xc92   : > { %9041 = vmatpush1.bf16.msra.mxu1 %v10259_v22  ;;  %9001 = vmatprep.subr.bf16.mxu0 %v10266_v45  ;;  %v10284_v22 = vcombine.high %v8214_v19, %v8218_v25  ;;  %v8262_v45 = vld [vmem:[%s14207_s3 + $0x248] sm:$0xff]  ;;  %v8269_v9 = vld [vmem:[%s14207_s3 + $0x280] sm:$0xff] }
 0xc93   : > { %9042 = vmatprep.subr.bf16.mxu1 %v10268_v61  ;;  %v10330_v61 = vcombine.high %v8261_v33, %v8265_v63  ;;  %v10332_v8 = vcombine.high %v8262_v45, %v8266_v46  ;;  %v8274_v13 = vld [vmem:[%s14207_s3 + $0x2a8] sm:$0xff]  ;;  %v10337_v11 = vcombine.low %v8269_v9, %v8273_v2  ;;  %v8277_v19 = vld [vmem:[%s14207_s3 + $0x2c0] sm:$0xff] }
 0xc94   : > { %v10339_v14 = vcombine.low %v8270_v7, %v8274_v13  ;;  %v8281_v25 = vld [vmem:[%s14207_s3 + $0x2e0] sm:$0xff] }
 0xc95   : > { %9002 = vmatpush1.bf16.msra.mxu0 %v10265_v53  ;;  %v10329_v53 = vcombine.low %v8261_v33, %v8265_v63  ;;  %v8305_v50 = vld [vmem:[%s14207_s3 + $0x3a0] sm:$0xff] }
 0xc96   : > { %9043 = vmatpush1.bf16.msra.mxu1 %v10267_v44  ;;  %9003 = vmatprep.subr.bf16.mxu0 %v10274_v18  ;;  %v10331_v44 = vcombine.low %v8262_v45, %v8266_v46  ;;  %v10338_v18 = vcombine.high %v8269_v9, %v8273_v2  ;;  %v8309_v54 = vld [vmem:[%s14207_s3 + $0x3c0] sm:$0xff] }
 0xc97   : > { %9044 = vmatprep.subr.bf16.mxu1 %v10276_v21  ;;  %v10340_v21 = vcombine.high %v8270_v7, %v8274_v13  ;;  %v8313_v59 = vld [vmem:[%s14207_s3 + $0x3e0] sm:$0xff]  ;;  %v12204_v13 = vmov 1934713408  }
 0xc99   : > { %9004 = vmatpush1.bf16.msra.mxu0 %v10273_v47  ;;  %v8278_v47 = vld [vmem:[%s14207_s3 + $0x2c8] sm:$0xff] }
 0xc9a   : > { %9045 = vmatpush1.bf16.msra.mxu1 %v10275_v56  ;;  %9005 = vmatprep.subr.bf16.mxu0 %v10282_v37  ;;  %v10346_v56 = vcombine.high %v8277_v19, %v8281_v25  ;;  %v8282_v37 = vld [vmem:[%s14207_s3 + $0x2e8] sm:$0xff] }
 0xc9b   : > { %9046 = vmatprep.subr.bf16.mxu1 %v10284_v22  ;;  %v10345_v22 = vcombine.low %v8277_v19, %v8281_v25  ;;  %v10347_v24 = vcombine.low %v8278_v47, %v8282_v37  ;;  %v10348_v27 = vcombine.high %v8278_v47, %v8282_v37 }
 0xc9d   : > { %9006 = vmatpush1.bf16.msra.mxu0 %v10281_v38  ;;  %v8286_v38 = vld [vmem:[%s14207_s3 + $0x308] sm:$0xff] }
 0xc9e   : > { %9047 = vmatpush1.bf16.msra.mxu1 %v10283_v12  ;;  %9007 = vmatprep.subr.bf16.mxu0 %v10290_v39  ;;  %v10354_v12 = vcombine.high %v8285_v34, %v8289_v36  ;;  %v8290_v39 = vld [vmem:[%s14207_s3 + $0x328] sm:$0xff] }
 0xc9f   : > { %9048 = vmatprep.subr.bf16.mxu1 %v10292_v42  ;;  %v10353_v42 = vcombine.low %v8285_v34, %v8289_v36  ;;  %v10355_v17 = vcombine.low %v8286_v38, %v8290_v39  ;;  %v10356_v4 = vcombine.high %v8286_v38, %v8290_v39 }
 0xca1   : > { %9008 = vmatpush1.bf16.msra.mxu0 %v10289_v41  ;;  %v8294_v41 = vld [vmem:[%s14207_s3 + $0x348] sm:$0xff] }
 0xca2   : > { %9049 = vmatpush1.bf16.msra.mxu1 %v10291_v55  ;;  %9009 = vmatprep.subr.bf16.mxu0 %v10298_v20  ;;  %v10362_v55 = vcombine.high %v8293_v16, %v8297_v32  ;;  %v8298_v20 = vld [vmem:[%s14207_s3 + $0x368] sm:$0xff] }
 0xca3   : > { %9050 = vmatprep.subr.bf16.mxu1 %v10300_v43  ;;  %v10361_v43 = vcombine.low %v8293_v16, %v8297_v32  ;;  %v10363_v31 = vcombine.low %v8294_v41, %v8298_v20  ;;  %v10364_v10 = vcombine.high %v8294_v41, %v8298_v20  ;;  %v8204_v16 = vld [vmem:[%s14207_s3 + $0x78] sm:$0xff] }
 0xca5   : > { %9010 = vmatpush1.bf16.msra.mxu0 %v10297_v23  ;;  %v8302_v23 = vld [vmem:[%s14207_s3 + $0x388] sm:$0xff] }
 0xca6   : > { %9051 = vmatpush1.bf16.msra.mxu1 %v10299_v40  ;;  %9011 = vmatprep.subr.bf16.mxu0 %v10306_v48  ;;  %v10370_v40 = vcombine.high %v8301_v58, %v8305_v50  ;;  %v8306_v48 = vld [vmem:[%s14207_s3 + $0x3a8] sm:$0xff] }
 0xca7   : > { %9052 = vmatprep.subr.bf16.mxu1 %v10308_v51  ;;  %v10369_v51 = vcombine.low %v8301_v58, %v8305_v50  ;;  %v10371_v15 = vcombine.low %v8302_v23, %v8306_v48  ;;  %v10372_v52 = vcombine.high %v8302_v23, %v8306_v48  ;;  %v8212_v58 = vld [vmem:[%s14207_s3 + $0xb8] sm:$0xff] }
 0xca9   : > { %9012 = vmatpush1.bf16.msra.mxu0 %v10305_v57  ;;  %v8310_v57 = vld [vmem:[%s14207_s3 + $0x3c8] sm:$0xff] }
 0xcaa   : > { %9053 = vmatpush1.bf16.msra.mxu1 %v10307_v28  ;;  %9013 = vmatprep.subr.bf16.mxu0 %v10314_v29  ;;  %v10378_v28 = vcombine.high %v8309_v54, %v8313_v59  ;;  %v8314_v29 = vld [vmem:[%s14207_s3 + $0x3e8] sm:$0xff] }
 0xcab   : > { %9054 = vmatprep.subr.bf16.mxu1 %v10316_v60  ;;  %v10377_v60 = vcombine.low %v8309_v54, %v8313_v59  ;;  %v10379_v6 = vcombine.low %v8310_v57, %v8314_v29  ;;  %v10380_v49 = vcombine.high %v8310_v57, %v8314_v29  ;;  %v8220_v54 = vld [vmem:[%s14207_s3 + $0xf8] sm:$0xff] }
 0xcad   : > { %9014 = vmatpush1.bf16.msra.mxu0 %v10313_v62  ;;  %v8192_v62 = vld [vmem:[%s14207_s3 + $0x18] sm:$0xff] }
 0xcae   : > { %9055 = vmatpush1.bf16.msra.mxu1 %v10315_v0  ;;  %9015 = vmatprep.subr.bf16.mxu0 %v10322_v1  ;;  %v10262_v0 = vcombine.high %v8191_v30, %v8195_v26  ;;  %v8196_v1 = vld [vmem:[%s14207_s3 + $0x38] sm:$0xff] }
 0xcaf   : > { %9056 = vmatprep.subr.bf16.mxu1 %v10324_v3  ;;  %v10261_v3 = vcombine.low %v8191_v30, %v8195_v26  ;;  %v10263_v33 = vcombine.low %v8192_v62, %v8196_v1  ;;  %v10264_v63 = vcombine.high %v8192_v62, %v8196_v1  ;;  %v8228_v30 = vld [vmem:[%s14207_s3 + $0x138] sm:$0xff] }
 0xcb1   : > { %9016 = vmatpush1.bf16.msra.mxu0 %v10321_v35  ;;  %v10224_v35 = vld [vmem:[%s14206_s2 + $0x7] ss:$0 sm:$0xff] }
 0xcb2   : > { %9057 = vmatpush1.bf16.msra.mxu1 %v10323_v5  ;;  %9017 = vmatprep.subr.bf16.mxu0 %v10330_v61 }
 0xcb3   : > { %9058 = vmatprep.subr.bf16.mxu1 %v10332_v8 }
 0xcb5   : > { %9018 = vmatpush1.bf16.msra.mxu0 %v10329_v53  ;;  %v8180_v53 = vunpack.c.l.s4 %v12204_v13 }
 0xcb6   : > { %9059 = vmatpush1.bf16.msra.mxu1 %v10331_v44  ;;  %9019 = vmatprep.subr.bf16.mxu0 %v10338_v18  ;;  %v8182_v44 = vlaneseq }
 0xcb7   : > { %9060 = vmatprep.subr.bf16.mxu1 %v10340_v21 }
 0xcb8   : > { %v13991_v37 = vshrl.u32 %v8182_v44, 7 }
 0xcb9   : > { %9020 = vmatpush1.bf16.msra.mxu0 %v10337_v11 }
 0xcba   : > { %9061 = vmatpush1.bf16.msra.mxu1 %v10339_v14  ;;  %9021 = vmatprep.subr.bf16.mxu0 %v10346_v56  ;;  %v8181_v56 = vunpack.c.0.s8 %v8180_v53 }
 0xcbb   : > { %9062 = vmatprep.subr.bf16.mxu1 %v10348_v27 }
 0xcbc   : > { %v8184_v34 = vsub.s32 %v8181_v56, %v13991_v37 }
 0xcbd   : > { %9022 = vmatpush1.bf16.msra.mxu0 %v10345_v22 }
 0xcbe   : > { %9063 = vmatpush1.bf16.msra.mxu1 %v10347_v24  ;;  %9023 = vmatprep.subr.bf16.mxu0 %v10354_v12  ;;  %v12205_v12 = vmov 0.0  }
 0xcbf   : > { %9064 = vmatprep.subr.bf16.mxu1 %v10356_v4  ;;  %v8200_v4 = vld [vmem:[%s14207_s3 + $0x58] sm:$0xff] }
 0xcc0   : > { %v10271_v23 = vcombine.low %v8200_v4, %v8204_v16 }
 0xcc1   : > { %9024 = vmatpush1.bf16.msra.mxu0 %v10353_v42  ;;  %v8199_v42 = vld [vmem:[%s14207_s3 + $0x50] sm:$0xff] }
 0xcc2   : > { %9065 = vmatpush1.bf16.msra.mxu1 %v10355_v17  ;;  %9025 = vmatprep.subr.bf16.mxu0 %v10362_v55  ;;  %v8203_v17 = vld [vmem:[%s14207_s3 + $0x70] sm:$0xff] }
 0xcc3   : > { %9066 = vmatprep.subr.bf16.mxu1 %v10364_v10  ;;  %v8207_v55 = vld [vmem:[%s14207_s3 + $0x90] sm:$0xff]  ;;  %v10270_v20 = vcombine.high %v8199_v42, %v8203_v17  ;;  %v8208_v10 = vld [vmem:[%s14207_s3 + $0x98] sm:$0xff]  ;;  %v10269_v50 = vcombine.low %v8199_v42, %v8203_v17 }
 0xcc4   : > { %v10280_v48 = vcombine.high %v8208_v10, %v8212_v58  ;;  %v10279_v57 = vcombine.low %v8208_v10, %v8212_v58  ;;  %v8263_v17 = vld [vmem:[%s14207_s3 + $0x250] sm:$0xff] }
 0xcc5   : > { %9026 = vmatpush1.bf16.msra.mxu0 %v10361_v43  ;;  %v10272_v43 = vcombine.high %v8200_v4, %v8204_v16  ;;  %v8267_v4 = vld [vmem:[%s14207_s3 + $0x270] sm:$0xff]  ;;  %v8264_v16 = vld [vmem:[%s14207_s3 + $0x258] sm:$0xff] }
 0xcc6   : > { %9067 = vmatpush1.bf16.msra.mxu1 %v10363_v31  ;;  %9027 = vmatprep.subr.bf16.mxu0 %v10370_v40  ;;  %v8211_v31 = vld [vmem:[%s14207_s3 + $0xb0] sm:$0xff] }
 0xcc7   : > { %9068 = vmatprep.subr.bf16.mxu1 %v10372_v52  ;;  %v10278_v40 = vcombine.high %v8207_v55, %v8211_v31  ;;  %v8216_v52 = vld [vmem:[%s14207_s3 + $0xd8] sm:$0xff]  ;;  %v10277_v59 = vcombine.low %v8207_v55, %v8211_v31  ;;  %v8271_v10 = vld [vmem:[%s14207_s3 + $0x290] sm:$0xff] }
 0xcc8   : > { %v10288_v29 = vcombine.high %v8216_v52, %v8220_v54  ;;  %v10287_v62 = vcombine.low %v8216_v52, %v8220_v54  ;;  %v8275_v58 = vld [vmem:[%s14207_s3 + $0x2b0] sm:$0xff] }
 0xcc9   : > { %9028 = vmatpush1.bf16.msra.mxu0 %v10369_v51  ;;  %v8215_v51 = vld [vmem:[%s14207_s3 + $0xd0] sm:$0xff] }
 0xcca   : > { %9069 = vmatpush1.bf16.msra.mxu1 %v10371_v15  ;;  %9029 = vmatprep.subr.bf16.mxu0 %v10378_v28  ;;  %v8219_v15 = vld [vmem:[%s14207_s3 + $0xf0] sm:$0xff] }
 0xccb   : > { %9070 = vmatprep.subr.bf16.mxu1 %v10380_v49  ;;  %v10286_v28 = vcombine.high %v8215_v51, %v8219_v15  ;;  %v8224_v49 = vld [vmem:[%s14207_s3 + $0x118] sm:$0xff]  ;;  %v10285_v26 = vcombine.low %v8215_v51, %v8219_v15  ;;  %v10342_v51 = vcombine.high %v8271_v10, %v8275_v58  ;;  %v8279_v52 = vld [vmem:[%s14207_s3 + $0x2d0] sm:$0xff] }
 0xccc   : > { %v10296_v1 = vcombine.high %v8224_v49, %v8228_v30  ;;  %v8283_v54 = vld [vmem:[%s14207_s3 + $0x2f0] sm:$0xff] }
 0xccd   : > { %9030 = vmatpush1.bf16.msra.mxu0 %v10377_v60  ;;  %v8223_v60 = vld [vmem:[%s14207_s3 + $0x110] sm:$0xff] }
 0xcce   : > { %9071 = vmatpush1.bf16.msra.mxu1 %v10379_v6  ;;  %9081 = vmatprep.subr.bf16.mxu0 %v10262_v0  ;;  %v8227_v6 = vld [vmem:[%s14207_s3 + $0x130] sm:$0xff] }
 0xccf   : > { %9122 = vmatprep.subr.bf16.mxu1 %v10264_v63  ;;  %v10294_v0 = vcombine.high %v8223_v60, %v8227_v6  ;;  %v8232_v63 = vld [vmem:[%s14207_s3 + $0x158] sm:$0xff] }
 0xd63   : > { %v10937_v45 = vpop.f32.mrb[4].mxu0 }
 0xd64   : > { %v10959_v46 = vpop.f32.mrb[116].mxu1  ;;  %v10938_v5 = vpop.f32.mrb[5].mxu0 }
 0xd65   : > { %v10960_v61 = vpop.f32.mrb[117].mxu1  ;;  %v10939_v8 = vadd.f32 %v10938_v5, %v10937_v45  ;;  %v10940_v2 = vpop.f32.mrb[6].mxu0  ;;  %v8236_v45 = vld [vmem:[%s14207_s3 + $0x178] sm:$0xff] }
 0xd66   : > { %v10961_v9 = vadd.f32 %v10960_v61, %v10959_v46  ;;  %v10962_v7 = vpop.f32.mrb[118].mxu1  ;;  %v10941_v18 = vpop.f32.mrb[7].mxu0  ;;  %v10293_v46 = vcombine.low %v8223_v60, %v8227_v6  ;;  %v10304_v61 = vcombine.high %v8232_v63, %v8236_v45  ;;  %v10303_v53 = vcombine.low %v8232_v63, %v8236_v45  ;;  %v8295_v63 = vld [vmem:[%s14207_s3 + $0x350] sm:$0xff] }
 0xd67   : > { %v10963_v21 = vpop.f32.mrb[119].mxu1  ;;  %v8129_v11 = vadd.f32 %v10939_v8, %v10224_v35  ;;  %v10942_v14 = vadd.f32 %v10941_v18, %v10940_v2  ;;  %v8239_v8 = vld [vmem:[%s14207_s3 + $0x190] sm:$0xff]  ;;  %v8240_v2 = vld [vmem:[%s14207_s3 + $0x198] sm:$0xff]  ;;  %v10350_v60 = vcombine.high %v8279_v52, %v8283_v54 }
 0xd68   : > { %v10964_v19 = vadd.f32 %v10963_v21, %v10962_v7  ;;  %v8244_v7 = vld [vmem:[%s14207_s3 + $0x1b8] sm:$0xff]  ;;  %v8247_v21 = vld [vmem:[%s14207_s3 + $0x1d0] sm:$0xff] }
 0xd69   : > { %v8170_v25 = vadd.f32 %v10961_v9, %v8129_v11  ;;  %v8132_v47 = vadd.f32 %v10942_v14, %v10224_v35  ;;  %v10295_v35 = vcombine.low %v8224_v49, %v8228_v30  ;;  %v8243_v9 = vld [vmem:[%s14207_s3 + $0x1b0] sm:$0xff]  ;;  %v10312_v18 = vcombine.high %v8240_v2, %v8244_v7  ;;  %v8248_v14 = vld [vmem:[%s14207_s3 + $0x1d8] sm:$0xff] }
 0xd6a   : > { %v10310_v44 = vcombine.high %v8239_v8, %v8243_v9  ;;  %v8251_v11 = vld [vmem:[%s14207_s3 + $0x1f0] sm:$0xff] }
 0xd6b   : > { %v8173_v22 = vadd.f32 %v10964_v19, %v8132_v47  ;;  %v8176_v24 = vmax.f32 %v8170_v25, 0.0  ;;  %v8252_v19 = vld [vmem:[%s14207_s3 + $0x1f8] sm:$0xff]  ;;  %v10309_v25 = vcombine.low %v8239_v8, %v8243_v9  ;;  %v10311_v47 = vcombine.low %v8240_v2, %v8244_v7  ;;  %v8287_v49 = vld [vmem:[%s14207_s3 + $0x310] sm:$0xff] }
 0xd6c   : > { %v10318_v56 = vcombine.high %v8247_v21, %v8251_v11  ;;  %v8291_v30 = vld [vmem:[%s14207_s3 + $0x330] sm:$0xff] }
 0xd6d   : > { %v8177_v27 = vmax.f32 %v8173_v22, 0.0  ;;  %v10320_v22 = vcombine.high %v8248_v14, %v8252_v19  ;;  %v8299_v45 = vld [vmem:[%s14207_s3 + $0x370] sm:$0xff] }
 0xd6e   : > { %v10366_v8 = vcombine.high %v8295_v63, %v8299_v45  ;;  %v8303_v2 = vld [vmem:[%s14207_s3 + $0x390] sm:$0xff] }
 0xd6f   : > { %v8178_v36 = vcombine.low %v8176_v24, %v8177_v27  ;;  %v8255_v24 = vld [vmem:[%s14207_s3 + $0x210] sm:$0xff] }
 0xd70   : > { %v8259_v27 = vld [vmem:[%s14207_s3 + $0x230] sm:$0xff] }
 0xd71   : > { %v8185_v38 = vrot.slane %v8178_v36, %v8184_v34  ;;  %v8256_v34 = vld [vmem:[%s14207_s3 + $0x218] sm:$0xff]  ;;  %v10325_v55 = vcombine.low %v8255_v24, %v8259_v27  ;;  %v8307_v7 = vld [vmem:[%s14207_s3 + $0x3b0] sm:$0xff] }
 0xd72   : > { %v8260_v36 = vld [vmem:[%s14207_s3 + $0x238] sm:$0xff] }
 0xd73   : > { %v8186_v39 = vcombine.high %v8185_v38, %v12205_v12  ;;  %v14006_v41 = vpack.c.bf16 %v8185_v38, %v8185_v38  ;;  %v10317_v38 = vcombine.low %v8247_v21, %v8251_v11  ;;  %v10319_v12 = vcombine.low %v8248_v14, %v8252_v19  ;;  %v8311_v14 = vld [vmem:[%s14207_s3 + $0x3d0] sm:$0xff] }
 0xd74   : > { %v10328_v42 = vcombine.high %v8256_v34, %v8260_v36  ;;  %v10374_v21 = vcombine.high %v8303_v2, %v8307_v7  ;;  %v8315_v19 = vld [vmem:[%s14207_s3 + $0x3f0] sm:$0xff] }
 0xd75   : > { %v8188_v32 = vpack.c.bf16 %v8186_v39, %v8186_v39  ;;  %v10326_v39 = vcombine.high %v8255_v24, %v8259_v27  ;;  %v10382_v24 = vcombine.high %v8311_v14, %v8315_v19 }
 0xd77   : > { %9031 = vmatprep.mubr.bf16.mxu0 %v8188_v32  ;;  %9072 = vmatprep.mubr.bf16.mxu1 %v8188_v32 }
 0xd78   : > { %9032 = vmatmul.mubr.bf16.vlgmr.msra.gmra.mrb[8].mxu0 %v14006_v41  ;;  %9073 = vmatmul.mubr.bf16.vlgmr.msra.gmra.mrb[120].mxu1 %v14006_v41 }
 0xd79   : > { %9082 = vmatpush1.bf16.msra.mxu0 %v10261_v3  ;;  %9123 = vmatpush1.bf16.msra.mxu1 %v10263_v33  ;;  %v8231_v3 = vld [vmem:[%s14207_s3 + $0x150] sm:$0xff] }
 0xd7a   : > { %9113 = vmatprep.mubr.bf16.mxu0 %v8188_v32  ;;  %9154 = vmatprep.mubr.bf16.mxu1 %v8188_v32  ;;  %v8235_v33 = vld [vmem:[%s14207_s3 + $0x170] sm:$0xff]  ;;  %v8268_v32 = vld [vmem:[%s14207_s3 + $0x278] sm:$0xff] }
 0xd7b   : > { %9083 = vmatprep.subr.bf16.mxu0 %v10270_v20  ;;  %9124 = vmatprep.subr.bf16.mxu1 %v10272_v43  ;;  %v10302_v5 = vcombine.high %v8231_v3, %v8235_v33  ;;  %v10301_v13 = vcombine.low %v8231_v3, %v8235_v33  ;;  %v10327_v20 = vcombine.low %v8256_v34, %v8260_v36 }
 0xd7c   : > { %v10334_v43 = vcombine.high %v8263_v17, %v8267_v4  ;;  %v10336_v31 = vcombine.high %v8264_v16, %v8268_v32  ;;  %v10358_v3 = vcombine.high %v8287_v49, %v8291_v30  ;;  %v10381_v34 = vcombine.low %v8311_v14, %v8315_v19 }
 0xd7d   : > { %9084 = vmatpush1.bf16.msra.mxu0 %v10269_v50  ;;  %9125 = vmatpush1.bf16.msra.mxu1 %v10271_v23  ;;  %v8272_v50 = vld [vmem:[%s14207_s3 + $0x298] sm:$0xff] }
 0xd7e   : > { %9085 = vmatprep.subr.bf16.mxu0 %v10278_v40  ;;  %9126 = vmatprep.subr.bf16.mxu1 %v10280_v48  ;;  %v8276_v23 = vld [vmem:[%s14207_s3 + $0x2b8] sm:$0xff]  ;;  %v10333_v40 = vcombine.low %v8263_v17, %v8267_v4  ;;  %v10335_v48 = vcombine.low %v8264_v16, %v8268_v32  ;;  %v8333_v17 = vsub.s32 3, %v13991_v37  ;;  %v12206_v4 = vmov 1983009808  }
 0xd7f   : > { %v10344_v15 = vcombine.high %v8272_v50, %v8276_v23  ;;  %v9182_v16 = vunpack.c.l.s4 %v12206_v4 }
 0xd81   : > { %9086 = vmatpush1.bf16.msra.mxu0 %v10277_v59  ;;  %9127 = vmatpush1.bf16.msra.mxu1 %v10279_v57  ;;  %v8280_v59 = vld [vmem:[%s14207_s3 + $0x2d8] sm:$0xff] }
 0xd82   : > { %9087 = vmatprep.subr.bf16.mxu0 %v10286_v28  ;;  %9128 = vmatprep.subr.bf16.mxu1 %v10288_v29  ;;  %v8284_v57 = vld [vmem:[%s14207_s3 + $0x2f8] sm:$0xff]  ;;  %v10341_v28 = vcombine.low %v8271_v10, %v8275_v58  ;;  %v10343_v29 = vcombine.low %v8272_v50, %v8276_v23  ;;  %v9183_v10 = vunpack.c.0.s8 %v9182_v16 }
 0xd83   : > { %v10352_v6 = vcombine.high %v8280_v59, %v8284_v57 }
 0xd85   : > { %9088 = vmatpush1.bf16.msra.mxu0 %v10285_v26  ;;  %9129 = vmatpush1.bf16.msra.mxu1 %v10287_v62  ;;  %v8288_v26 = vld [vmem:[%s14207_s3 + $0x318] sm:$0xff] }
 0xd86   : > { %9089 = vmatprep.subr.bf16.mxu0 %v10294_v0  ;;  %9130 = vmatprep.subr.bf16.mxu1 %v10296_v1  ;;  %v8292_v62 = vld [vmem:[%s14207_s3 + $0x338] sm:$0xff]  ;;  %v10349_v0 = vcombine.low %v8279_v52, %v8283_v54  ;;  %v10351_v1 = vcombine.low %v8280_v59, %v8284_v57 }
 0xd87   : > { %v10360_v33 = vcombine.high %v8288_v26, %v8292_v62 }
 0xd89   : > { %9090 = vmatpush1.bf16.msra.mxu0 %v10293_v46  ;;  %9131 = vmatpush1.bf16.msra.mxu1 %v10295_v35  ;;  %v8296_v46 = vld [vmem:[%s14207_s3 + $0x358] sm:$0xff] }
 0xd8a   : > { %9091 = vmatprep.subr.bf16.mxu0 %v10302_v5  ;;  %9132 = vmatprep.subr.bf16.mxu1 %v10304_v61  ;;  %v8300_v35 = vld [vmem:[%s14207_s3 + $0x378] sm:$0xff]  ;;  %v10357_v5 = vcombine.low %v8287_v49, %v8291_v30  ;;  %v10359_v61 = vcombine.low %v8288_v26, %v8292_v62 }
 0xd8b   : > { %v10368_v9 = vcombine.high %v8296_v46, %v8300_v35 }
 0xd8d   : > { %9092 = vmatpush1.bf16.msra.mxu0 %v10301_v13  ;;  %9133 = vmatpush1.bf16.msra.mxu1 %v10303_v53  ;;  %v8304_v13 = vld [vmem:[%s14207_s3 + $0x398] sm:$0xff] }
 0xd8e   : > { %9093 = vmatprep.subr.bf16.mxu0 %v10310_v44  ;;  %9134 = vmatprep.subr.bf16.mxu1 %v10312_v18  ;;  %v8308_v53 = vld [vmem:[%s14207_s3 + $0x3b8] sm:$0xff]  ;;  %v10365_v44 = vcombine.low %v8295_v63, %v8299_v45  ;;  %v10367_v18 = vcombine.low %v8296_v46, %v8300_v35  ;;  %v8349_v63 = vsub.s32 7, %v13991_v37 }
 0xd8f   : > { %v10376_v11 = vcombine.high %v8304_v13, %v8308_v53 }
 0xd91   : > { %9094 = vmatpush1.bf16.msra.mxu0 %v10309_v25  ;;  %9135 = vmatpush1.bf16.msra.mxu1 %v10311_v47  ;;  %v8312_v25 = vld [vmem:[%s14207_s3 + $0x3d8] sm:$0xff] }
 0xd92   : > { %9095 = vmatprep.subr.bf16.mxu0 %v10318_v56  ;;  %9136 = vmatprep.subr.bf16.mxu1 %v10320_v22  ;;  %v8316_v47 = vld [vmem:[%s14207_s3 + $0x3f8] sm:$0xff]  ;;  %v10373_v56 = vcombine.low %v8303_v2, %v8307_v7  ;;  %v10375_v22 = vcombine.low %v8304_v13, %v8308_v53 }
 0xd93   : > { %v10384_v27 = vcombine.high %v8312_v25, %v8316_v47  ;;  %v10383_v36 = vcombine.low %v8312_v25, %v8316_v47 }
 0xd95   : > { %9096 = vmatpush1.bf16.msra.mxu0 %v10317_v38  ;;  %9137 = vmatpush1.bf16.msra.mxu1 %v10319_v12  ;;  %v8321_v38 = vsub.s32 0, %v13991_v37  ;;  %v8329_v12 = vsub.s32 2, %v13991_v37 }
 0xd96   : > { %9097 = vmatprep.subr.bf16.mxu0 %v10326_v39  ;;  %9138 = vmatprep.subr.bf16.mxu1 %v10328_v42  ;;  %v8317_v39 = vld [vmem:[%s14208_s4] sm:$0xff]  ;;  %v8325_v42 = vsub.s32 1, %v13991_v37 }
 0xd97   : > { %v8322_v32 = vrot.slane %v8317_v39, %v8321_v38 }
 0xd99   : > { %9098 = vmatpush1.bf16.msra.mxu0 %v10325_v55  ;;  %9139 = vmatpush1.bf16.msra.mxu1 %v10327_v20  ;;  %v8330_v55 = vrot.slane %v8317_v39, %v8329_v12  ;;  %v8326_v20 = vrot.slane %v8317_v39, %v8325_v42 }
 0xd9a   : > { %9099 = vmatprep.subr.bf16.mxu0 %v10334_v43  ;;  %9140 = vmatprep.subr.bf16.mxu1 %v10336_v31 }
 0xd9d   : > { %9100 = vmatpush1.bf16.msra.mxu0 %v10333_v40  ;;  %9141 = vmatpush1.bf16.msra.mxu1 %v10335_v48 }
 0xd9e   : > { %9101 = vmatprep.subr.bf16.mxu0 %v10342_v51  ;;  %9142 = vmatprep.subr.bf16.mxu1 %v10344_v15 }
 0xda1   : > { %9102 = vmatpush1.bf16.msra.mxu0 %v10341_v28  ;;  %9143 = vmatpush1.bf16.msra.mxu1 %v10343_v29 }
 0xda2   : > { %9103 = vmatprep.subr.bf16.mxu0 %v10350_v60  ;;  %9144 = vmatprep.subr.bf16.mxu1 %v10352_v6  ;;  %v9186_v60 = vsub.s32 %v9183_v10, %v13991_v37 }
 0xda5   : > { %9104 = vmatpush1.bf16.msra.mxu0 %v10349_v0  ;;  %9145 = vmatpush1.bf16.msra.mxu1 %v10351_v1  ;;  %v8337_v1 = vsub.s32 4, %v13991_v37 }
 0xda6   : > { %9105 = vmatprep.subr.bf16.mxu0 %v10358_v3  ;;  %9146 = vmatprep.subr.bf16.mxu1 %v10360_v33  ;;  %v8345_v3 = vsub.s32 6, %v13991_v37  ;;  %v8341_v33 = vsub.s32 5, %v13991_v37 }
 0xda7   : > { %v8338_v45 = vrot.slane %v8317_v39, %v8337_v1 }
 0xda8   : > { %v8346_v46 = vrot.slane %v8317_v39, %v8345_v3  ;;  %v8342_v35 = vrot.slane %v8317_v39, %v8341_v33 }
 0xda9   : > { %9106 = vmatpush1.bf16.msra.mxu0 %v10357_v5  ;;  %9147 = vmatpush1.bf16.msra.mxu1 %v10359_v61  ;;  %v8350_v5 = vrot.slane %v8317_v39, %v8349_v63 }
 0xdaa   : > { %9107 = vmatprep.subr.bf16.mxu0 %v10366_v8  ;;  %9148 = vmatprep.subr.bf16.mxu1 %v10368_v9 }
 0xdad   : > { %9108 = vmatpush1.bf16.msra.mxu0 %v10365_v44  ;;  %9149 = vmatpush1.bf16.msra.mxu1 %v10367_v18 }
 0xdae   : > { %9109 = vmatprep.subr.bf16.mxu0 %v10374_v21  ;;  %9150 = vmatprep.subr.bf16.mxu1 %v10376_v11 }
 0xdb1   : > { %9110 = vmatpush1.bf16.msra.mxu0 %v10373_v56  ;;  %9151 = vmatpush1.bf16.msra.mxu1 %v10375_v22 }
 0xdb2   : > { %9111 = vmatprep.subr.bf16.mxu0 %v10382_v24  ;;  %9152 = vmatprep.subr.bf16.mxu1 %v10384_v27 }
 0xdb5   : > { %9112 = vmatpush1.bf16.msra.mxu0 %v10381_v34  ;;  %9153 = vmatpush1.bf16.msra.mxu1 %v10383_v36 }
 0xdb8   : > { %9114 = vmatmul.mubr.bf16.vlgmr.msra.gmra.mrb[12].mxu0 %v14006_v41  ;;  %9155 = vmatmul.mubr.bf16.vlgmr.msra.gmra.mrb[124].mxu1 %v14006_v41  ;;  %v8334_v41 = vrot.slane %v8317_v39, %v8333_v17 }
 0xe4b   : > { %v9033_v43 = vpop.f32.mrb[8].mxu0  ;;  %v9074_v31 = vpop.f32.mrb[120].mxu1 }
 0xe4c   : > { %v9034_v58 = vadd.f32 %v9033_v43, %v8322_v32  ;;  %v9075_v50 = vadd.f32 %v9074_v31, %v8330_v55  ;;  %v9035_v23 = vpop.f32.mrb[9].mxu0  ;;  %v9076_v40 = vpop.f32.mrb[121].mxu1 }
 0xe4d   : > { %v9036_v48 = vadd.f32 %v9035_v23, %v8326_v20  ;;  %v9077_v51 = vadd.f32 %v9076_v40, %v8334_v41  ;;  %v9037_v15 = vpop.f32.mrb[10].mxu0  ;;  %v9078_v52 = vpop.f32.mrb[122].mxu1 }
 0xe4e   : > { %v9163_v54 = vmax.f32 %v9034_v58, 0.0  ;;  %v9165_v59 = vmax.f32 %v9075_v50, 0.0  ;;  %v9038_v57 = vpop.f32.mrb[11].mxu0  ;;  %v9079_v28 = vpop.f32.mrb[123].mxu1 }
 0xe4f   : > { %v9164_v29 = vmax.f32 %v9036_v48, 0.0  ;;  %v9166_v6 = vmax.f32 %v9077_v51, 0.0 }
 0xe51   : > { %v9179_v49 = vcombine.low %v9163_v54, %v9164_v29  ;;  %v9180_v30 = vcombine.low %v9165_v59, %v9166_v6 }
 0xe53   : > { %v9187_v26 = vrot.slane %v9179_v49, %v9186_v60  ;;  %v9194_v62 = vrot.slane %v9180_v30, %v9186_v60 }
 0xe55   : > { %v9195_v0 = vcombine.low %v9187_v26, %v9194_v62 }
 0xe57   : > { %9215 = vst [vmem:[%s14193_s15] sm:$0xff] %v9195_v0 }
 0xe8b   : > { %v9115_v61 = vpop.f32.mrb[12].mxu0  ;;  %v9156_v8 = vpop.f32.mrb[124].mxu1 }
 0xe8c   : > { %v9116_v9 = vadd.f32 %v9115_v61, %v8338_v45  ;;  %v9157_v2 = vadd.f32 %v9156_v8, %v8346_v46  ;;  %v9117_v7 = vpop.f32.mrb[13].mxu0  ;;  %v9158_v13 = vpop.f32.mrb[125].mxu1 }
 0xe8d   : > { %v9118_v53 = vadd.f32 %v9117_v7, %v8342_v35  ;;  %v9159_v44 = vadd.f32 %v9158_v13, %v8350_v5  ;;  %v9119_v18 = vpop.f32.mrb[14].mxu0  ;;  %v9160_v21 = vpop.f32.mrb[126].mxu1 }
 0xe8e   : > { %v9167_v11 = vmax.f32 %v9116_v9, 0.0  ;;  %v9169_v14 = vmax.f32 %v9157_v2, 0.0  ;;  %v9120_v19 = vpop.f32.mrb[15].mxu0  ;;  %v9161_v25 = vpop.f32.mrb[127].mxu1 }
 0xe8f   : > { %v9168_v37 = vmax.f32 %v9118_v53, 0.0  ;;  %v9170_v47 = vmax.f32 %v9159_v44, 0.0 }
 0xe91   : > { %v9196_v56 = vcombine.low %v9167_v11, %v9168_v37  ;;  %v9197_v22 = vcombine.low %v9169_v14, %v9170_v47 }
 0xe93   : > { %v9204_v24 = vrot.slane %v9196_v56, %v9186_v60  ;;  %v9211_v27 = vrot.slane %v9197_v22, %v9186_v60 }
 0xe95   : > { %v9212_v34 = vcombine.low %v9204_v24, %v9211_v27 }
 0xe97   : > { %9216 = vst [vmem:[%s14193_s15 + $0x8] sm:$0xff] %v9212_v34 }
 0xe98 PF: > { %s15_s18 = sadd.s32 1, %s12201_s18  }
 0xe99   : > { %p12_p5 = scmp.ge.s32.totalorder %s15_s18, 4  }
 0xe9b   :  { %14 = sbr.rel (!%p12_p5) target bundleno = 1 (0x1), region = 466 }

</bundles_post_ra>
